<compile_context>
chip_gen: v7x
topology: tpu7x:2x2x1
jax: 0.10.0
libtpu: 0.0.40
codegen_flags: <defaults>
</compile_context>

<pallas_src>
import functools

import jax
import jax.numpy as jnp
from jax.experimental import pallas as pl
from jax.experimental.pallas import tpu as pltpu

LRELU_SLOPE = 0.2
BN_EPS = 1e-5


def _round_up(x, m):
    return (x + m - 1) // m * m


def _select_tuning():
    """Per-generation M-tile rows and scoped-VMEM limit (bytes)."""
    try:
        kind = jax.devices()[0].device_kind.lower()
    except Exception:
        kind = ""
    if "v5" in kind or "v6" in kind:
        return 512, 64 * 1024 * 1024          # 128 MiB physical VMEM
    return 256, 32 * 1024 * 1024               # v7x / unknown: conservative


def _choose_tm(m, tm_max):
    """Pick an M-tile: small-M layers get a single (rounded) tile; large-M
    layers prefer a tile that divides M exactly (no row padding copy)."""
    if m <= tm_max:
        return _round_up(m, 16)
    tm = tm_max - tm_max % 16
    for cand in range(tm, tm // 2 - 1, -16):
        if m % cand == 0:
            return cand
    return tm


# --------------------------------------------------------------------------
# Kernels
# --------------------------------------------------------------------------
def _conv_bias_lrelu_kernel(p_ref, w_ref, b_ref, o_ref):
    """One M tile: y = LeakyReLU(P @ W + b). Weights stay VMEM-resident."""
    acc = jnp.dot(p_ref[...], w_ref[...], preferred_element_type=jnp.float32)
    y = acc + b_ref[...]
    o_ref[...] = jnp.where(y >= 0.0, y, LRELU_SLOPE * y).astype(o_ref.dtype)


def _conv_stats_kernel(p_ref, w_ref, y_ref, stats_ref):
    """BN pass A: write pre-BN conv tile + exact f32 per-tile sum / sumsq.

    Padded patch rows are all-zero and the conv has no bias, so padded rows
    contribute exactly nothing to the statistics — no masking needed."""
    acc = jnp.dot(p_ref[...], w_ref[...], preferred_element_type=jnp.float32)
    y_ref[...] = acc.astype(y_ref.dtype)
    s = jnp.sum(acc, axis=0, keepdims=True)            # (1, Np)
    q = jnp.sum(acc * acc, axis=0, keepdims=True)      # (1, Np)
    z = jnp.zeros((6, acc.shape[1]), jnp.float32)
    stats_ref[...] = jnp.concatenate([s, q, z], axis=0)  # rows 0=sum, 1=sumsq


def _bn_lrelu_kernel(y_ref, scale_ref, shift_ref, o_ref):
    """BN pass B: y*scale + shift, then LeakyReLU (pure elementwise)."""
    y = y_ref[...].astype(jnp.float32) * scale_ref[...] + shift_ref[...]
    o_ref[...] = jnp.where(y >= 0.0, y, LRELU_SLOPE * y).astype(o_ref.dtype)


# --------------------------------------------------------------------------
# One Conv_ReLU block
# --------------------------------------------------------------------------
def conv3x3_lrelu(x, prm, *, cout, stride, use_bn, tm_max, vmem_limit):
    """x: (N,H,W,Cin) bf16 activations.  prm: pre-packed layer parameters.
    cout / stride / use_bn are static Python values (not pytree leaves)."""
    n, h, wd, cin = x.shape
    w_pad = prm["w"]            # (kp, np_)  bf16, matmul layout
    g_pad = prm["g"]            # (1, np_)   f32  gamma (or ones)
    b_pad = prm["b"]            # (1, np_)   f32  beta  (or conv bias)
    kp, np_ = w_pad.shape

    oh = (h + 2 - 3) // stride + 1
    ow = (wd + 2 - 3) // stride + 1

    # --- glue: bf16 im2col (zero pad=1, 3x3 taps, given stride) -------------
    # TODO(synk): move this into the kernel (haloed NHWC block + 9 dots).
    xp = jnp.pad(x, ((0, 0), (1, 1), (1, 1), (0, 0)))
    taps = [xp[:, kh:kh + stride * (oh - 1) + 1:stride,
               kw:kw + stride * (ow - 1) + 1:stride, :]
            for kh in range(3) for kw in range(3)]
    # patch element ordering = (kh, kw, cin), matching the weight packing.
    p = jnp.stack(taps, axis=3).reshape(n * oh * ow, 9 * cin)

    m, k = p.shape
    tm = _choose_tm(m, tm_max)
    mp = _round_up(m, tm)
    gm = mp // tm
    if mp != m or kp != k:
        p = jnp.pad(p, ((0, mp - m), (0, kp - k)))       # zero rows / cols

    cparams = pltpu.CompilerParams(dimension_semantics=("parallel",),
                                   vmem_limit_bytes=vmem_limit)

    if not use_bn:
        out = pl.pallas_call(
            _conv_bias_lrelu_kernel,
            out_shape=jax.ShapeDtypeStruct((mp, np_), jnp.bfloat16),
            grid_spec=pltpu.PrefetchScalarGridSpec(
                num_scalar_prefetch=0,
                grid=(gm,),
                in_specs=[
                    pl.BlockSpec((tm, kp), lambda mi: (mi, 0)),    # patches
                    pl.BlockSpec((kp, np_), lambda mi: (0, 0)),    # resident W
                    pl.BlockSpec((1, np_), lambda mi: (0, 0)),     # conv bias
                ],
                out_specs=pl.BlockSpec((tm, np_), lambda mi: (mi, 0)),
            ),
            compiler_params=cparams,
        )(p, w_pad, b_pad)
    else:
        # ---- pass A: conv output + exact per-tile partial statistics ------
        y, stats = pl.pallas_call(
            _conv_stats_kernel,
            out_shape=(jax.ShapeDtypeStruct((mp, np_), jnp.bfloat16),
                       jax.ShapeDtypeStruct((gm * 8, np_), jnp.float32)),
            grid_spec=pltpu.PrefetchScalarGridSpec(
                num_scalar_prefetch=0,
                grid=(gm,),
                in_specs=[
                    pl.BlockSpec((tm, kp), lambda mi: (mi, 0)),    # patches
                    pl.BlockSpec((kp, np_), lambda mi: (0, 0)),    # resident W
                ],
                out_specs=[pl.BlockSpec((tm, np_), lambda mi: (mi, 0)),
                           pl.BlockSpec((8, np_), lambda mi: (mi, 0))],
            ),
            compiler_params=cparams,
        )(p, w_pad)

        # ---- tiny JAX reduction over gm partial-stat blocks ---------------
        stats = stats.reshape(gm, 8, np_)
        sums = jnp.sum(stats[:, 0, :], axis=0)           # (np_,) f32
        sqs = jnp.sum(stats[:, 1, :], axis=0)            # (np_,) f32
        inv_n = 1.0 / m                                    # biased var (train)
        mean = sums * inv_n
        var = jnp.maximum(sqs * inv_n - mean * mean, 0.0)
        scale_row = g_pad[0] * jax.lax.rsqrt(var + BN_EPS)
        shift_row = b_pad[0] - mean * scale_row
        scale = scale_row.reshape(1, np_)
        shift = shift_row.reshape(1, np_)

        # ---- pass B: elementwise normalize + affine + LeakyReLU -----------
        out = pl.pallas_call(
            _bn_lrelu_kernel,
            out_shape=jax.ShapeDtypeStruct((mp, np_), jnp.bfloat16),
            grid_spec=pltpu.PrefetchScalarGridSpec(
                num_scalar_prefetch=0,
                grid=(gm,),
                in_specs=[
                    pl.BlockSpec((tm, np_), lambda mi: (mi, 0)),   # conv out
                    pl.BlockSpec((1, np_), lambda mi: (0, 0)),     # scale
                    pl.BlockSpec((1, np_), lambda mi: (0, 0)),     # shift
                ],
                out_specs=pl.BlockSpec((tm, np_), lambda mi: (mi, 0)),
            ),
            compiler_params=cparams,
        )(y, scale, shift)

    return out[:m, :cout].reshape(n, oh, ow, cout)


# --------------------------------------------------------------------------
# Encoder architecture (7 Conv_ReLU blocks, 3x3 / pad 1):
#   idx: cin -> cout   stride  BN?   bias?
#    0 : nc  -> 64       2     no    yes
#    1 : 64  -> 128      2     no    yes
#    2 : 128 -> 256      1     yes   no
#    3 : 256 -> 256      2     no    yes
#    4 : 256 -> 512      1     yes   no
#    5 : 512 -> 512      2     no    yes
#    6 : 512 -> out_dim  1     yes   no
# --------------------------------------------------------------------------
def encoder_layer_configs(input_nc, output_dim):
    nm = [64, 128, 256, 256, 512, 512, output_dim]
    ss = [2, 2, 1, 2, 1, 2, 1]
    has_bn = [False, False, True, False, True, False, True]
    cins = [input_nc] + nm[:-1]
    return [(cins[i], nm[i], ss[i], has_bn[i], not has_bn[i]) for i in range(7)]


def pack_layer_params(w, g, b):
    """Hoist the matmul-layout transform / padding / bf16 cast out of the
    forward path (done once per layer at parameter creation).  Only arrays
    go into the returned dict (no Python ints -> nothing becomes a tracer
    under jit)."""
    cout, cin = w.shape[0], w.shape[1]
    k = 9 * cin
    # K < 128 (layer 0): keep a narrow full-extent lane block instead of
    # padding to 128.  K >= 128: pad to the next lane multiple.
    kp = _round_up(k, 16) if k < 128 else _round_up(k, 128)
    np_ = _round_up(cout, 128)
    wmat = jnp.transpose(w, (2, 3, 1, 0)).reshape(k, cout).astype(jnp.bfloat16)
    w_pad = jnp.pad(wmat, ((0, kp - k), (0, np_ - cout)))
    g_pad = jnp.pad(g.astype(jnp.float32), (0, np_ - cout)).reshape(1, np_)
    b_pad = jnp.pad(b.astype(jnp.float32), (0, np_ - cout)).reshape(1, np_)
    return {"w": w_pad, "g": g_pad, "b": b_pad}


def init_params(key, input_nc, output_dim):
    params = []
    for (cin, cout, _stride, use_bn, has_bias) in encoder_layer_configs(
            input_nc, output_dim):
        key, kw, kb, kg, kbeta = jax.random.split(key, 5)
        w = 0.05 * jax.random.normal(kw, (cout, cin, 3, 3), jnp.float32)
        if use_bn:
            g = 1.0 + 0.1 * jax.random.normal(kg, (cout,), jnp.float32)
            b = 0.1 * jax.random.normal(kbeta, (cout,), jnp.float32)
        else:
            g = jnp.ones((cout,), jnp.float32)
            b = (0.05 * jax.random.normal(kb, (cout,), jnp.float32)
                 if has_bias else jnp.zeros((cout,), jnp.float32))
        params.append(pack_layer_params(w, g, b))
    return params


def encoder_forward(params, x_nchw, *, input_nc, output_dim, tm_max,
                    vmem_limit):
    # NCHW f32 -> NHWC bf16 (matmul operands are bf16; accumulation stays f32)
    x = jnp.transpose(x_nchw, (0, 2, 3, 1)).astype(jnp.bfloat16)
    for prm, (_cin, cout, stride, use_bn, _has_bias) in zip(
            params, encoder_layer_configs(input_nc, output_dim)):
        x = conv3x3_lrelu(x, prm, cout=cout, stride=stride, use_bn=use_bn,
                          tm_max=tm_max, vmem_limit=vmem_limit)
    # NHWC -> NCHW, back to f32 at the module boundary
    return jnp.transpose(x, (0, 3, 1, 2)).astype(jnp.float32)


if __name__ == "__main__":
    INPUT_NC = 3
    OUTPUT_DIM = 128

    key = jax.random.PRNGKey(0)
    kx, kparams = jax.random.split(key)
    x = jax.random.normal(kx, (2, INPUT_NC, 16, 16), jnp.float32)
    params = init_params(kparams, INPUT_NC, OUTPUT_DIM)

    tm_max, vmem_limit = _select_tuning()
    fwd = jax.jit(functools.partial(encoder_forward,
                                    input_nc=INPUT_NC, output_dim=OUTPUT_DIM,
                                    tm_max=tm_max, vmem_limit=vmem_limit))
    out = fwd(params, x)
    out = jax.block_until_ready(out)

    # 16x16 input -> strides (2,2,1,2,1,2,1) -> 1x1 spatial, OUTPUT_DIM channels
    assert out.shape == (2, OUTPUT_DIM, 1, 1), out.shape
    assert bool(jnp.all(jnp.isfinite(out)))
    print("KERNEL_OK")
</pallas_src>

<mosaic_0001>
module attributes {stable_mosaic.version = 11 : i64} {
  func.func @_conv_bias_lrelu_kernel(%arg0: i32, %arg1: memref<128x32xbf16, #tpu.memory_space<vmem>>, %arg2: memref<32x128xbf16, #tpu.memory_space<vmem>>, %arg3: memref<1x128xf32, #tpu.memory_space<vmem>>, %arg4: memref<128x128xbf16, #tpu.memory_space<vmem>>) attributes {dimension_semantics = [#tpu.dimension_semantics<parallel>], iteration_bounds = array<i64: 1>, scalar_prefetch = 0 : i64, scratch_operands = 0 : i64, tpu.core_type = #tpu.core_type<tc>, window_params = [{transform_indices = @transform_0, window_bounds = array<i64: 128, 32>}, {pipeline_mode = #tpu.pipeline_mode<synchronous>, transform_indices = @transform_1, window_bounds = array<i64: 32, 128>}, {pipeline_mode = #tpu.pipeline_mode<synchronous>, transform_indices = @transform_2, window_bounds = array<i64: 1, 128>}, {transform_indices = @transform_3, window_bounds = array<i64: 128, 128>}]} {
    %c0 = arith.constant 0 : index
    %c0_0 = arith.constant 0 : index
    %0 = vector.load %arg1[%c0, %c0_0] : memref<128x32xbf16, #tpu.memory_space<vmem>>, vector<128x32xbf16>
    %c0_1 = arith.constant 0 : index
    %c0_2 = arith.constant 0 : index
    %1 = vector.load %arg2[%c0_1, %c0_2] : memref<32x128xbf16, #tpu.memory_space<vmem>>, vector<32x128xbf16>
    %cst = arith.constant dense<0.000000e+00> : vector<128x128xf32>
    %2 = tpu.matmul %0, %1, %cst {dimension_numbers = #tpu.dot_dimension_numbers<[1], [0], [0], [1], [0, 0, 1, 1], [], []>} : vector<128x32xbf16>, vector<32x128xbf16>, vector<128x128xf32> -> vector<128x128xf32>
    %c0_3 = arith.constant 0 : index
    %c0_4 = arith.constant 0 : index
    %3 = vector.load %arg3[%c0_3, %c0_4] : memref<1x128xf32, #tpu.memory_space<vmem>>, vector<1x128xf32>
    %4 = vector.broadcast %3 : vector<1x128xf32> to vector<128x128xf32>
    %5 = arith.addf %2, %4 : vector<128x128xf32>
    %cst_5 = arith.constant 0.000000e+00 : f32
    %6 = vector.broadcast %cst_5 : f32 to vector<128x128xf32>
    %7 = arith.cmpf oge, %5, %6 : vector<128x128xf32>
    %cst_6 = arith.constant 2.000000e-01 : f32
    %8 = vector.broadcast %cst_6 : f32 to vector<128x128xf32>
    %9 = arith.mulf %8, %5 : vector<128x128xf32>
    %10 = arith.select %7, %5, %9 : vector<128x128xi1>, vector<128x128xf32>
    %11 = arith.truncf %10 : vector<128x128xf32> to vector<128x128xbf16>
    %c0_7 = arith.constant 0 : index
    %c0_8 = arith.constant 0 : index
    %12 = vector.load %arg4[%c0_7, %c0_8] : memref<128x128xbf16, #tpu.memory_space<vmem>>, vector<128x128xbf16>
    tpu.vector_store %arg4[%c0_7, %c0_8], %11 {strides = array<i32>} : memref<128x128xbf16, #tpu.memory_space<vmem>>, vector<128x128xbf16>,
    return
  }
  func.func @transform_0(%arg0: i32) -> (i32, i32) {
    %c0_i32 = arith.constant 0 : i32
    %c0_i32_0 = arith.constant 0 : i32
    return %arg0, %c0_i32 : i32, i32
  }
  func.func @transform_1(%arg0: i32) -> (i32, i32) {
    %c0_i32 = arith.constant 0 : i32
    %c0_i32_0 = arith.constant 0 : i32
    %c0_i32_1 = arith.constant 0 : i32
    return %c0_i32, %c0_i32_0 : i32, i32
  }
  func.func @transform_2(%arg0: i32) -> (i32, i32) {
    %c0_i32 = arith.constant 0 : i32
    %c0_i32_0 = arith.constant 0 : i32
    %c0_i32_1 = arith.constant 0 : i32
    return %c0_i32, %c0_i32_0 : i32, i32
  }
  func.func @transform_3(%arg0: i32) -> (i32, i32) {
    %c0_i32 = arith.constant 0 : i32
    %c0_i32_0 = arith.constant 0 : i32
    return %arg0, %c0_i32 : i32, i32
  }
}

module attributes {stable_mosaic.version = 11 : i64} {
  func.func @_conv_bias_lrelu_kernel(%arg0: i32, %arg1: memref<32x640xbf16, #tpu.memory_space<vmem>>, %arg2: memref<640x128xbf16, #tpu.memory_space<vmem>>, %arg3: memref<1x128xf32, #tpu.memory_space<vmem>>, %arg4: memref<32x128xbf16, #tpu.memory_space<vmem>>) attributes {dimension_semantics = [#tpu.dimension_semantics<parallel>], iteration_bounds = array<i64: 1>, scalar_prefetch = 0 : i64, scratch_operands = 0 : i64, tpu.core_type = #tpu.core_type<tc>, window_params = [{transform_indices = @transform_0, window_bounds = array<i64: 32, 640>}, {pipeline_mode = #tpu.pipeline_mode<synchronous>, transform_indices = @transform_1, window_bounds = array<i64: 640, 128>}, {pipeline_mode = #tpu.pipeline_mode<synchronous>, transform_indices = @transform_2, window_bounds = array<i64: 1, 128>}, {transform_indices = @transform_3, window_bounds = array<i64: 32, 128>}]} {
    %c0 = arith.constant 0 : index
    %c0_0 = arith.constant 0 : index
    %0 = vector.load %arg1[%c0, %c0_0] : memref<32x640xbf16, #tpu.memory_space<vmem>>, vector<32x640xbf16>
    %c0_1 = arith.constant 0 : index
    %c0_2 = arith.constant 0 : index
    %1 = vector.load %arg2[%c0_1, %c0_2] : memref<640x128xbf16, #tpu.memory_space<vmem>>, vector<640x128xbf16>
    %cst = arith.constant dense<0.000000e+00> : vector<32x128xf32>
    %2 = tpu.matmul %0, %1, %cst {dimension_numbers = #tpu.dot_dimension_numbers<[1], [0], [0], [1], [0, 0, 1, 1], [], []>} : vector<32x640xbf16>, vector<640x128xbf16>, vector<32x128xf32> -> vector<32x128xf32>
    %c0_3 = arith.constant 0 : index
    %c0_4 = arith.constant 0 : index
    %3 = vector.load %arg3[%c0_3, %c0_4] : memref<1x128xf32, #tpu.memory_space<vmem>>, vector<1x128xf32>
    %4 = vector.broadcast %3 : vector<1x128xf32> to vector<32x128xf32>
    %5 = arith.addf %2, %4 : vector<32x128xf32>
    %cst_5 = arith.constant 0.000000e+00 : f32
    %6 = vector.broadcast %cst_5 : f32 to vector<32x128xf32>
    %7 = arith.cmpf oge, %5, %6 : vector<32x128xf32>
    %cst_6 = arith.constant 2.000000e-01 : f32
    %8 = vector.broadcast %cst_6 : f32 to vector<32x128xf32>
    %9 = arith.mulf %8, %5 : vector<32x128xf32>
    %10 = arith.select %7, %5, %9 : vector<32x128xi1>, vector<32x128xf32>
    %11 = arith.truncf %10 : vector<32x128xf32> to vector<32x128xbf16>
    %c0_7 = arith.constant 0 : index
    %c0_8 = arith.constant 0 : index
    %12 = vector.load %arg4[%c0_7, %c0_8] : memref<32x128xbf16, #tpu.memory_space<vmem>>, vector<32x128xbf16>
    tpu.vector_store %arg4[%c0_7, %c0_8], %11 {strides = array<i32>} : memref<32x128xbf16, #tpu.memory_space<vmem>>, vector<32x128xbf16>,
    return
  }
  func.func @transform_0(%arg0: i32) -> (i32, i32) {
    %c0_i32 = arith.constant 0 : i32
    %c0_i32_0 = arith.constant 0 : i32
    return %arg0, %c0_i32 : i32, i32
  }
  func.func @transform_1(%arg0: i32) -> (i32, i32) {
    %c0_i32 = arith.constant 0 : i32
    %c0_i32_0 = arith.constant 0 : i32
    %c0_i32_1 = arith.constant 0 : i32
    return %c0_i32, %c0_i32_0 : i32, i32
  }
  func.func @transform_2(%arg0: i32) -> (i32, i32) {
    %c0_i32 = arith.constant 0 : i32
    %c0_i32_0 = arith.constant 0 : i32
    %c0_i32_1 = arith.constant 0 : i32
    return %c0_i32, %c0_i32_0 : i32, i32
  }
  func.func @transform_3(%arg0: i32) -> (i32, i32) {
    %c0_i32 = arith.constant 0 : i32
    %c0_i32_0 = arith.constant 0 : i32
    return %arg0, %c0_i32 : i32, i32
  }
}

module attributes {stable_mosaic.version = 11 : i64} {
  func.func @_conv_stats_kernel(%arg0: i32, %arg1: memref<32x1152xbf16, #tpu.memory_space<vmem>>, %arg2: memref<1152x256xbf16, #tpu.memory_space<vmem>>, %arg3: memref<32x256xbf16, #tpu.memory_space<vmem>>, %arg4: memref<8x256xf32, #tpu.memory_space<vmem>>) attributes {dimension_semantics = [#tpu.dimension_semantics<parallel>], iteration_bounds = array<i64: 1>, scalar_prefetch = 0 : i64, scratch_operands = 0 : i64, tpu.core_type = #tpu.core_type<tc>, window_params = [{transform_indices = @transform_0, window_bounds = array<i64: 32, 1152>}, {pipeline_mode = #tpu.pipeline_mode<synchronous>, transform_indices = @transform_1, window_bounds = array<i64: 1152, 256>}, {transform_indices = @transform_2, window_bounds = array<i64: 32, 256>}, {transform_indices = @transform_3, window_bounds = array<i64: 8, 256>}]} {
    %c0 = arith.constant 0 : index
    %c0_0 = arith.constant 0 : index
    %0 = vector.load %arg1[%c0, %c0_0] : memref<32x1152xbf16, #tpu.memory_space<vmem>>, vector<32x1152xbf16>
    %c0_1 = arith.constant 0 : index
    %c0_2 = arith.constant 0 : index
    %1 = vector.load %arg2[%c0_1, %c0_2] : memref<1152x256xbf16, #tpu.memory_space<vmem>>, vector<1152x256xbf16>
    %cst = arith.constant dense<0.000000e+00> : vector<32x256xf32>
    %2 = tpu.matmul %0, %1, %cst {dimension_numbers = #tpu.dot_dimension_numbers<[1], [0], [0], [1], [0, 0, 1, 1], [], []>} : vector<32x1152xbf16>, vector<1152x256xbf16>, vector<32x256xf32> -> vector<32x256xf32>
    %3 = arith.truncf %2 : vector<32x256xf32> to vector<32x256xbf16>
    %c0_3 = arith.constant 0 : index
    %c0_4 = arith.constant 0 : index
    %4 = vector.load %arg3[%c0_3, %c0_4] : memref<32x256xbf16, #tpu.memory_space<vmem>>, vector<32x256xbf16>
    tpu.vector_store %arg3[%c0_3, %c0_4], %3 {strides = array<i32>} : memref<32x256xbf16, #tpu.memory_space<vmem>>, vector<32x256xbf16>,
    %cst_5 = arith.constant dense<0.000000e+00> : vector<256xf32>
    %5 = vector.multi_reduction <add>, %2, %cst_5 [0] : vector<32x256xf32> to vector<256xf32>
    %6 = vector.shape_cast %5 : vector<256xf32> to vector<1x256xf32>
    %7 = arith.mulf %2, %2 : vector<32x256xf32>
    %cst_6 = arith.constant dense<0.000000e+00> : vector<256xf32>
    %8 = vector.multi_reduction <add>, %7, %cst_6 [0] : vector<32x256xf32> to vector<256xf32>
    %9 = vector.shape_cast %8 : vector<256xf32> to vector<1x256xf32>
    %cst_7 = arith.constant 0.000000e+00 : f32
    %10 = vector.broadcast %cst_7 : f32 to vector<6x256xf32>
    %11 = tpu.concatenate %6, %9, %10 in 0 : vector<1x256xf32>, vector<1x256xf32>, vector<6x256xf32> -> vector<8x256xf32>
    %c0_8 = arith.constant 0 : index
    %c0_9 = arith.constant 0 : index
    %12 = vector.load %arg4[%c0_8, %c0_9] : memref<8x256xf32, #tpu.memory_space<vmem>>, vector<8x256xf32>
    tpu.vector_store %arg4[%c0_8, %c0_9], %11 {strides = array<i32>} : memref<8x256xf32, #tpu.memory_space<vmem>>, vector<8x256xf32>,
    return
  }
  func.func @transform_0(%arg0: i32) -> (i32, i32) {
    %c0_i32 = arith.constant 0 : i32
    %c0_i32_0 = arith.constant 0 : i32
    return %arg0, %c0_i32 : i32, i32
  }
  func.func @transform_1(%arg0: i32) -> (i32, i32) {
    %c0_i32 = arith.constant 0 : i32
    %c0_i32_0 = arith.constant 0 : i32
    %c0_i32_1 = arith.constant 0 : i32
    return %c0_i32, %c0_i32_0 : i32, i32
  }
  func.func @transform_2(%arg0: i32) -> (i32, i32) {
    %c0_i32 = arith.constant 0 : i32
    %c0_i32_0 = arith.constant 0 : i32
    return %arg0, %c0_i32 : i32, i32
  }
  func.func @transform_3(%arg0: i32) -> (i32, i32) {
    %c0_i32 = arith.constant 0 : i32
    %c0_i32_0 = arith.constant 0 : i32
    return %arg0, %c0_i32 : i32, i32
  }
}

module attributes {stable_mosaic.version = 11 : i64} {
  func.func @_bn_lrelu_kernel(%arg0: i32, %arg1: memref<32x256xbf16, #tpu.memory_space<vmem>>, %arg2: memref<1x256xf32, #tpu.memory_space<vmem>>, %arg3: memref<1x256xf32, #tpu.memory_space<vmem>>, %arg4: memref<32x256xbf16, #tpu.memory_space<vmem>>) attributes {dimension_semantics = [#tpu.dimension_semantics<parallel>], iteration_bounds = array<i64: 1>, scalar_prefetch = 0 : i64, scratch_operands = 0 : i64, tpu.core_type = #tpu.core_type<tc>, window_params = [{transform_indices = @transform_0, window_bounds = array<i64: 32, 256>}, {pipeline_mode = #tpu.pipeline_mode<synchronous>, transform_indices = @transform_1, window_bounds = array<i64: 1, 256>}, {pipeline_mode = #tpu.pipeline_mode<synchronous>, transform_indices = @transform_2, window_bounds = array<i64: 1, 256>}, {transform_indices = @transform_3, window_bounds = array<i64: 32, 256>}]} {
    %c0 = arith.constant 0 : index
    %c0_0 = arith.constant 0 : index
    %0 = vector.load %arg1[%c0, %c0_0] : memref<32x256xbf16, #tpu.memory_space<vmem>>, vector<32x256xbf16>
    %1 = arith.extf %0 : vector<32x256xbf16> to vector<32x256xf32>
    %c0_1 = arith.constant 0 : index
    %c0_2 = arith.constant 0 : index
    %2 = vector.load %arg2[%c0_1, %c0_2] : memref<1x256xf32, #tpu.memory_space<vmem>>, vector<1x256xf32>
    %3 = vector.broadcast %2 : vector<1x256xf32> to vector<32x256xf32>
    %4 = arith.mulf %1, %3 : vector<32x256xf32>
    %c0_3 = arith.constant 0 : index
    %c0_4 = arith.constant 0 : index
    %5 = vector.load %arg3[%c0_3, %c0_4] : memref<1x256xf32, #tpu.memory_space<vmem>>, vector<1x256xf32>
    %6 = vector.broadcast %5 : vector<1x256xf32> to vector<32x256xf32>
    %7 = arith.addf %4, %6 : vector<32x256xf32>
    %cst = arith.constant 0.000000e+00 : f32
    %8 = vector.broadcast %cst : f32 to vector<32x256xf32>
    %9 = arith.cmpf oge, %7, %8 : vector<32x256xf32>
    %cst_5 = arith.constant 2.000000e-01 : f32
    %10 = vector.broadcast %cst_5 : f32 to vector<32x256xf32>
    %11 = arith.mulf %10, %7 : vector<32x256xf32>
    %12 = arith.select %9, %7, %11 : vector<32x256xi1>, vector<32x256xf32>
    %13 = arith.truncf %12 : vector<32x256xf32> to vector<32x256xbf16>
    %c0_6 = arith.constant 0 : index
    %c0_7 = arith.constant 0 : index
    %14 = vector.load %arg4[%c0_6, %c0_7] : memref<32x256xbf16, #tpu.memory_space<vmem>>, vector<32x256xbf16>
    tpu.vector_store %arg4[%c0_6, %c0_7], %13 {strides = array<i32>} : memref<32x256xbf16, #tpu.memory_space<vmem>>, vector<32x256xbf16>,
    return
  }
  func.func @transform_0(%arg0: i32) -> (i32, i32) {
    %c0_i32 = arith.constant 0 : i32
    %c0_i32_0 = arith.constant 0 : i32
    return %arg0, %c0_i32 : i32, i32
  }
  func.func @transform_1(%arg0: i32) -> (i32, i32) {
    %c0_i32 = arith.constant 0 : i32
    %c0_i32_0 = arith.constant 0 : i32
    %c0_i32_1 = arith.constant 0 : i32
    return %c0_i32, %c0_i32_0 : i32, i32
  }
  func.func @transform_2(%arg0: i32) -> (i32, i32) {
    %c0_i32 = arith.constant 0 : i32
    %c0_i32_0 = arith.constant 0 : i32
    %c0_i32_1 = arith.constant 0 : i32
    return %c0_i32, %c0_i32_0 : i32, i32
  }
  func.func @transform_3(%arg0: i32) -> (i32, i32) {
    %c0_i32 = arith.constant 0 : i32
    %c0_i32_0 = arith.constant 0 : i32
    return %arg0, %c0_i32 : i32, i32
  }
}

module attributes {stable_mosaic.version = 11 : i64} {
  func.func @_conv_bias_lrelu_kernel(%arg0: i32, %arg1: memref<16x2304xbf16, #tpu.memory_space<vmem>>, %arg2: memref<2304x256xbf16, #tpu.memory_space<vmem>>, %arg3: memref<1x256xf32, #tpu.memory_space<vmem>>, %arg4: memref<16x256xbf16, #tpu.memory_space<vmem>>) attributes {dimension_semantics = [#tpu.dimension_semantics<parallel>], iteration_bounds = array<i64: 1>, scalar_prefetch = 0 : i64, scratch_operands = 0 : i64, tpu.core_type = #tpu.core_type<tc>, window_params = [{transform_indices = @transform_0, window_bounds = array<i64: 16, 2304>}, {pipeline_mode = #tpu.pipeline_mode<synchronous>, transform_indices = @transform_1, window_bounds = array<i64: 2304, 256>}, {pipeline_mode = #tpu.pipeline_mode<synchronous>, transform_indices = @transform_2, window_bounds = array<i64: 1, 256>}, {transform_indices = @transform_3, window_bounds = array<i64: 16, 256>}]} {
    %c0 = arith.constant 0 : index
    %c0_0 = arith.constant 0 : index
    %0 = vector.load %arg1[%c0, %c0_0] : memref<16x2304xbf16, #tpu.memory_space<vmem>>, vector<16x2304xbf16>
    %c0_1 = arith.constant 0 : index
    %c0_2 = arith.constant 0 : index
    %1 = vector.load %arg2[%c0_1, %c0_2] : memref<2304x256xbf16, #tpu.memory_space<vmem>>, vector<2304x256xbf16>
    %cst = arith.constant dense<0.000000e+00> : vector<16x256xf32>
    %2 = tpu.matmul %0, %1, %cst {dimension_numbers = #tpu.dot_dimension_numbers<[1], [0], [0], [1], [0, 0, 1, 1], [], []>} : vector<16x2304xbf16>, vector<2304x256xbf16>, vector<16x256xf32> -> vector<16x256xf32>
    %c0_3 = arith.constant 0 : index
    %c0_4 = arith.constant 0 : index
    %3 = vector.load %arg3[%c0_3, %c0_4] : memref<1x256xf32, #tpu.memory_space<vmem>>, vector<1x256xf32>
    %4 = vector.broadcast %3 : vector<1x256xf32> to vector<16x256xf32>
    %5 = arith.addf %2, %4 : vector<16x256xf32>
    %cst_5 = arith.constant 0.000000e+00 : f32
    %6 = vector.broadcast %cst_5 : f32 to vector<16x256xf32>
    %7 = arith.cmpf oge, %5, %6 : vector<16x256xf32>
    %cst_6 = arith.constant 2.000000e-01 : f32
    %8 = vector.broadcast %cst_6 : f32 to vector<16x256xf32>
    %9 = arith.mulf %8, %5 : vector<16x256xf32>
    %10 = arith.select %7, %5, %9 : vector<16x256xi1>, vector<16x256xf32>
    %11 = arith.truncf %10 : vector<16x256xf32> to vector<16x256xbf16>
    %c0_7 = arith.constant 0 : index
    %c0_8 = arith.constant 0 : index
    %12 = vector.load %arg4[%c0_7, %c0_8] : memref<16x256xbf16, #tpu.memory_space<vmem>>, vector<16x256xbf16>
    tpu.vector_store %arg4[%c0_7, %c0_8], %11 {strides = array<i32>} : memref<16x256xbf16, #tpu.memory_space<vmem>>, vector<16x256xbf16>,
    return
  }
  func.func @transform_0(%arg0: i32) -> (i32, i32) {
    %c0_i32 = arith.constant 0 : i32
    %c0_i32_0 = arith.constant 0 : i32
    return %arg0, %c0_i32 : i32, i32
  }
  func.func @transform_1(%arg0: i32) -> (i32, i32) {
    %c0_i32 = arith.constant 0 : i32
    %c0_i32_0 = arith.constant 0 : i32
    %c0_i32_1 = arith.constant 0 : i32
    return %c0_i32, %c0_i32_0 : i32, i32
  }
  func.func @transform_2(%arg0: i32) -> (i32, i32) {
    %c0_i32 = arith.constant 0 : i32
    %c0_i32_0 = arith.constant 0 : i32
    %c0_i32_1 = arith.constant 0 : i32
    return %c0_i32, %c0_i32_0 : i32, i32
  }
  func.func @transform_3(%arg0: i32) -> (i32, i32) {
    %c0_i32 = arith.constant 0 : i32
    %c0_i32_0 = arith.constant 0 : i32
    return %arg0, %c0_i32 : i32, i32
  }
}

module attributes {stable_mosaic.version = 11 : i64} {
  func.func @_conv_stats_kernel(%arg0: i32, %arg1: memref<16x2304xbf16, #tpu.memory_space<vmem>>, %arg2: memref<2304x512xbf16, #tpu.memory_space<vmem>>, %arg3: memref<16x512xbf16, #tpu.memory_space<vmem>>, %arg4: memref<8x512xf32, #tpu.memory_space<vmem>>) attributes {dimension_semantics = [#tpu.dimension_semantics<parallel>], iteration_bounds = array<i64: 1>, scalar_prefetch = 0 : i64, scratch_operands = 0 : i64, tpu.core_type = #tpu.core_type<tc>, window_params = [{transform_indices = @transform_0, window_bounds = array<i64: 16, 2304>}, {pipeline_mode = #tpu.pipeline_mode<synchronous>, transform_indices = @transform_1, window_bounds = array<i64: 2304, 512>}, {transform_indices = @transform_2, window_bounds = array<i64: 16, 512>}, {transform_indices = @transform_3, window_bounds = array<i64: 8, 512>}]} {
    %c0 = arith.constant 0 : index
    %c0_0 = arith.constant 0 : index
    %0 = vector.load %arg1[%c0, %c0_0] : memref<16x2304xbf16, #tpu.memory_space<vmem>>, vector<16x2304xbf16>
    %c0_1 = arith.constant 0 : index
    %c0_2 = arith.constant 0 : index
    %1 = vector.load %arg2[%c0_1, %c0_2] : memref<2304x512xbf16, #tpu.memory_space<vmem>>, vector<2304x512xbf16>
    %cst = arith.constant dense<0.000000e+00> : vector<16x512xf32>
    %2 = tpu.matmul %0, %1, %cst {dimension_numbers = #tpu.dot_dimension_numbers<[1], [0], [0], [1], [0, 0, 1, 1], [], []>} : vector<16x2304xbf16>, vector<2304x512xbf16>, vector<16x512xf32> -> vector<16x512xf32>
    %3 = arith.truncf %2 : vector<16x512xf32> to vector<16x512xbf16>
    %c0_3 = arith.constant 0 : index
    %c0_4 = arith.constant 0 : index
    %4 = vector.load %arg3[%c0_3, %c0_4] : memref<16x512xbf16, #tpu.memory_space<vmem>>, vector<16x512xbf16>
    tpu.vector_store %arg3[%c0_3, %c0_4], %3 {strides = array<i32>} : memref<16x512xbf16, #tpu.memory_space<vmem>>, vector<16x512xbf16>,
    %cst_5 = arith.constant dense<0.000000e+00> : vector<512xf32>
    %5 = vector.multi_reduction <add>, %2, %cst_5 [0] : vector<16x512xf32> to vector<512xf32>
    %6 = vector.shape_cast %5 : vector<512xf32> to vector<1x512xf32>
    %7 = arith.mulf %2, %2 : vector<16x512xf32>
    %cst_6 = arith.constant dense<0.000000e+00> : vector<512xf32>
    %8 = vector.multi_reduction <add>, %7, %cst_6 [0] : vector<16x512xf32> to vector<512xf32>
    %9 = vector.shape_cast %8 : vector<512xf32> to vector<1x512xf32>
    %cst_7 = arith.constant 0.000000e+00 : f32
    %10 = vector.broadcast %cst_7 : f32 to vector<6x512xf32>
    %11 = tpu.concatenate %6, %9, %10 in 0 : vector<1x512xf32>, vector<1x512xf32>, vector<6x512xf32> -> vector<8x512xf32>
    %c0_8 = arith.constant 0 : index
    %c0_9 = arith.constant 0 : index
    %12 = vector.load %arg4[%c0_8, %c0_9] : memref<8x512xf32, #tpu.memory_space<vmem>>, vector<8x512xf32>
    tpu.vector_store %arg4[%c0_8, %c0_9], %11 {strides = array<i32>} : memref<8x512xf32, #tpu.memory_space<vmem>>, vector<8x512xf32>,
    return
  }
  func.func @transform_0(%arg0: i32) -> (i32, i32) {
    %c0_i32 = arith.constant 0 : i32
    %c0_i32_0 = arith.constant 0 : i32
    return %arg0, %c0_i32 : i32, i32
  }
  func.func @transform_1(%arg0: i32) -> (i32, i32) {
    %c0_i32 = arith.constant 0 : i32
    %c0_i32_0 = arith.constant 0 : i32
    %c0_i32_1 = arith.constant 0 : i32
    return %c0_i32, %c0_i32_0 : i32, i32
  }
  func.func @transform_2(%arg0: i32) -> (i32, i32) {
    %c0_i32 = arith.constant 0 : i32
    %c0_i32_0 = arith.constant 0 : i32
    return %arg0, %c0_i32 : i32, i32
  }
  func.func @transform_3(%arg0: i32) -> (i32, i32) {
    %c0_i32 = arith.constant 0 : i32
    %c0_i32_0 = arith.constant 0 : i32
    return %arg0, %c0_i32 : i32, i32
  }
}

module attributes {stable_mosaic.version = 11 : i64} {
  func.func @_bn_lrelu_kernel(%arg0: i32, %arg1: memref<16x512xbf16, #tpu.memory_space<vmem>>, %arg2: memref<1x512xf32, #tpu.memory_space<vmem>>, %arg3: memref<1x512xf32, #tpu.memory_space<vmem>>, %arg4: memref<16x512xbf16, #tpu.memory_space<vmem>>) attributes {dimension_semantics = [#tpu.dimension_semantics<parallel>], iteration_bounds = array<i64: 1>, scalar_prefetch = 0 : i64, scratch_operands = 0 : i64, tpu.core_type = #tpu.core_type<tc>, window_params = [{transform_indices = @transform_0, window_bounds = array<i64: 16, 512>}, {pipeline_mode = #tpu.pipeline_mode<synchronous>, transform_indices = @transform_1, window_bounds = array<i64: 1, 512>}, {pipeline_mode = #tpu.pipeline_mode<synchronous>, transform_indices = @transform_2, window_bounds = array<i64: 1, 512>}, {transform_indices = @transform_3, window_bounds = array<i64: 16, 512>}]} {
    %c0 = arith.constant 0 : index
    %c0_0 = arith.constant 0 : index
    %0 = vector.load %arg1[%c0, %c0_0] : memref<16x512xbf16, #tpu.memory_space<vmem>>, vector<16x512xbf16>
    %1 = arith.extf %0 : vector<16x512xbf16> to vector<16x512xf32>
    %c0_1 = arith.constant 0 : index
    %c0_2 = arith.constant 0 : index
    %2 = vector.load %arg2[%c0_1, %c0_2] : memref<1x512xf32, #tpu.memory_space<vmem>>, vector<1x512xf32>
    %3 = vector.broadcast %2 : vector<1x512xf32> to vector<16x512xf32>
    %4 = arith.mulf %1, %3 : vector<16x512xf32>
    %c0_3 = arith.constant 0 : index
    %c0_4 = arith.constant 0 : index
    %5 = vector.load %arg3[%c0_3, %c0_4] : memref<1x512xf32, #tpu.memory_space<vmem>>, vector<1x512xf32>
    %6 = vector.broadcast %5 : vector<1x512xf32> to vector<16x512xf32>
    %7 = arith.addf %4, %6 : vector<16x512xf32>
    %cst = arith.constant 0.000000e+00 : f32
    %8 = vector.broadcast %cst : f32 to vector<16x512xf32>
    %9 = arith.cmpf oge, %7, %8 : vector<16x512xf32>
    %cst_5 = arith.constant 2.000000e-01 : f32
    %10 = vector.broadcast %cst_5 : f32 to vector<16x512xf32>
    %11 = arith.mulf %10, %7 : vector<16x512xf32>
    %12 = arith.select %9, %7, %11 : vector<16x512xi1>, vector<16x512xf32>
    %13 = arith.truncf %12 : vector<16x512xf32> to vector<16x512xbf16>
    %c0_6 = arith.constant 0 : index
    %c0_7 = arith.constant 0 : index
    %14 = vector.load %arg4[%c0_6, %c0_7] : memref<16x512xbf16, #tpu.memory_space<vmem>>, vector<16x512xbf16>
    tpu.vector_store %arg4[%c0_6, %c0_7], %13 {strides = array<i32>} : memref<16x512xbf16, #tpu.memory_space<vmem>>, vector<16x512xbf16>,
    return
  }
  func.func @transform_0(%arg0: i32) -> (i32, i32) {
    %c0_i32 = arith.constant 0 : i32
    %c0_i32_0 = arith.constant 0 : i32
    return %arg0, %c0_i32 : i32, i32
  }
  func.func @transform_1(%arg0: i32) -> (i32, i32) {
    %c0_i32 = arith.constant 0 : i32
    %c0_i32_0 = arith.constant 0 : i32
    %c0_i32_1 = arith.constant 0 : i32
    return %c0_i32, %c0_i32_0 : i32, i32
  }
  func.func @transform_2(%arg0: i32) -> (i32, i32) {
    %c0_i32 = arith.constant 0 : i32
    %c0_i32_0 = arith.constant 0 : i32
    %c0_i32_1 = arith.constant 0 : i32
    return %c0_i32, %c0_i32_0 : i32, i32
  }
  func.func @transform_3(%arg0: i32) -> (i32, i32) {
    %c0_i32 = arith.constant 0 : i32
    %c0_i32_0 = arith.constant 0 : i32
    return %arg0, %c0_i32 : i32, i32
  }
}

module attributes {stable_mosaic.version = 11 : i64} {
  func.func @_conv_bias_lrelu_kernel(%arg0: i32, %arg1: memref<16x4608xbf16, #tpu.memory_space<vmem>>, %arg2: memref<4608x512xbf16, #tpu.memory_space<vmem>>, %arg3: memref<1x512xf32, #tpu.memory_space<vmem>>, %arg4: memref<16x512xbf16, #tpu.memory_space<vmem>>) attributes {dimension_semantics = [#tpu.dimension_semantics<parallel>], iteration_bounds = array<i64: 1>, scalar_prefetch = 0 : i64, scratch_operands = 0 : i64, tpu.core_type = #tpu.core_type<tc>, window_params = [{transform_indices = @transform_0, window_bounds = array<i64: 16, 4608>}, {pipeline_mode = #tpu.pipeline_mode<synchronous>, transform_indices = @transform_1, window_bounds = array<i64: 4608, 512>}, {pipeline_mode = #tpu.pipeline_mode<synchronous>, transform_indices = @transform_2, window_bounds = array<i64: 1, 512>}, {transform_indices = @transform_3, window_bounds = array<i64: 16, 512>}]} {
    %c0 = arith.constant 0 : index
    %c0_0 = arith.constant 0 : index
    %0 = vector.load %arg1[%c0, %c0_0] : memref<16x4608xbf16, #tpu.memory_space<vmem>>, vector<16x4608xbf16>
    %c0_1 = arith.constant 0 : index
    %c0_2 = arith.constant 0 : index
    %1 = vector.load %arg2[%c0_1, %c0_2] : memref<4608x512xbf16, #tpu.memory_space<vmem>>, vector<4608x512xbf16>
    %cst = arith.constant dense<0.000000e+00> : vector<16x512xf32>
    %2 = tpu.matmul %0, %1, %cst {dimension_numbers = #tpu.dot_dimension_numbers<[1], [0], [0], [1], [0, 0, 1, 1], [], []>} : vector<16x4608xbf16>, vector<4608x512xbf16>, vector<16x512xf32> -> vector<16x512xf32>
    %c0_3 = arith.constant 0 : index
    %c0_4 = arith.constant 0 : index
    %3 = vector.load %arg3[%c0_3, %c0_4] : memref<1x512xf32, #tpu.memory_space<vmem>>, vector<1x512xf32>
    %4 = vector.broadcast %3 : vector<1x512xf32> to vector<16x512xf32>
    %5 = arith.addf %2, %4 : vector<16x512xf32>
    %cst_5 = arith.constant 0.000000e+00 : f32
    %6 = vector.broadcast %cst_5 : f32 to vector<16x512xf32>
    %7 = arith.cmpf oge, %5, %6 : vector<16x512xf32>
    %cst_6 = arith.constant 2.000000e-01 : f32
    %8 = vector.broadcast %cst_6 : f32 to vector<16x512xf32>
    %9 = arith.mulf %8, %5 : vector<16x512xf32>
    %10 = arith.select %7, %5, %9 : vector<16x512xi1>, vector<16x512xf32>
    %11 = arith.truncf %10 : vector<16x512xf32> to vector<16x512xbf16>
    %c0_7 = arith.constant 0 : index
    %c0_8 = arith.constant 0 : index
    %12 = vector.load %arg4[%c0_7, %c0_8] : memref<16x512xbf16, #tpu.memory_space<vmem>>, vector<16x512xbf16>
    tpu.vector_store %arg4[%c0_7, %c0_8], %11 {strides = array<i32>} : memref<16x512xbf16, #tpu.memory_space<vmem>>, vector<16x512xbf16>,
    return
  }
  func.func @transform_0(%arg0: i32) -> (i32, i32) {
    %c0_i32 = arith.constant 0 : i32
    %c0_i32_0 = arith.constant 0 : i32
    return %arg0, %c0_i32 : i32, i32
  }
  func.func @transform_1(%arg0: i32) -> (i32, i32) {
    %c0_i32 = arith.constant 0 : i32
    %c0_i32_0 = arith.constant 0 : i32
    %c0_i32_1 = arith.constant 0 : i32
    return %c0_i32, %c0_i32_0 : i32, i32
  }
  func.func @transform_2(%arg0: i32) -> (i32, i32) {
    %c0_i32 = arith.constant 0 : i32
    %c0_i32_0 = arith.constant 0 : i32
    %c0_i32_1 = arith.constant 0 : i32
    return %c0_i32, %c0_i32_0 : i32, i32
  }
  func.func @transform_3(%arg0: i32) -> (i32, i32) {
    %c0_i32 = arith.constant 0 : i32
    %c0_i32_0 = arith.constant 0 : i32
    return %arg0, %c0_i32 : i32, i32
  }
}

module attributes {stable_mosaic.version = 11 : i64} {
  func.func @_conv_stats_kernel(%arg0: i32, %arg1: memref<16x4608xbf16, #tpu.memory_space<vmem>>, %arg2: memref<4608x128xbf16, #tpu.memory_space<vmem>>, %arg3: memref<16x128xbf16, #tpu.memory_space<vmem>>, %arg4: memref<8x128xf32, #tpu.memory_space<vmem>>) attributes {dimension_semantics = [#tpu.dimension_semantics<parallel>], iteration_bounds = array<i64: 1>, scalar_prefetch = 0 : i64, scratch_operands = 0 : i64, tpu.core_type = #tpu.core_type<tc>, window_params = [{transform_indices = @transform_0, window_bounds = array<i64: 16, 4608>}, {pipeline_mode = #tpu.pipeline_mode<synchronous>, transform_indices = @transform_1, window_bounds = array<i64: 4608, 128>}, {transform_indices = @transform_2, window_bounds = array<i64: 16, 128>}, {transform_indices = @transform_3, window_bounds = array<i64: 8, 128>}]} {
    %c0 = arith.constant 0 : index
    %c0_0 = arith.constant 0 : index
    %0 = vector.load %arg1[%c0, %c0_0] : memref<16x4608xbf16, #tpu.memory_space<vmem>>, vector<16x4608xbf16>
    %c0_1 = arith.constant 0 : index
    %c0_2 = arith.constant 0 : index
    %1 = vector.load %arg2[%c0_1, %c0_2] : memref<4608x128xbf16, #tpu.memory_space<vmem>>, vector<4608x128xbf16>
    %cst = arith.constant dense<0.000000e+00> : vector<16x128xf32>
    %2 = tpu.matmul %0, %1, %cst {dimension_numbers = #tpu.dot_dimension_numbers<[1], [0], [0], [1], [0, 0, 1, 1], [], []>} : vector<16x4608xbf16>, vector<4608x128xbf16>, vector<16x128xf32> -> vector<16x128xf32>
    %3 = arith.truncf %2 : vector<16x128xf32> to vector<16x128xbf16>
    %c0_3 = arith.constant 0 : index
    %c0_4 = arith.constant 0 : index
    %4 = vector.load %arg3[%c0_3, %c0_4] : memref<16x128xbf16, #tpu.memory_space<vmem>>, vector<16x128xbf16>
    tpu.vector_store %arg3[%c0_3, %c0_4], %3 {strides = array<i32>} : memref<16x128xbf16, #tpu.memory_space<vmem>>, vector<16x128xbf16>,
    %cst_5 = arith.constant dense<0.000000e+00> : vector<128xf32>
    %5 = vector.multi_reduction <add>, %2, %cst_5 [0] : vector<16x128xf32> to vector<128xf32>
    %6 = vector.shape_cast %5 : vector<128xf32> to vector<1x128xf32>
    %7 = arith.mulf %2, %2 : vector<16x128xf32>
    %cst_6 = arith.constant dense<0.000000e+00> : vector<128xf32>
    %8 = vector.multi_reduction <add>, %7, %cst_6 [0] : vector<16x128xf32> to vector<128xf32>
    %9 = vector.shape_cast %8 : vector<128xf32> to vector<1x128xf32>
    %cst_7 = arith.constant 0.000000e+00 : f32
    %10 = vector.broadcast %cst_7 : f32 to vector<6x128xf32>
    %11 = tpu.concatenate %6, %9, %10 in 0 : vector<1x128xf32>, vector<1x128xf32>, vector<6x128xf32> -> vector<8x128xf32>
    %c0_8 = arith.constant 0 : index
    %c0_9 = arith.constant 0 : index
    %12 = vector.load %arg4[%c0_8, %c0_9] : memref<8x128xf32, #tpu.memory_space<vmem>>, vector<8x128xf32>
    tpu.vector_store %arg4[%c0_8, %c0_9], %11 {strides = array<i32>} : memref<8x128xf32, #tpu.memory_space<vmem>>, vector<8x128xf32>,
    return
  }
  func.func @transform_0(%arg0: i32) -> (i32, i32) {
    %c0_i32 = arith.constant 0 : i32
    %c0_i32_0 = arith.constant 0 : i32
    return %arg0, %c0_i32 : i32, i32
  }
  func.func @transform_1(%arg0: i32) -> (i32, i32) {
    %c0_i32 = arith.constant 0 : i32
    %c0_i32_0 = arith.constant 0 : i32
    %c0_i32_1 = arith.constant 0 : i32
    return %c0_i32, %c0_i32_0 : i32, i32
  }
  func.func @transform_2(%arg0: i32) -> (i32, i32) {
    %c0_i32 = arith.constant 0 : i32
    %c0_i32_0 = arith.constant 0 : i32
    return %arg0, %c0_i32 : i32, i32
  }
  func.func @transform_3(%arg0: i32) -> (i32, i32) {
    %c0_i32 = arith.constant 0 : i32
    %c0_i32_0 = arith.constant 0 : i32
    return %arg0, %c0_i32 : i32, i32
  }
}

module attributes {stable_mosaic.version = 11 : i64} {
  func.func @_bn_lrelu_kernel(%arg0: i32, %arg1: memref<16x128xbf16, #tpu.memory_space<vmem>>, %arg2: memref<1x128xf32, #tpu.memory_space<vmem>>, %arg3: memref<1x128xf32, #tpu.memory_space<vmem>>, %arg4: memref<16x128xbf16, #tpu.memory_space<vmem>>) attributes {dimension_semantics = [#tpu.dimension_semantics<parallel>], iteration_bounds = array<i64: 1>, scalar_prefetch = 0 : i64, scratch_operands = 0 : i64, tpu.core_type = #tpu.core_type<tc>, window_params = [{transform_indices = @transform_0, window_bounds = array<i64: 16, 128>}, {pipeline_mode = #tpu.pipeline_mode<synchronous>, transform_indices = @transform_1, window_bounds = array<i64: 1, 128>}, {pipeline_mode = #tpu.pipeline_mode<synchronous>, transform_indices = @transform_2, window_bounds = array<i64: 1, 128>}, {transform_indices = @transform_3, window_bounds = array<i64: 16, 128>}]} {
    %c0 = arith.constant 0 : index
    %c0_0 = arith.constant 0 : index
    %0 = vector.load %arg1[%c0, %c0_0] : memref<16x128xbf16, #tpu.memory_space<vmem>>, vector<16x128xbf16>
    %1 = arith.extf %0 : vector<16x128xbf16> to vector<16x128xf32>
    %c0_1 = arith.constant 0 : index
    %c0_2 = arith.constant 0 : index
    %2 = vector.load %arg2[%c0_1, %c0_2] : memref<1x128xf32, #tpu.memory_space<vmem>>, vector<1x128xf32>
    %3 = vector.broadcast %2 : vector<1x128xf32> to vector<16x128xf32>
    %4 = arith.mulf %1, %3 : vector<16x128xf32>
    %c0_3 = arith.constant 0 : index
    %c0_4 = arith.constant 0 : index
    %5 = vector.load %arg3[%c0_3, %c0_4] : memref<1x128xf32, #tpu.memory_space<vmem>>, vector<1x128xf32>
    %6 = vector.broadcast %5 : vector<1x128xf32> to vector<16x128xf32>
    %7 = arith.addf %4, %6 : vector<16x128xf32>
    %cst = arith.constant 0.000000e+00 : f32
    %8 = vector.broadcast %cst : f32 to vector<16x128xf32>
    %9 = arith.cmpf oge, %7, %8 : vector<16x128xf32>
    %cst_5 = arith.constant 2.000000e-01 : f32
    %10 = vector.broadcast %cst_5 : f32 to vector<16x128xf32>
    %11 = arith.mulf %10, %7 : vector<16x128xf32>
    %12 = arith.select %9, %7, %11 : vector<16x128xi1>, vector<16x128xf32>
    %13 = arith.truncf %12 : vector<16x128xf32> to vector<16x128xbf16>
    %c0_6 = arith.constant 0 : index
    %c0_7 = arith.constant 0 : index
    %14 = vector.load %arg4[%c0_6, %c0_7] : memref<16x128xbf16, #tpu.memory_space<vmem>>, vector<16x128xbf16>
    tpu.vector_store %arg4[%c0_6, %c0_7], %13 {strides = array<i32>} : memref<16x128xbf16, #tpu.memory_space<vmem>>, vector<16x128xbf16>,
    return
  }
  func.func @transform_0(%arg0: i32) -> (i32, i32) {
    %c0_i32 = arith.constant 0 : i32
    %c0_i32_0 = arith.constant 0 : i32
    return %arg0, %c0_i32 : i32, i32
  }
  func.func @transform_1(%arg0: i32) -> (i32, i32) {
    %c0_i32 = arith.constant 0 : i32
    %c0_i32_0 = arith.constant 0 : i32
    %c0_i32_1 = arith.constant 0 : i32
    return %c0_i32, %c0_i32_0 : i32, i32
  }
  func.func @transform_2(%arg0: i32) -> (i32, i32) {
    %c0_i32 = arith.constant 0 : i32
    %c0_i32_0 = arith.constant 0 : i32
    %c0_i32_1 = arith.constant 0 : i32
    return %c0_i32, %c0_i32_0 : i32, i32
  }
  func.func @transform_3(%arg0: i32) -> (i32, i32) {
    %c0_i32 = arith.constant 0 : i32
    %c0_i32_0 = arith.constant 0 : i32
    return %arg0, %c0_i32 : i32, i32
  }
}

</mosaic_0001>

<bundles_post_ra>
// kernel: encoder_forward.10
= control target key start
LH: loop header
LB: loop body
LE: loop exit
PB: predicated region body
PF: predicated region fallthrough
CT: control target
= control target key end

     0   :  { %8 = vsyncpa [#allocation3], 0  ;;  %s696_s0 = inlined_call_operand.vmem [shape: bf16[128,32], index: 0, kind: input, shape index: {}]   ;;  %s697_s1 = inlined_call_operand.hbm [shape: bf16[32,128], index: 1, kind: input, shape index: {}]   ;;  %s698_s2 = inlined_call_operand.hbm [shape: f32[1,128], index: 2, kind: input, shape index: {}]   ;;  %s699_s3 = inlined_call_operand.vmem [shape: bf16[128,128], index: 3, kind: output, shape index: {}]  }
   0x1   :  { %9 = vsyncpa [#allocation5], 0  ;;  %s570_s12 = smov [#allocation2]   ;;  %s522_s16 = scalar_lea.hbm %s697_s1, 256 }
   0x2   :  { %s17_s13 = sshll.u32 %s570_s12, 4  ;;  %p523_p0 = scmp.ne.s32.totalorder %s697_s1, %s522_s16  ;;  %s18_s13 = int_to_ptr.vmem [resolvable:$true] %s17_s13 }
   0x3   :  { %p526_p1 = scmp.lt.u32.totalorder %s522_s16, %s697_s1 }
   0x5   :  { %p528_p2 = pnand %p526_p1, %p523_p0 }
   0x7   :  { %531 = shalt.err (!%p528_p2)
}
   0x8   :  { %s532_s21 = scalar_lea.vmem %s18_s13, 256  ;;  %p537_p4 = scmp.lt.s32.totalorder %s18_s13, %s18_s13 }
   0x9   :  { %p533_p3 = scmp.ne.s32.totalorder %s18_s13, %s532_s21  ;;  %p538_p5 = scmp.lt.s32.totalorder %s532_s21, %s532_s21 }
   0xb   :  { %p539_p6 = por %p538_p5, %p537_p4 }
   0xd   :  { %p540_p7 = pnand %p539_p6, %p533_p3 }
   0xf   :  { %543 = shalt.err (!%p540_p7)
}
  0x10   :  { %s571_s22 = smov 64   ;;  %s572_s23 = smov 4  }
  0x11   :  { %23 = dma.hbm_to_vmem [thread:$0]  %s697_s1, 256, %s18_s13, [#allocation3], %s571_s22, %s571_s22, %s572_s23  }
  0x12   :  { %s573_s26 = smov [#allocation4]   ;;  %s544_s30 = scalar_lea.hbm %s698_s2, 16 }
  0x13   :  { %s30_s27 = sshll.u32 %s573_s26, 4  ;;  %p545_p8 = scmp.ne.s32.totalorder %s698_s2, %s544_s30  ;;  %s31_s27 = int_to_ptr.vmem [resolvable:$true] %s30_s27 }
  0x14   :  { %p548_p9 = scmp.lt.u32.totalorder %s544_s30, %s698_s2 }
  0x16   :  { %p550_p10 = pnand %p548_p9, %p545_p8 }
  0x18   :  { %553 = shalt.err (!%p550_p10)
}
  0x19   :  { %s554_s8 = scalar_lea.vmem %s31_s27, 16  ;;  %s558_s1 = scalar_lea.vmem %s31_s27, 32 }
  0x1a   :  { %p555_p11 = scmp.ne.s32.totalorder %s31_s27, %s554_s8  ;;  %p559_p12 = scmp.lt.s32.totalorder %s31_s27, %s31_s27 }
  0x1b   :  { %p560_p13 = scmp.lt.s32.totalorder %s558_s1, %s554_s8 }
  0x1d   :  { %p561_p0 = por %p560_p13, %p559_p12 }
  0x1f   :  { %p562_p1 = pnand %p561_p0, %p555_p11 }
  0x21   :  { %565 = shalt.err (!%p562_p1)
}
  0x22   :  { %33 = dma.hbm_to_vmem [thread:$0]  %s698_s2, 16, %s31_s27, [#allocation5]  }
  0x23   :  { %566 = dma.done.wait [#allocation3], 256  }
  0x24   :  { %567 = vsyncadd [#allocation3], 4294967040 }
  0x25   :  { %568 = dma.done.wait [#allocation5], 16  }
  0x26   :  { %569 = vsyncadd [#allocation5], 4294967280  ;;  %v512_v0 = vld [vmem:[#allocation2] sm:$0xff]   ;;  %v513_v1 = vld [vmem:[#allocation2 + $0x8] sm:$0xff]   ;;  %vm120_vm0 = vcmask 261120  }
  0x27   :  { %484 = vmatprep.subr.bf16.mxu0 %v512_v0  ;;  %504 = vmatprep.subr.bf16.mxu1 %v512_v0  ;;  %v514_v2 = vld [vmem:[%s696_s0] sm:$0xff]   ;;  %v516_v4 = vld [vmem:[%s696_s0 + $0x8] sm:$0xff]   ;;  %v518_v6 = vld [vmem:[%s696_s0 + $0x10] sm:$0xff]  }
  0x28   :  { %485 = vmatpush3.bf16.msra.mxu0 %v512_v0  ;;  %506 = vmatpush3.bf16.msra.mxu1 %v512_v0  ;;  %v515_v3 = vld [vmem:[%s696_s0 + $0x20] sm:$0xff]   ;;  %v517_v5 = vld [vmem:[%s696_s0 + $0x28] sm:$0xff]   ;;  %v519_v7 = vld [vmem:[%s696_s0 + $0x30] sm:$0xff]  }
  0x29   :  { %486 = vmatprep.subr.bf16.mxu0 %v513_v1  ;;  %505 = vmatprep.subr.bf16.mxu1 %v513_v1  ;;  %v520_v8 = vld [vmem:[%s696_s0 + $0x18] sm:$0xff]   ;;  %v650_v10 = vld [vmem:[#allocation4] ss:$0 sm:$0xff] }
  0x2a   :  { %488 = vmatprep.mubr.msk.bf16.mxu0 %vm120_vm0, %v514_v2  ;;  %496 = vmatprep.mubr.msk.bf16.mxu1 %vm120_vm0, %v515_v3  ;;  %v521_v9 = vld [vmem:[%s696_s0 + $0x38] sm:$0xff]  }
  0x2c   :  { %487 = vmatpush3.bf16.msra.mxu0 %v513_v1  ;;  %507 = vmatpush3.bf16.msra.mxu1 %v513_v1 }
  0x2f   :  { %489 = vmatmul.mubr.msk.bf16.vlgmr.msra.gmra.mrb[0].mxu0 %vm120_vm0, %v516_v4  ;;  %497 = vmatmul.mubr.msk.bf16.vlgmr.msra.gmra.mrb[0].mxu1 %vm120_vm0, %v517_v5 }
  0x30   :  { %492 = vmatprep.mubr.msk.bf16.mxu0 %vm120_vm0, %v518_v6  ;;  %500 = vmatprep.mubr.msk.bf16.mxu1 %vm120_vm0, %v519_v7 }
  0x37   :  { %493 = vmatmul.mubr.msk.bf16.gmra.mrb[4].mxu0 %vm120_vm0, %v520_v8  ;;  %501 = vmatmul.mubr.msk.bf16.gmra.mrb[4].mxu1 %vm120_vm0, %v521_v9 }
 0x102   :  { %v490_v11 = vpop.f32.mrb[0].mxu0  ;;  %v498_v12 = vpop.f32.mrb[0].mxu1 }
 0x103   :  { %v188_v13 = vadd.f32 %v490_v11, %v650_v10  ;;  %v220_v14 = vadd.f32 %v498_v12, %v650_v10  ;;  %v179_v15 = vpop.f32.mrb[1].mxu0  ;;  %v211_v16 = vpop.f32.mrb[1].mxu1 }
 0x104   :  { %v180_v17 = vadd.f32 %v650_v10, %v179_v15  ;;  %v212_v18 = vadd.f32 %v650_v10, %v211_v16  ;;  %v491_v19 = vpop.f32.mrb[2].mxu0  ;;  %v499_v20 = vpop.f32.mrb[2].mxu1 }
 0x105   :  { %vm244_vm1 = vcmp.ge.f32.partialorder %v188_v13, 0.0  ;;  %v260_v21 = vmul.f32 0.2, %v188_v13  ;;  %vm252_vm2 = vcmp.ge.f32.partialorder %v220_v14, 0.0  ;;  %v268_v22 = vmul.f32 0.2, %v220_v14 }
 0x106   :  { %vm242_vm3 = vcmp.ge.f32.partialorder %v180_v17, 0.0  ;;  %v258_v23 = vmul.f32 0.2, %v180_v17  ;;  %vm250_vm4 = vcmp.ge.f32.partialorder %v212_v18, 0.0  ;;  %v266_v24 = vmul.f32 0.2, %v212_v18 }
 0x107   :  { %v191_v25 = vadd.f32 %v491_v19, %v650_v10  ;;  %v223_v26 = vadd.f32 %v499_v20, %v650_v10  ;;  %v182_v27 = vpop.f32.mrb[3].mxu0  ;;  %v214_v28 = vpop.f32.mrb[3].mxu1  ;;  %v276_v29 = vsel %vm244_vm1, %v188_v13, %v260_v21  ;;  %v284_v30 = vsel %vm252_vm2, %v220_v14, %v268_v22 }
 0x108   :  { %v183_v31 = vadd.f32 %v650_v10, %v182_v27  ;;  %v215_v32 = vadd.f32 %v650_v10, %v214_v28  ;;  %v274_v37 = vsel %vm242_vm3, %v180_v17, %v258_v23  ;;  %v282_v38 = vsel %vm250_vm4, %v212_v18, %v266_v24 }
 0x109   :  { %vm245_vm5 = vcmp.ge.f32.partialorder %v191_v25, 0.0  ;;  %v261_v33 = vmul.f32 0.2, %v191_v25  ;;  %vm253_vm6 = vcmp.ge.f32.partialorder %v223_v26, 0.0  ;;  %v269_v34 = vmul.f32 0.2, %v223_v26 }
 0x10a   :  { %vm243_vm7 = vcmp.ge.f32.partialorder %v183_v31, 0.0  ;;  %v259_v35 = vmul.f32 0.2, %v183_v31  ;;  %vm251_vm8 = vcmp.ge.f32.partialorder %v215_v32, 0.0  ;;  %v267_v36 = vmul.f32 0.2, %v215_v32 }
 0x10b   :  { %v277_v39 = vsel %vm245_vm5, %v191_v25, %v261_v33  ;;  %v285_v40 = vsel %vm253_vm6, %v223_v26, %v269_v34  ;;  %v494_v41 = vpop.f32.mrb[4].mxu0  ;;  %v502_v42 = vpop.f32.mrb[4].mxu1 }
 0x10c   :  { %v435_v43 = vpack.c.bf16 %v277_v39, %v276_v29  ;;  %v455_v44 = vpack.c.bf16 %v285_v40, %v284_v30  ;;  %v275_v45 = vsel %vm243_vm7, %v183_v31, %v259_v35  ;;  %v283_v46 = vsel %vm251_vm8, %v215_v32, %v267_v36  ;;  %v195_v47 = vpop.f32.mrb[5].mxu0  ;;  %v227_v48 = vpop.f32.mrb[5].mxu1 }
 0x10d   :  { %v430_v49 = vpack.c.bf16 %v275_v45, %v274_v37  ;;  %v450_v50 = vpack.c.bf16 %v283_v46, %v282_v38  ;;  %v204_v51 = vadd.f32 %v494_v41, %v650_v10  ;;  %v236_v52 = vadd.f32 %v502_v42, %v650_v10  ;;  %v495_v53 = vpop.f32.mrb[6].mxu0  ;;  %v503_v54 = vpop.f32.mrb[6].mxu1 }
 0x10e   :  { %467 = vst [vmem:[%s699_s3 + $0x8] sm:$0xff] %v435_v43   ;;  %471 = vst [vmem:[%s699_s3 + $0x28] sm:$0xff] %v455_v44   ;;  %v196_v55 = vadd.f32 %v650_v10, %v195_v47  ;;  %v228_v56 = vadd.f32 %v650_v10, %v227_v48  ;;  %v207_v57 = vadd.f32 %v495_v53, %v650_v10  ;;  %v198_v59 = vpop.f32.mrb[7].mxu0  ;;  %v230_v60 = vpop.f32.mrb[7].mxu1 }
 0x10f   :  { %v239_v58 = vadd.f32 %v503_v54, %v650_v10  ;;  %431 = vst [vmem:[%s699_s3] sm:$0xff] %v430_v49   ;;  %470 = vst [vmem:[%s699_s3 + $0x20] sm:$0xff] %v450_v50   ;;  %v264_v61 = vmul.f32 0.2, %v204_v51  ;;  %vm248_vm9 = vcmp.ge.f32.partialorder %v204_v51, 0.0  ;;  %v272_v62 = vmul.f32 0.2, %v236_v52 }
 0x110   :  { %vm256_vm10 = vcmp.ge.f32.partialorder %v236_v52, 0.0  ;;  %vm246_vm11 = vcmp.ge.f32.partialorder %v196_v55, 0.0  ;;  %vm249_vm12 = vcmp.ge.f32.partialorder %v207_v57, 0.0  ;;  %v265_v63 = vmul.f32 0.2, %v207_v57 }
 0x111   :  { %v262_v0 = vmul.f32 0.2, %v196_v55  ;;  %vm254_vm13 = vcmp.ge.f32.partialorder %v228_v56, 0.0  ;;  %vm257_vm14 = vcmp.ge.f32.partialorder %v239_v58, 0.0  ;;  %v273_v1 = vmul.f32 0.2, %v239_v58 }
 0x112   :  { %v280_v2 = vsel %vm248_vm9, %v204_v51, %v264_v61  ;;  %v281_v3 = vsel %vm249_vm12, %v207_v57, %v265_v63  ;;  %v199_v4 = vadd.f32 %v650_v10, %v198_v59  ;;  %v231_v5 = vadd.f32 %v650_v10, %v230_v60 }
 0x113   :  { %v288_v6 = vsel %vm256_vm10, %v236_v52, %v272_v62  ;;  %v270_v7 = vmul.f32 0.2, %v228_v56  ;;  %v445_v8 = vpack.c.bf16 %v281_v3, %v280_v2  ;;  %v289_v9 = vsel %vm257_vm14, %v239_v58, %v273_v1 }
 0x114   :  { %v465_v11 = vpack.c.bf16 %v289_v9, %v288_v6  ;;  %vm247_vm15 = vcmp.ge.f32.partialorder %v199_v4, 0.0  ;;  %v263_v12 = vmul.f32 0.2, %v199_v4  ;;  %vm255_vm0 = vcmp.ge.f32.partialorder %v231_v5, 0.0 }
 0x115   :  { %469 = vst [vmem:[%s699_s3 + $0x18] sm:$0xff] %v445_v8   ;;  %v271_v13 = vmul.f32 0.2, %v231_v5  ;;  %v278_v14 = vsel %vm246_vm11, %v196_v55, %v262_v0  ;;  %v286_v15 = vsel %vm254_vm13, %v228_v56, %v270_v7 }
 0x116   :  { %473 = vst [vmem:[%s699_s3 + $0x38] sm:$0xff] %v465_v11   ;;  %v279_v10 = vsel %vm247_vm15, %v199_v4, %v263_v12 }
 0x117   :  { %v440_v16 = vpack.c.bf16 %v279_v10, %v278_v14  ;;  %v287_v17 = vsel %vm255_vm0, %v231_v5, %v271_v13 }
 0x118   :  { %v460_v18 = vpack.c.bf16 %v287_v17, %v286_v15 }
 0x119   :  { %468 = vst [vmem:[%s699_s3 + $0x10] sm:$0xff] %v440_v16  }
 0x11a   :  { %472 = vst [vmem:[%s699_s3 + $0x30] sm:$0xff] %v460_v18  }
 0x11b   :  { %374 = vsyncpa [#allocation3], 1 }
 0x11c   :  { %375 = vsyncpa [#allocation5], 1 }

// kernel: encoder_forward.11
= control target key start
LH: loop header
LB: loop body
LE: loop exit
PB: predicated region body
PF: predicated region fallthrough
CT: control target
= control target key end

     0   :  { %8 = vsyncpa [#allocation3], 0  ;;  %s963_s0 = inlined_call_operand.vmem [shape: bf16[32,640], index: 0, kind: input, shape index: {}]   ;;  %s964_s1 = inlined_call_operand.hbm [shape: bf16[640,128], index: 1, kind: input, shape index: {}]   ;;  %s965_s2 = inlined_call_operand.hbm [shape: f32[1,128], index: 2, kind: input, shape index: {}]   ;;  %s966_s3 = inlined_call_operand.vmem [shape: bf16[32,128], index: 3, kind: output, shape index: {}]  }
   0x1   :  { %9 = vsyncpa [#allocation5], 0  ;;  %s879_s12 = smov [#allocation2]   ;;  %s831_s16 = scalar_lea.hbm %s964_s1, 5120 }
   0x2   :  { %s17_s13 = sshll.u32 %s879_s12, 4  ;;  %p832_p0 = scmp.ne.s32.totalorder %s964_s1, %s831_s16  ;;  %s18_s13 = int_to_ptr.vmem [resolvable:$true] %s17_s13 }
   0x3   :  { %p835_p1 = scmp.lt.u32.totalorder %s831_s16, %s964_s1 }
   0x5   :  { %p837_p2 = pnand %p835_p1, %p832_p0 }
   0x7   :  { %840 = shalt.err (!%p837_p2)
}
   0x8   :  { %s841_s21 = scalar_lea.vmem %s18_s13, 5120  ;;  %p846_p4 = scmp.lt.s32.totalorder %s18_s13, %s18_s13 }
   0x9   :  { %p842_p3 = scmp.ne.s32.totalorder %s18_s13, %s841_s21  ;;  %p847_p5 = scmp.lt.s32.totalorder %s841_s21, %s841_s21 }
   0xb   :  { %p848_p6 = por %p847_p5, %p846_p4 }
   0xd   :  { %p849_p7 = pnand %p848_p6, %p842_p3 }
   0xf   :  { %852 = shalt.err (!%p849_p7)
}
  0x10   :  { %s880_s22 = smov 64   ;;  %s881_s23 = smov 4  }
  0x11   :  { %23 = dma.hbm_to_vmem [thread:$0]  %s964_s1, 5120, %s18_s13, [#allocation3], %s880_s22, %s880_s22, %s881_s23  }
  0x12   :  { %s882_s26 = smov [#allocation4]   ;;  %s853_s30 = scalar_lea.hbm %s965_s2, 16 }
  0x13   :  { %s30_s27 = sshll.u32 %s882_s26, 4  ;;  %p854_p8 = scmp.ne.s32.totalorder %s965_s2, %s853_s30  ;;  %s31_s27 = int_to_ptr.vmem [resolvable:$true] %s30_s27 }
  0x14   :  { %p857_p9 = scmp.lt.u32.totalorder %s853_s30, %s965_s2 }
  0x16   :  { %p859_p10 = pnand %p857_p9, %p854_p8 }
  0x18   :  { %862 = shalt.err (!%p859_p10)
}
  0x19   :  { %s863_s8 = scalar_lea.vmem %s31_s27, 16  ;;  %s867_s1 = scalar_lea.vmem %s31_s27, 32 }
  0x1a   :  { %p864_p11 = scmp.ne.s32.totalorder %s31_s27, %s863_s8  ;;  %p868_p12 = scmp.lt.s32.totalorder %s31_s27, %s31_s27 }
  0x1b   :  { %p869_p13 = scmp.lt.s32.totalorder %s867_s1, %s863_s8 }
  0x1d   :  { %p870_p0 = por %p869_p13, %p868_p12 }
  0x1f   :  { %p871_p1 = pnand %p870_p0, %p864_p11 }
  0x21   :  { %874 = shalt.err (!%p871_p1)
}
  0x22   :  { %33 = dma.hbm_to_vmem [thread:$0]  %s965_s2, 16, %s31_s27, [#allocation5]  }
  0x23   :  { %875 = dma.done.wait [#allocation3], 5120  }
  0x24   :  { %876 = vsyncadd [#allocation3], 4294962176 }
  0x25   :  { %877 = dma.done.wait [#allocation5], 16  }
  0x26   :  { %878 = vsyncadd [#allocation5], 4294967280  ;;  %v777_v0 = vld [vmem:[#allocation2 + $0x40] sm:$0xff]   ;;  %v781_v4 = vld [vmem:[#allocation2 + $0x48] sm:$0xff]  }
  0x27   :  { %v778_v1 = vld [vmem:[#allocation2] sm:$0xff]   ;;  %687 = vmatprep.subr.bf16.mxu0 %v777_v0  ;;  %v782_v5 = vld [vmem:[#allocation2 + $0x8] sm:$0xff]   ;;  %v785_v8 = vld [vmem:[#allocation2 + $0x50] sm:$0xff]  }
  0x28   :  { %v779_v2 = vld [vmem:[#allocation2 + $0xc0] sm:$0xff]   ;;  %688 = vmatpush3.bf16.msra.mxu0 %v778_v1  ;;  %v783_v6 = vld [vmem:[#allocation2 + $0xc8] sm:$0xff]   ;;  %v786_v9 = vld [vmem:[#allocation2 + $0x10] sm:$0xff]  }
  0x29   :  { %v780_v3 = vld [vmem:[#allocation2 + $0x80] sm:$0xff]   ;;  %715 = vmatprep.subr.bf16.mxu1 %v779_v2  ;;  %689 = vmatprep.subr.bf16.mxu0 %v781_v4  ;;  %v784_v7 = vld [vmem:[#allocation2 + $0x88] sm:$0xff]   ;;  %v787_v10 = vld [vmem:[#allocation2 + $0xd0] sm:$0xff]  }
  0x2a   :  { %716 = vmatpush3.bf16.msra.mxu1 %v780_v3  ;;  %v788_v11 = vld [vmem:[#allocation2 + $0x90] sm:$0xff]   ;;  %v789_v12 = vld [vmem:[#allocation2 + $0x58] sm:$0xff]   ;;  %v793_v16 = vld [vmem:[#allocation2 + $0x60] sm:$0xff]  }
  0x2b   :  { %717 = vmatprep.subr.bf16.mxu1 %v783_v6  ;;  %v790_v13 = vld [vmem:[#allocation2 + $0x18] sm:$0xff]   ;;  %v794_v17 = vld [vmem:[#allocation2 + $0x20] sm:$0xff]   ;;  %v797_v20 = vld [vmem:[#allocation2 + $0x68] sm:$0xff]  }
  0x2c   :  { %690 = vmatpush3.bf16.msra.mxu0 %v782_v5  ;;  %v791_v14 = vld [vmem:[#allocation2 + $0xd8] sm:$0xff]   ;;  %v795_v18 = vld [vmem:[#allocation2 + $0xe0] sm:$0xff]   ;;  %v798_v21 = vld [vmem:[#allocation2 + $0x28] sm:$0xff]  }
  0x2d   :  { %691 = vmatprep.subr.bf16.mxu0 %v785_v8  ;;  %v792_v15 = vld [vmem:[#allocation2 + $0x98] sm:$0xff]   ;;  %v796_v19 = vld [vmem:[#allocation2 + $0xa0] sm:$0xff]   ;;  %v799_v22 = vld [vmem:[#allocation2 + $0xe8] sm:$0xff]  }
  0x2e   :  { %718 = vmatpush3.bf16.msra.mxu1 %v784_v7  ;;  %v800_v23 = vld [vmem:[#allocation2 + $0xa8] sm:$0xff]   ;;  %v801_v24 = vld [vmem:[#allocation2 + $0x70] sm:$0xff]   ;;  %v805_v28 = vld [vmem:[#allocation2 + $0x78] sm:$0xff]  }
  0x2f   :  { %719 = vmatprep.subr.bf16.mxu1 %v787_v10  ;;  %v802_v25 = vld [vmem:[#allocation2 + $0x30] sm:$0xff]   ;;  %v806_v29 = vld [vmem:[#allocation2 + $0x38] sm:$0xff]   ;;  %v812_v34 = vld [vmem:[#allocation2 + $0x100] sm:$0xff]  }
  0x30   :  { %692 = vmatpush3.bf16.msra.mxu0 %v786_v9  ;;  %v803_v26 = vld [vmem:[#allocation2 + $0xf0] sm:$0xff]   ;;  %v807_v30 = vld [vmem:[#allocation2 + $0xf8] sm:$0xff]   ;;  %v815_v36 = vld [vmem:[%s963_s0 + $0xc] ss:$20 sps:$4 sm:$0xff]  }
  0x31   :  { %693 = vmatprep.subr.bf16.mxu0 %v789_v12  ;;  %v804_v27 = vld [vmem:[#allocation2 + $0xb0] sm:$0xff]   ;;  %v810_v32 = vld [vmem:[%s963_s0 + $0x4] ss:$20 sps:$4 sm:$0xff]   ;;  %v813_v35 = vld [vmem:[%s963_s0 + $0x8] ss:$20 sps:$4 sm:$0xff]   ;;  %513 = vmatprep.mubr.bf16.mxu1 %v815_v36 }
  0x32   :  { %720 = vmatpush3.bf16.msra.mxu1 %v788_v11  ;;  %v808_v31 = vld [vmem:[%s963_s0] ss:$20 sps:$4 sm:$0xff]   ;;  %v811_v33 = vld [vmem:[#allocation2 + $0xb8] sm:$0xff]   ;;  %464 = vmatprep.mubr.bf16.mxu0 %v810_v32  ;;  %v816_v37 = vld [vmem:[#allocation2 + $0x108] sm:$0xff]  }
  0x33   :  { %721 = vmatprep.subr.bf16.mxu1 %v791_v14  ;;  %v817_v38 = vld [vmem:[#allocation2 + $0x110] sm:$0xff]   ;;  %v820_v39 = vld [vmem:[%s963_s0 + $0x2c] ss:$20 sps:$4 sm:$0xff]   ;;  %v818_v40 = vld [vmem:[#allocation2 + $0x118] sm:$0xff]  }
  0x34   :  { %694 = vmatpush3.bf16.msra.mxu0 %v790_v13  ;;  %v823_v41 = vld [vmem:[%s963_s0 + $0x28] ss:$20 sps:$4 sm:$0xff]   ;;  %v826_v43 = vld [vmem:[%s963_s0 + $0x30] ss:$20 sps:$4 sm:$0xff]   ;;  %v830_v49 = vld [vmem:[%s963_s0 + $0x38] ss:$20 sps:$4 sm:$0xff]  }
  0x35   :  { %695 = vmatprep.subr.bf16.mxu0 %v793_v16  ;;  %v824_v42 = vld [vmem:[%s963_s0 + $0x34] ss:$20 sps:$4 sm:$0xff]   ;;  %v819_v44 = vld [vmem:[#allocation2 + $0x120] sm:$0xff]   ;;  %v828_v48 = vld [vmem:[#allocation2 + $0x138] sm:$0xff]  }
  0x36   :  { %722 = vmatpush3.bf16.msra.mxu1 %v792_v15  ;;  %v829_v45 = vld [vmem:[%s963_s0 + $0x10] ss:$20 sps:$4 sm:$0xff]   ;;  %v822_v46 = vld [vmem:[#allocation2 + $0x128] sm:$0xff]   ;;  %v617_v51 = vld [vmem:[#allocation4] ss:$0 sm:$0xff] }
  0x37   :  { %723 = vmatprep.subr.bf16.mxu1 %v795_v18  ;;  %v827_v47 = vld [vmem:[#allocation2 + $0x130] sm:$0xff]  }
  0x38   :  { %696 = vmatpush3.bf16.msra.mxu0 %v794_v17 }
  0x39   :  { %697 = vmatprep.subr.bf16.mxu0 %v797_v20 }
  0x3a   :  { %724 = vmatpush3.bf16.msra.mxu1 %v796_v19 }
  0x3b   :  { %725 = vmatprep.subr.bf16.mxu1 %v799_v22 }
  0x3c   :  { %698 = vmatpush3.bf16.msra.mxu0 %v798_v21 }
  0x3d   :  { %699 = vmatprep.subr.bf16.mxu0 %v801_v24 }
  0x3e   :  { %726 = vmatpush3.bf16.msra.mxu1 %v800_v23 }
  0x3f   :  { %727 = vmatprep.subr.bf16.mxu1 %v803_v26 }
  0x40   :  { %700 = vmatpush3.bf16.msra.mxu0 %v802_v25 }
  0x41   :  { %701 = vmatprep.subr.bf16.mxu0 %v805_v28 }
  0x42   :  { %728 = vmatpush3.bf16.msra.mxu1 %v804_v27 }
  0x43   :  { %729 = vmatprep.subr.bf16.mxu1 %v807_v30 }
  0x44   :  { %702 = vmatpush3.bf16.msra.mxu0 %v806_v29 }
  0x45   :  { %753 = vmatprep.subr.bf16.mxu0 %v812_v34 }
  0x46   :  { %730 = vmatpush3.bf16.msra.mxu1 %v811_v33 }
  0x47   :  { %465 = vmatmul.mubr.bf16.vlgmr.msra.gmra.mrb[0].mxu0 %v808_v31 }
  0x48   :  { %754 = vmatpush3.bf16.msra.mxu0 %v812_v34  ;;  %472 = vmatprep.mubr.bf16.mxu0 %v820_v39 }
  0x49   :  { %514 = vmatmul.mubr.bf16.vlgmr.msra.gmra.mrb[0].mxu1 %v813_v35  ;;  %755 = vmatprep.subr.bf16.mxu0 %v816_v37 }
  0x4a   :  { %521 = vmatprep.mubr.bf16.mxu1 %v824_v42 }
  0x4c   :  { %756 = vmatpush3.bf16.msra.mxu0 %v816_v37 }
  0x4d   :  { %757 = vmatprep.subr.bf16.mxu0 %v817_v38 }
  0x4f   :  { %473 = vmatmul.mubr.bf16.gmra.mrb[4].mxu0 %v823_v41 }
  0x50   :  { %758 = vmatpush3.bf16.msra.mxu0 %v817_v38  ;;  %769 = vmatprep.mubr.bf16.mxu0 %v829_v45 }
  0x51   :  { %759 = vmatprep.subr.bf16.mxu0 %v818_v40  ;;  %522 = vmatmul.mubr.bf16.gmra.mrb[4].mxu1 %v826_v43 }
  0x54   :  { %760 = vmatpush3.bf16.msra.mxu0 %v818_v40 }
  0x55   :  { %761 = vmatprep.subr.bf16.mxu0 %v819_v44 }
  0x58   :  { %762 = vmatpush3.bf16.msra.mxu0 %v819_v44 }
  0x59   :  { %763 = vmatprep.subr.bf16.mxu0 %v822_v46 }
  0x5c   :  { %764 = vmatpush3.bf16.msra.mxu0 %v822_v46 }
  0x5d   :  { %765 = vmatprep.subr.bf16.mxu0 %v827_v47 }
  0x60   :  { %766 = vmatpush3.bf16.msra.mxu0 %v827_v47 }
  0x61   :  { %767 = vmatprep.subr.bf16.mxu0 %v828_v48 }
  0x64   :  { %768 = vmatpush3.bf16.msra.mxu0 %v828_v48 }
  0x67   :  { %770 = vmatmul.mubr.bf16.vlgmr.msra.gmra.mrb[8].mxu0 %v830_v49 }
 0x11a   :  { %v703_v50 = vpop.f32.mrb[0].mxu0 }
 0x11b   :  { %v704_v52 = vpop.f32.mrb[1].mxu0 }
 0x11c   :  { %v705_v53 = vadd.f32 %v704_v52, %v703_v50  ;;  %v706_v54 = vpop.f32.mrb[2].mxu0  ;;  %v731_v55 = vpop.f32.mrb[0].mxu1 }
 0x11d   :  { %v707_v56 = vpop.f32.mrb[3].mxu0  ;;  %v732_v59 = vpop.f32.mrb[1].mxu1 }
 0x11e   :  { %v467_v57 = vadd.f32 %v705_v53, %v617_v51  ;;  %v708_v58 = vadd.f32 %v707_v56, %v706_v54  ;;  %v733_v60 = vadd.f32 %v732_v59, %v731_v55  ;;  %v734_v61 = vpop.f32.mrb[2].mxu1 }
 0x11f   :  { %v735_v63 = vpop.f32.mrb[3].mxu1 }
 0x120   :  { %v470_v62 = vadd.f32 %v708_v58, %v617_v51  ;;  %v736_v0 = vadd.f32 %v735_v63, %v734_v61  ;;  %v516_v1 = vadd.f32 %v733_v60, %v467_v57 }
 0x122   :  { %v709_v2 = vpop.f32.mrb[4].mxu0  ;;  %v519_v4 = vadd.f32 %v736_v0, %v470_v62 }
 0x123   :  { %v710_v3 = vpop.f32.mrb[5].mxu0 }
 0x124   :  { %v711_v5 = vadd.f32 %v710_v3, %v709_v2  ;;  %v712_v6 = vpop.f32.mrb[6].mxu0  ;;  %v737_v7 = vpop.f32.mrb[4].mxu1 }
 0x125   :  { %v713_v8 = vpop.f32.mrb[7].mxu0  ;;  %v738_v11 = vpop.f32.mrb[5].mxu1 }
 0x126   :  { %v475_v9 = vadd.f32 %v711_v5, %v617_v51  ;;  %v714_v10 = vadd.f32 %v713_v8, %v712_v6  ;;  %v739_v12 = vadd.f32 %v738_v11, %v737_v7  ;;  %v740_v13 = vpop.f32.mrb[6].mxu1 }
 0x127   :  { %v741_v15 = vpop.f32.mrb[7].mxu1 }
 0x128   :  { %v478_v14 = vadd.f32 %v714_v10, %v617_v51  ;;  %v742_v16 = vadd.f32 %v741_v15, %v740_v13  ;;  %v524_v17 = vadd.f32 %v739_v12, %v475_v9 }
 0x12a   :  { %v527_v18 = vadd.f32 %v742_v16, %v478_v14 }
 0x13a   :  { %v771_v19 = vpop.f32.mrb[8].mxu0 }
 0x13b   :  { %v573_v20 = vadd.f32 %v771_v19, %v524_v17  ;;  %v564_v21 = vpop.f32.mrb[9].mxu0 }
 0x13c   :  { %v565_v22 = vadd.f32 %v564_v21, %v516_v1  ;;  %v772_v23 = vpop.f32.mrb[10].mxu0 }
 0x13d   :  { %v585_v24 = vmul.f32 0.2, %v573_v20  ;;  %v576_v25 = vadd.f32 %v772_v23, %v527_v18  ;;  %v567_v26 = vpop.f32.mrb[11].mxu0  ;;  %vm581_vm0 = vcmp.ge.f32.partialorder %v573_v20, 0.0 }
 0x13e   :  { %v583_v27 = vmul.f32 0.2, %v565_v22  ;;  %v568_v28 = vadd.f32 %v567_v26, %v519_v4  ;;  %vm579_vm1 = vcmp.ge.f32.partialorder %v565_v22, 0.0 }
 0x13f   :  { %vm582_vm2 = vcmp.ge.f32.partialorder %v576_v25, 0.0  ;;  %v586_v29 = vmul.f32 0.2, %v576_v25  ;;  %v589_v31 = vsel %vm581_vm0, %v573_v20, %v585_v24 }
 0x140   :  { %vm580_vm3 = vcmp.ge.f32.partialorder %v568_v28, 0.0  ;;  %v584_v30 = vmul.f32 0.2, %v568_v28  ;;  %v587_v33 = vsel %vm579_vm1, %v565_v22, %v583_v27 }
 0x141   :  { %v590_v32 = vsel %vm582_vm2, %v576_v25, %v586_v29 }
 0x142   :  { %v684_v34 = vpack.c.bf16 %v590_v32, %v589_v31  ;;  %v588_v35 = vsel %vm580_vm3, %v568_v28, %v584_v30 }
 0x143   :  { %v679_v36 = vpack.c.bf16 %v588_v35, %v587_v33 }
 0x144   :  { %686 = vst [vmem:[%s966_s3 + $0x8] sm:$0xff] %v684_v34  }
 0x145   :  { %680 = vst [vmem:[%s966_s3] sm:$0xff] %v679_v36  }
 0x146   :  { %615 = vsyncpa [#allocation3], 1 }
 0x147   :  { %616 = vsyncpa [#allocation5], 1 }

// kernel: encoder_forward.13
= control target key start
LH: loop header
LB: loop body
LE: loop exit
PB: predicated region body
PF: predicated region fallthrough
CT: control target
= control target key end

     0   :  { %v28_v0 = vlaneseq  ;;  %s180_s0 = inlined_call_operand.vmem [shape: bf16[32,256], index: 0, kind: input, shape index: {}]   ;;  %s181_s1 = inlined_call_operand.vmem [shape: f32[1,256], index: 1, kind: input, shape index: {}]   ;;  %s182_s2 = inlined_call_operand.vmem [shape: f32[1,256], index: 2, kind: input, shape index: {}]   ;;  %s183_s3 = inlined_call_operand.vmem [shape: bf16[32,256], index: 3, kind: output, shape index: {}]  }
   0x1   :  { %v14_v1 = vld [vmem:[%s180_s0] sm:$0xff]  ;;  %v15_v3 = vld [vmem:[%s180_s0 + $0x8] sm:$0xff]  ;;  %v16_v4 = vld [vmem:[%s180_s0 + $0x10] sm:$0xff] }
   0x2   :  { %v29_v2 = vshrl.u32 %v28_v0, 7  ;;  %v17_v5 = vld [vmem:[%s180_s0 + $0x18] sm:$0xff]  ;;  %v18_v6 = vunpack.c.l.bf16 %v14_v1  ;;  %v19_v7 = vunpack.c.h.bf16 %v14_v1  ;;  %v26_v8 = vld [vmem:[%s181_s1] sm:$0x3]  ;;  %v20_v12 = vunpack.c.l.bf16 %v15_v3 }
   0x3   :  { %v46_v9 = vld [vmem:[%s182_s2] sm:$0x3]  ;;  %v21_v13 = vunpack.c.h.bf16 %v15_v3  ;;  %v22_v14 = vunpack.c.l.bf16 %v16_v4  ;;  %v23_v15 = vunpack.c.h.bf16 %v16_v4  ;;  %v24_v16 = vunpack.c.l.bf16 %v17_v5 }
   0x4   :  { %v30_v10 = vsub.s32 0, %v29_v2  ;;  %v34_v11 = vsub.s32 1, %v29_v2  ;;  %v25_v17 = vunpack.c.h.bf16 %v17_v5 }
   0x6   :  { %v31_v18 = vrot.slane %v26_v8, %v30_v10  ;;  %v35_v19 = vrot.slane %v26_v8, %v34_v11  ;;  %v51_v20 = vrot.slane %v46_v9, %v30_v10  ;;  %v55_v21 = vrot.slane %v46_v9, %v34_v11 }
   0x8   :  { %v38_v22 = vmul.f32 %v31_v18, %v18_v6  ;;  %v39_v23 = vmul.f32 %v35_v19, %v19_v7  ;;  %v40_v24 = vmul.f32 %v31_v18, %v20_v12  ;;  %v41_v25 = vmul.f32 %v35_v19, %v21_v13 }
   0x9   :  { %v42_v26 = vmul.f32 %v31_v18, %v22_v14  ;;  %v43_v27 = vmul.f32 %v35_v19, %v23_v15  ;;  %v44_v28 = vmul.f32 %v31_v18, %v24_v16  ;;  %v45_v29 = vmul.f32 %v35_v19, %v25_v17 }
   0xa   :  { %v58_v30 = vadd.f32 %v51_v20, %v38_v22  ;;  %v59_v31 = vadd.f32 %v55_v21, %v39_v23  ;;  %v60_v32 = vadd.f32 %v51_v20, %v40_v24  ;;  %v61_v33 = vadd.f32 %v55_v21, %v41_v25 }
   0xb   :  { %v62_v34 = vadd.f32 %v51_v20, %v42_v26  ;;  %v63_v35 = vadd.f32 %v55_v21, %v43_v27  ;;  %v64_v36 = vadd.f32 %v51_v20, %v44_v28  ;;  %v65_v37 = vadd.f32 %v55_v21, %v45_v29 }
   0xc   :  { %vm66_vm0 = vcmp.ge.f32.partialorder %v58_v30, 0.0  ;;  %vm67_vm1 = vcmp.ge.f32.partialorder %v59_v31, 0.0  ;;  %v74_v38 = vmul.f32 0.2, %v58_v30  ;;  %v75_v39 = vmul.f32 0.2, %v59_v31 }
   0xd   :  { %vm68_vm2 = vcmp.ge.f32.partialorder %v60_v32, 0.0  ;;  %vm69_vm3 = vcmp.ge.f32.partialorder %v61_v33, 0.0  ;;  %v76_v40 = vmul.f32 0.2, %v60_v32  ;;  %v77_v41 = vmul.f32 0.2, %v61_v33 }
   0xe   :  { %v82_v42 = vsel %vm66_vm0, %v58_v30, %v74_v38  ;;  %v83_v43 = vsel %vm67_vm1, %v59_v31, %v75_v39  ;;  %vm70_vm4 = vcmp.ge.f32.partialorder %v62_v34, 0.0  ;;  %vm71_vm5 = vcmp.ge.f32.partialorder %v63_v35, 0.0 }
   0xf   :  { %v126_v44 = vpack.c.bf16 %v83_v43, %v82_v42  ;;  %v84_v45 = vsel %vm68_vm2, %v60_v32, %v76_v40  ;;  %v85_v46 = vsel %vm69_vm3, %v61_v33, %v77_v41  ;;  %v78_v47 = vmul.f32 0.2, %v62_v34 }
  0x10   :  { %v127_v48 = vpack.c.bf16 %v85_v46, %v84_v45  ;;  %v79_v49 = vmul.f32 0.2, %v63_v35  ;;  %vm72_vm6 = vcmp.ge.f32.partialorder %v64_v36, 0.0  ;;  %vm73_vm7 = vcmp.ge.f32.partialorder %v65_v37, 0.0 }
  0x11   :  { %114 = vst [vmem:[%s183_s3] sm:$0xff] %v126_v44  ;;  %v86_v50 = vsel %vm70_vm4, %v62_v34, %v78_v47  ;;  %v80_v51 = vmul.f32 0.2, %v64_v36  ;;  %v81_v52 = vmul.f32 0.2, %v65_v37 }
  0x12   :  { %115 = vst [vmem:[%s183_s3 + $0x8] sm:$0xff] %v127_v48  ;;  %v87_v53 = vsel %vm71_vm5, %v63_v35, %v79_v49 }
  0x13   :  { %v128_v54 = vpack.c.bf16 %v87_v53, %v86_v50  ;;  %v88_v55 = vsel %vm72_vm6, %v64_v36, %v80_v51  ;;  %v89_v56 = vsel %vm73_vm7, %v65_v37, %v81_v52 }
  0x14   :  { %v129_v57 = vpack.c.bf16 %v89_v56, %v88_v55 }
  0x15   :  { %116 = vst [vmem:[%s183_s3 + $0x10] sm:$0xff] %v128_v54 }
  0x16   :  { %117 = vst [vmem:[%s183_s3 + $0x18] sm:$0xff] %v129_v57 }

// kernel: encoder_forward.12
= control target key start
LH: loop header
LB: loop body
LE: loop exit
PB: predicated region body
PF: predicated region fallthrough
CT: control target
= control target key end

     0   :  { %9 = vsyncpa [#allocation3], 0  ;;  %s1846_s12 = smov [#allocation2]   ;;  %s1954_s0 = inlined_call_operand.vmem [shape: bf16[32,1152], index: 0, kind: input, shape index: {}]   ;;  %s1955_s1 = inlined_call_operand.hbm [shape: bf16[1152,256], index: 1, kind: input, shape index: {}]   ;;  %s1956_s2 = inlined_call_operand.vmem [shape: bf16[32,256], index: 2, kind: output, shape index: {0}]   ;;  %s1957_s3 = inlined_call_operand.vmem [shape: f32[8,256], index: 3, kind: output, shape index: {1}]  }
   0x1   :  { %s17_s13 = sshll.u32 %s1846_s12, 4  ;;  %s1822_s16 = scalar_lea.hbm %s1955_s1, 18432  ;;  %s18_s13 = int_to_ptr.vmem [resolvable:$true] %s17_s13 }
   0x2   :  { %p1823_p0 = scmp.ne.s32.totalorder %s1955_s1, %s1822_s16  ;;  %p1826_p1 = scmp.lt.u32.totalorder %s1822_s16, %s1955_s1 }
   0x4   :  { %p1828_p2 = pnand %p1826_p1, %p1823_p0 }
   0x6   :  { %1831 = shalt.err (!%p1828_p2)
}
   0x7   :  { %s1832_s21 = scalar_lea.vmem %s18_s13, 18432  ;;  %p1837_p4 = scmp.lt.s32.totalorder %s18_s13, %s18_s13 }
   0x8   :  { %p1833_p3 = scmp.ne.s32.totalorder %s18_s13, %s1832_s21  ;;  %p1838_p5 = scmp.lt.s32.totalorder %s1832_s21, %s1832_s21 }
   0xa   :  { %p1839_p6 = por %p1838_p5, %p1837_p4 }
   0xc   :  { %p1840_p7 = pnand %p1839_p6, %p1833_p3 }
   0xe   :  { %1843 = shalt.err (!%p1840_p7)
}
   0xf   :  { %s1847_s22 = smov 128   ;;  %s1848_s23 = smov 8  }
  0x10   :  { %23 = dma.hbm_to_vmem [thread:$0]  %s1955_s1, 18432, %s18_s13, [#allocation3], %s1847_s22, %s1847_s22, %s1848_s23  }
  0x11   :  { %1844 = dma.done.wait [#allocation3], 18432  }
  0x12   :  { %1845 = vsyncadd [#allocation3], 4294948864  ;;  %v1580_v0 = vld [vmem:[#allocation2 + $0x4] ss:$8 sps:$4 sm:$0xff]   ;;  %v1584_v2 = vld [vmem:[#allocation2] ss:$8 sps:$4 sm:$0xff]  }
  0x13   :  { %v1582_v1 = vld [vmem:[#allocation2 + $0x204] ss:$8 sps:$4 sm:$0xff]   ;;  %1004 = vmatprep.subr.bf16.mxu1 %v1580_v0  ;;  %v1585_v3 = vld [vmem:[#allocation2 + $0x200] ss:$8 sps:$4 sm:$0xff]   ;;  %v1586_v4 = vld [vmem:[#allocation2 + $0x14] ss:$8 sps:$4 sm:$0xff]  }
  0x14   :  { %1110 = vmatprep.subr.bf16.mxu0 %v1582_v1  ;;  %1005 = vmatpush1.bf16.msra.mxu1 %v1584_v2  ;;  %v1588_v5 = vld [vmem:[#allocation2 + $0x214] ss:$8 sps:$4 sm:$0xff]   ;;  %v1590_v6 = vld [vmem:[#allocation2 + $0x10] ss:$8 sps:$4 sm:$0xff]   ;;  %v1592_v8 = vld [vmem:[#allocation2 + $0x24] ss:$8 sps:$4 sm:$0xff]  }
  0x15   :  { %1111 = vmatpush1.bf16.msra.mxu0 %v1585_v3  ;;  %1006 = vmatprep.subr.bf16.mxu1 %v1586_v4  ;;  %v1591_v7 = vld [vmem:[#allocation2 + $0x210] ss:$8 sps:$4 sm:$0xff]   ;;  %v1594_v9 = vld [vmem:[#allocation2 + $0x224] ss:$8 sps:$4 sm:$0xff]   ;;  %v1596_v10 = vld [vmem:[#allocation2 + $0x20] ss:$8 sps:$4 sm:$0xff]  }
  0x16   :  { %1112 = vmatprep.subr.bf16.mxu0 %v1588_v5  ;;  %v1597_v11 = vld [vmem:[#allocation2 + $0x220] ss:$8 sps:$4 sm:$0xff]   ;;  %v1598_v12 = vld [vmem:[#allocation2 + $0x34] ss:$8 sps:$4 sm:$0xff]   ;;  %v1602_v14 = vld [vmem:[#allocation2 + $0x30] ss:$8 sps:$4 sm:$0xff]  }
  0x17   :  { %v1600_v13 = vld [vmem:[#allocation2 + $0x234] ss:$8 sps:$4 sm:$0xff]   ;;  %v1603_v15 = vld [vmem:[#allocation2 + $0x230] ss:$8 sps:$4 sm:$0xff]   ;;  %v1604_v16 = vld [vmem:[#allocation2 + $0x44] ss:$8 sps:$4 sm:$0xff]  }
  0x18   :  { %1007 = vmatpush1.bf16.msra.mxu1 %v1590_v6  ;;  %v1606_v17 = vld [vmem:[#allocation2 + $0x244] ss:$8 sps:$4 sm:$0xff]   ;;  %v1608_v18 = vld [vmem:[#allocation2 + $0x40] ss:$8 sps:$4 sm:$0xff]   ;;  %v1610_v20 = vld [vmem:[#allocation2 + $0x54] ss:$8 sps:$4 sm:$0xff]  }
  0x19   :  { %1113 = vmatpush1.bf16.msra.mxu0 %v1591_v7  ;;  %1008 = vmatprep.subr.bf16.mxu1 %v1592_v8  ;;  %v1609_v19 = vld [vmem:[#allocation2 + $0x240] ss:$8 sps:$4 sm:$0xff]   ;;  %v1612_v21 = vld [vmem:[#allocation2 + $0x254] ss:$8 sps:$4 sm:$0xff]   ;;  %v1614_v22 = vld [vmem:[#allocation2 + $0x50] ss:$8 sps:$4 sm:$0xff]  }
  0x1a   :  { %1114 = vmatprep.subr.bf16.mxu0 %v1594_v9  ;;  %v1615_v23 = vld [vmem:[#allocation2 + $0x250] ss:$8 sps:$4 sm:$0xff]   ;;  %v1616_v24 = vld [vmem:[#allocation2 + $0x64] ss:$8 sps:$4 sm:$0xff]   ;;  %v1620_v26 = vld [vmem:[#allocation2 + $0x60] ss:$8 sps:$4 sm:$0xff]  }
  0x1b   :  { %v1618_v25 = vld [vmem:[#allocation2 + $0x264] ss:$8 sps:$4 sm:$0xff]   ;;  %v1621_v27 = vld [vmem:[#allocation2 + $0x260] ss:$8 sps:$4 sm:$0xff]   ;;  %v1622_v28 = vld [vmem:[#allocation2 + $0x74] ss:$8 sps:$4 sm:$0xff]  }
  0x1c   :  { %1009 = vmatpush1.bf16.msra.mxu1 %v1596_v10  ;;  %v1624_v29 = vld [vmem:[#allocation2 + $0x274] ss:$8 sps:$4 sm:$0xff]   ;;  %v1626_v30 = vld [vmem:[#allocation2 + $0x70] ss:$8 sps:$4 sm:$0xff]   ;;  %v1628_v32 = vld [vmem:[#allocation2 + $0x84] ss:$8 sps:$4 sm:$0xff]  }
  0x1d   :  { %1115 = vmatpush1.bf16.msra.mxu0 %v1597_v11  ;;  %1010 = vmatprep.subr.bf16.mxu1 %v1598_v12  ;;  %v1627_v31 = vld [vmem:[#allocation2 + $0x270] ss:$8 sps:$4 sm:$0xff]   ;;  %v1630_v33 = vld [vmem:[#allocation2 + $0x284] ss:$8 sps:$4 sm:$0xff]   ;;  %v1632_v34 = vld [vmem:[#allocation2 + $0x80] ss:$8 sps:$4 sm:$0xff]  }
  0x1e   :  { %1116 = vmatprep.subr.bf16.mxu0 %v1600_v13  ;;  %v1633_v35 = vld [vmem:[#allocation2 + $0x280] ss:$8 sps:$4 sm:$0xff]   ;;  %v1634_v36 = vld [vmem:[#allocation2 + $0x94] ss:$8 sps:$4 sm:$0xff]   ;;  %v1638_v38 = vld [vmem:[#allocation2 + $0x90] ss:$8 sps:$4 sm:$0xff]  }
  0x1f   :  { %v1636_v37 = vld [vmem:[#allocation2 + $0x294] ss:$8 sps:$4 sm:$0xff]   ;;  %v1639_v39 = vld [vmem:[#allocation2 + $0x290] ss:$8 sps:$4 sm:$0xff]   ;;  %v1640_v40 = vld [vmem:[#allocation2 + $0xa4] ss:$8 sps:$4 sm:$0xff]  }
  0x20   :  { %1011 = vmatpush1.bf16.msra.mxu1 %v1602_v14  ;;  %v1642_v41 = vld [vmem:[#allocation2 + $0x2a4] ss:$8 sps:$4 sm:$0xff]   ;;  %v1644_v42 = vld [vmem:[#allocation2 + $0xa0] ss:$8 sps:$4 sm:$0xff]   ;;  %v1646_v44 = vld [vmem:[#allocation2 + $0xb4] ss:$8 sps:$4 sm:$0xff]  }
  0x21   :  { %1117 = vmatpush1.bf16.msra.mxu0 %v1603_v15  ;;  %1012 = vmatprep.subr.bf16.mxu1 %v1604_v16  ;;  %v1645_v43 = vld [vmem:[#allocation2 + $0x2a0] ss:$8 sps:$4 sm:$0xff]   ;;  %v1648_v45 = vld [vmem:[#allocation2 + $0x2b4] ss:$8 sps:$4 sm:$0xff]   ;;  %v1650_v46 = vld [vmem:[#allocation2 + $0xb0] ss:$8 sps:$4 sm:$0xff]  }
  0x22   :  { %1118 = vmatprep.subr.bf16.mxu0 %v1606_v17  ;;  %v1651_v47 = vld [vmem:[#allocation2 + $0x2b0] ss:$8 sps:$4 sm:$0xff]   ;;  %v1678_v48 = vld [vmem:[%s1954_s0 + $0x4] ss:$36 sps:$4 sm:$0xff]   ;;  %v1658_v54 = vld [vmem:[#allocation2 + $0xd4] ss:$8 sps:$4 sm:$0xff]  }
  0x23   :  { %v1652_v49 = vld [vmem:[#allocation2 + $0xc4] ss:$8 sps:$4 sm:$0xff]   ;;  %1036 = vmatprep.mubr.bf16.mxu1 %v1678_v48  ;;  %v1684_v51 = vld [vmem:[%s1954_s0 + $0x14] ss:$36 sps:$4 sm:$0xff]   ;;  %v1656_v52 = vld [vmem:[#allocation2 + $0xc0] ss:$8 sps:$4 sm:$0xff]  }
  0x24   :  { %1013 = vmatpush1.bf16.msra.mxu1 %v1608_v18  ;;  %v1654_v50 = vld [vmem:[#allocation2 + $0x2c4] ss:$8 sps:$4 sm:$0xff]   ;;  %v1657_v53 = vld [vmem:[#allocation2 + $0x2c0] ss:$8 sps:$4 sm:$0xff]   ;;  %v1660_v55 = vld [vmem:[#allocation2 + $0x2d4] ss:$8 sps:$4 sm:$0xff]   ;;  %1142 = vmatprep.mubr.bf16.mxu0 %v1684_v51 }
  0x25   :  { %1119 = vmatpush1.bf16.msra.mxu0 %v1609_v19  ;;  %1014 = vmatprep.subr.bf16.mxu1 %v1610_v20  ;;  %v1662_v56 = vld [vmem:[#allocation2 + $0xd0] ss:$8 sps:$4 sm:$0xff]   ;;  %v1664_v58 = vld [vmem:[#allocation2 + $0xe4] ss:$8 sps:$4 sm:$0xff]   ;;  %v1668_v60 = vld [vmem:[#allocation2 + $0xe0] ss:$8 sps:$4 sm:$0xff]  }
  0x26   :  { %1120 = vmatprep.subr.bf16.mxu0 %v1612_v21  ;;  %v1663_v57 = vld [vmem:[#allocation2 + $0x2d0] ss:$8 sps:$4 sm:$0xff]   ;;  %v1666_v59 = vld [vmem:[#allocation2 + $0x2e4] ss:$8 sps:$4 sm:$0xff]   ;;  %v1669_v61 = vld [vmem:[#allocation2 + $0x2e0] ss:$8 sps:$4 sm:$0xff]  }
  0x27   :  { %v1670_v62 = vld [vmem:[#allocation2 + $0xf4] ss:$8 sps:$4 sm:$0xff]   ;;  %v1674_v0 = vld [vmem:[#allocation2 + $0xf0] ss:$8 sps:$4 sm:$0xff]   ;;  %v1681_v2 = vld [vmem:[#allocation2 + $0x104] ss:$8 sps:$4 sm:$0xff]  }
  0x28   :  { %1015 = vmatpush1.bf16.msra.mxu1 %v1614_v22  ;;  %v1672_v63 = vld [vmem:[#allocation2 + $0x2f4] ss:$8 sps:$4 sm:$0xff]   ;;  %v1675_v1 = vld [vmem:[#allocation2 + $0x2f0] ss:$8 sps:$4 sm:$0xff]   ;;  %v1687_v3 = vld [vmem:[#allocation2 + $0x304] ss:$8 sps:$4 sm:$0xff]  }
  0x29   :  { %1121 = vmatpush1.bf16.msra.mxu0 %v1615_v23  ;;  %1016 = vmatprep.subr.bf16.mxu1 %v1616_v24  ;;  %v1676_v4 = vld [vmem:[%s1954_s0] ss:$36 sps:$4 sm:$0xff]   ;;  %v1682_v6 = vld [vmem:[%s1954_s0 + $0x10] ss:$36 sps:$4 sm:$0xff]   ;;  %vm1341_vm0 = vcmask 1040384   ;;  %vm1344_vm1 = vcmask 1041408  }
  0x2a   :  { %1122 = vmatprep.subr.bf16.mxu0 %v1618_v25  ;;  %v1679_v5 = vld [vmem:[#allocation2 + $0x100] ss:$8 sps:$4 sm:$0xff]   ;;  %v1690_v8 = vld [vmem:[#allocation2 + $0x114] ss:$8 sps:$4 sm:$0xff]   ;;  %v1688_v10 = vld [vmem:[#allocation2 + $0x110] ss:$8 sps:$4 sm:$0xff]  }
  0x2b   :  { %v1685_v7 = vld [vmem:[#allocation2 + $0x300] ss:$8 sps:$4 sm:$0xff]   ;;  %v1693_v9 = vld [vmem:[#allocation2 + $0x314] ss:$8 sps:$4 sm:$0xff]   ;;  %v1691_v11 = vld [vmem:[#allocation2 + $0x310] ss:$8 sps:$4 sm:$0xff]  }
  0x2c   :  { %1017 = vmatpush1.bf16.msra.mxu1 %v1620_v26  ;;  %v1696_v12 = vld [vmem:[#allocation2 + $0x124] ss:$8 sps:$4 sm:$0xff]   ;;  %v1694_v14 = vld [vmem:[#allocation2 + $0x120] ss:$8 sps:$4 sm:$0xff]   ;;  %v1702_v16 = vld [vmem:[#allocation2 + $0x134] ss:$8 sps:$4 sm:$0xff]  }
  0x2d   :  { %1123 = vmatpush1.bf16.msra.mxu0 %v1621_v27  ;;  %1018 = vmatprep.subr.bf16.mxu1 %v1622_v28  ;;  %v1699_v13 = vld [vmem:[#allocation2 + $0x324] ss:$8 sps:$4 sm:$0xff]   ;;  %v1697_v15 = vld [vmem:[#allocation2 + $0x320] ss:$8 sps:$4 sm:$0xff]   ;;  %v1705_v17 = vld [vmem:[#allocation2 + $0x334] ss:$8 sps:$4 sm:$0xff]  }
  0x2e   :  { %1124 = vmatprep.subr.bf16.mxu0 %v1624_v29  ;;  %v1700_v18 = vld [vmem:[#allocation2 + $0x130] ss:$8 sps:$4 sm:$0xff]   ;;  %v1708_v20 = vld [vmem:[#allocation2 + $0x144] ss:$8 sps:$4 sm:$0xff]   ;;  %v1706_v22 = vld [vmem:[#allocation2 + $0x140] ss:$8 sps:$4 sm:$0xff]  }
  0x2f   :  { %v1703_v19 = vld [vmem:[#allocation2 + $0x330] ss:$8 sps:$4 sm:$0xff]   ;;  %v1711_v21 = vld [vmem:[#allocation2 + $0x344] ss:$8 sps:$4 sm:$0xff]   ;;  %v1709_v23 = vld [vmem:[#allocation2 + $0x340] ss:$8 sps:$4 sm:$0xff]  }
  0x30   :  { %1019 = vmatpush1.bf16.msra.mxu1 %v1626_v30  ;;  %v1714_v24 = vld [vmem:[#allocation2 + $0x154] ss:$8 sps:$4 sm:$0xff]   ;;  %v1712_v26 = vld [vmem:[#allocation2 + $0x150] ss:$8 sps:$4 sm:$0xff]   ;;  %v1720_v28 = vld [vmem:[#allocation2 + $0x164] ss:$8 sps:$4 sm:$0xff]  }
  0x31   :  { %1125 = vmatpush1.bf16.msra.mxu0 %v1627_v31  ;;  %1020 = vmatprep.subr.bf16.mxu1 %v1628_v32  ;;  %v1717_v25 = vld [vmem:[#allocation2 + $0x354] ss:$8 sps:$4 sm:$0xff]   ;;  %v1715_v27 = vld [vmem:[#allocation2 + $0x350] ss:$8 sps:$4 sm:$0xff]   ;;  %v1770_v31 = vld [vmem:[%s1954_s0 + $0x48] ss:$36 sps:$4 sm:$0xff]  }
  0x32   :  { %1126 = vmatprep.subr.bf16.mxu0 %v1630_v33  ;;  %v1766_v29 = vld [vmem:[%s1954_s0 + $0x4c] ss:$36 sps:$4 sm:$0xff]   ;;  %v1768_v30 = vld [vmem:[%s1954_s0 + $0x5c] ss:$36 sps:$4 sm:$0xff]  }
  0x33   :  { %v1723_v32 = vld [vmem:[#allocation2 + $0x364] ss:$8 sps:$4 sm:$0xff]   ;;  %v1774_v33 = vld [vmem:[%s1954_s0 + $0x58] ss:$36 sps:$4 sm:$0xff]  }
  0x34   :  { %1021 = vmatpush1.bf16.msra.mxu1 %v1632_v34  ;;  %v1718_v34 = vld [vmem:[#allocation2 + $0x160] ss:$8 sps:$4 sm:$0xff]   ;;  %v1736_v48 = vld [vmem:[#allocation2 + $0x190] ss:$8 sps:$4 sm:$0xff]   ;;  %v1747_v51 = vld [vmem:[#allocation2 + $0x3a4] ss:$8 sps:$4 sm:$0xff]  }
  0x35   :  { %1127 = vmatpush1.bf16.msra.mxu0 %v1633_v35  ;;  %1022 = vmatprep.subr.bf16.mxu1 %v1634_v36  ;;  %v1721_v35 = vld [vmem:[#allocation2 + $0x360] ss:$8 sps:$4 sm:$0xff]   ;;  %v1726_v36 = vld [vmem:[#allocation2 + $0x174] ss:$8 sps:$4 sm:$0xff]  }
  0x36   :  { %1128 = vmatprep.subr.bf16.mxu0 %v1636_v37  ;;  %v1729_v37 = vld [vmem:[#allocation2 + $0x374] ss:$8 sps:$4 sm:$0xff]  }
  0x38   :  { %1023 = vmatpush1.bf16.msra.mxu1 %v1638_v38  ;;  %v1724_v38 = vld [vmem:[#allocation2 + $0x170] ss:$8 sps:$4 sm:$0xff]  }
  0x39   :  { %1129 = vmatpush1.bf16.msra.mxu0 %v1639_v39  ;;  %1024 = vmatprep.subr.bf16.mxu1 %v1640_v40  ;;  %v1727_v39 = vld [vmem:[#allocation2 + $0x370] ss:$8 sps:$4 sm:$0xff]   ;;  %v1732_v40 = vld [vmem:[#allocation2 + $0x184] ss:$8 sps:$4 sm:$0xff]  }
  0x3a   :  { %1130 = vmatprep.subr.bf16.mxu0 %v1642_v41  ;;  %v1786_v41 = vld [vmem:[%s1954_s0 + $0xc] ss:$36 sps:$4 sm:$0xff]  }
  0x3c   :  { %1025 = vmatpush1.bf16.msra.mxu1 %v1644_v42  ;;  %v1735_v42 = vld [vmem:[#allocation2 + $0x384] ss:$8 sps:$4 sm:$0xff]  }
  0x3d   :  { %1131 = vmatpush1.bf16.msra.mxu0 %v1645_v43  ;;  %1026 = vmatprep.subr.bf16.mxu1 %v1646_v44  ;;  %v1789_v43 = vld [vmem:[%s1954_s0 + $0x1c] ss:$36 sps:$4 sm:$0xff]  }
  0x3e   :  { %1132 = vmatprep.subr.bf16.mxu0 %v1648_v45  ;;  %v1730_v44 = vld [vmem:[#allocation2 + $0x180] ss:$8 sps:$4 sm:$0xff]  }
  0x3f   :  { %v1733_v45 = vld [vmem:[#allocation2 + $0x380] ss:$8 sps:$4 sm:$0xff]  }
  0x40   :  { %1027 = vmatpush1.bf16.msra.mxu1 %v1650_v46  ;;  %v1738_v46 = vld [vmem:[#allocation2 + $0x194] ss:$8 sps:$4 sm:$0xff]  }
  0x41   :  { %1133 = vmatpush1.bf16.msra.mxu0 %v1651_v47  ;;  %1028 = vmatprep.subr.bf16.mxu1 %v1652_v49  ;;  %v1741_v47 = vld [vmem:[#allocation2 + $0x394] ss:$8 sps:$4 sm:$0xff]   ;;  %v1739_v49 = vld [vmem:[#allocation2 + $0x390] ss:$8 sps:$4 sm:$0xff]  }
  0x42   :  { %1134 = vmatprep.subr.bf16.mxu0 %v1654_v50  ;;  %v1744_v50 = vld [vmem:[#allocation2 + $0x1a4] ss:$8 sps:$4 sm:$0xff]  }
  0x44   :  { %1029 = vmatpush1.bf16.msra.mxu1 %v1656_v52  ;;  %v1742_v52 = vld [vmem:[#allocation2 + $0x1a0] ss:$8 sps:$4 sm:$0xff]  }
  0x45   :  { %1135 = vmatpush1.bf16.msra.mxu0 %v1657_v53  ;;  %1030 = vmatprep.subr.bf16.mxu1 %v1658_v54  ;;  %v1745_v53 = vld [vmem:[#allocation2 + $0x3a0] ss:$8 sps:$4 sm:$0xff]   ;;  %v1750_v54 = vld [vmem:[#allocation2 + $0x1b4] ss:$8 sps:$4 sm:$0xff]  }
  0x46   :  { %1136 = vmatprep.subr.bf16.mxu0 %v1660_v55  ;;  %v1753_v55 = vld [vmem:[#allocation2 + $0x3b4] ss:$8 sps:$4 sm:$0xff]  }
  0x48   :  { %1031 = vmatpush1.bf16.msra.mxu1 %v1662_v56  ;;  %v1748_v56 = vld [vmem:[#allocation2 + $0x1b0] ss:$8 sps:$4 sm:$0xff]  }
  0x49   :  { %1137 = vmatpush1.bf16.msra.mxu0 %v1663_v57  ;;  %1032 = vmatprep.subr.bf16.mxu1 %v1664_v58  ;;  %v1751_v57 = vld [vmem:[#allocation2 + $0x3b0] ss:$8 sps:$4 sm:$0xff]   ;;  %v1756_v58 = vld [vmem:[#allocation2 + $0x1c4] ss:$8 sps:$4 sm:$0xff]  }
  0x4a   :  { %1138 = vmatprep.subr.bf16.mxu0 %v1666_v59  ;;  %v1759_v59 = vld [vmem:[#allocation2 + $0x3c4] ss:$8 sps:$4 sm:$0xff]  }
  0x4c   :  { %1033 = vmatpush1.bf16.msra.mxu1 %v1668_v60  ;;  %v1754_v60 = vld [vmem:[#allocation2 + $0x1c0] ss:$8 sps:$4 sm:$0xff]  }
  0x4d   :  { %1139 = vmatpush1.bf16.msra.mxu0 %v1669_v61  ;;  %1034 = vmatprep.subr.bf16.mxu1 %v1670_v62  ;;  %v1757_v61 = vld [vmem:[#allocation2 + $0x3c0] ss:$8 sps:$4 sm:$0xff]   ;;  %v1762_v62 = vld [vmem:[#allocation2 + $0x1d4] ss:$8 sps:$4 sm:$0xff]  }
  0x4e   :  { %1140 = vmatprep.subr.bf16.mxu0 %v1672_v63  ;;  %v1765_v63 = vld [vmem:[#allocation2 + $0x3d4] ss:$8 sps:$4 sm:$0xff]  }
  0x50   :  { %1035 = vmatpush1.bf16.msra.mxu1 %v1674_v0  ;;  %v1760_v0 = vld [vmem:[#allocation2 + $0x1d0] ss:$8 sps:$4 sm:$0xff]  }
  0x51   :  { %1141 = vmatpush1.bf16.msra.mxu0 %v1675_v1  ;;  %1057 = vmatprep.subr.bf16.mxu1 %v1681_v2  ;;  %v1763_v1 = vld [vmem:[#allocation2 + $0x3d0] ss:$8 sps:$4 sm:$0xff]   ;;  %v1773_v2 = vld [vmem:[#allocation2 + $0x1e4] ss:$8 sps:$4 sm:$0xff]  }
  0x52   :  { %1163 = vmatprep.subr.bf16.mxu0 %v1687_v3  ;;  %v1777_v3 = vld [vmem:[#allocation2 + $0x3e4] ss:$8 sps:$4 sm:$0xff]  }
  0x53   :  { %1037 = vmatmul.mubr.bf16.vlgmr.msra.gmra.mrb[0].mxu1 %v1676_v4  ;;  %v1771_v4 = vld [vmem:[#allocation2 + $0x1e0] ss:$8 sps:$4 sm:$0xff]  }
  0x54   :  { %1143 = vmatmul.mubr.bf16.vlgmr.msra.gmra.mrb[0].mxu0 %v1682_v6  ;;  %1058 = vmatpush1.bf16.msra.mxu1 %v1679_v5  ;;  %v1775_v5 = vld [vmem:[#allocation2 + $0x3e0] ss:$8 sps:$4 sm:$0xff]   ;;  %v1780_v6 = vld [vmem:[#allocation2 + $0x1f4] ss:$8 sps:$4 sm:$0xff]  }
  0x55   :  { %1164 = vmatpush1.bf16.msra.mxu0 %v1685_v7  ;;  %1059 = vmatprep.subr.bf16.mxu1 %v1690_v8  ;;  %v1783_v7 = vld [vmem:[#allocation2 + $0x3f4] ss:$8 sps:$4 sm:$0xff]   ;;  %v1778_v8 = vld [vmem:[#allocation2 + $0x1f0] ss:$8 sps:$4 sm:$0xff]  }
  0x56   :  { %1165 = vmatprep.subr.bf16.mxu0 %v1693_v9  ;;  %1046 = vmatprep.mubr.bf16.mxu1 %v1766_v29  ;;  %v1781_v9 = vld [vmem:[#allocation2 + $0x3f0] ss:$8 sps:$4 sm:$0xff]   ;;  %v1816_v29 = vld [vmem:[#allocation2 + $0x464] ss:$8 sps:$4 sm:$0xff]  }
  0x57   :  { %1152 = vmatprep.mubr.bf16.mxu0 %v1768_v30  ;;  %v1814_v30 = vld [vmem:[#allocation2 + $0x460] ss:$8 sps:$4 sm:$0xff]  }
  0x58   :  { %1060 = vmatpush1.bf16.msra.mxu1 %v1688_v10  ;;  %v1792_v10 = vld [vmem:[#allocation2 + $0x404] ss:$8 sps:$4 sm:$0xff]  }
  0x59   :  { %1166 = vmatpush1.bf16.msra.mxu0 %v1691_v11  ;;  %1061 = vmatprep.subr.bf16.mxu1 %v1696_v12  ;;  %v1784_v11 = vld [vmem:[%s1954_s0 + $0x8] ss:$36 sps:$4 sm:$0xff]   ;;  %v1787_v12 = vld [vmem:[%s1954_s0 + $0x18] ss:$36 sps:$4 sm:$0xff]  }
  0x5a   :  { %1167 = vmatprep.subr.bf16.mxu0 %v1699_v13  ;;  %v1790_v13 = vld [vmem:[#allocation2 + $0x400] ss:$8 sps:$4 sm:$0xff]  }
  0x5b   :  { %1047 = vmatmul.mubr.bf16.gmra.mrb[4].mxu1 %v1770_v31  ;;  %v1819_v31 = vld [vmem:[#allocation2 + $0x474] ss:$8 sps:$4 sm:$0xff]  }
  0x5c   :  { %1062 = vmatpush1.bf16.msra.mxu1 %v1694_v14  ;;  %1153 = vmatmul.mubr.bf16.gmra.mrb[4].mxu0 %v1774_v33  ;;  %v1795_v14 = vld [vmem:[#allocation2 + $0x414] ss:$8 sps:$4 sm:$0xff]   ;;  %v1820_v33 = vld [vmem:[%s1954_s0 + $0x20] ss:$36 sps:$4 sm:$0xff]  }
  0x5d   :  { %1168 = vmatpush1.bf16.msra.mxu0 %v1697_v15  ;;  %1063 = vmatprep.subr.bf16.mxu1 %v1702_v16  ;;  %v1796_v15 = vld [vmem:[%s1954_s0 + $0x54] ss:$36 sps:$4 sm:$0xff]   ;;  %v1798_v16 = vld [vmem:[%s1954_s0 + $0x64] ss:$36 sps:$4 sm:$0xff]  }
  0x5e   :  { %1169 = vmatprep.subr.bf16.mxu0 %v1705_v17  ;;  %1089 = vmatprep.mubr.bf16.mxu1 %v1786_v41  ;;  %v1793_v17 = vld [vmem:[#allocation2 + $0x410] ss:$8 sps:$4 sm:$0xff]  }
  0x5f   :  { %1195 = vmatprep.mubr.bf16.mxu0 %v1789_v43 }
  0x60   :  { %1064 = vmatpush1.bf16.msra.mxu1 %v1700_v18  ;;  %v1804_v18 = vld [vmem:[#allocation2 + $0x424] ss:$8 sps:$4 sm:$0xff]  }
  0x61   :  { %1170 = vmatpush1.bf16.msra.mxu0 %v1703_v19  ;;  %1065 = vmatprep.subr.bf16.mxu1 %v1708_v20  ;;  %v1800_v19 = vld [vmem:[%s1954_s0 + $0x50] ss:$36 sps:$4 sm:$0xff]   ;;  %v1801_v20 = vld [vmem:[%s1954_s0 + $0x60] ss:$36 sps:$4 sm:$0xff]  }
  0x62   :  { %1171 = vmatprep.subr.bf16.mxu0 %v1711_v21  ;;  %v1802_v21 = vld [vmem:[#allocation2 + $0x420] ss:$8 sps:$4 sm:$0xff]  }
  0x64   :  { %1066 = vmatpush1.bf16.msra.mxu1 %v1706_v22  ;;  %v1807_v22 = vld [vmem:[#allocation2 + $0x434] ss:$8 sps:$4 sm:$0xff]  }
  0x65   :  { %1172 = vmatpush1.bf16.msra.mxu0 %v1709_v23  ;;  %1067 = vmatprep.subr.bf16.mxu1 %v1714_v24  ;;  %v1805_v23 = vld [vmem:[#allocation2 + $0x430] ss:$8 sps:$4 sm:$0xff]   ;;  %v1810_v24 = vld [vmem:[#allocation2 + $0x444] ss:$8 sps:$4 sm:$0xff]  }
  0x66   :  { %1173 = vmatprep.subr.bf16.mxu0 %v1717_v25  ;;  %v1849_v25 = vmov 0  }
  0x68   :  { %1068 = vmatpush1.bf16.msra.mxu1 %v1712_v26  ;;  %v1808_v26 = vld [vmem:[#allocation2 + $0x440] ss:$8 sps:$4 sm:$0xff]  }
  0x69   :  { %1174 = vmatpush1.bf16.msra.mxu0 %v1715_v27  ;;  %1069 = vmatprep.subr.bf16.mxu1 %v1720_v28  ;;  %v1813_v27 = vld [vmem:[#allocation2 + $0x454] ss:$8 sps:$4 sm:$0xff]   ;;  %v1811_v28 = vld [vmem:[#allocation2 + $0x450] ss:$8 sps:$4 sm:$0xff]  }
  0x6a   :  { %1175 = vmatprep.subr.bf16.mxu0 %v1723_v32  ;;  %v1817_v32 = vld [vmem:[#allocation2 + $0x470] ss:$8 sps:$4 sm:$0xff]  }
  0x6c   :  { %1070 = vmatpush1.bf16.msra.mxu1 %v1718_v34  ;;  %v1821_v34 = vld [vmem:[%s1954_s0 + $0x68] ss:$36 sps:$4 sm:$0xff]  }
  0x6d   :  { %1176 = vmatpush1.bf16.msra.mxu0 %v1721_v35  ;;  %1071 = vmatprep.subr.bf16.mxu1 %v1726_v36 }
  0x6e   :  { %1177 = vmatprep.subr.bf16.mxu0 %v1729_v37 }
  0x70   :  { %1072 = vmatpush1.bf16.msra.mxu1 %v1724_v38 }
  0x71   :  { %1178 = vmatpush1.bf16.msra.mxu0 %v1727_v39  ;;  %1073 = vmatprep.subr.bf16.mxu1 %v1732_v40 }
  0x72   :  { %1179 = vmatprep.subr.bf16.mxu0 %v1735_v42 }
  0x74   :  { %1074 = vmatpush1.bf16.msra.mxu1 %v1730_v44 }
  0x75   :  { %1180 = vmatpush1.bf16.msra.mxu0 %v1733_v45  ;;  %1075 = vmatprep.subr.bf16.mxu1 %v1738_v46 }
  0x76   :  { %1181 = vmatprep.subr.bf16.mxu0 %v1741_v47 }
  0x78   :  { %1076 = vmatpush1.bf16.msra.mxu1 %v1736_v48 }
  0x79   :  { %1182 = vmatpush1.bf16.msra.mxu0 %v1739_v49  ;;  %1077 = vmatprep.subr.bf16.mxu1 %v1744_v50 }
  0x7a   :  { %1183 = vmatprep.subr.bf16.mxu0 %v1747_v51 }
  0x7c   :  { %1078 = vmatpush1.bf16.msra.mxu1 %v1742_v52 }
  0x7d   :  { %1184 = vmatpush1.bf16.msra.mxu0 %v1745_v53  ;;  %1079 = vmatprep.subr.bf16.mxu1 %v1750_v54 }
  0x7e   :  { %1185 = vmatprep.subr.bf16.mxu0 %v1753_v55 }
  0x80   :  { %1080 = vmatpush1.bf16.msra.mxu1 %v1748_v56 }
  0x81   :  { %1186 = vmatpush1.bf16.msra.mxu0 %v1751_v57  ;;  %1081 = vmatprep.subr.bf16.mxu1 %v1756_v58 }
  0x82   :  { %1187 = vmatprep.subr.bf16.mxu0 %v1759_v59 }
  0x84   :  { %1082 = vmatpush1.bf16.msra.mxu1 %v1754_v60 }
  0x85   :  { %1188 = vmatpush1.bf16.msra.mxu0 %v1757_v61  ;;  %1083 = vmatprep.subr.bf16.mxu1 %v1762_v62 }
  0x86   :  { %1189 = vmatprep.subr.bf16.mxu0 %v1765_v63 }
  0x88   :  { %1084 = vmatpush1.bf16.msra.mxu1 %v1760_v0 }
  0x89   :  { %1190 = vmatpush1.bf16.msra.mxu0 %v1763_v1  ;;  %1085 = vmatprep.subr.bf16.mxu1 %v1773_v2 }
  0x8a   :  { %1191 = vmatprep.subr.bf16.mxu0 %v1777_v3 }
  0x8c   :  { %1086 = vmatpush1.bf16.msra.mxu1 %v1771_v4 }
  0x8d   :  { %1192 = vmatpush1.bf16.msra.mxu0 %v1775_v5  ;;  %1087 = vmatprep.subr.bf16.mxu1 %v1780_v6 }
  0x8e   :  { %1193 = vmatprep.subr.bf16.mxu0 %v1783_v7 }
  0x90   :  { %1088 = vmatpush1.bf16.msra.mxu1 %v1778_v8 }
  0x91   :  { %1194 = vmatpush1.bf16.msra.mxu0 %v1781_v9  ;;  %1528 = vmatprep.subr.bf16.mxu1 %v1792_v10 }
  0x92   :  { %1216 = vmatprep.subr.bf16.mxu0 %v1792_v10 }
  0x93   :  { %1090 = vmatmul.mubr.bf16.vlgmr.msra.gmra.mrb[0].mxu1 %v1784_v11 }
  0x94   :  { %1196 = vmatmul.mubr.bf16.vlgmr.msra.gmra.mrb[0].mxu0 %v1787_v12  ;;  %1536 = vmatpush1.bf16.msra.mxu1 %v1790_v13 }
  0x95   :  { %1217 = vmatpush1.bf16.msra.mxu0 %v1790_v13  ;;  %1529 = vmatprep.subr.bf16.mxu1 %v1795_v14 }
  0x96   :  { %1218 = vmatprep.subr.bf16.mxu0 %v1795_v14  ;;  %1099 = vmatprep.mubr.bf16.mxu1 %v1796_v15 }
  0x97   :  { %1205 = vmatprep.mubr.bf16.mxu0 %v1798_v16 }
  0x98   :  { %1537 = vmatpush1.bf16.msra.mxu1 %v1793_v17 }
  0x99   :  { %1219 = vmatpush1.bf16.msra.mxu0 %v1793_v17  ;;  %1530 = vmatprep.subr.bf16.mxu1 %v1804_v18 }
  0x9a   :  { %1220 = vmatprep.subr.bf16.mxu0 %v1804_v18 }
  0x9b   :  { %1100 = vmatmul.mubr.bf16.gmra.mrb[4].mxu1 %v1800_v19 }
  0x9c   :  { %1206 = vmatmul.mubr.bf16.gmra.mrb[4].mxu0 %v1801_v20  ;;  %1538 = vmatpush1.bf16.msra.mxu1 %v1802_v21 }
  0x9d   :  { %1221 = vmatpush1.bf16.msra.mxu0 %v1802_v21  ;;  %1531 = vmatprep.subr.bf16.mxu1 %v1807_v22 }
  0x9e   :  { %1222 = vmatprep.subr.bf16.mxu0 %v1807_v22  ;;  %1248 = vmatprep.mubr.bf16.mxu0 %v1849_v25 }
  0x9f   :  { %1258 = vmatprep.mubr.bf16.mxu1 %v1849_v25 }
  0xa0   :  { %1539 = vmatpush1.bf16.msra.mxu1 %v1805_v23 }
  0xa1   :  { %1223 = vmatpush1.bf16.msra.mxu0 %v1805_v23  ;;  %1532 = vmatprep.subr.bf16.mxu1 %v1810_v24 }
  0xa2   :  { %1224 = vmatprep.subr.bf16.mxu0 %v1810_v24 }
  0xa4   :  { %1540 = vmatpush1.bf16.msra.mxu1 %v1808_v26 }
  0xa5   :  { %1225 = vmatpush1.bf16.msra.mxu0 %v1808_v26  ;;  %1533 = vmatprep.subr.bf16.mxu1 %v1813_v27 }
  0xa6   :  { %1226 = vmatprep.subr.bf16.mxu0 %v1813_v27 }
  0xa8   :  { %1541 = vmatpush1.bf16.msra.mxu1 %v1811_v28 }
  0xa9   :  { %1227 = vmatpush1.bf16.msra.mxu0 %v1811_v28  ;;  %1534 = vmatprep.subr.bf16.mxu1 %v1816_v29 }
  0xaa   :  { %1228 = vmatprep.subr.bf16.mxu0 %v1816_v29 }
  0xac   :  { %1542 = vmatpush1.bf16.msra.mxu1 %v1814_v30 }
  0xad   :  { %1229 = vmatpush1.bf16.msra.mxu0 %v1814_v30  ;;  %1535 = vmatprep.subr.bf16.mxu1 %v1819_v31 }
  0xae   :  { %1230 = vmatprep.subr.bf16.mxu0 %v1819_v31 }
  0xb0   :  { %1543 = vmatpush1.bf16.msra.mxu1 %v1817_v32 }
  0xb1   :  { %1231 = vmatpush1.bf16.msra.mxu0 %v1817_v32 }
  0xb3   :  { %1259 = vmatmul.mubr.bf16.vlgmr.msra.gmra.mrb[8].mxu1 %v1821_v34 }
  0xb4   :  { %1249 = vmatmul.mubr.bf16.vlgmr.msra.gmra.mrb[0].mxu0 %v1820_v33 }
 0x166   :  { %v1091_v35 = vpop.f32.mrb[0].mxu1 }
 0x167   :  { %v1093_v36 = vpop.f32.mrb[1].mxu1 }
 0x168   :  { %v1095_v37 = vpop.f32.mrb[2].mxu1 }
 0x169   :  { %v1097_v38 = vpop.f32.mrb[3].mxu1 }
 0x16e   :  { %v1101_v39 = vpop.f32.mrb[4].mxu1 }
 0x16f   :  { %v1207_v40 = vpop.f32.mrb[4].mxu0  ;;  %v1103_v42 = vpop.f32.mrb[5].mxu1 }
 0x170   :  { %v1548_v41 = vadd.f32 %v1207_v40, %v1101_v39  ;;  %v1209_v43 = vpop.f32.mrb[5].mxu0  ;;  %v1105_v45 = vpop.f32.mrb[6].mxu1 }
 0x171   :  { %v1550_v44 = vadd.f32 %v1209_v43, %v1103_v42  ;;  %v1211_v46 = vpop.f32.mrb[6].mxu0  ;;  %v1107_v48 = vpop.f32.mrb[7].mxu1 }
 0x172   :  { %v1552_v47 = vadd.f32 %v1211_v46, %v1105_v45  ;;  %v1213_v49 = vpop.f32.mrb[7].mxu0 }
 0x173   :  { %v1554_v50 = vadd.f32 %v1213_v49, %v1107_v48 }
 0x186   :  { %v1260_v52 = vpop.f32.mrb[8].mxu1 }
 0x187   :  { %v1250_v51 = vpop.f32.mrb[0].mxu0  ;;  %v1549_v54 = vadd.f32 %v1548_v41, %v1260_v52  ;;  %v1262_v56 = vpop.f32.mrb[9].mxu1 }
 0x188   :  { %v1544_v53 = vadd.f32 %v1250_v51, %v1091_v35  ;;  %v1252_v55 = vpop.f32.mrb[1].mxu0  ;;  %v1551_v58 = vadd.f32 %v1550_v44, %v1262_v56  ;;  %v1264_v60 = vpop.f32.mrb[10].mxu1 }
 0x189   :  { %v1545_v57 = vadd.f32 %v1252_v55, %v1093_v36  ;;  %v1254_v59 = vpop.f32.mrb[2].mxu0  ;;  %v1553_v62 = vadd.f32 %v1552_v47, %v1264_v60  ;;  %v1266_v0 = vpop.f32.mrb[11].mxu1  ;;  %v1319_v7 = vmul.f32 %v1549_v54, %v1549_v54 }
 0x18a   :  { %v1546_v61 = vadd.f32 %v1254_v59, %v1095_v37  ;;  %v1256_v63 = vpop.f32.mrb[3].mxu0  ;;  %v1526_v2 = vpack.c.bf16 %v1551_v58, %v1549_v54  ;;  %v1315_v3 = vmul.f32 %v1544_v53, %v1544_v53  ;;  %v1555_v8 = vadd.f32 %v1554_v50, %v1266_v0 }
 0x18b   :  { %v1524_v1 = vpack.c.bf16 %v1545_v57, %v1544_v53  ;;  %v1547_v6 = vadd.f32 %v1256_v63, %v1097_v38  ;;  %v1316_v13 = vmul.f32 %v1545_v57, %v1545_v57  ;;  %v1321_v17 = vmul.f32 %v1553_v62, %v1553_v62 }
 0x18c   :  { %v1297_v4 = vadd.f32 %v1546_v61, %v1544_v53  ;;  %v1317_v5 = vmul.f32 %v1546_v61, %v1546_v61  ;;  %1295 = vst [vmem:[%s1956_s2 + $0x10] sm:$0xff] %v1526_v2  ;;  %v1527_v15 = vpack.c.bf16 %v1555_v8, %v1553_v62  ;;  %v1320_v20 = vmul.f32 %v1551_v58, %v1551_v58 }
 0x18d   :  { %1293 = vst [vmem:[%s1956_s2] sm:$0xff] %v1524_v1  ;;  %v1525_v11 = vpack.c.bf16 %v1547_v6, %v1546_v61  ;;  %v1306_v12 = vadd.f32 %v1547_v6, %v1545_v57  ;;  %v1318_v14 = vmul.f32 %v1547_v6, %v1547_v6  ;;  %v1322_v25 = vmul.f32 %v1555_v8, %v1555_v8 }
 0x18e   :  { %v1323_v9 = vadd.f32 %v1317_v5, %v1315_v3  ;;  %v1298_v10 = vadd.f32 %v1549_v54, %v1297_v4  ;;  %1296 = vst [vmem:[%s1956_s2 + $0x18] sm:$0xff] %v1527_v15 }
 0x18f   :  { %1294 = vst [vmem:[%s1956_s2 + $0x8] sm:$0xff] %v1525_v11  ;;  %v1307_v19 = vadd.f32 %v1551_v58, %v1306_v12  ;;  %v1332_v21 = vadd.f32 %v1318_v14, %v1316_v13 }
 0x190   :  { %v1299_v16 = vadd.f32 %v1553_v62, %v1298_v10  ;;  %v1324_v18 = vadd.f32 %v1323_v9, %v1319_v7 }
 0x191   :  { %v1308_v24 = vadd.f32 %v1555_v8, %v1307_v19  ;;  %v1333_v26 = vadd.f32 %v1332_v21, %v1320_v20 }
 0x192   :  { %v1300_v22 = vrot.slane %v1299_v16, 4  ;;  %v1325_v23 = vadd.f32 %v1324_v18, %v1321_v17 }
 0x193   :  { %v1309_v29 = vrot.slane %v1308_v24, 4  ;;  %v1334_v30 = vadd.f32 %v1333_v26, %v1322_v25 }
 0x194   :  { %v1301_v27 = vadd.f32 %v1300_v22, %v1299_v16  ;;  %v1326_v28 = vrot.slane %v1325_v23, 4 }
 0x195   :  { %v1310_v33 = vadd.f32 %v1309_v29, %v1308_v24  ;;  %v1335_v34 = vrot.slane %v1334_v30, 4 }
 0x196   :  { %v1302_v31 = vrot.slane %v1301_v27, 2  ;;  %v1327_v32 = vadd.f32 %v1326_v28, %v1325_v23 }
 0x197   :  { %v1311_v37 = vrot.slane %v1310_v33, 2  ;;  %v1336_v38 = vadd.f32 %v1335_v34, %v1334_v30 }
 0x198   :  { %v1303_v35 = vadd.f32 %v1302_v31, %v1301_v27  ;;  %v1328_v36 = vrot.slane %v1327_v32, 2 }
 0x199   :  { %v1312_v41 = vadd.f32 %v1311_v37, %v1310_v33  ;;  %v1337_v42 = vrot.slane %v1336_v38, 2 }
 0x19a   :  { %v1304_v39 = vrot.slane %v1303_v35, 1  ;;  %v1329_v40 = vadd.f32 %v1328_v36, %v1327_v32 }
 0x19b   :  { %v1313_v44 = vrot.slane %v1312_v41, 1  ;;  %v1338_v45 = vadd.f32 %v1337_v42, %v1336_v38 }
 0x19c   :  { %v1330_v43 = vrot.slane %v1329_v40, 1  ;;  %v1305_v46 = vadd.f32 %v1304_v39, %v1303_v35 }
 0x19d   :  { %v1339_v48 = vrot.slane %v1338_v45, 1  ;;  %v1314_v51 = vadd.f32 %v1313_v44, %v1312_v41 }
 0x19e   :  { %v1331_v47 = vadd.f32 %v1330_v43, %v1329_v40 }
 0x19f   :  { %v1340_v52 = vadd.f32 %v1339_v48, %v1338_v45 }
 0x1a0   :  { %v1342_v49 = vsel %vm1341_vm0, %v1305_v46, %v1331_v47 }
 0x1a1   :  { %v1345_v50 = vsel %vm1344_vm1, %v1342_v49, 0.0  ;;  %v1343_v53 = vsel %vm1341_vm0, %v1314_v51, %v1340_v52 }
 0x1a2   :  { %1347 = vst [vmem:[%s1957_s3] sm:$0xff] %v1345_v50  ;;  %v1346_v54 = vsel %vm1344_vm1, %v1343_v53, 0.0 }
 0x1a3   :  { %1348 = vst [vmem:[%s1957_s3 + $0x8] sm:$0xff] %v1346_v54 }
 0x1a4   :  { %1357 = vsyncpa [#allocation3], 1 }

// kernel: encoder_forward.16
= control target key start
LH: loop header
LB: loop body
LE: loop exit
PB: predicated region body
PF: predicated region fallthrough
CT: control target
= control target key end

     0   :  { %v28_v0 = vlaneseq  ;;  %s200_s0 = inlined_call_operand.vmem [shape: bf16[16,512], index: 0, kind: input, shape index: {}]   ;;  %s201_s1 = inlined_call_operand.vmem [shape: f32[1,512], index: 1, kind: input, shape index: {}]   ;;  %s202_s2 = inlined_call_operand.vmem [shape: f32[1,512], index: 2, kind: input, shape index: {}]   ;;  %s203_s3 = inlined_call_operand.vmem [shape: bf16[16,512], index: 3, kind: output, shape index: {}]  }
   0x1   :  { %v14_v1 = vld [vmem:[%s200_s0] sm:$0xff]  ;;  %v15_v3 = vld [vmem:[%s200_s0 + $0x8] sm:$0xff]  ;;  %v16_v4 = vld [vmem:[%s200_s0 + $0x10] sm:$0xff] }
   0x2   :  { %v29_v2 = vshrl.u32 %v28_v0, 7  ;;  %v17_v5 = vld [vmem:[%s200_s0 + $0x18] sm:$0xff]  ;;  %v18_v6 = vunpack.c.l.bf16 %v14_v1  ;;  %v19_v7 = vunpack.c.h.bf16 %v14_v1  ;;  %v26_v8 = vld [vmem:[%s201_s1] sm:$0xf]  ;;  %v22_v10 = vunpack.c.l.bf16 %v16_v4 }
   0x3   :  { %v56_v9 = vld [vmem:[%s202_s2] sm:$0xf]  ;;  %v23_v11 = vunpack.c.h.bf16 %v16_v4  ;;  %v20_v16 = vunpack.c.l.bf16 %v15_v3  ;;  %v21_v17 = vunpack.c.h.bf16 %v15_v3  ;;  %v24_v18 = vunpack.c.l.bf16 %v17_v5 }
   0x4   :  { %v30_v12 = vsub.s32 0, %v29_v2  ;;  %v34_v13 = vsub.s32 1, %v29_v2  ;;  %v38_v14 = vsub.s32 2, %v29_v2  ;;  %v42_v15 = vsub.s32 3, %v29_v2 }
   0x5   :  { %v25_v19 = vunpack.c.h.bf16 %v17_v5 }
   0x6   :  { %v31_v20 = vrot.slane %v26_v8, %v30_v12  ;;  %v35_v21 = vrot.slane %v26_v8, %v34_v13  ;;  %v61_v22 = vrot.slane %v56_v9, %v30_v12  ;;  %v65_v23 = vrot.slane %v56_v9, %v34_v13 }
   0x7   :  { %v39_v24 = vrot.slane %v26_v8, %v38_v14  ;;  %v43_v25 = vrot.slane %v26_v8, %v42_v15  ;;  %v69_v26 = vrot.slane %v56_v9, %v38_v14  ;;  %v73_v27 = vrot.slane %v56_v9, %v42_v15 }
   0x8   :  { %v48_v28 = vmul.f32 %v31_v20, %v18_v6  ;;  %v49_v29 = vmul.f32 %v35_v21, %v19_v7  ;;  %v52_v30 = vmul.f32 %v31_v20, %v22_v10  ;;  %v53_v31 = vmul.f32 %v35_v21, %v23_v11 }
   0x9   :  { %v50_v32 = vmul.f32 %v39_v24, %v20_v16  ;;  %v51_v33 = vmul.f32 %v43_v25, %v21_v17  ;;  %v54_v34 = vmul.f32 %v39_v24, %v24_v18  ;;  %v55_v35 = vmul.f32 %v43_v25, %v25_v19 }
   0xa   :  { %v78_v36 = vadd.f32 %v61_v22, %v48_v28  ;;  %v79_v37 = vadd.f32 %v65_v23, %v49_v29  ;;  %v82_v38 = vadd.f32 %v61_v22, %v52_v30  ;;  %v83_v39 = vadd.f32 %v65_v23, %v53_v31 }
   0xb   :  { %v80_v40 = vadd.f32 %v69_v26, %v50_v32  ;;  %v81_v41 = vadd.f32 %v73_v27, %v51_v33  ;;  %v84_v42 = vadd.f32 %v69_v26, %v54_v34  ;;  %v85_v43 = vadd.f32 %v73_v27, %v55_v35 }
   0xc   :  { %vm86_vm0 = vcmp.ge.f32.partialorder %v78_v36, 0.0  ;;  %vm87_vm1 = vcmp.ge.f32.partialorder %v79_v37, 0.0  ;;  %v94_v44 = vmul.f32 0.2, %v78_v36  ;;  %v95_v45 = vmul.f32 0.2, %v79_v37 }
   0xd   :  { %vm88_vm2 = vcmp.ge.f32.partialorder %v80_v40, 0.0  ;;  %vm89_vm3 = vcmp.ge.f32.partialorder %v81_v41, 0.0  ;;  %v96_v46 = vmul.f32 0.2, %v80_v40  ;;  %v97_v47 = vmul.f32 0.2, %v81_v41 }
   0xe   :  { %v102_v48 = vsel %vm86_vm0, %v78_v36, %v94_v44  ;;  %v103_v49 = vsel %vm87_vm1, %v79_v37, %v95_v45  ;;  %vm90_vm4 = vcmp.ge.f32.partialorder %v82_v38, 0.0  ;;  %vm91_vm5 = vcmp.ge.f32.partialorder %v83_v39, 0.0 }
   0xf   :  { %v146_v50 = vpack.c.bf16 %v103_v49, %v102_v48  ;;  %v104_v51 = vsel %vm88_vm2, %v80_v40, %v96_v46  ;;  %v105_v52 = vsel %vm89_vm3, %v81_v41, %v97_v47  ;;  %v98_v53 = vmul.f32 0.2, %v82_v38 }
  0x10   :  { %v147_v54 = vpack.c.bf16 %v105_v52, %v104_v51  ;;  %v99_v55 = vmul.f32 0.2, %v83_v39  ;;  %vm92_vm6 = vcmp.ge.f32.partialorder %v84_v42, 0.0  ;;  %vm93_vm7 = vcmp.ge.f32.partialorder %v85_v43, 0.0 }
  0x11   :  { %134 = vst [vmem:[%s203_s3] sm:$0xff] %v146_v50  ;;  %v106_v56 = vsel %vm90_vm4, %v82_v38, %v98_v53  ;;  %v100_v57 = vmul.f32 0.2, %v84_v42  ;;  %v101_v58 = vmul.f32 0.2, %v85_v43 }
  0x12   :  { %135 = vst [vmem:[%s203_s3 + $0x8] sm:$0xff] %v147_v54  ;;  %v107_v59 = vsel %vm91_vm5, %v83_v39, %v99_v55 }
  0x13   :  { %v148_v60 = vpack.c.bf16 %v107_v59, %v106_v56  ;;  %v108_v61 = vsel %vm92_vm6, %v84_v42, %v100_v57  ;;  %v109_v62 = vsel %vm93_vm7, %v85_v43, %v101_v58 }
  0x14   :  { %v149_v63 = vpack.c.bf16 %v109_v62, %v108_v61 }
  0x15   :  { %136 = vst [vmem:[%s203_s3 + $0x10] sm:$0xff] %v148_v60 }
  0x16   :  { %137 = vst [vmem:[%s203_s3 + $0x18] sm:$0xff] %v149_v63 }

// kernel: encoder_forward.14
= control target key start
LH: loop header
LB: loop body
LE: loop exit
PB: predicated region body
PF: predicated region fallthrough
CT: control target
= control target key end

     0   :  { %s4031_s1 = inlined_call_operand.vmem [shape: bf16[2304,256], index: 1, kind: input, shape index: {}]   ;;  %s4032_s0 = inlined_call_operand.vmem [shape: bf16[16,2304], index: 0, kind: input, shape index: {}]   ;;  %s4033_s2 = inlined_call_operand.vmem [shape: f32[1,256], index: 2, kind: input, shape index: {}]   ;;  %s4034_s3 = inlined_call_operand.vmem [shape: bf16[16,256], index: 3, kind: output, shape index: {}]  }
   0x1   :  { %v2625_v0 = vld [vmem:[%s4031_s1 + $0x4] ss:$8 sps:$4 sm:$0xff]   ;;  %v2629_v2 = vld [vmem:[%s4031_s1] ss:$8 sps:$4 sm:$0xff]   ;;  %v2631_v4 = vld [vmem:[%s4031_s1 + $0x14] ss:$8 sps:$4 sm:$0xff]  }
   0x2   :  { %v2627_v1 = vld [vmem:[%s4031_s1 + $0x404] ss:$8 sps:$4 sm:$0xff]   ;;  %1862 = vmatprep.subr.bf16.mxu1 %v2625_v0  ;;  %v2630_v3 = vld [vmem:[%s4031_s1 + $0x400] ss:$8 sps:$4 sm:$0xff]   ;;  %v2633_v5 = vld [vmem:[%s4031_s1 + $0x414] ss:$8 sps:$4 sm:$0xff]  }
   0x3   :  { %2034 = vmatprep.subr.bf16.mxu0 %v2627_v1  ;;  %1863 = vmatpush1.bf16.msra.mxu1 %v2629_v2  ;;  %v2635_v6 = vld [vmem:[%s4031_s1 + $0x10] ss:$8 sps:$4 sm:$0xff]   ;;  %v2637_v8 = vld [vmem:[%s4031_s1 + $0x24] ss:$8 sps:$4 sm:$0xff]   ;;  %v2641_v10 = vld [vmem:[%s4031_s1 + $0x20] ss:$8 sps:$4 sm:$0xff]  }
   0x4   :  { %2035 = vmatpush1.bf16.msra.mxu0 %v2630_v3  ;;  %1864 = vmatprep.subr.bf16.mxu1 %v2631_v4  ;;  %v2636_v7 = vld [vmem:[%s4031_s1 + $0x410] ss:$8 sps:$4 sm:$0xff]   ;;  %v2639_v9 = vld [vmem:[%s4031_s1 + $0x424] ss:$8 sps:$4 sm:$0xff]   ;;  %v2642_v11 = vld [vmem:[%s4031_s1 + $0x420] ss:$8 sps:$4 sm:$0xff]  }
   0x5   :  { %2036 = vmatprep.subr.bf16.mxu0 %v2633_v5  ;;  %v2643_v12 = vld [vmem:[%s4031_s1 + $0x34] ss:$8 sps:$4 sm:$0xff]   ;;  %v2647_v14 = vld [vmem:[%s4031_s1 + $0x30] ss:$8 sps:$4 sm:$0xff]   ;;  %v2649_v16 = vld [vmem:[%s4031_s1 + $0x44] ss:$8 sps:$4 sm:$0xff]  }
   0x6   :  { %v2645_v13 = vld [vmem:[%s4031_s1 + $0x434] ss:$8 sps:$4 sm:$0xff]   ;;  %v2648_v15 = vld [vmem:[%s4031_s1 + $0x430] ss:$8 sps:$4 sm:$0xff]   ;;  %v2651_v17 = vld [vmem:[%s4031_s1 + $0x444] ss:$8 sps:$4 sm:$0xff]  }
   0x7   :  { %1865 = vmatpush1.bf16.msra.mxu1 %v2635_v6  ;;  %v2653_v18 = vld [vmem:[%s4031_s1 + $0x40] ss:$8 sps:$4 sm:$0xff]   ;;  %v2655_v20 = vld [vmem:[%s4031_s1 + $0x54] ss:$8 sps:$4 sm:$0xff]   ;;  %v2659_v22 = vld [vmem:[%s4031_s1 + $0x50] ss:$8 sps:$4 sm:$0xff]  }
   0x8   :  { %2037 = vmatpush1.bf16.msra.mxu0 %v2636_v7  ;;  %1866 = vmatprep.subr.bf16.mxu1 %v2637_v8  ;;  %v2654_v19 = vld [vmem:[%s4031_s1 + $0x440] ss:$8 sps:$4 sm:$0xff]   ;;  %v2657_v21 = vld [vmem:[%s4031_s1 + $0x454] ss:$8 sps:$4 sm:$0xff]   ;;  %v2660_v23 = vld [vmem:[%s4031_s1 + $0x450] ss:$8 sps:$4 sm:$0xff]  }
   0x9   :  { %2038 = vmatprep.subr.bf16.mxu0 %v2639_v9  ;;  %v2661_v24 = vld [vmem:[%s4031_s1 + $0x64] ss:$8 sps:$4 sm:$0xff]   ;;  %v2665_v26 = vld [vmem:[%s4031_s1 + $0x60] ss:$8 sps:$4 sm:$0xff]   ;;  %v2667_v28 = vld [vmem:[%s4031_s1 + $0x74] ss:$8 sps:$4 sm:$0xff]  }
   0xa   :  { %v2663_v25 = vld [vmem:[%s4031_s1 + $0x464] ss:$8 sps:$4 sm:$0xff]   ;;  %v2666_v27 = vld [vmem:[%s4031_s1 + $0x460] ss:$8 sps:$4 sm:$0xff]   ;;  %v2669_v29 = vld [vmem:[%s4031_s1 + $0x474] ss:$8 sps:$4 sm:$0xff]  }
   0xb   :  { %1867 = vmatpush1.bf16.msra.mxu1 %v2641_v10  ;;  %v2671_v30 = vld [vmem:[%s4031_s1 + $0x70] ss:$8 sps:$4 sm:$0xff]   ;;  %v2673_v32 = vld [vmem:[%s4031_s1 + $0x84] ss:$8 sps:$4 sm:$0xff]   ;;  %v2677_v34 = vld [vmem:[%s4031_s1 + $0x80] ss:$8 sps:$4 sm:$0xff]  }
   0xc   :  { %2039 = vmatpush1.bf16.msra.mxu0 %v2642_v11  ;;  %1868 = vmatprep.subr.bf16.mxu1 %v2643_v12  ;;  %v2672_v31 = vld [vmem:[%s4031_s1 + $0x470] ss:$8 sps:$4 sm:$0xff]   ;;  %v2675_v33 = vld [vmem:[%s4031_s1 + $0x484] ss:$8 sps:$4 sm:$0xff]   ;;  %v2678_v35 = vld [vmem:[%s4031_s1 + $0x480] ss:$8 sps:$4 sm:$0xff]  }
   0xd   :  { %2040 = vmatprep.subr.bf16.mxu0 %v2645_v13  ;;  %v2679_v36 = vld [vmem:[%s4031_s1 + $0x94] ss:$8 sps:$4 sm:$0xff]   ;;  %v2683_v38 = vld [vmem:[%s4031_s1 + $0x90] ss:$8 sps:$4 sm:$0xff]   ;;  %v2685_v40 = vld [vmem:[%s4031_s1 + $0xa4] ss:$8 sps:$4 sm:$0xff]  }
   0xe   :  { %v2681_v37 = vld [vmem:[%s4031_s1 + $0x494] ss:$8 sps:$4 sm:$0xff]   ;;  %v2684_v39 = vld [vmem:[%s4031_s1 + $0x490] ss:$8 sps:$4 sm:$0xff]   ;;  %v2687_v41 = vld [vmem:[%s4031_s1 + $0x4a4] ss:$8 sps:$4 sm:$0xff]  }
   0xf   :  { %1869 = vmatpush1.bf16.msra.mxu1 %v2647_v14  ;;  %v2689_v42 = vld [vmem:[%s4031_s1 + $0xa0] ss:$8 sps:$4 sm:$0xff]   ;;  %v2691_v44 = vld [vmem:[%s4031_s1 + $0xb4] ss:$8 sps:$4 sm:$0xff]   ;;  %v2695_v46 = vld [vmem:[%s4031_s1 + $0xb0] ss:$8 sps:$4 sm:$0xff]  }
  0x10   :  { %2041 = vmatpush1.bf16.msra.mxu0 %v2648_v15  ;;  %1870 = vmatprep.subr.bf16.mxu1 %v2649_v16  ;;  %v2690_v43 = vld [vmem:[%s4031_s1 + $0x4a0] ss:$8 sps:$4 sm:$0xff]   ;;  %v2693_v45 = vld [vmem:[%s4031_s1 + $0x4b4] ss:$8 sps:$4 sm:$0xff]   ;;  %v2696_v47 = vld [vmem:[%s4031_s1 + $0x4b0] ss:$8 sps:$4 sm:$0xff]  }
  0x11   :  { %2042 = vmatprep.subr.bf16.mxu0 %v2651_v17  ;;  %v2723_v48 = vld [vmem:[%s4032_s0 + $0x4] ss:$72 sps:$4 sm:$0xff]   ;;  %v2701_v52 = vld [vmem:[%s4031_s1 + $0xc0] ss:$8 sps:$4 sm:$0xff]   ;;  %v2703_v54 = vld [vmem:[%s4031_s1 + $0xd4] ss:$8 sps:$4 sm:$0xff]  }
  0x12   :  { %v2697_v49 = vld [vmem:[%s4031_s1 + $0xc4] ss:$8 sps:$4 sm:$0xff]   ;;  %1894 = vmatprep.mubr.bf16.mxu1 %v2723_v48  ;;  %v2702_v53 = vld [vmem:[%s4031_s1 + $0x4c0] ss:$8 sps:$4 sm:$0xff]   ;;  %v2705_v55 = vld [vmem:[%s4031_s1 + $0x4d4] ss:$8 sps:$4 sm:$0xff]  }
  0x13   :  { %1871 = vmatpush1.bf16.msra.mxu1 %v2653_v18  ;;  %v2699_v50 = vld [vmem:[%s4031_s1 + $0x4c4] ss:$8 sps:$4 sm:$0xff]   ;;  %v2707_v56 = vld [vmem:[%s4031_s1 + $0xd0] ss:$8 sps:$4 sm:$0xff]   ;;  %v2713_v60 = vld [vmem:[%s4031_s1 + $0xe0] ss:$8 sps:$4 sm:$0xff]  }
  0x14   :  { %2043 = vmatpush1.bf16.msra.mxu0 %v2654_v19  ;;  %1872 = vmatprep.subr.bf16.mxu1 %v2655_v20  ;;  %v2729_v51 = vld [vmem:[%s4032_s0 + $0x24] ss:$72 sps:$4 sm:$0xff]   ;;  %v2708_v57 = vld [vmem:[%s4031_s1 + $0x4d0] ss:$8 sps:$4 sm:$0xff]   ;;  %v2714_v61 = vld [vmem:[%s4031_s1 + $0x4e0] ss:$8 sps:$4 sm:$0xff]  }
  0x15   :  { %2044 = vmatprep.subr.bf16.mxu0 %v2657_v21  ;;  %2066 = vmatprep.mubr.bf16.mxu0 %v2729_v51  ;;  %v2709_v58 = vld [vmem:[%s4031_s1 + $0xe4] ss:$8 sps:$4 sm:$0xff]   ;;  %v2715_v62 = vld [vmem:[%s4031_s1 + $0xf4] ss:$8 sps:$4 sm:$0xff]   ;;  %v2719_v0 = vld [vmem:[%s4031_s1 + $0xf0] ss:$8 sps:$4 sm:$0xff]  }
  0x16   :  { %v2711_v59 = vld [vmem:[%s4031_s1 + $0x4e4] ss:$8 sps:$4 sm:$0xff]   ;;  %v2717_v63 = vld [vmem:[%s4031_s1 + $0x4f4] ss:$8 sps:$4 sm:$0xff]   ;;  %v2720_v1 = vld [vmem:[%s4031_s1 + $0x4f0] ss:$8 sps:$4 sm:$0xff]  }
  0x17   :  { %1873 = vmatpush1.bf16.msra.mxu1 %v2659_v22  ;;  %v2726_v2 = vld [vmem:[%s4031_s1 + $0x104] ss:$8 sps:$4 sm:$0xff]   ;;  %v2721_v4 = vld [vmem:[%s4032_s0] ss:$72 sps:$4 sm:$0xff]   ;;  %v2735_v8 = vld [vmem:[%s4031_s1 + $0x114] ss:$8 sps:$4 sm:$0xff]  }
  0x18   :  { %2045 = vmatpush1.bf16.msra.mxu0 %v2660_v23  ;;  %1874 = vmatprep.subr.bf16.mxu1 %v2661_v24  ;;  %v2732_v3 = vld [vmem:[%s4031_s1 + $0x504] ss:$8 sps:$4 sm:$0xff]   ;;  %v2724_v5 = vld [vmem:[%s4031_s1 + $0x100] ss:$8 sps:$4 sm:$0xff]   ;;  %v2738_v9 = vld [vmem:[%s4031_s1 + $0x514] ss:$8 sps:$4 sm:$0xff]  }
  0x19   :  { %2046 = vmatprep.subr.bf16.mxu0 %v2663_v25  ;;  %v2727_v6 = vld [vmem:[%s4032_s0 + $0x20] ss:$72 sps:$4 sm:$0xff]   ;;  %v2733_v10 = vld [vmem:[%s4031_s1 + $0x110] ss:$8 sps:$4 sm:$0xff]   ;;  %v2741_v12 = vld [vmem:[%s4031_s1 + $0x124] ss:$8 sps:$4 sm:$0xff]  }
  0x1a   :  { %v2730_v7 = vld [vmem:[%s4031_s1 + $0x500] ss:$8 sps:$4 sm:$0xff]   ;;  %v2736_v11 = vld [vmem:[%s4031_s1 + $0x510] ss:$8 sps:$4 sm:$0xff]   ;;  %v2744_v13 = vld [vmem:[%s4031_s1 + $0x524] ss:$8 sps:$4 sm:$0xff]  }
  0x1b   :  { %1875 = vmatpush1.bf16.msra.mxu1 %v2665_v26  ;;  %v2739_v14 = vld [vmem:[%s4031_s1 + $0x120] ss:$8 sps:$4 sm:$0xff]   ;;  %v2747_v16 = vld [vmem:[%s4031_s1 + $0x134] ss:$8 sps:$4 sm:$0xff]   ;;  %v2745_v18 = vld [vmem:[%s4031_s1 + $0x130] ss:$8 sps:$4 sm:$0xff]  }
  0x1c   :  { %2047 = vmatpush1.bf16.msra.mxu0 %v2666_v27  ;;  %1876 = vmatprep.subr.bf16.mxu1 %v2667_v28  ;;  %v2742_v15 = vld [vmem:[%s4031_s1 + $0x520] ss:$8 sps:$4 sm:$0xff]   ;;  %v2750_v17 = vld [vmem:[%s4031_s1 + $0x534] ss:$8 sps:$4 sm:$0xff]   ;;  %v2748_v19 = vld [vmem:[%s4031_s1 + $0x530] ss:$8 sps:$4 sm:$0xff]  }
  0x1d   :  { %2048 = vmatprep.subr.bf16.mxu0 %v2669_v29  ;;  %v2753_v20 = vld [vmem:[%s4031_s1 + $0x144] ss:$8 sps:$4 sm:$0xff]   ;;  %v2751_v22 = vld [vmem:[%s4031_s1 + $0x140] ss:$8 sps:$4 sm:$0xff]   ;;  %v2759_v24 = vld [vmem:[%s4031_s1 + $0x154] ss:$8 sps:$4 sm:$0xff]  }
  0x1e   :  { %v2756_v21 = vld [vmem:[%s4031_s1 + $0x544] ss:$8 sps:$4 sm:$0xff]   ;;  %v2754_v23 = vld [vmem:[%s4031_s1 + $0x540] ss:$8 sps:$4 sm:$0xff]   ;;  %v2762_v25 = vld [vmem:[%s4031_s1 + $0x554] ss:$8 sps:$4 sm:$0xff]  }
  0x1f   :  { %1877 = vmatpush1.bf16.msra.mxu1 %v2671_v30  ;;  %v2757_v26 = vld [vmem:[%s4031_s1 + $0x150] ss:$8 sps:$4 sm:$0xff]   ;;  %v2765_v28 = vld [vmem:[%s4031_s1 + $0x164] ss:$8 sps:$4 sm:$0xff]   ;;  %v2763_v30 = vld [vmem:[%s4031_s1 + $0x160] ss:$8 sps:$4 sm:$0xff]  }
  0x20   :  { %2049 = vmatpush1.bf16.msra.mxu0 %v2672_v31  ;;  %1878 = vmatprep.subr.bf16.mxu1 %v2673_v32  ;;  %v2760_v27 = vld [vmem:[%s4031_s1 + $0x550] ss:$8 sps:$4 sm:$0xff]   ;;  %v2768_v29 = vld [vmem:[%s4031_s1 + $0x564] ss:$8 sps:$4 sm:$0xff]   ;;  %v2766_v31 = vld [vmem:[%s4031_s1 + $0x560] ss:$8 sps:$4 sm:$0xff]  }
  0x21   :  { %2050 = vmatprep.subr.bf16.mxu0 %v2675_v33  ;;  %v2771_v32 = vld [vmem:[%s4031_s1 + $0x174] ss:$8 sps:$4 sm:$0xff]   ;;  %v2787_v48 = vld [vmem:[%s4031_s1 + $0x1a0] ss:$8 sps:$4 sm:$0xff]  }
  0x22   :  { %v2774_v33 = vld [vmem:[%s4031_s1 + $0x574] ss:$8 sps:$4 sm:$0xff]  }
  0x23   :  { %1879 = vmatpush1.bf16.msra.mxu1 %v2677_v34  ;;  %v2825_v34 = vld [vmem:[%s4032_s0 + $0xc] ss:$72 sps:$4 sm:$0xff]  }
  0x24   :  { %2051 = vmatpush1.bf16.msra.mxu0 %v2678_v35  ;;  %1880 = vmatprep.subr.bf16.mxu1 %v2679_v36  ;;  %v2769_v35 = vld [vmem:[%s4031_s1 + $0x170] ss:$8 sps:$4 sm:$0xff]   ;;  %v2798_v51 = vld [vmem:[%s4031_s1 + $0x5b4] ss:$8 sps:$4 sm:$0xff]  }
  0x25   :  { %2052 = vmatprep.subr.bf16.mxu0 %v2681_v37  ;;  %v2772_v36 = vld [vmem:[%s4031_s1 + $0x570] ss:$8 sps:$4 sm:$0xff]   ;;  %v2831_v37 = vld [vmem:[%s4032_s0 + $0x2c] ss:$72 sps:$4 sm:$0xff]  }
  0x27   :  { %1881 = vmatpush1.bf16.msra.mxu1 %v2683_v38  ;;  %v2777_v38 = vld [vmem:[%s4031_s1 + $0x184] ss:$8 sps:$4 sm:$0xff]  }
  0x28   :  { %2053 = vmatpush1.bf16.msra.mxu0 %v2684_v39  ;;  %1882 = vmatprep.subr.bf16.mxu1 %v2685_v40  ;;  %v2780_v39 = vld [vmem:[%s4031_s1 + $0x584] ss:$8 sps:$4 sm:$0xff]   ;;  %v2775_v40 = vld [vmem:[%s4031_s1 + $0x180] ss:$8 sps:$4 sm:$0xff]  }
  0x29   :  { %2054 = vmatprep.subr.bf16.mxu0 %v2687_v41  ;;  %v2778_v41 = vld [vmem:[%s4031_s1 + $0x580] ss:$8 sps:$4 sm:$0xff]  }
  0x2b   :  { %1883 = vmatpush1.bf16.msra.mxu1 %v2689_v42  ;;  %v2783_v42 = vld [vmem:[%s4031_s1 + $0x194] ss:$8 sps:$4 sm:$0xff]  }
  0x2c   :  { %2055 = vmatpush1.bf16.msra.mxu0 %v2690_v43  ;;  %1884 = vmatprep.subr.bf16.mxu1 %v2691_v44  ;;  %v2786_v43 = vld [vmem:[%s4031_s1 + $0x594] ss:$8 sps:$4 sm:$0xff]   ;;  %v2781_v44 = vld [vmem:[%s4031_s1 + $0x190] ss:$8 sps:$4 sm:$0xff]  }
  0x2d   :  { %2056 = vmatprep.subr.bf16.mxu0 %v2693_v45  ;;  %v2784_v45 = vld [vmem:[%s4031_s1 + $0x590] ss:$8 sps:$4 sm:$0xff]  }
  0x2f   :  { %1885 = vmatpush1.bf16.msra.mxu1 %v2695_v46  ;;  %v2789_v46 = vld [vmem:[%s4031_s1 + $0x1a4] ss:$8 sps:$4 sm:$0xff]  }
  0x30   :  { %2057 = vmatpush1.bf16.msra.mxu0 %v2696_v47  ;;  %1886 = vmatprep.subr.bf16.mxu1 %v2697_v49  ;;  %v2792_v47 = vld [vmem:[%s4031_s1 + $0x5a4] ss:$8 sps:$4 sm:$0xff]   ;;  %v2790_v49 = vld [vmem:[%s4031_s1 + $0x5a0] ss:$8 sps:$4 sm:$0xff]  }
  0x31   :  { %2058 = vmatprep.subr.bf16.mxu0 %v2699_v50  ;;  %v2795_v50 = vld [vmem:[%s4031_s1 + $0x1b4] ss:$8 sps:$4 sm:$0xff]  }
  0x33   :  { %1887 = vmatpush1.bf16.msra.mxu1 %v2701_v52  ;;  %v2793_v52 = vld [vmem:[%s4031_s1 + $0x1b0] ss:$8 sps:$4 sm:$0xff]  }
  0x34   :  { %2059 = vmatpush1.bf16.msra.mxu0 %v2702_v53  ;;  %1888 = vmatprep.subr.bf16.mxu1 %v2703_v54  ;;  %v2796_v53 = vld [vmem:[%s4031_s1 + $0x5b0] ss:$8 sps:$4 sm:$0xff]   ;;  %v2801_v54 = vld [vmem:[%s4031_s1 + $0x1c4] ss:$8 sps:$4 sm:$0xff]  }
  0x35   :  { %2060 = vmatprep.subr.bf16.mxu0 %v2705_v55  ;;  %v2804_v55 = vld [vmem:[%s4031_s1 + $0x5c4] ss:$8 sps:$4 sm:$0xff]  }
  0x37   :  { %1889 = vmatpush1.bf16.msra.mxu1 %v2707_v56  ;;  %v2799_v56 = vld [vmem:[%s4031_s1 + $0x1c0] ss:$8 sps:$4 sm:$0xff]  }
  0x38   :  { %2061 = vmatpush1.bf16.msra.mxu0 %v2708_v57  ;;  %1890 = vmatprep.subr.bf16.mxu1 %v2709_v58  ;;  %v2802_v57 = vld [vmem:[%s4031_s1 + $0x5c0] ss:$8 sps:$4 sm:$0xff]   ;;  %v2807_v58 = vld [vmem:[%s4031_s1 + $0x1d4] ss:$8 sps:$4 sm:$0xff]  }
  0x39   :  { %2062 = vmatprep.subr.bf16.mxu0 %v2711_v59  ;;  %v2810_v59 = vld [vmem:[%s4031_s1 + $0x5d4] ss:$8 sps:$4 sm:$0xff]  }
  0x3b   :  { %1891 = vmatpush1.bf16.msra.mxu1 %v2713_v60  ;;  %v2805_v60 = vld [vmem:[%s4031_s1 + $0x1d0] ss:$8 sps:$4 sm:$0xff]  }
  0x3c   :  { %2063 = vmatpush1.bf16.msra.mxu0 %v2714_v61  ;;  %1892 = vmatprep.subr.bf16.mxu1 %v2715_v62  ;;  %v2808_v61 = vld [vmem:[%s4031_s1 + $0x5d0] ss:$8 sps:$4 sm:$0xff]   ;;  %v2813_v62 = vld [vmem:[%s4031_s1 + $0x1e4] ss:$8 sps:$4 sm:$0xff]  }
  0x3d   :  { %2064 = vmatprep.subr.bf16.mxu0 %v2717_v63  ;;  %v2816_v63 = vld [vmem:[%s4031_s1 + $0x5e4] ss:$8 sps:$4 sm:$0xff]  }
  0x3f   :  { %1893 = vmatpush1.bf16.msra.mxu1 %v2719_v0  ;;  %v2811_v0 = vld [vmem:[%s4031_s1 + $0x1e0] ss:$8 sps:$4 sm:$0xff]  }
  0x40   :  { %2065 = vmatpush1.bf16.msra.mxu0 %v2720_v1  ;;  %1905 = vmatprep.subr.bf16.mxu1 %v2726_v2  ;;  %v2814_v1 = vld [vmem:[%s4031_s1 + $0x5e0] ss:$8 sps:$4 sm:$0xff]   ;;  %v2819_v2 = vld [vmem:[%s4031_s1 + $0x1f4] ss:$8 sps:$4 sm:$0xff]  }
  0x41   :  { %2077 = vmatprep.subr.bf16.mxu0 %v2732_v3  ;;  %v2822_v3 = vld [vmem:[%s4031_s1 + $0x5f4] ss:$8 sps:$4 sm:$0xff]  }
  0x42   :  { %1895 = vmatmul.mubr.bf16.vlgmr.msra.gmra.mrb[0].mxu1 %v2721_v4  ;;  %v2817_v4 = vld [vmem:[%s4031_s1 + $0x1f0] ss:$8 sps:$4 sm:$0xff]  }
  0x43   :  { %2067 = vmatmul.mubr.bf16.vlgmr.msra.gmra.mrb[0].mxu0 %v2727_v6  ;;  %1906 = vmatpush1.bf16.msra.mxu1 %v2724_v5  ;;  %v2820_v5 = vld [vmem:[%s4031_s1 + $0x5f0] ss:$8 sps:$4 sm:$0xff]   ;;  %v2828_v6 = vld [vmem:[%s4031_s1 + $0x204] ss:$8 sps:$4 sm:$0xff]  }
  0x44   :  { %2078 = vmatpush1.bf16.msra.mxu0 %v2730_v7  ;;  %1907 = vmatprep.subr.bf16.mxu1 %v2735_v8  ;;  %v2834_v7 = vld [vmem:[%s4031_s1 + $0x604] ss:$8 sps:$4 sm:$0xff]   ;;  %v2823_v8 = vld [vmem:[%s4032_s0 + $0x8] ss:$72 sps:$4 sm:$0xff]  }
  0x45   :  { %2079 = vmatprep.subr.bf16.mxu0 %v2738_v9  ;;  %1937 = vmatprep.mubr.bf16.mxu1 %v2825_v34  ;;  %v2826_v9 = vld [vmem:[%s4031_s1 + $0x200] ss:$8 sps:$4 sm:$0xff]   ;;  %v2867_v34 = vld [vmem:[%s4031_s1 + $0x264] ss:$8 sps:$4 sm:$0xff]  }
  0x46   :  { %2109 = vmatprep.mubr.bf16.mxu0 %v2831_v37  ;;  %v2868_v37 = vld [vmem:[%s4031_s1 + $0x660] ss:$8 sps:$4 sm:$0xff]  }
  0x47   :  { %1908 = vmatpush1.bf16.msra.mxu1 %v2733_v10  ;;  %v2829_v10 = vld [vmem:[%s4032_s0 + $0x28] ss:$72 sps:$4 sm:$0xff]  }
  0x48   :  { %2080 = vmatpush1.bf16.msra.mxu0 %v2736_v11  ;;  %1909 = vmatprep.subr.bf16.mxu1 %v2741_v12  ;;  %v2832_v11 = vld [vmem:[%s4031_s1 + $0x600] ss:$8 sps:$4 sm:$0xff]   ;;  %v2837_v12 = vld [vmem:[%s4031_s1 + $0x214] ss:$8 sps:$4 sm:$0xff]  }
  0x49   :  { %2081 = vmatprep.subr.bf16.mxu0 %v2744_v13  ;;  %v2840_v13 = vld [vmem:[%s4031_s1 + $0x614] ss:$8 sps:$4 sm:$0xff]  }
  0x4b   :  { %1910 = vmatpush1.bf16.msra.mxu1 %v2739_v14  ;;  %v2835_v14 = vld [vmem:[%s4031_s1 + $0x210] ss:$8 sps:$4 sm:$0xff]  }
  0x4c   :  { %2082 = vmatpush1.bf16.msra.mxu0 %v2742_v15  ;;  %1911 = vmatprep.subr.bf16.mxu1 %v2747_v16  ;;  %v2838_v15 = vld [vmem:[%s4031_s1 + $0x610] ss:$8 sps:$4 sm:$0xff]   ;;  %v2843_v16 = vld [vmem:[%s4031_s1 + $0x224] ss:$8 sps:$4 sm:$0xff]  }
  0x4d   :  { %2083 = vmatprep.subr.bf16.mxu0 %v2750_v17  ;;  %v2846_v17 = vld [vmem:[%s4031_s1 + $0x624] ss:$8 sps:$4 sm:$0xff]  }
  0x4f   :  { %1912 = vmatpush1.bf16.msra.mxu1 %v2745_v18  ;;  %v2841_v18 = vld [vmem:[%s4031_s1 + $0x220] ss:$8 sps:$4 sm:$0xff]  }
  0x50   :  { %2084 = vmatpush1.bf16.msra.mxu0 %v2748_v19  ;;  %1913 = vmatprep.subr.bf16.mxu1 %v2753_v20  ;;  %v2927_v19 = vld [vmem:[%s4032_s0 + $0x14] ss:$72 sps:$4 sm:$0xff]   ;;  %v2844_v20 = vld [vmem:[%s4031_s1 + $0x620] ss:$8 sps:$4 sm:$0xff]  }
  0x51   :  { %2085 = vmatprep.subr.bf16.mxu0 %v2756_v21  ;;  %v2849_v21 = vld [vmem:[%s4031_s1 + $0x234] ss:$8 sps:$4 sm:$0xff]  }
  0x53   :  { %1914 = vmatpush1.bf16.msra.mxu1 %v2751_v22  ;;  %v2852_v22 = vld [vmem:[%s4031_s1 + $0x634] ss:$8 sps:$4 sm:$0xff]  }
  0x54   :  { %2086 = vmatpush1.bf16.msra.mxu0 %v2754_v23  ;;  %1915 = vmatprep.subr.bf16.mxu1 %v2759_v24  ;;  %v2933_v23 = vld [vmem:[%s4032_s0 + $0x34] ss:$72 sps:$4 sm:$0xff]   ;;  %v2847_v24 = vld [vmem:[%s4031_s1 + $0x230] ss:$8 sps:$4 sm:$0xff]  }
  0x55   :  { %2087 = vmatprep.subr.bf16.mxu0 %v2762_v25  ;;  %v2850_v25 = vld [vmem:[%s4031_s1 + $0x630] ss:$8 sps:$4 sm:$0xff]  }
  0x57   :  { %1916 = vmatpush1.bf16.msra.mxu1 %v2757_v26  ;;  %v2855_v26 = vld [vmem:[%s4031_s1 + $0x244] ss:$8 sps:$4 sm:$0xff]  }
  0x58   :  { %2088 = vmatpush1.bf16.msra.mxu0 %v2760_v27  ;;  %1917 = vmatprep.subr.bf16.mxu1 %v2765_v28  ;;  %v2858_v27 = vld [vmem:[%s4031_s1 + $0x644] ss:$8 sps:$4 sm:$0xff]   ;;  %v2853_v28 = vld [vmem:[%s4031_s1 + $0x240] ss:$8 sps:$4 sm:$0xff]  }
  0x59   :  { %2089 = vmatprep.subr.bf16.mxu0 %v2768_v29  ;;  %v2856_v29 = vld [vmem:[%s4031_s1 + $0x640] ss:$8 sps:$4 sm:$0xff]  }
  0x5b   :  { %1918 = vmatpush1.bf16.msra.mxu1 %v2763_v30  ;;  %v2861_v30 = vld [vmem:[%s4031_s1 + $0x254] ss:$8 sps:$4 sm:$0xff]  }
  0x5c   :  { %2090 = vmatpush1.bf16.msra.mxu0 %v2766_v31  ;;  %1919 = vmatprep.subr.bf16.mxu1 %v2771_v32  ;;  %v2864_v31 = vld [vmem:[%s4031_s1 + $0x654] ss:$8 sps:$4 sm:$0xff]   ;;  %v2859_v32 = vld [vmem:[%s4031_s1 + $0x250] ss:$8 sps:$4 sm:$0xff]  }
  0x5d   :  { %2091 = vmatprep.subr.bf16.mxu0 %v2774_v33  ;;  %v2862_v33 = vld [vmem:[%s4031_s1 + $0x650] ss:$8 sps:$4 sm:$0xff]  }
  0x5f   :  { %1920 = vmatpush1.bf16.msra.mxu1 %v2769_v35  ;;  %v2870_v35 = vld [vmem:[%s4031_s1 + $0x664] ss:$8 sps:$4 sm:$0xff]  }
  0x60   :  { %2092 = vmatpush1.bf16.msra.mxu0 %v2772_v36  ;;  %1921 = vmatprep.subr.bf16.mxu1 %v2777_v38  ;;  %v2865_v36 = vld [vmem:[%s4031_s1 + $0x260] ss:$8 sps:$4 sm:$0xff]   ;;  %v2873_v38 = vld [vmem:[%s4031_s1 + $0x274] ss:$8 sps:$4 sm:$0xff]  }
  0x61   :  { %2093 = vmatprep.subr.bf16.mxu0 %v2780_v39  ;;  %v2876_v39 = vld [vmem:[%s4031_s1 + $0x674] ss:$8 sps:$4 sm:$0xff]  }
  0x63   :  { %1922 = vmatpush1.bf16.msra.mxu1 %v2775_v40  ;;  %v2871_v40 = vld [vmem:[%s4031_s1 + $0x270] ss:$8 sps:$4 sm:$0xff]  }
  0x64   :  { %2094 = vmatpush1.bf16.msra.mxu0 %v2778_v41  ;;  %1923 = vmatprep.subr.bf16.mxu1 %v2783_v42  ;;  %v2874_v41 = vld [vmem:[%s4031_s1 + $0x670] ss:$8 sps:$4 sm:$0xff]   ;;  %v2879_v42 = vld [vmem:[%s4031_s1 + $0x284] ss:$8 sps:$4 sm:$0xff]  }
  0x65   :  { %2095 = vmatprep.subr.bf16.mxu0 %v2786_v43  ;;  %v2882_v43 = vld [vmem:[%s4031_s1 + $0x684] ss:$8 sps:$4 sm:$0xff]  }
  0x67   :  { %1924 = vmatpush1.bf16.msra.mxu1 %v2781_v44  ;;  %v2877_v44 = vld [vmem:[%s4031_s1 + $0x280] ss:$8 sps:$4 sm:$0xff]  }
  0x68   :  { %2096 = vmatpush1.bf16.msra.mxu0 %v2784_v45  ;;  %1925 = vmatprep.subr.bf16.mxu1 %v2789_v46  ;;  %v2880_v45 = vld [vmem:[%s4031_s1 + $0x680] ss:$8 sps:$4 sm:$0xff]   ;;  %v2885_v46 = vld [vmem:[%s4031_s1 + $0x294] ss:$8 sps:$4 sm:$0xff]  }
  0x69   :  { %2097 = vmatprep.subr.bf16.mxu0 %v2792_v47  ;;  %v2888_v47 = vld [vmem:[%s4031_s1 + $0x694] ss:$8 sps:$4 sm:$0xff]  }
  0x6b   :  { %1926 = vmatpush1.bf16.msra.mxu1 %v2787_v48  ;;  %v2883_v48 = vld [vmem:[%s4031_s1 + $0x290] ss:$8 sps:$4 sm:$0xff]  }
  0x6c   :  { %2098 = vmatpush1.bf16.msra.mxu0 %v2790_v49  ;;  %1927 = vmatprep.subr.bf16.mxu1 %v2795_v50  ;;  %v2886_v49 = vld [vmem:[%s4031_s1 + $0x690] ss:$8 sps:$4 sm:$0xff]   ;;  %v2891_v50 = vld [vmem:[%s4031_s1 + $0x2a4] ss:$8 sps:$4 sm:$0xff]  }
  0x6d   :  { %2099 = vmatprep.subr.bf16.mxu0 %v2798_v51  ;;  %v2894_v51 = vld [vmem:[%s4031_s1 + $0x6a4] ss:$8 sps:$4 sm:$0xff]  }
  0x6f   :  { %1928 = vmatpush1.bf16.msra.mxu1 %v2793_v52  ;;  %v2889_v52 = vld [vmem:[%s4031_s1 + $0x2a0] ss:$8 sps:$4 sm:$0xff]  }
  0x70   :  { %2100 = vmatpush1.bf16.msra.mxu0 %v2796_v53  ;;  %1929 = vmatprep.subr.bf16.mxu1 %v2801_v54  ;;  %v2892_v53 = vld [vmem:[%s4031_s1 + $0x6a0] ss:$8 sps:$4 sm:$0xff]   ;;  %v2897_v54 = vld [vmem:[%s4031_s1 + $0x2b4] ss:$8 sps:$4 sm:$0xff]  }
  0x71   :  { %2101 = vmatprep.subr.bf16.mxu0 %v2804_v55  ;;  %v2900_v55 = vld [vmem:[%s4031_s1 + $0x6b4] ss:$8 sps:$4 sm:$0xff]  }
  0x73   :  { %1930 = vmatpush1.bf16.msra.mxu1 %v2799_v56  ;;  %v2895_v56 = vld [vmem:[%s4031_s1 + $0x2b0] ss:$8 sps:$4 sm:$0xff]  }
  0x74   :  { %2102 = vmatpush1.bf16.msra.mxu0 %v2802_v57  ;;  %1931 = vmatprep.subr.bf16.mxu1 %v2807_v58  ;;  %v2898_v57 = vld [vmem:[%s4031_s1 + $0x6b0] ss:$8 sps:$4 sm:$0xff]   ;;  %v2903_v58 = vld [vmem:[%s4031_s1 + $0x2c4] ss:$8 sps:$4 sm:$0xff]  }
  0x75   :  { %2103 = vmatprep.subr.bf16.mxu0 %v2810_v59  ;;  %v2906_v59 = vld [vmem:[%s4031_s1 + $0x6c4] ss:$8 sps:$4 sm:$0xff]  }
  0x77   :  { %1932 = vmatpush1.bf16.msra.mxu1 %v2805_v60  ;;  %v2901_v60 = vld [vmem:[%s4031_s1 + $0x2c0] ss:$8 sps:$4 sm:$0xff]  }
  0x78   :  { %2104 = vmatpush1.bf16.msra.mxu0 %v2808_v61  ;;  %1933 = vmatprep.subr.bf16.mxu1 %v2813_v62  ;;  %v2904_v61 = vld [vmem:[%s4031_s1 + $0x6c0] ss:$8 sps:$4 sm:$0xff]   ;;  %v2909_v62 = vld [vmem:[%s4031_s1 + $0x2d4] ss:$8 sps:$4 sm:$0xff]  }
  0x79   :  { %2105 = vmatprep.subr.bf16.mxu0 %v2816_v63  ;;  %v2912_v63 = vld [vmem:[%s4031_s1 + $0x6d4] ss:$8 sps:$4 sm:$0xff]  }
  0x7b   :  { %1934 = vmatpush1.bf16.msra.mxu1 %v2811_v0  ;;  %v2907_v0 = vld [vmem:[%s4031_s1 + $0x2d0] ss:$8 sps:$4 sm:$0xff]  }
  0x7c   :  { %2106 = vmatpush1.bf16.msra.mxu0 %v2814_v1  ;;  %1935 = vmatprep.subr.bf16.mxu1 %v2819_v2  ;;  %v2910_v1 = vld [vmem:[%s4031_s1 + $0x6d0] ss:$8 sps:$4 sm:$0xff]   ;;  %v2915_v2 = vld [vmem:[%s4031_s1 + $0x2e4] ss:$8 sps:$4 sm:$0xff]  }
  0x7d   :  { %2107 = vmatprep.subr.bf16.mxu0 %v2822_v3  ;;  %v2918_v3 = vld [vmem:[%s4031_s1 + $0x6e4] ss:$8 sps:$4 sm:$0xff]  }
  0x7f   :  { %1936 = vmatpush1.bf16.msra.mxu1 %v2817_v4  ;;  %v2913_v4 = vld [vmem:[%s4031_s1 + $0x2e0] ss:$8 sps:$4 sm:$0xff]  }
  0x80   :  { %2108 = vmatpush1.bf16.msra.mxu0 %v2820_v5  ;;  %1948 = vmatprep.subr.bf16.mxu1 %v2828_v6  ;;  %v2916_v5 = vld [vmem:[%s4031_s1 + $0x6e0] ss:$8 sps:$4 sm:$0xff]   ;;  %v2921_v6 = vld [vmem:[%s4031_s1 + $0x2f4] ss:$8 sps:$4 sm:$0xff]  }
  0x81   :  { %2120 = vmatprep.subr.bf16.mxu0 %v2834_v7  ;;  %v2924_v7 = vld [vmem:[%s4031_s1 + $0x6f4] ss:$8 sps:$4 sm:$0xff]  }
  0x82   :  { %1938 = vmatmul.mubr.bf16.vlgmr.msra.gmra.mrb[0].mxu1 %v2823_v8  ;;  %v2919_v8 = vld [vmem:[%s4031_s1 + $0x2f0] ss:$8 sps:$4 sm:$0xff]  }
  0x83   :  { %2110 = vmatmul.mubr.bf16.vlgmr.msra.gmra.mrb[0].mxu0 %v2829_v10  ;;  %1949 = vmatpush1.bf16.msra.mxu1 %v2826_v9  ;;  %v2922_v9 = vld [vmem:[%s4031_s1 + $0x6f0] ss:$8 sps:$4 sm:$0xff]   ;;  %v2930_v10 = vld [vmem:[%s4031_s1 + $0x304] ss:$8 sps:$4 sm:$0xff]  }
  0x84   :  { %2121 = vmatpush1.bf16.msra.mxu0 %v2832_v11  ;;  %1950 = vmatprep.subr.bf16.mxu1 %v2837_v12  ;;  %v2936_v11 = vld [vmem:[%s4031_s1 + $0x704] ss:$8 sps:$4 sm:$0xff]   ;;  %v2925_v12 = vld [vmem:[%s4032_s0 + $0x10] ss:$72 sps:$4 sm:$0xff]  }
  0x85   :  { %2122 = vmatprep.subr.bf16.mxu0 %v2840_v13  ;;  %1980 = vmatprep.mubr.bf16.mxu1 %v2927_v19  ;;  %v2928_v13 = vld [vmem:[%s4031_s1 + $0x300] ss:$8 sps:$4 sm:$0xff]   ;;  %v3032_v19 = vld [vmem:[%s4032_s0 + $0x3c] ss:$72 sps:$4 sm:$0xff]  }
  0x86   :  { %2152 = vmatprep.mubr.bf16.mxu0 %v2933_v23  ;;  %v2948_v23 = vld [vmem:[%s4031_s1 + $0x724] ss:$8 sps:$4 sm:$0xff]  }
  0x87   :  { %1951 = vmatpush1.bf16.msra.mxu1 %v2835_v14  ;;  %v2931_v14 = vld [vmem:[%s4032_s0 + $0x30] ss:$72 sps:$4 sm:$0xff]  }
  0x88   :  { %2123 = vmatpush1.bf16.msra.mxu0 %v2838_v15  ;;  %1952 = vmatprep.subr.bf16.mxu1 %v2843_v16  ;;  %v2934_v15 = vld [vmem:[%s4031_s1 + $0x700] ss:$8 sps:$4 sm:$0xff]   ;;  %v2939_v16 = vld [vmem:[%s4031_s1 + $0x314] ss:$8 sps:$4 sm:$0xff]  }
  0x89   :  { %2124 = vmatprep.subr.bf16.mxu0 %v2846_v17  ;;  %v2942_v17 = vld [vmem:[%s4031_s1 + $0x714] ss:$8 sps:$4 sm:$0xff]  }
  0x8b   :  { %1953 = vmatpush1.bf16.msra.mxu1 %v2841_v18  ;;  %v3029_v18 = vld [vmem:[%s4032_s0 + $0x1c] ss:$72 sps:$4 sm:$0xff]  }
  0x8c   :  { %2125 = vmatpush1.bf16.msra.mxu0 %v2844_v20  ;;  %1954 = vmatprep.subr.bf16.mxu1 %v2849_v21  ;;  %v2937_v20 = vld [vmem:[%s4031_s1 + $0x310] ss:$8 sps:$4 sm:$0xff]  }
  0x8d   :  { %2126 = vmatprep.subr.bf16.mxu0 %v2852_v22  ;;  %v2940_v21 = vld [vmem:[%s4031_s1 + $0x710] ss:$8 sps:$4 sm:$0xff]   ;;  %v2945_v22 = vld [vmem:[%s4031_s1 + $0x324] ss:$8 sps:$4 sm:$0xff]  }
  0x8f   :  { %1955 = vmatpush1.bf16.msra.mxu1 %v2847_v24  ;;  %v2943_v24 = vld [vmem:[%s4031_s1 + $0x320] ss:$8 sps:$4 sm:$0xff]  }
  0x90   :  { %2127 = vmatpush1.bf16.msra.mxu0 %v2850_v25  ;;  %1956 = vmatprep.subr.bf16.mxu1 %v2855_v26  ;;  %v2946_v25 = vld [vmem:[%s4031_s1 + $0x720] ss:$8 sps:$4 sm:$0xff]   ;;  %v2951_v26 = vld [vmem:[%s4031_s1 + $0x334] ss:$8 sps:$4 sm:$0xff]  }
  0x91   :  { %2128 = vmatprep.subr.bf16.mxu0 %v2858_v27  ;;  %v2954_v27 = vld [vmem:[%s4031_s1 + $0x734] ss:$8 sps:$4 sm:$0xff]  }
  0x93   :  { %1957 = vmatpush1.bf16.msra.mxu1 %v2853_v28  ;;  %v2949_v28 = vld [vmem:[%s4031_s1 + $0x330] ss:$8 sps:$4 sm:$0xff]  }
  0x94   :  { %2129 = vmatpush1.bf16.msra.mxu0 %v2856_v29  ;;  %1958 = vmatprep.subr.bf16.mxu1 %v2861_v30  ;;  %v2952_v29 = vld [vmem:[%s4031_s1 + $0x730] ss:$8 sps:$4 sm:$0xff]   ;;  %v2957_v30 = vld [vmem:[%s4031_s1 + $0x344] ss:$8 sps:$4 sm:$0xff]  }
  0x95   :  { %2130 = vmatprep.subr.bf16.mxu0 %v2864_v31  ;;  %v2960_v31 = vld [vmem:[%s4031_s1 + $0x744] ss:$8 sps:$4 sm:$0xff]  }
  0x97   :  { %1959 = vmatpush1.bf16.msra.mxu1 %v2859_v32  ;;  %v2955_v32 = vld [vmem:[%s4031_s1 + $0x340] ss:$8 sps:$4 sm:$0xff]  }
  0x98   :  { %2131 = vmatpush1.bf16.msra.mxu0 %v2862_v33  ;;  %1960 = vmatprep.subr.bf16.mxu1 %v2867_v34  ;;  %v2958_v33 = vld [vmem:[%s4031_s1 + $0x740] ss:$8 sps:$4 sm:$0xff]   ;;  %v2963_v34 = vld [vmem:[%s4031_s1 + $0x354] ss:$8 sps:$4 sm:$0xff]  }
  0x99   :  { %2132 = vmatprep.subr.bf16.mxu0 %v2870_v35  ;;  %v2966_v35 = vld [vmem:[%s4031_s1 + $0x754] ss:$8 sps:$4 sm:$0xff]  }
  0x9b   :  { %1961 = vmatpush1.bf16.msra.mxu1 %v2865_v36  ;;  %v2961_v36 = vld [vmem:[%s4031_s1 + $0x350] ss:$8 sps:$4 sm:$0xff]  }
  0x9c   :  { %2133 = vmatpush1.bf16.msra.mxu0 %v2868_v37  ;;  %1962 = vmatprep.subr.bf16.mxu1 %v2873_v38  ;;  %v2964_v37 = vld [vmem:[%s4031_s1 + $0x750] ss:$8 sps:$4 sm:$0xff]   ;;  %v2969_v38 = vld [vmem:[%s4031_s1 + $0x364] ss:$8 sps:$4 sm:$0xff]  }
  0x9d   :  { %2134 = vmatprep.subr.bf16.mxu0 %v2876_v39  ;;  %v2972_v39 = vld [vmem:[%s4031_s1 + $0x764] ss:$8 sps:$4 sm:$0xff]  }
  0x9f   :  { %1963 = vmatpush1.bf16.msra.mxu1 %v2871_v40  ;;  %v2967_v40 = vld [vmem:[%s4031_s1 + $0x360] ss:$8 sps:$4 sm:$0xff]  }
  0xa0   :  { %2135 = vmatpush1.bf16.msra.mxu0 %v2874_v41  ;;  %1964 = vmatprep.subr.bf16.mxu1 %v2879_v42  ;;  %v2970_v41 = vld [vmem:[%s4031_s1 + $0x760] ss:$8 sps:$4 sm:$0xff]   ;;  %v2975_v42 = vld [vmem:[%s4031_s1 + $0x374] ss:$8 sps:$4 sm:$0xff]  }
  0xa1   :  { %2136 = vmatprep.subr.bf16.mxu0 %v2882_v43  ;;  %v2978_v43 = vld [vmem:[%s4031_s1 + $0x774] ss:$8 sps:$4 sm:$0xff]  }
  0xa3   :  { %1965 = vmatpush1.bf16.msra.mxu1 %v2877_v44  ;;  %v2973_v44 = vld [vmem:[%s4031_s1 + $0x370] ss:$8 sps:$4 sm:$0xff]  }
  0xa4   :  { %2137 = vmatpush1.bf16.msra.mxu0 %v2880_v45  ;;  %1966 = vmatprep.subr.bf16.mxu1 %v2885_v46  ;;  %v2976_v45 = vld [vmem:[%s4031_s1 + $0x770] ss:$8 sps:$4 sm:$0xff]   ;;  %v2981_v46 = vld [vmem:[%s4031_s1 + $0x384] ss:$8 sps:$4 sm:$0xff]  }
  0xa5   :  { %2138 = vmatprep.subr.bf16.mxu0 %v2888_v47  ;;  %v2984_v47 = vld [vmem:[%s4031_s1 + $0x784] ss:$8 sps:$4 sm:$0xff]  }
  0xa7   :  { %1967 = vmatpush1.bf16.msra.mxu1 %v2883_v48  ;;  %v2979_v48 = vld [vmem:[%s4031_s1 + $0x380] ss:$8 sps:$4 sm:$0xff]  }
  0xa8   :  { %2139 = vmatpush1.bf16.msra.mxu0 %v2886_v49  ;;  %1968 = vmatprep.subr.bf16.mxu1 %v2891_v50  ;;  %v2982_v49 = vld [vmem:[%s4031_s1 + $0x780] ss:$8 sps:$4 sm:$0xff]   ;;  %v2987_v50 = vld [vmem:[%s4031_s1 + $0x394] ss:$8 sps:$4 sm:$0xff]  }
  0xa9   :  { %2140 = vmatprep.subr.bf16.mxu0 %v2894_v51  ;;  %v2990_v51 = vld [vmem:[%s4031_s1 + $0x794] ss:$8 sps:$4 sm:$0xff]  }
  0xab   :  { %1969 = vmatpush1.bf16.msra.mxu1 %v2889_v52  ;;  %v2985_v52 = vld [vmem:[%s4031_s1 + $0x390] ss:$8 sps:$4 sm:$0xff]  }
  0xac   :  { %2141 = vmatpush1.bf16.msra.mxu0 %v2892_v53  ;;  %1970 = vmatprep.subr.bf16.mxu1 %v2897_v54  ;;  %v2988_v53 = vld [vmem:[%s4031_s1 + $0x790] ss:$8 sps:$4 sm:$0xff]   ;;  %v2993_v54 = vld [vmem:[%s4031_s1 + $0x3a4] ss:$8 sps:$4 sm:$0xff]  }
  0xad   :  { %2142 = vmatprep.subr.bf16.mxu0 %v2900_v55  ;;  %v2996_v55 = vld [vmem:[%s4031_s1 + $0x7a4] ss:$8 sps:$4 sm:$0xff]  }
  0xaf   :  { %1971 = vmatpush1.bf16.msra.mxu1 %v2895_v56  ;;  %v2991_v56 = vld [vmem:[%s4031_s1 + $0x3a0] ss:$8 sps:$4 sm:$0xff]  }
  0xb0   :  { %2143 = vmatpush1.bf16.msra.mxu0 %v2898_v57  ;;  %1972 = vmatprep.subr.bf16.mxu1 %v2903_v58  ;;  %v2994_v57 = vld [vmem:[%s4031_s1 + $0x7a0] ss:$8 sps:$4 sm:$0xff]   ;;  %v2999_v58 = vld [vmem:[%s4031_s1 + $0x3b4] ss:$8 sps:$4 sm:$0xff]  }
  0xb1   :  { %2144 = vmatprep.subr.bf16.mxu0 %v2906_v59  ;;  %v3002_v59 = vld [vmem:[%s4031_s1 + $0x7b4] ss:$8 sps:$4 sm:$0xff]  }
  0xb3   :  { %1973 = vmatpush1.bf16.msra.mxu1 %v2901_v60  ;;  %v2997_v60 = vld [vmem:[%s4031_s1 + $0x3b0] ss:$8 sps:$4 sm:$0xff]  }
  0xb4   :  { %2145 = vmatpush1.bf16.msra.mxu0 %v2904_v61  ;;  %1974 = vmatprep.subr.bf16.mxu1 %v2909_v62  ;;  %v3000_v61 = vld [vmem:[%s4031_s1 + $0x7b0] ss:$8 sps:$4 sm:$0xff]   ;;  %v3005_v62 = vld [vmem:[%s4031_s1 + $0x3c4] ss:$8 sps:$4 sm:$0xff]  }
  0xb5   :  { %2146 = vmatprep.subr.bf16.mxu0 %v2912_v63  ;;  %v3008_v63 = vld [vmem:[%s4031_s1 + $0x7c4] ss:$8 sps:$4 sm:$0xff]  }
  0xb7   :  { %1975 = vmatpush1.bf16.msra.mxu1 %v2907_v0  ;;  %v3003_v0 = vld [vmem:[%s4031_s1 + $0x3c0] ss:$8 sps:$4 sm:$0xff]  }
  0xb8   :  { %2147 = vmatpush1.bf16.msra.mxu0 %v2910_v1  ;;  %1976 = vmatprep.subr.bf16.mxu1 %v2915_v2  ;;  %v3006_v1 = vld [vmem:[%s4031_s1 + $0x7c0] ss:$8 sps:$4 sm:$0xff]   ;;  %v3011_v2 = vld [vmem:[%s4031_s1 + $0x3d4] ss:$8 sps:$4 sm:$0xff]  }
  0xb9   :  { %2148 = vmatprep.subr.bf16.mxu0 %v2918_v3  ;;  %v3014_v3 = vld [vmem:[%s4031_s1 + $0x7d4] ss:$8 sps:$4 sm:$0xff]  }
  0xbb   :  { %1977 = vmatpush1.bf16.msra.mxu1 %v2913_v4  ;;  %v3009_v4 = vld [vmem:[%s4031_s1 + $0x3d0] ss:$8 sps:$4 sm:$0xff]  }
  0xbc   :  { %2149 = vmatpush1.bf16.msra.mxu0 %v2916_v5  ;;  %1978 = vmatprep.subr.bf16.mxu1 %v2921_v6  ;;  %v3012_v5 = vld [vmem:[%s4031_s1 + $0x7d0] ss:$8 sps:$4 sm:$0xff]   ;;  %v3017_v6 = vld [vmem:[%s4031_s1 + $0x3e4] ss:$8 sps:$4 sm:$0xff]  }
  0xbd   :  { %2150 = vmatprep.subr.bf16.mxu0 %v2924_v7  ;;  %v3020_v7 = vld [vmem:[%s4031_s1 + $0x7e4] ss:$8 sps:$4 sm:$0xff]  }
  0xbf   :  { %1979 = vmatpush1.bf16.msra.mxu1 %v2919_v8  ;;  %v3015_v8 = vld [vmem:[%s4031_s1 + $0x3e0] ss:$8 sps:$4 sm:$0xff]  }
  0xc0   :  { %2151 = vmatpush1.bf16.msra.mxu0 %v2922_v9  ;;  %1991 = vmatprep.subr.bf16.mxu1 %v2930_v10  ;;  %v3018_v9 = vld [vmem:[%s4031_s1 + $0x7e0] ss:$8 sps:$4 sm:$0xff]   ;;  %v3023_v10 = vld [vmem:[%s4031_s1 + $0x3f4] ss:$8 sps:$4 sm:$0xff]  }
  0xc1   :  { %2163 = vmatprep.subr.bf16.mxu0 %v2936_v11  ;;  %v3026_v11 = vld [vmem:[%s4031_s1 + $0x7f4] ss:$8 sps:$4 sm:$0xff]  }
  0xc2   :  { %1981 = vmatmul.mubr.bf16.vlgmr.msra.gmra.mrb[0].mxu1 %v2925_v12  ;;  %v3021_v12 = vld [vmem:[%s4031_s1 + $0x3f0] ss:$8 sps:$4 sm:$0xff]  }
  0xc3   :  { %2153 = vmatmul.mubr.bf16.vlgmr.msra.gmra.mrb[0].mxu0 %v2931_v14  ;;  %1992 = vmatpush1.bf16.msra.mxu1 %v2928_v13  ;;  %v3024_v13 = vld [vmem:[%s4031_s1 + $0x7f0] ss:$8 sps:$4 sm:$0xff]   ;;  %v3035_v14 = vld [vmem:[%s4031_s1 + $0x804] ss:$8 sps:$4 sm:$0xff]  }
  0xc4   :  { %2164 = vmatpush1.bf16.msra.mxu0 %v2934_v15  ;;  %1993 = vmatprep.subr.bf16.mxu1 %v2939_v16  ;;  %v3027_v15 = vld [vmem:[%s4032_s0 + $0x18] ss:$72 sps:$4 sm:$0xff]  }
  0xc5   :  { %2165 = vmatprep.subr.bf16.mxu0 %v2942_v17  ;;  %2023 = vmatprep.mubr.bf16.mxu1 %v3029_v18  ;;  %v3030_v16 = vld [vmem:[%s4032_s0 + $0x38] ss:$72 sps:$4 sm:$0xff]   ;;  %v3083_v18 = vld [vmem:[%s4032_s0 + $0x44] ss:$72 sps:$4 sm:$0xff]  }
  0xc6   :  { %2195 = vmatprep.mubr.bf16.mxu0 %v3032_v19  ;;  %v3033_v17 = vld [vmem:[%s4031_s1 + $0x800] ss:$8 sps:$4 sm:$0xff]   ;;  %v3038_v19 = vld [vmem:[%s4031_s1 + $0x814] ss:$8 sps:$4 sm:$0xff]  }
  0xc7   :  { %1994 = vmatpush1.bf16.msra.mxu1 %v2937_v20  ;;  %v3036_v20 = vld [vmem:[%s4031_s1 + $0x810] ss:$8 sps:$4 sm:$0xff]  }
  0xc8   :  { %2166 = vmatpush1.bf16.msra.mxu0 %v2940_v21  ;;  %1995 = vmatprep.subr.bf16.mxu1 %v2945_v22  ;;  %v3041_v21 = vld [vmem:[%s4031_s1 + $0x824] ss:$8 sps:$4 sm:$0xff]   ;;  %v3039_v22 = vld [vmem:[%s4031_s1 + $0x820] ss:$8 sps:$4 sm:$0xff]  }
  0xc9   :  { %2167 = vmatprep.subr.bf16.mxu0 %v2948_v23  ;;  %v3044_v23 = vld [vmem:[%s4031_s1 + $0x834] ss:$8 sps:$4 sm:$0xff]  }
  0xcb   :  { %1996 = vmatpush1.bf16.msra.mxu1 %v2943_v24  ;;  %v3042_v24 = vld [vmem:[%s4031_s1 + $0x830] ss:$8 sps:$4 sm:$0xff]  }
  0xcc   :  { %2168 = vmatpush1.bf16.msra.mxu0 %v2946_v25  ;;  %1997 = vmatprep.subr.bf16.mxu1 %v2951_v26  ;;  %v3047_v25 = vld [vmem:[%s4031_s1 + $0x844] ss:$8 sps:$4 sm:$0xff]   ;;  %v3045_v26 = vld [vmem:[%s4031_s1 + $0x840] ss:$8 sps:$4 sm:$0xff]  }
  0xcd   :  { %2169 = vmatprep.subr.bf16.mxu0 %v2954_v27  ;;  %v3050_v27 = vld [vmem:[%s4031_s1 + $0x854] ss:$8 sps:$4 sm:$0xff]  }
  0xcf   :  { %1998 = vmatpush1.bf16.msra.mxu1 %v2949_v28  ;;  %v3048_v28 = vld [vmem:[%s4031_s1 + $0x850] ss:$8 sps:$4 sm:$0xff]  }
  0xd0   :  { %2170 = vmatpush1.bf16.msra.mxu0 %v2952_v29  ;;  %1999 = vmatprep.subr.bf16.mxu1 %v2957_v30  ;;  %v3053_v29 = vld [vmem:[%s4031_s1 + $0x864] ss:$8 sps:$4 sm:$0xff]   ;;  %v3051_v30 = vld [vmem:[%s4031_s1 + $0x860] ss:$8 sps:$4 sm:$0xff]  }
  0xd1   :  { %2171 = vmatprep.subr.bf16.mxu0 %v2960_v31  ;;  %v3056_v31 = vld [vmem:[%s4031_s1 + $0x874] ss:$8 sps:$4 sm:$0xff]  }
  0xd3   :  { %2000 = vmatpush1.bf16.msra.mxu1 %v2955_v32  ;;  %v3054_v32 = vld [vmem:[%s4031_s1 + $0x870] ss:$8 sps:$4 sm:$0xff]  }
  0xd4   :  { %2172 = vmatpush1.bf16.msra.mxu0 %v2958_v33  ;;  %2001 = vmatprep.subr.bf16.mxu1 %v2963_v34  ;;  %v3059_v33 = vld [vmem:[%s4031_s1 + $0x884] ss:$8 sps:$4 sm:$0xff]   ;;  %v3057_v34 = vld [vmem:[%s4031_s1 + $0x880] ss:$8 sps:$4 sm:$0xff]  }
  0xd5   :  { %2173 = vmatprep.subr.bf16.mxu0 %v2966_v35  ;;  %v3062_v35 = vld [vmem:[%s4031_s1 + $0x894] ss:$8 sps:$4 sm:$0xff]  }
  0xd7   :  { %2002 = vmatpush1.bf16.msra.mxu1 %v2961_v36  ;;  %v3060_v36 = vld [vmem:[%s4031_s1 + $0x890] ss:$8 sps:$4 sm:$0xff]  }
  0xd8   :  { %2174 = vmatpush1.bf16.msra.mxu0 %v2964_v37  ;;  %2003 = vmatprep.subr.bf16.mxu1 %v2969_v38  ;;  %v3065_v37 = vld [vmem:[%s4031_s1 + $0x8a4] ss:$8 sps:$4 sm:$0xff]   ;;  %v3063_v38 = vld [vmem:[%s4031_s1 + $0x8a0] ss:$8 sps:$4 sm:$0xff]  }
  0xd9   :  { %2175 = vmatprep.subr.bf16.mxu0 %v2972_v39  ;;  %v3068_v39 = vld [vmem:[%s4031_s1 + $0x8b4] ss:$8 sps:$4 sm:$0xff]  }
  0xdb   :  { %2004 = vmatpush1.bf16.msra.mxu1 %v2967_v40  ;;  %v3066_v40 = vld [vmem:[%s4031_s1 + $0x8b0] ss:$8 sps:$4 sm:$0xff]  }
  0xdc   :  { %2176 = vmatpush1.bf16.msra.mxu0 %v2970_v41  ;;  %2005 = vmatprep.subr.bf16.mxu1 %v2975_v42  ;;  %v3071_v41 = vld [vmem:[%s4031_s1 + $0x8c4] ss:$8 sps:$4 sm:$0xff]   ;;  %v3069_v42 = vld [vmem:[%s4031_s1 + $0x8c0] ss:$8 sps:$4 sm:$0xff]  }
  0xdd   :  { %2177 = vmatprep.subr.bf16.mxu0 %v2978_v43  ;;  %v3074_v43 = vld [vmem:[%s4031_s1 + $0x8d4] ss:$8 sps:$4 sm:$0xff]  }
  0xdf   :  { %2006 = vmatpush1.bf16.msra.mxu1 %v2973_v44  ;;  %v3072_v44 = vld [vmem:[%s4031_s1 + $0x8d0] ss:$8 sps:$4 sm:$0xff]  }
  0xe0   :  { %2178 = vmatpush1.bf16.msra.mxu0 %v2976_v45  ;;  %2007 = vmatprep.subr.bf16.mxu1 %v2981_v46  ;;  %v3077_v45 = vld [vmem:[%s4031_s1 + $0x8e4] ss:$8 sps:$4 sm:$0xff]   ;;  %v3075_v46 = vld [vmem:[%s4031_s1 + $0x8e0] ss:$8 sps:$4 sm:$0xff]  }
  0xe1   :  { %2179 = vmatprep.subr.bf16.mxu0 %v2984_v47  ;;  %v3080_v47 = vld [vmem:[%s4031_s1 + $0x8f4] ss:$8 sps:$4 sm:$0xff]  }
  0xe3   :  { %2008 = vmatpush1.bf16.msra.mxu1 %v2979_v48  ;;  %v3078_v48 = vld [vmem:[%s4031_s1 + $0x8f0] ss:$8 sps:$4 sm:$0xff]  }
  0xe4   :  { %2180 = vmatpush1.bf16.msra.mxu0 %v2982_v49  ;;  %2009 = vmatprep.subr.bf16.mxu1 %v2987_v50  ;;  %v3081_v49 = vld [vmem:[%s4032_s0 + $0x40] ss:$72 sps:$4 sm:$0xff]  }
  0xe5   :  { %2181 = vmatprep.subr.bf16.mxu0 %v2990_v51 }
  0xe7   :  { %2010 = vmatpush1.bf16.msra.mxu1 %v2985_v52 }
  0xe8   :  { %2182 = vmatpush1.bf16.msra.mxu0 %v2988_v53  ;;  %2011 = vmatprep.subr.bf16.mxu1 %v2993_v54  ;;  %v322_v54 = vlaneseq }
  0xe9   :  { %2183 = vmatprep.subr.bf16.mxu0 %v2996_v55 }
  0xea   :  { %v323_v55 = vshrl.u32 %v322_v54, 7 }
  0xeb   :  { %2012 = vmatpush1.bf16.msra.mxu1 %v2991_v56 }
  0xec   :  { %2184 = vmatpush1.bf16.msra.mxu0 %v2994_v57  ;;  %2013 = vmatprep.subr.bf16.mxu1 %v2999_v58  ;;  %v324_v56 = vsub.s32 0, %v323_v55  ;;  %v320_v57 = vld [vmem:[%s4033_s2] sm:$0x3]  ;;  %v328_v58 = vsub.s32 1, %v323_v55 }
  0xed   :  { %2185 = vmatprep.subr.bf16.mxu0 %v3002_v59 }
  0xee   :  { %v325_v59 = vrot.slane %v320_v57, %v324_v56 }
  0xef   :  { %2014 = vmatpush1.bf16.msra.mxu1 %v2997_v60  ;;  %v329_v60 = vrot.slane %v320_v57, %v328_v58 }
  0xf0   :  { %2186 = vmatpush1.bf16.msra.mxu0 %v3000_v61  ;;  %2015 = vmatprep.subr.bf16.mxu1 %v3005_v62 }
  0xf1   :  { %2187 = vmatprep.subr.bf16.mxu0 %v3008_v63 }
  0xf3   :  { %2016 = vmatpush1.bf16.msra.mxu1 %v3003_v0 }
  0xf4   :  { %2188 = vmatpush1.bf16.msra.mxu0 %v3006_v1  ;;  %2017 = vmatprep.subr.bf16.mxu1 %v3011_v2 }
  0xf5   :  { %2189 = vmatprep.subr.bf16.mxu0 %v3014_v3 }
  0xf7   :  { %2018 = vmatpush1.bf16.msra.mxu1 %v3009_v4 }
  0xf8   :  { %2190 = vmatpush1.bf16.msra.mxu0 %v3012_v5  ;;  %2019 = vmatprep.subr.bf16.mxu1 %v3017_v6 }
  0xf9   :  { %2191 = vmatprep.subr.bf16.mxu0 %v3020_v7 }
  0xfb   :  { %2020 = vmatpush1.bf16.msra.mxu1 %v3015_v8 }
  0xfc   :  { %2192 = vmatpush1.bf16.msra.mxu0 %v3018_v9  ;;  %2021 = vmatprep.subr.bf16.mxu1 %v3023_v10 }
  0xfd   :  { %2193 = vmatprep.subr.bf16.mxu0 %v3026_v11 }
  0xff   :  { %2022 = vmatpush1.bf16.msra.mxu1 %v3021_v12 }
 0x100   :  { %2194 = vmatpush1.bf16.msra.mxu0 %v3024_v13 }
 0x101   :  { %2206 = vmatprep.subr.bf16.mxu0 %v3035_v14 }
 0x102   :  { %2024 = vmatmul.mubr.bf16.vlgmr.msra.gmra.mrb[0].mxu1 %v3027_v15 }
 0x103   :  { %2196 = vmatmul.mubr.bf16.vlgmr.msra.gmra.mrb[0].mxu0 %v3030_v16 }
 0x104   :  { %2207 = vmatpush1.bf16.msra.mxu0 %v3033_v17  ;;  %2238 = vmatprep.mubr.bf16.mxu0 %v3083_v18 }
 0x105   :  { %2208 = vmatprep.subr.bf16.mxu0 %v3038_v19 }
 0x108   :  { %2209 = vmatpush1.bf16.msra.mxu0 %v3036_v20 }
 0x109   :  { %2210 = vmatprep.subr.bf16.mxu0 %v3041_v21 }
 0x10c   :  { %2211 = vmatpush1.bf16.msra.mxu0 %v3039_v22 }
 0x10d   :  { %2212 = vmatprep.subr.bf16.mxu0 %v3044_v23 }
 0x110   :  { %2213 = vmatpush1.bf16.msra.mxu0 %v3042_v24 }
 0x111   :  { %2214 = vmatprep.subr.bf16.mxu0 %v3047_v25 }
 0x114   :  { %2215 = vmatpush1.bf16.msra.mxu0 %v3045_v26 }
 0x115   :  { %2216 = vmatprep.subr.bf16.mxu0 %v3050_v27 }
 0x118   :  { %2217 = vmatpush1.bf16.msra.mxu0 %v3048_v28 }
 0x119   :  { %2218 = vmatprep.subr.bf16.mxu0 %v3053_v29 }
 0x11c   :  { %2219 = vmatpush1.bf16.msra.mxu0 %v3051_v30 }
 0x11d   :  { %2220 = vmatprep.subr.bf16.mxu0 %v3056_v31 }
 0x120   :  { %2221 = vmatpush1.bf16.msra.mxu0 %v3054_v32 }
 0x121   :  { %2222 = vmatprep.subr.bf16.mxu0 %v3059_v33 }
 0x124   :  { %2223 = vmatpush1.bf16.msra.mxu0 %v3057_v34 }
 0x125   :  { %2224 = vmatprep.subr.bf16.mxu0 %v3062_v35 }
 0x128   :  { %2225 = vmatpush1.bf16.msra.mxu0 %v3060_v36 }
 0x129   :  { %2226 = vmatprep.subr.bf16.mxu0 %v3065_v37 }
 0x12c   :  { %2227 = vmatpush1.bf16.msra.mxu0 %v3063_v38 }
 0x12d   :  { %2228 = vmatprep.subr.bf16.mxu0 %v3068_v39 }
 0x130   :  { %2229 = vmatpush1.bf16.msra.mxu0 %v3066_v40 }
 0x131   :  { %2230 = vmatprep.subr.bf16.mxu0 %v3071_v41 }
 0x134   :  { %2231 = vmatpush1.bf16.msra.mxu0 %v3069_v42 }
 0x135   :  { %2232 = vmatprep.subr.bf16.mxu0 %v3074_v43 }
 0x138   :  { %2233 = vmatpush1.bf16.msra.mxu0 %v3072_v44 }
 0x139   :  { %2234 = vmatprep.subr.bf16.mxu0 %v3077_v45 }
 0x13c   :  { %2235 = vmatpush1.bf16.msra.mxu0 %v3075_v46 }
 0x13d   :  { %2236 = vmatprep.subr.bf16.mxu0 %v3080_v47 }
 0x140   :  { %2237 = vmatpush1.bf16.msra.mxu0 %v3078_v48 }
 0x143   :  { %2239 = vmatmul.mubr.bf16.vlgmr.msra.gmra.mrb[0].mxu0 %v3081_v49 }
 0x1d5   :  { %v2025_v50 = vpop.f32.mrb[0].mxu1 }
 0x1d6   :  { %v2027_v51 = vpop.f32.mrb[1].mxu1  ;;  %v2589_v61 = vadd.f32 %v2025_v50, %v325_v59 }
 0x1d7   :  { %v2029_v52 = vpop.f32.mrb[2].mxu1  ;;  %v2591_v62 = vadd.f32 %v2027_v51, %v329_v60 }
 0x1d8   :  { %v2031_v53 = vpop.f32.mrb[3].mxu1  ;;  %v2593_v0 = vadd.f32 %v2029_v52, %v325_v59 }
 0x1d9   :  { %v2595_v3 = vadd.f32 %v2031_v53, %v329_v60 }
 0x216   :  { %v2240_v63 = vpop.f32.mrb[0].mxu0 }
 0x217   :  { %v2590_v1 = vadd.f32 %v2589_v61, %v2240_v63  ;;  %v2242_v2 = vpop.f32.mrb[1].mxu0 }
 0x218   :  { %v2592_v4 = vadd.f32 %v2591_v62, %v2242_v2  ;;  %v2244_v5 = vpop.f32.mrb[2].mxu0 }
 0x219   :  { %vm2249_vm0 = vcmp.ge.f32.partialorder %v2590_v1, 0.0  ;;  %v2253_v6 = vmul.f32 0.2, %v2590_v1  ;;  %v2594_v7 = vadd.f32 %v2593_v0, %v2244_v5  ;;  %v2246_v8 = vpop.f32.mrb[3].mxu0 }
 0x21a   :  { %vm2250_vm1 = vcmp.ge.f32.partialorder %v2592_v4, 0.0  ;;  %v2254_v9 = vmul.f32 0.2, %v2592_v4  ;;  %v2596_v10 = vadd.f32 %v2595_v3, %v2246_v8 }
 0x21b   :  { %v2257_v11 = vsel %vm2249_vm0, %v2590_v1, %v2253_v6  ;;  %vm2251_vm2 = vcmp.ge.f32.partialorder %v2594_v7, 0.0  ;;  %v2255_v12 = vmul.f32 0.2, %v2594_v7 }
 0x21c   :  { %v2258_v13 = vsel %vm2250_vm1, %v2592_v4, %v2254_v9  ;;  %vm2252_vm3 = vcmp.ge.f32.partialorder %v2596_v10, 0.0  ;;  %v2256_v14 = vmul.f32 0.2, %v2596_v10 }
 0x21d   :  { %v2587_v15 = vpack.c.bf16 %v2258_v13, %v2257_v11  ;;  %v2259_v16 = vsel %vm2251_vm2, %v2594_v7, %v2255_v12 }
 0x21e   :  { %v2260_v17 = vsel %vm2252_vm3, %v2596_v10, %v2256_v14 }
 0x21f   :  { %2273 = vst [vmem:[%s4034_s3] sm:$0xff] %v2587_v15  ;;  %v2588_v18 = vpack.c.bf16 %v2260_v17, %v2259_v16 }
 0x221   :  { %2274 = vst [vmem:[%s4034_s3 + $0x8] sm:$0xff] %v2588_v18 }

// kernel: encoder_forward.19
= control target key start
LH: loop header
LB: loop body
LE: loop exit
PB: predicated region body
PF: predicated region fallthrough
CT: control target
= control target key end

     0   :  { %s103_s0 = inlined_call_operand.vmem [shape: bf16[16,128], index: 0, kind: input, shape index: {}]   ;;  %s104_s1 = inlined_call_operand.vmem [shape: f32[1,128], index: 1, kind: input, shape index: {}]   ;;  %s105_s2 = inlined_call_operand.vmem [shape: f32[1,128], index: 2, kind: input, shape index: {}]   ;;  %s106_s3 = inlined_call_operand.vmem [shape: bf16[16,128], index: 3, kind: output, shape index: {}]  }
   0x1   :  { %v63_v0 = vld [vmem:[%s103_s0] sm:$0xff]  }
   0x2   :  { %v56_v1 = vld [vmem:[%s104_s1] ss:$0 sm:$0xff]  ;;  %v64_v2 = vunpack.c.l.bf16 %v63_v0  ;;  %v65_v3 = vunpack.c.h.bf16 %v63_v0 }
   0x3   :  { %v57_v4 = vld [vmem:[%s105_s2] ss:$0 sm:$0xff] }
   0x4   :  { %v25_v5 = vmul.f32 %v64_v2, %v56_v1  ;;  %v26_v6 = vmul.f32 %v65_v3, %v56_v1 }
   0x6   :  { %v34_v7 = vadd.f32 %v57_v4, %v25_v5  ;;  %v35_v8 = vadd.f32 %v57_v4, %v26_v6 }
   0x8   :  { %vm36_vm0 = vcmp.ge.f32.partialorder %v34_v7, 0.0  ;;  %vm37_vm1 = vcmp.ge.f32.partialorder %v35_v8, 0.0  ;;  %v38_v9 = vmul.f32 0.2, %v34_v7  ;;  %v39_v10 = vmul.f32 0.2, %v35_v8 }
   0xa   :  { %v40_v11 = vsel %vm36_vm0, %v34_v7, %v38_v9  ;;  %v41_v12 = vsel %vm37_vm1, %v35_v8, %v39_v10 }
   0xb   :  { %v69_v13 = vpack.c.bf16 %v41_v12, %v40_v11 }
   0xd   :  { %70 = vst [vmem:[%s106_s3] sm:$0xff] %v69_v13  }

// kernel: encoder_forward.15
= control target key start
LH: loop header
LB: loop body
LE: loop exit
PB: predicated region body
PF: predicated region fallthrough
CT: control target
= control target key end

     0   :  { %vm4443_vm0 = vcmask 1040384   ;;  %vm4448_vm1 = vcmask 1041408   ;;  %s7856_s1 = inlined_call_operand.vmem [shape: bf16[2304,512], index: 1, kind: input, shape index: {}]   ;;  %s7857_s0 = inlined_call_operand.vmem [shape: bf16[16,2304], index: 0, kind: input, shape index: {}]   ;;  %s7858_s2 = inlined_call_operand.vmem [shape: bf16[16,512], index: 2, kind: output, shape index: {0}]   ;;  %s7859_s3 = inlined_call_operand.vmem [shape: f32[8,512], index: 3, kind: output, shape index: {1}]  }
   0x1   :  { %v5131_v0 = vld [vmem:[%s7856_s1 + $0x4] ss:$16 sps:$4 sm:$0xff]   ;;  %v5133_v1 = vld [vmem:[%s7856_s1 + $0xc] ss:$16 sps:$4 sm:$0xff]   ;;  %v5135_v2 = vld [vmem:[%s7856_s1] ss:$16 sps:$4 sm:$0xff]  }
   0x2   :  { %3577 = vmatprep.subr.bf16.mxu0 %v5131_v0  ;;  %v5136_v3 = vld [vmem:[%s7856_s1 + $0x8] ss:$16 sps:$4 sm:$0xff]   ;;  %3964 = vmatprep.subr.bf16.mxu1 %v5133_v1  ;;  %v5137_v4 = vld [vmem:[%s7856_s1 + $0x24] ss:$16 sps:$4 sm:$0xff]   ;;  %v5139_v5 = vld [vmem:[%s7856_s1 + $0x2c] ss:$16 sps:$4 sm:$0xff]  }
   0x3   :  { %3578 = vmatpush1.bf16.msra.mxu0 %v5135_v2  ;;  %3965 = vmatpush1.bf16.msra.mxu1 %v5136_v3  ;;  %v5141_v6 = vld [vmem:[%s7856_s1 + $0x20] ss:$16 sps:$4 sm:$0xff]   ;;  %v5142_v7 = vld [vmem:[%s7856_s1 + $0x28] ss:$16 sps:$4 sm:$0xff]   ;;  %v5143_v8 = vld [vmem:[%s7856_s1 + $0x44] ss:$16 sps:$4 sm:$0xff]  }
   0x4   :  { %3579 = vmatprep.subr.bf16.mxu0 %v5137_v4  ;;  %3966 = vmatprep.subr.bf16.mxu1 %v5139_v5  ;;  %v5145_v9 = vld [vmem:[%s7856_s1 + $0x4c] ss:$16 sps:$4 sm:$0xff]   ;;  %v5147_v10 = vld [vmem:[%s7856_s1 + $0x40] ss:$16 sps:$4 sm:$0xff]   ;;  %v5148_v11 = vld [vmem:[%s7856_s1 + $0x48] ss:$16 sps:$4 sm:$0xff]  }
   0x5   :  { %v5149_v12 = vld [vmem:[%s7856_s1 + $0x64] ss:$16 sps:$4 sm:$0xff]   ;;  %v5151_v13 = vld [vmem:[%s7856_s1 + $0x6c] ss:$16 sps:$4 sm:$0xff]   ;;  %v5153_v14 = vld [vmem:[%s7856_s1 + $0x60] ss:$16 sps:$4 sm:$0xff]  }
   0x6   :  { %v5154_v15 = vld [vmem:[%s7856_s1 + $0x68] ss:$16 sps:$4 sm:$0xff]   ;;  %v5155_v16 = vld [vmem:[%s7856_s1 + $0x84] ss:$16 sps:$4 sm:$0xff]   ;;  %v5157_v17 = vld [vmem:[%s7856_s1 + $0x8c] ss:$16 sps:$4 sm:$0xff]  }
   0x7   :  { %3580 = vmatpush1.bf16.msra.mxu0 %v5141_v6  ;;  %3967 = vmatpush1.bf16.msra.mxu1 %v5142_v7  ;;  %v5159_v18 = vld [vmem:[%s7856_s1 + $0x80] ss:$16 sps:$4 sm:$0xff]   ;;  %v5160_v19 = vld [vmem:[%s7856_s1 + $0x88] ss:$16 sps:$4 sm:$0xff]   ;;  %v5161_v20 = vld [vmem:[%s7856_s1 + $0xa4] ss:$16 sps:$4 sm:$0xff]  }
   0x8   :  { %3581 = vmatprep.subr.bf16.mxu0 %v5143_v8  ;;  %3968 = vmatprep.subr.bf16.mxu1 %v5145_v9  ;;  %v5163_v21 = vld [vmem:[%s7856_s1 + $0xac] ss:$16 sps:$4 sm:$0xff]   ;;  %v5165_v22 = vld [vmem:[%s7856_s1 + $0xa0] ss:$16 sps:$4 sm:$0xff]   ;;  %v5166_v23 = vld [vmem:[%s7856_s1 + $0xa8] ss:$16 sps:$4 sm:$0xff]  }
   0x9   :  { %v5167_v24 = vld [vmem:[%s7856_s1 + $0xc4] ss:$16 sps:$4 sm:$0xff]   ;;  %v5169_v25 = vld [vmem:[%s7856_s1 + $0xcc] ss:$16 sps:$4 sm:$0xff]   ;;  %v5171_v26 = vld [vmem:[%s7856_s1 + $0xc0] ss:$16 sps:$4 sm:$0xff]  }
   0xa   :  { %v5172_v27 = vld [vmem:[%s7856_s1 + $0xc8] ss:$16 sps:$4 sm:$0xff]   ;;  %v5173_v28 = vld [vmem:[%s7856_s1 + $0xe4] ss:$16 sps:$4 sm:$0xff]   ;;  %v5175_v29 = vld [vmem:[%s7856_s1 + $0xec] ss:$16 sps:$4 sm:$0xff]  }
   0xb   :  { %3582 = vmatpush1.bf16.msra.mxu0 %v5147_v10  ;;  %3969 = vmatpush1.bf16.msra.mxu1 %v5148_v11  ;;  %v5177_v30 = vld [vmem:[%s7856_s1 + $0xe0] ss:$16 sps:$4 sm:$0xff]   ;;  %v5178_v31 = vld [vmem:[%s7856_s1 + $0xe8] ss:$16 sps:$4 sm:$0xff]   ;;  %v5179_v32 = vld [vmem:[%s7856_s1 + $0x104] ss:$16 sps:$4 sm:$0xff]  }
   0xc   :  { %3583 = vmatprep.subr.bf16.mxu0 %v5149_v12  ;;  %3970 = vmatprep.subr.bf16.mxu1 %v5151_v13  ;;  %v5181_v33 = vld [vmem:[%s7856_s1 + $0x10c] ss:$16 sps:$4 sm:$0xff]   ;;  %v5183_v34 = vld [vmem:[%s7856_s1 + $0x100] ss:$16 sps:$4 sm:$0xff]   ;;  %v5184_v35 = vld [vmem:[%s7856_s1 + $0x108] ss:$16 sps:$4 sm:$0xff]  }
   0xd   :  { %v5185_v36 = vld [vmem:[%s7856_s1 + $0x124] ss:$16 sps:$4 sm:$0xff]   ;;  %v5187_v37 = vld [vmem:[%s7856_s1 + $0x12c] ss:$16 sps:$4 sm:$0xff]   ;;  %v5189_v38 = vld [vmem:[%s7856_s1 + $0x120] ss:$16 sps:$4 sm:$0xff]  }
   0xe   :  { %v5190_v39 = vld [vmem:[%s7856_s1 + $0x128] ss:$16 sps:$4 sm:$0xff]   ;;  %v5191_v40 = vld [vmem:[%s7856_s1 + $0x144] ss:$16 sps:$4 sm:$0xff]   ;;  %v5193_v41 = vld [vmem:[%s7856_s1 + $0x14c] ss:$16 sps:$4 sm:$0xff]  }
   0xf   :  { %3584 = vmatpush1.bf16.msra.mxu0 %v5153_v14  ;;  %3971 = vmatpush1.bf16.msra.mxu1 %v5154_v15  ;;  %v5195_v42 = vld [vmem:[%s7856_s1 + $0x140] ss:$16 sps:$4 sm:$0xff]   ;;  %v5196_v43 = vld [vmem:[%s7856_s1 + $0x148] ss:$16 sps:$4 sm:$0xff]   ;;  %v5197_v44 = vld [vmem:[%s7856_s1 + $0x164] ss:$16 sps:$4 sm:$0xff]  }
  0x10   :  { %3585 = vmatprep.subr.bf16.mxu0 %v5155_v16  ;;  %3972 = vmatprep.subr.bf16.mxu1 %v5157_v17  ;;  %v5199_v45 = vld [vmem:[%s7856_s1 + $0x16c] ss:$16 sps:$4 sm:$0xff]   ;;  %v5201_v46 = vld [vmem:[%s7856_s1 + $0x160] ss:$16 sps:$4 sm:$0xff]   ;;  %v5202_v47 = vld [vmem:[%s7856_s1 + $0x168] ss:$16 sps:$4 sm:$0xff]  }
  0x11   :  { %v5229_v48 = vld [vmem:[%s7857_s0 + $0x4] ss:$72 sps:$4 sm:$0xff]   ;;  %v5207_v51 = vld [vmem:[%s7856_s1 + $0x180] ss:$16 sps:$4 sm:$0xff]   ;;  %v5208_v52 = vld [vmem:[%s7856_s1 + $0x188] ss:$16 sps:$4 sm:$0xff]  }
  0x12   :  { %v5203_v49 = vld [vmem:[%s7856_s1 + $0x184] ss:$16 sps:$4 sm:$0xff]   ;;  %v5205_v50 = vld [vmem:[%s7856_s1 + $0x18c] ss:$16 sps:$4 sm:$0xff]   ;;  %3609 = vmatprep.mubr.bf16.mxu0 %v5229_v48  ;;  %3996 = vmatprep.mubr.bf16.mxu1 %v5229_v48  ;;  %v5213_v55 = vld [vmem:[%s7856_s1 + $0x1a0] ss:$16 sps:$4 sm:$0xff]  }
  0x13   :  { %3586 = vmatpush1.bf16.msra.mxu0 %v5159_v18  ;;  %3973 = vmatpush1.bf16.msra.mxu1 %v5160_v19  ;;  %v5209_v53 = vld [vmem:[%s7856_s1 + $0x1a4] ss:$16 sps:$4 sm:$0xff]   ;;  %v5211_v54 = vld [vmem:[%s7856_s1 + $0x1ac] ss:$16 sps:$4 sm:$0xff]   ;;  %v5214_v56 = vld [vmem:[%s7856_s1 + $0x1a8] ss:$16 sps:$4 sm:$0xff]  }
  0x14   :  { %3587 = vmatprep.subr.bf16.mxu0 %v5161_v20  ;;  %3974 = vmatprep.subr.bf16.mxu1 %v5163_v21  ;;  %v5215_v57 = vld [vmem:[%s7856_s1 + $0x1c4] ss:$16 sps:$4 sm:$0xff]   ;;  %v5217_v58 = vld [vmem:[%s7856_s1 + $0x1cc] ss:$16 sps:$4 sm:$0xff]   ;;  %v5219_v59 = vld [vmem:[%s7856_s1 + $0x1c0] ss:$16 sps:$4 sm:$0xff]  }
  0x15   :  { %v5220_v60 = vld [vmem:[%s7856_s1 + $0x1c8] ss:$16 sps:$4 sm:$0xff]   ;;  %v5221_v61 = vld [vmem:[%s7856_s1 + $0x1e4] ss:$16 sps:$4 sm:$0xff]   ;;  %v5223_v62 = vld [vmem:[%s7856_s1 + $0x1ec] ss:$16 sps:$4 sm:$0xff]  }
  0x16   :  { %v5225_v63 = vld [vmem:[%s7856_s1 + $0x1e0] ss:$16 sps:$4 sm:$0xff]   ;;  %v5226_v0 = vld [vmem:[%s7856_s1 + $0x1e8] ss:$16 sps:$4 sm:$0xff]   ;;  %v5232_v1 = vld [vmem:[%s7856_s1 + $0x204] ss:$16 sps:$4 sm:$0xff]  }
  0x17   :  { %3588 = vmatpush1.bf16.msra.mxu0 %v5165_v22  ;;  %3975 = vmatpush1.bf16.msra.mxu1 %v5166_v23  ;;  %v5235_v2 = vld [vmem:[%s7856_s1 + $0x20c] ss:$16 sps:$4 sm:$0xff]   ;;  %v5227_v3 = vld [vmem:[%s7857_s0] ss:$72 sps:$4 sm:$0xff]   ;;  %v5238_v6 = vld [vmem:[%s7856_s1 + $0x224] ss:$16 sps:$4 sm:$0xff]  }
  0x18   :  { %3589 = vmatprep.subr.bf16.mxu0 %v5167_v24  ;;  %3976 = vmatprep.subr.bf16.mxu1 %v5169_v25  ;;  %v5230_v4 = vld [vmem:[%s7856_s1 + $0x200] ss:$16 sps:$4 sm:$0xff]   ;;  %v5233_v5 = vld [vmem:[%s7856_s1 + $0x208] ss:$16 sps:$4 sm:$0xff]   ;;  %v5241_v7 = vld [vmem:[%s7856_s1 + $0x22c] ss:$16 sps:$4 sm:$0xff]  }
  0x19   :  { %v5236_v8 = vld [vmem:[%s7856_s1 + $0x220] ss:$16 sps:$4 sm:$0xff]   ;;  %v5239_v9 = vld [vmem:[%s7856_s1 + $0x228] ss:$16 sps:$4 sm:$0xff]   ;;  %v5244_v10 = vld [vmem:[%s7856_s1 + $0x244] ss:$16 sps:$4 sm:$0xff]  }
  0x1a   :  { %v5247_v11 = vld [vmem:[%s7856_s1 + $0x24c] ss:$16 sps:$4 sm:$0xff]   ;;  %v5242_v12 = vld [vmem:[%s7856_s1 + $0x240] ss:$16 sps:$4 sm:$0xff]   ;;  %v5245_v13 = vld [vmem:[%s7856_s1 + $0x248] ss:$16 sps:$4 sm:$0xff]  }
  0x1b   :  { %3590 = vmatpush1.bf16.msra.mxu0 %v5171_v26  ;;  %3977 = vmatpush1.bf16.msra.mxu1 %v5172_v27  ;;  %v5250_v14 = vld [vmem:[%s7856_s1 + $0x264] ss:$16 sps:$4 sm:$0xff]   ;;  %v5253_v15 = vld [vmem:[%s7856_s1 + $0x26c] ss:$16 sps:$4 sm:$0xff]   ;;  %v5248_v16 = vld [vmem:[%s7856_s1 + $0x260] ss:$16 sps:$4 sm:$0xff]  }
  0x1c   :  { %3591 = vmatprep.subr.bf16.mxu0 %v5173_v28  ;;  %3978 = vmatprep.subr.bf16.mxu1 %v5175_v29  ;;  %v5251_v17 = vld [vmem:[%s7856_s1 + $0x268] ss:$16 sps:$4 sm:$0xff]   ;;  %v5256_v18 = vld [vmem:[%s7856_s1 + $0x284] ss:$16 sps:$4 sm:$0xff]   ;;  %v5259_v19 = vld [vmem:[%s7856_s1 + $0x28c] ss:$16 sps:$4 sm:$0xff]  }
  0x1d   :  { %v5254_v20 = vld [vmem:[%s7856_s1 + $0x280] ss:$16 sps:$4 sm:$0xff]   ;;  %v5257_v21 = vld [vmem:[%s7856_s1 + $0x288] ss:$16 sps:$4 sm:$0xff]   ;;  %v5262_v22 = vld [vmem:[%s7856_s1 + $0x2a4] ss:$16 sps:$4 sm:$0xff]  }
  0x1e   :  { %v5265_v23 = vld [vmem:[%s7856_s1 + $0x2ac] ss:$16 sps:$4 sm:$0xff]   ;;  %v5260_v24 = vld [vmem:[%s7856_s1 + $0x2a0] ss:$16 sps:$4 sm:$0xff]   ;;  %v5263_v25 = vld [vmem:[%s7856_s1 + $0x2a8] ss:$16 sps:$4 sm:$0xff]  }
  0x1f   :  { %3592 = vmatpush1.bf16.msra.mxu0 %v5177_v30  ;;  %3979 = vmatpush1.bf16.msra.mxu1 %v5178_v31  ;;  %v5268_v26 = vld [vmem:[%s7856_s1 + $0x2c4] ss:$16 sps:$4 sm:$0xff]   ;;  %v5271_v27 = vld [vmem:[%s7856_s1 + $0x2cc] ss:$16 sps:$4 sm:$0xff]   ;;  %v5266_v28 = vld [vmem:[%s7856_s1 + $0x2c0] ss:$16 sps:$4 sm:$0xff]  }
  0x20   :  { %3593 = vmatprep.subr.bf16.mxu0 %v5179_v32  ;;  %3980 = vmatprep.subr.bf16.mxu1 %v5181_v33  ;;  %v5269_v29 = vld [vmem:[%s7856_s1 + $0x2c8] ss:$16 sps:$4 sm:$0xff]   ;;  %v5328_v30 = vld [vmem:[%s7857_s0 + $0xc] ss:$72 sps:$4 sm:$0xff]   ;;  %v5272_v33 = vld [vmem:[%s7856_s1 + $0x2e0] ss:$16 sps:$4 sm:$0xff]  }
  0x21   :  { %v5274_v31 = vld [vmem:[%s7856_s1 + $0x2e4] ss:$16 sps:$4 sm:$0xff]   ;;  %v5277_v32 = vld [vmem:[%s7856_s1 + $0x2ec] ss:$16 sps:$4 sm:$0xff]  }
  0x22   :  { %v5301_v48 = vld [vmem:[%s7856_s1 + $0x36c] ss:$16 sps:$4 sm:$0xff]  }
  0x23   :  { %3594 = vmatpush1.bf16.msra.mxu0 %v5183_v34  ;;  %3981 = vmatpush1.bf16.msra.mxu1 %v5184_v35  ;;  %v5275_v34 = vld [vmem:[%s7856_s1 + $0x2e8] ss:$16 sps:$4 sm:$0xff]   ;;  %v5280_v35 = vld [vmem:[%s7856_s1 + $0x304] ss:$16 sps:$4 sm:$0xff]  }
  0x24   :  { %3595 = vmatprep.subr.bf16.mxu0 %v5185_v36  ;;  %3982 = vmatprep.subr.bf16.mxu1 %v5187_v37  ;;  %v5283_v36 = vld [vmem:[%s7856_s1 + $0x30c] ss:$16 sps:$4 sm:$0xff]   ;;  %v5278_v37 = vld [vmem:[%s7856_s1 + $0x300] ss:$16 sps:$4 sm:$0xff]  }
  0x27   :  { %3596 = vmatpush1.bf16.msra.mxu0 %v5189_v38  ;;  %3983 = vmatpush1.bf16.msra.mxu1 %v5190_v39  ;;  %v5281_v38 = vld [vmem:[%s7856_s1 + $0x308] ss:$16 sps:$4 sm:$0xff]   ;;  %v5286_v39 = vld [vmem:[%s7856_s1 + $0x324] ss:$16 sps:$4 sm:$0xff]  }
  0x28   :  { %3597 = vmatprep.subr.bf16.mxu0 %v5191_v40  ;;  %3984 = vmatprep.subr.bf16.mxu1 %v5193_v41  ;;  %v5289_v40 = vld [vmem:[%s7856_s1 + $0x32c] ss:$16 sps:$4 sm:$0xff]   ;;  %v5284_v41 = vld [vmem:[%s7856_s1 + $0x320] ss:$16 sps:$4 sm:$0xff]  }
  0x2b   :  { %3598 = vmatpush1.bf16.msra.mxu0 %v5195_v42  ;;  %3985 = vmatpush1.bf16.msra.mxu1 %v5196_v43  ;;  %v5287_v42 = vld [vmem:[%s7856_s1 + $0x328] ss:$16 sps:$4 sm:$0xff]   ;;  %v5292_v43 = vld [vmem:[%s7856_s1 + $0x344] ss:$16 sps:$4 sm:$0xff]  }
  0x2c   :  { %3599 = vmatprep.subr.bf16.mxu0 %v5197_v44  ;;  %3986 = vmatprep.subr.bf16.mxu1 %v5199_v45  ;;  %v5295_v44 = vld [vmem:[%s7856_s1 + $0x34c] ss:$16 sps:$4 sm:$0xff]   ;;  %v5290_v45 = vld [vmem:[%s7856_s1 + $0x340] ss:$16 sps:$4 sm:$0xff]  }
  0x2f   :  { %3600 = vmatpush1.bf16.msra.mxu0 %v5201_v46  ;;  %3987 = vmatpush1.bf16.msra.mxu1 %v5202_v47  ;;  %v5293_v46 = vld [vmem:[%s7856_s1 + $0x348] ss:$16 sps:$4 sm:$0xff]   ;;  %v5298_v47 = vld [vmem:[%s7856_s1 + $0x364] ss:$16 sps:$4 sm:$0xff]  }
  0x30   :  { %3601 = vmatprep.subr.bf16.mxu0 %v5203_v49  ;;  %3988 = vmatprep.subr.bf16.mxu1 %v5205_v50  ;;  %v5296_v49 = vld [vmem:[%s7856_s1 + $0x360] ss:$16 sps:$4 sm:$0xff]   ;;  %v5299_v50 = vld [vmem:[%s7856_s1 + $0x368] ss:$16 sps:$4 sm:$0xff]  }
  0x33   :  { %3602 = vmatpush1.bf16.msra.mxu0 %v5207_v51  ;;  %3989 = vmatpush1.bf16.msra.mxu1 %v5208_v52  ;;  %v5304_v51 = vld [vmem:[%s7856_s1 + $0x384] ss:$16 sps:$4 sm:$0xff]   ;;  %v5307_v52 = vld [vmem:[%s7856_s1 + $0x38c] ss:$16 sps:$4 sm:$0xff]  }
  0x34   :  { %3603 = vmatprep.subr.bf16.mxu0 %v5209_v53  ;;  %3990 = vmatprep.subr.bf16.mxu1 %v5211_v54  ;;  %v5302_v53 = vld [vmem:[%s7856_s1 + $0x380] ss:$16 sps:$4 sm:$0xff]   ;;  %v5305_v54 = vld [vmem:[%s7856_s1 + $0x388] ss:$16 sps:$4 sm:$0xff]  }
  0x37   :  { %3604 = vmatpush1.bf16.msra.mxu0 %v5213_v55  ;;  %3991 = vmatpush1.bf16.msra.mxu1 %v5214_v56  ;;  %v5310_v55 = vld [vmem:[%s7856_s1 + $0x3a4] ss:$16 sps:$4 sm:$0xff]   ;;  %v5313_v56 = vld [vmem:[%s7856_s1 + $0x3ac] ss:$16 sps:$4 sm:$0xff]  }
  0x38   :  { %3605 = vmatprep.subr.bf16.mxu0 %v5215_v57  ;;  %3992 = vmatprep.subr.bf16.mxu1 %v5217_v58  ;;  %v5308_v57 = vld [vmem:[%s7856_s1 + $0x3a0] ss:$16 sps:$4 sm:$0xff]   ;;  %v5311_v58 = vld [vmem:[%s7856_s1 + $0x3a8] ss:$16 sps:$4 sm:$0xff]  }
  0x3b   :  { %3606 = vmatpush1.bf16.msra.mxu0 %v5219_v59  ;;  %3993 = vmatpush1.bf16.msra.mxu1 %v5220_v60  ;;  %v5316_v59 = vld [vmem:[%s7856_s1 + $0x3c4] ss:$16 sps:$4 sm:$0xff]   ;;  %v5319_v60 = vld [vmem:[%s7856_s1 + $0x3cc] ss:$16 sps:$4 sm:$0xff]  }
  0x3c   :  { %3607 = vmatprep.subr.bf16.mxu0 %v5221_v61  ;;  %3994 = vmatprep.subr.bf16.mxu1 %v5223_v62  ;;  %v5314_v61 = vld [vmem:[%s7856_s1 + $0x3c0] ss:$16 sps:$4 sm:$0xff]   ;;  %v5317_v62 = vld [vmem:[%s7856_s1 + $0x3c8] ss:$16 sps:$4 sm:$0xff]  }
  0x3f   :  { %3608 = vmatpush1.bf16.msra.mxu0 %v5225_v63  ;;  %3995 = vmatpush1.bf16.msra.mxu1 %v5226_v0  ;;  %v5322_v63 = vld [vmem:[%s7856_s1 + $0x3e4] ss:$16 sps:$4 sm:$0xff]   ;;  %v5325_v0 = vld [vmem:[%s7856_s1 + $0x3ec] ss:$16 sps:$4 sm:$0xff]  }
  0x40   :  { %3620 = vmatprep.subr.bf16.mxu0 %v5232_v1  ;;  %4007 = vmatprep.subr.bf16.mxu1 %v5235_v2  ;;  %v5320_v1 = vld [vmem:[%s7856_s1 + $0x3e0] ss:$16 sps:$4 sm:$0xff]   ;;  %v5323_v2 = vld [vmem:[%s7856_s1 + $0x3e8] ss:$16 sps:$4 sm:$0xff]  }
  0x42   :  { %3610 = vmatmul.mubr.bf16.vlgmr.msra.gmra.mrb[0].mxu0 %v5227_v3  ;;  %3997 = vmatmul.mubr.bf16.vlgmr.msra.gmra.mrb[0].mxu1 %v5227_v3  ;;  %v5331_v3 = vld [vmem:[%s7856_s1 + $0x404] ss:$16 sps:$4 sm:$0xff]  }
  0x43   :  { %3621 = vmatpush1.bf16.msra.mxu0 %v5230_v4  ;;  %4008 = vmatpush1.bf16.msra.mxu1 %v5233_v5  ;;  %v5334_v4 = vld [vmem:[%s7856_s1 + $0x40c] ss:$16 sps:$4 sm:$0xff]   ;;  %v5326_v5 = vld [vmem:[%s7857_s0 + $0x8] ss:$72 sps:$4 sm:$0xff]  }
  0x44   :  { %3622 = vmatprep.subr.bf16.mxu0 %v5238_v6  ;;  %4009 = vmatprep.subr.bf16.mxu1 %v5241_v7  ;;  %v5329_v6 = vld [vmem:[%s7856_s1 + $0x400] ss:$16 sps:$4 sm:$0xff]   ;;  %v5332_v7 = vld [vmem:[%s7856_s1 + $0x408] ss:$16 sps:$4 sm:$0xff]  }
  0x45   :  { %3652 = vmatprep.mubr.bf16.mxu0 %v5328_v30  ;;  %4039 = vmatprep.mubr.bf16.mxu1 %v5328_v30  ;;  %v5370_v30 = vld [vmem:[%s7856_s1 + $0x4cc] ss:$16 sps:$4 sm:$0xff]  }
  0x47   :  { %3623 = vmatpush1.bf16.msra.mxu0 %v5236_v8  ;;  %4010 = vmatpush1.bf16.msra.mxu1 %v5239_v9  ;;  %v5337_v8 = vld [vmem:[%s7856_s1 + $0x424] ss:$16 sps:$4 sm:$0xff]   ;;  %v5340_v9 = vld [vmem:[%s7856_s1 + $0x42c] ss:$16 sps:$4 sm:$0xff]  }
  0x48   :  { %3624 = vmatprep.subr.bf16.mxu0 %v5244_v10  ;;  %4011 = vmatprep.subr.bf16.mxu1 %v5247_v11  ;;  %v5335_v10 = vld [vmem:[%s7856_s1 + $0x420] ss:$16 sps:$4 sm:$0xff]   ;;  %v5338_v11 = vld [vmem:[%s7856_s1 + $0x428] ss:$16 sps:$4 sm:$0xff]  }
  0x4b   :  { %3625 = vmatpush1.bf16.msra.mxu0 %v5242_v12  ;;  %4012 = vmatpush1.bf16.msra.mxu1 %v5245_v13  ;;  %v5427_v12 = vld [vmem:[%s7857_s0 + $0x14] ss:$72 sps:$4 sm:$0xff]  }
  0x4c   :  { %3626 = vmatprep.subr.bf16.mxu0 %v5250_v14  ;;  %4013 = vmatprep.subr.bf16.mxu1 %v5253_v15  ;;  %v5343_v13 = vld [vmem:[%s7856_s1 + $0x444] ss:$16 sps:$4 sm:$0xff]   ;;  %v5346_v14 = vld [vmem:[%s7856_s1 + $0x44c] ss:$16 sps:$4 sm:$0xff]   ;;  %v5341_v15 = vld [vmem:[%s7856_s1 + $0x440] ss:$16 sps:$4 sm:$0xff]  }
  0x4f   :  { %3627 = vmatpush1.bf16.msra.mxu0 %v5248_v16  ;;  %4014 = vmatpush1.bf16.msra.mxu1 %v5251_v17  ;;  %v5344_v16 = vld [vmem:[%s7856_s1 + $0x448] ss:$16 sps:$4 sm:$0xff]   ;;  %v5349_v17 = vld [vmem:[%s7856_s1 + $0x464] ss:$16 sps:$4 sm:$0xff]  }
  0x50   :  { %3628 = vmatprep.subr.bf16.mxu0 %v5256_v18  ;;  %4015 = vmatprep.subr.bf16.mxu1 %v5259_v19  ;;  %v5352_v18 = vld [vmem:[%s7856_s1 + $0x46c] ss:$16 sps:$4 sm:$0xff]   ;;  %v5347_v19 = vld [vmem:[%s7856_s1 + $0x460] ss:$16 sps:$4 sm:$0xff]  }
  0x53   :  { %3629 = vmatpush1.bf16.msra.mxu0 %v5254_v20  ;;  %4016 = vmatpush1.bf16.msra.mxu1 %v5257_v21  ;;  %v5350_v20 = vld [vmem:[%s7856_s1 + $0x468] ss:$16 sps:$4 sm:$0xff]   ;;  %v5355_v21 = vld [vmem:[%s7856_s1 + $0x484] ss:$16 sps:$4 sm:$0xff]  }
  0x54   :  { %3630 = vmatprep.subr.bf16.mxu0 %v5262_v22  ;;  %4017 = vmatprep.subr.bf16.mxu1 %v5265_v23  ;;  %v5358_v22 = vld [vmem:[%s7856_s1 + $0x48c] ss:$16 sps:$4 sm:$0xff]   ;;  %v5353_v23 = vld [vmem:[%s7856_s1 + $0x480] ss:$16 sps:$4 sm:$0xff]  }
  0x57   :  { %3631 = vmatpush1.bf16.msra.mxu0 %v5260_v24  ;;  %4018 = vmatpush1.bf16.msra.mxu1 %v5263_v25  ;;  %v5356_v24 = vld [vmem:[%s7856_s1 + $0x488] ss:$16 sps:$4 sm:$0xff]   ;;  %v5361_v25 = vld [vmem:[%s7856_s1 + $0x4a4] ss:$16 sps:$4 sm:$0xff]  }
  0x58   :  { %3632 = vmatprep.subr.bf16.mxu0 %v5268_v26  ;;  %4019 = vmatprep.subr.bf16.mxu1 %v5271_v27  ;;  %v5364_v26 = vld [vmem:[%s7856_s1 + $0x4ac] ss:$16 sps:$4 sm:$0xff]   ;;  %v5359_v27 = vld [vmem:[%s7856_s1 + $0x4a0] ss:$16 sps:$4 sm:$0xff]  }
  0x5b   :  { %3633 = vmatpush1.bf16.msra.mxu0 %v5266_v28  ;;  %4020 = vmatpush1.bf16.msra.mxu1 %v5269_v29  ;;  %v5362_v28 = vld [vmem:[%s7856_s1 + $0x4a8] ss:$16 sps:$4 sm:$0xff]   ;;  %v5367_v29 = vld [vmem:[%s7856_s1 + $0x4c4] ss:$16 sps:$4 sm:$0xff]  }
  0x5c   :  { %3634 = vmatprep.subr.bf16.mxu0 %v5274_v31  ;;  %4021 = vmatprep.subr.bf16.mxu1 %v5277_v32  ;;  %v5365_v31 = vld [vmem:[%s7856_s1 + $0x4c0] ss:$16 sps:$4 sm:$0xff]   ;;  %v5368_v32 = vld [vmem:[%s7856_s1 + $0x4c8] ss:$16 sps:$4 sm:$0xff]  }
  0x5f   :  { %3635 = vmatpush1.bf16.msra.mxu0 %v5272_v33  ;;  %4022 = vmatpush1.bf16.msra.mxu1 %v5275_v34  ;;  %v5373_v33 = vld [vmem:[%s7856_s1 + $0x4e4] ss:$16 sps:$4 sm:$0xff]   ;;  %v5376_v34 = vld [vmem:[%s7856_s1 + $0x4ec] ss:$16 sps:$4 sm:$0xff]  }
  0x60   :  { %3636 = vmatprep.subr.bf16.mxu0 %v5280_v35  ;;  %4023 = vmatprep.subr.bf16.mxu1 %v5283_v36  ;;  %v5371_v35 = vld [vmem:[%s7856_s1 + $0x4e0] ss:$16 sps:$4 sm:$0xff]   ;;  %v5374_v36 = vld [vmem:[%s7856_s1 + $0x4e8] ss:$16 sps:$4 sm:$0xff]  }
  0x63   :  { %3637 = vmatpush1.bf16.msra.mxu0 %v5278_v37  ;;  %4024 = vmatpush1.bf16.msra.mxu1 %v5281_v38  ;;  %v5379_v37 = vld [vmem:[%s7856_s1 + $0x504] ss:$16 sps:$4 sm:$0xff]   ;;  %v5382_v38 = vld [vmem:[%s7856_s1 + $0x50c] ss:$16 sps:$4 sm:$0xff]  }
  0x64   :  { %3638 = vmatprep.subr.bf16.mxu0 %v5286_v39  ;;  %4025 = vmatprep.subr.bf16.mxu1 %v5289_v40  ;;  %v5377_v39 = vld [vmem:[%s7856_s1 + $0x500] ss:$16 sps:$4 sm:$0xff]   ;;  %v5380_v40 = vld [vmem:[%s7856_s1 + $0x508] ss:$16 sps:$4 sm:$0xff]  }
  0x67   :  { %3639 = vmatpush1.bf16.msra.mxu0 %v5284_v41  ;;  %4026 = vmatpush1.bf16.msra.mxu1 %v5287_v42  ;;  %v5385_v41 = vld [vmem:[%s7856_s1 + $0x524] ss:$16 sps:$4 sm:$0xff]   ;;  %v5388_v42 = vld [vmem:[%s7856_s1 + $0x52c] ss:$16 sps:$4 sm:$0xff]  }
  0x68   :  { %3640 = vmatprep.subr.bf16.mxu0 %v5292_v43  ;;  %4027 = vmatprep.subr.bf16.mxu1 %v5295_v44  ;;  %v5383_v43 = vld [vmem:[%s7856_s1 + $0x520] ss:$16 sps:$4 sm:$0xff]   ;;  %v5386_v44 = vld [vmem:[%s7856_s1 + $0x528] ss:$16 sps:$4 sm:$0xff]  }
  0x6b   :  { %3641 = vmatpush1.bf16.msra.mxu0 %v5290_v45  ;;  %4028 = vmatpush1.bf16.msra.mxu1 %v5293_v46  ;;  %v5391_v45 = vld [vmem:[%s7856_s1 + $0x544] ss:$16 sps:$4 sm:$0xff]   ;;  %v5394_v46 = vld [vmem:[%s7856_s1 + $0x54c] ss:$16 sps:$4 sm:$0xff]  }
  0x6c   :  { %3642 = vmatprep.subr.bf16.mxu0 %v5298_v47  ;;  %4029 = vmatprep.subr.bf16.mxu1 %v5301_v48  ;;  %v5389_v47 = vld [vmem:[%s7856_s1 + $0x540] ss:$16 sps:$4 sm:$0xff]   ;;  %v5392_v48 = vld [vmem:[%s7856_s1 + $0x548] ss:$16 sps:$4 sm:$0xff]  }
  0x6f   :  { %3643 = vmatpush1.bf16.msra.mxu0 %v5296_v49  ;;  %4030 = vmatpush1.bf16.msra.mxu1 %v5299_v50  ;;  %v5397_v49 = vld [vmem:[%s7856_s1 + $0x564] ss:$16 sps:$4 sm:$0xff]   ;;  %v5400_v50 = vld [vmem:[%s7856_s1 + $0x56c] ss:$16 sps:$4 sm:$0xff]  }
  0x70   :  { %3644 = vmatprep.subr.bf16.mxu0 %v5304_v51  ;;  %4031 = vmatprep.subr.bf16.mxu1 %v5307_v52  ;;  %v5395_v51 = vld [vmem:[%s7856_s1 + $0x560] ss:$16 sps:$4 sm:$0xff]   ;;  %v5398_v52 = vld [vmem:[%s7856_s1 + $0x568] ss:$16 sps:$4 sm:$0xff]  }
  0x73   :  { %3645 = vmatpush1.bf16.msra.mxu0 %v5302_v53  ;;  %4032 = vmatpush1.bf16.msra.mxu1 %v5305_v54  ;;  %v5403_v53 = vld [vmem:[%s7856_s1 + $0x584] ss:$16 sps:$4 sm:$0xff]   ;;  %v5406_v54 = vld [vmem:[%s7856_s1 + $0x58c] ss:$16 sps:$4 sm:$0xff]  }
  0x74   :  { %3646 = vmatprep.subr.bf16.mxu0 %v5310_v55  ;;  %4033 = vmatprep.subr.bf16.mxu1 %v5313_v56  ;;  %v5401_v55 = vld [vmem:[%s7856_s1 + $0x580] ss:$16 sps:$4 sm:$0xff]   ;;  %v5404_v56 = vld [vmem:[%s7856_s1 + $0x588] ss:$16 sps:$4 sm:$0xff]  }
  0x77   :  { %3647 = vmatpush1.bf16.msra.mxu0 %v5308_v57  ;;  %4034 = vmatpush1.bf16.msra.mxu1 %v5311_v58  ;;  %v5409_v57 = vld [vmem:[%s7856_s1 + $0x5a4] ss:$16 sps:$4 sm:$0xff]   ;;  %v5412_v58 = vld [vmem:[%s7856_s1 + $0x5ac] ss:$16 sps:$4 sm:$0xff]  }
  0x78   :  { %3648 = vmatprep.subr.bf16.mxu0 %v5316_v59  ;;  %4035 = vmatprep.subr.bf16.mxu1 %v5319_v60  ;;  %v5407_v59 = vld [vmem:[%s7856_s1 + $0x5a0] ss:$16 sps:$4 sm:$0xff]   ;;  %v5410_v60 = vld [vmem:[%s7856_s1 + $0x5a8] ss:$16 sps:$4 sm:$0xff]  }
  0x7b   :  { %3649 = vmatpush1.bf16.msra.mxu0 %v5314_v61  ;;  %4036 = vmatpush1.bf16.msra.mxu1 %v5317_v62  ;;  %v5415_v61 = vld [vmem:[%s7856_s1 + $0x5c4] ss:$16 sps:$4 sm:$0xff]   ;;  %v5418_v62 = vld [vmem:[%s7856_s1 + $0x5cc] ss:$16 sps:$4 sm:$0xff]  }
  0x7c   :  { %3650 = vmatprep.subr.bf16.mxu0 %v5322_v63  ;;  %4037 = vmatprep.subr.bf16.mxu1 %v5325_v0  ;;  %v5413_v63 = vld [vmem:[%s7856_s1 + $0x5c0] ss:$16 sps:$4 sm:$0xff]   ;;  %v5416_v0 = vld [vmem:[%s7856_s1 + $0x5c8] ss:$16 sps:$4 sm:$0xff]  }
  0x7f   :  { %3651 = vmatpush1.bf16.msra.mxu0 %v5320_v1  ;;  %4038 = vmatpush1.bf16.msra.mxu1 %v5323_v2  ;;  %v5421_v1 = vld [vmem:[%s7856_s1 + $0x5e4] ss:$16 sps:$4 sm:$0xff]   ;;  %v5424_v2 = vld [vmem:[%s7856_s1 + $0x5ec] ss:$16 sps:$4 sm:$0xff]  }
  0x80   :  { %3663 = vmatprep.subr.bf16.mxu0 %v5331_v3  ;;  %4050 = vmatprep.subr.bf16.mxu1 %v5334_v4  ;;  %v5419_v3 = vld [vmem:[%s7856_s1 + $0x5e0] ss:$16 sps:$4 sm:$0xff]   ;;  %v5422_v4 = vld [vmem:[%s7856_s1 + $0x5e8] ss:$16 sps:$4 sm:$0xff]  }
  0x82   :  { %3653 = vmatmul.mubr.bf16.vlgmr.msra.gmra.mrb[0].mxu0 %v5326_v5  ;;  %4040 = vmatmul.mubr.bf16.vlgmr.msra.gmra.mrb[0].mxu1 %v5326_v5  ;;  %v5430_v5 = vld [vmem:[%s7856_s1 + $0x604] ss:$16 sps:$4 sm:$0xff]  }
  0x83   :  { %3664 = vmatpush1.bf16.msra.mxu0 %v5329_v6  ;;  %4051 = vmatpush1.bf16.msra.mxu1 %v5332_v7  ;;  %v5433_v6 = vld [vmem:[%s7856_s1 + $0x60c] ss:$16 sps:$4 sm:$0xff]   ;;  %v5425_v7 = vld [vmem:[%s7857_s0 + $0x10] ss:$72 sps:$4 sm:$0xff]  }
  0x84   :  { %3665 = vmatprep.subr.bf16.mxu0 %v5337_v8  ;;  %4052 = vmatprep.subr.bf16.mxu1 %v5340_v9  ;;  %v5428_v8 = vld [vmem:[%s7856_s1 + $0x600] ss:$16 sps:$4 sm:$0xff]   ;;  %v5431_v9 = vld [vmem:[%s7856_s1 + $0x608] ss:$16 sps:$4 sm:$0xff]  }
  0x85   :  { %3695 = vmatprep.mubr.bf16.mxu0 %v5427_v12  ;;  %4082 = vmatprep.mubr.bf16.mxu1 %v5427_v12  ;;  %v5526_v12 = vld [vmem:[%s7857_s0 + $0x1c] ss:$72 sps:$4 sm:$0xff]  }
  0x87   :  { %3666 = vmatpush1.bf16.msra.mxu0 %v5335_v10  ;;  %4053 = vmatpush1.bf16.msra.mxu1 %v5338_v11  ;;  %v5436_v10 = vld [vmem:[%s7856_s1 + $0x624] ss:$16 sps:$4 sm:$0xff]   ;;  %v5439_v11 = vld [vmem:[%s7856_s1 + $0x62c] ss:$16 sps:$4 sm:$0xff]  }
  0x88   :  { %3667 = vmatprep.subr.bf16.mxu0 %v5343_v13  ;;  %4054 = vmatprep.subr.bf16.mxu1 %v5346_v14  ;;  %v5434_v13 = vld [vmem:[%s7856_s1 + $0x620] ss:$16 sps:$4 sm:$0xff]   ;;  %v5437_v14 = vld [vmem:[%s7856_s1 + $0x628] ss:$16 sps:$4 sm:$0xff]  }
  0x8b   :  { %3668 = vmatpush1.bf16.msra.mxu0 %v5341_v15  ;;  %4055 = vmatpush1.bf16.msra.mxu1 %v5344_v16  ;;  %v5442_v15 = vld [vmem:[%s7856_s1 + $0x644] ss:$16 sps:$4 sm:$0xff]   ;;  %v5445_v16 = vld [vmem:[%s7856_s1 + $0x64c] ss:$16 sps:$4 sm:$0xff]  }
  0x8c   :  { %3669 = vmatprep.subr.bf16.mxu0 %v5349_v17  ;;  %4056 = vmatprep.subr.bf16.mxu1 %v5352_v18  ;;  %v5440_v17 = vld [vmem:[%s7856_s1 + $0x640] ss:$16 sps:$4 sm:$0xff]   ;;  %v5443_v18 = vld [vmem:[%s7856_s1 + $0x648] ss:$16 sps:$4 sm:$0xff]  }
  0x8f   :  { %3670 = vmatpush1.bf16.msra.mxu0 %v5347_v19  ;;  %4057 = vmatpush1.bf16.msra.mxu1 %v5350_v20  ;;  %v5448_v19 = vld [vmem:[%s7856_s1 + $0x664] ss:$16 sps:$4 sm:$0xff]   ;;  %v5451_v20 = vld [vmem:[%s7856_s1 + $0x66c] ss:$16 sps:$4 sm:$0xff]  }
  0x90   :  { %3671 = vmatprep.subr.bf16.mxu0 %v5355_v21  ;;  %4058 = vmatprep.subr.bf16.mxu1 %v5358_v22  ;;  %v5446_v21 = vld [vmem:[%s7856_s1 + $0x660] ss:$16 sps:$4 sm:$0xff]   ;;  %v5449_v22 = vld [vmem:[%s7856_s1 + $0x668] ss:$16 sps:$4 sm:$0xff]  }
  0x93   :  { %3672 = vmatpush1.bf16.msra.mxu0 %v5353_v23  ;;  %4059 = vmatpush1.bf16.msra.mxu1 %v5356_v24  ;;  %v5454_v23 = vld [vmem:[%s7856_s1 + $0x684] ss:$16 sps:$4 sm:$0xff]   ;;  %v5457_v24 = vld [vmem:[%s7856_s1 + $0x68c] ss:$16 sps:$4 sm:$0xff]  }
  0x94   :  { %3673 = vmatprep.subr.bf16.mxu0 %v5361_v25  ;;  %4060 = vmatprep.subr.bf16.mxu1 %v5364_v26  ;;  %v5452_v25 = vld [vmem:[%s7856_s1 + $0x680] ss:$16 sps:$4 sm:$0xff]   ;;  %v5455_v26 = vld [vmem:[%s7856_s1 + $0x688] ss:$16 sps:$4 sm:$0xff]  }
  0x97   :  { %3674 = vmatpush1.bf16.msra.mxu0 %v5359_v27  ;;  %4061 = vmatpush1.bf16.msra.mxu1 %v5362_v28  ;;  %v5460_v27 = vld [vmem:[%s7856_s1 + $0x6a4] ss:$16 sps:$4 sm:$0xff]   ;;  %v5463_v28 = vld [vmem:[%s7856_s1 + $0x6ac] ss:$16 sps:$4 sm:$0xff]  }
  0x98   :  { %3675 = vmatprep.subr.bf16.mxu0 %v5367_v29  ;;  %4062 = vmatprep.subr.bf16.mxu1 %v5370_v30  ;;  %v5458_v29 = vld [vmem:[%s7856_s1 + $0x6a0] ss:$16 sps:$4 sm:$0xff]   ;;  %v5461_v30 = vld [vmem:[%s7856_s1 + $0x6a8] ss:$16 sps:$4 sm:$0xff]  }
  0x9b   :  { %3676 = vmatpush1.bf16.msra.mxu0 %v5365_v31  ;;  %4063 = vmatpush1.bf16.msra.mxu1 %v5368_v32  ;;  %v5466_v31 = vld [vmem:[%s7856_s1 + $0x6c4] ss:$16 sps:$4 sm:$0xff]   ;;  %v5469_v32 = vld [vmem:[%s7856_s1 + $0x6cc] ss:$16 sps:$4 sm:$0xff]  }
  0x9c   :  { %3677 = vmatprep.subr.bf16.mxu0 %v5373_v33  ;;  %4064 = vmatprep.subr.bf16.mxu1 %v5376_v34  ;;  %v5464_v33 = vld [vmem:[%s7856_s1 + $0x6c0] ss:$16 sps:$4 sm:$0xff]   ;;  %v5467_v34 = vld [vmem:[%s7856_s1 + $0x6c8] ss:$16 sps:$4 sm:$0xff]  }
  0x9f   :  { %3678 = vmatpush1.bf16.msra.mxu0 %v5371_v35  ;;  %4065 = vmatpush1.bf16.msra.mxu1 %v5374_v36  ;;  %v5472_v35 = vld [vmem:[%s7856_s1 + $0x6e4] ss:$16 sps:$4 sm:$0xff]   ;;  %v5475_v36 = vld [vmem:[%s7856_s1 + $0x6ec] ss:$16 sps:$4 sm:$0xff]  }
  0xa0   :  { %3679 = vmatprep.subr.bf16.mxu0 %v5379_v37  ;;  %4066 = vmatprep.subr.bf16.mxu1 %v5382_v38  ;;  %v5470_v37 = vld [vmem:[%s7856_s1 + $0x6e0] ss:$16 sps:$4 sm:$0xff]   ;;  %v5473_v38 = vld [vmem:[%s7856_s1 + $0x6e8] ss:$16 sps:$4 sm:$0xff]  }
  0xa3   :  { %3680 = vmatpush1.bf16.msra.mxu0 %v5377_v39  ;;  %4067 = vmatpush1.bf16.msra.mxu1 %v5380_v40  ;;  %v5478_v39 = vld [vmem:[%s7856_s1 + $0x704] ss:$16 sps:$4 sm:$0xff]   ;;  %v5481_v40 = vld [vmem:[%s7856_s1 + $0x70c] ss:$16 sps:$4 sm:$0xff]  }
  0xa4   :  { %3681 = vmatprep.subr.bf16.mxu0 %v5385_v41  ;;  %4068 = vmatprep.subr.bf16.mxu1 %v5388_v42  ;;  %v5476_v41 = vld [vmem:[%s7856_s1 + $0x700] ss:$16 sps:$4 sm:$0xff]   ;;  %v5479_v42 = vld [vmem:[%s7856_s1 + $0x708] ss:$16 sps:$4 sm:$0xff]  }
  0xa7   :  { %3682 = vmatpush1.bf16.msra.mxu0 %v5383_v43  ;;  %4069 = vmatpush1.bf16.msra.mxu1 %v5386_v44  ;;  %v5484_v43 = vld [vmem:[%s7856_s1 + $0x724] ss:$16 sps:$4 sm:$0xff]   ;;  %v5487_v44 = vld [vmem:[%s7856_s1 + $0x72c] ss:$16 sps:$4 sm:$0xff]  }
  0xa8   :  { %3683 = vmatprep.subr.bf16.mxu0 %v5391_v45  ;;  %4070 = vmatprep.subr.bf16.mxu1 %v5394_v46  ;;  %v5482_v45 = vld [vmem:[%s7856_s1 + $0x720] ss:$16 sps:$4 sm:$0xff]   ;;  %v5485_v46 = vld [vmem:[%s7856_s1 + $0x728] ss:$16 sps:$4 sm:$0xff]  }
  0xab   :  { %3684 = vmatpush1.bf16.msra.mxu0 %v5389_v47  ;;  %4071 = vmatpush1.bf16.msra.mxu1 %v5392_v48  ;;  %v5490_v47 = vld [vmem:[%s7856_s1 + $0x744] ss:$16 sps:$4 sm:$0xff]   ;;  %v5493_v48 = vld [vmem:[%s7856_s1 + $0x74c] ss:$16 sps:$4 sm:$0xff]  }
  0xac   :  { %3685 = vmatprep.subr.bf16.mxu0 %v5397_v49  ;;  %4072 = vmatprep.subr.bf16.mxu1 %v5400_v50  ;;  %v5488_v49 = vld [vmem:[%s7856_s1 + $0x740] ss:$16 sps:$4 sm:$0xff]   ;;  %v5491_v50 = vld [vmem:[%s7856_s1 + $0x748] ss:$16 sps:$4 sm:$0xff]  }
  0xaf   :  { %3686 = vmatpush1.bf16.msra.mxu0 %v5395_v51  ;;  %4073 = vmatpush1.bf16.msra.mxu1 %v5398_v52  ;;  %v5496_v51 = vld [vmem:[%s7856_s1 + $0x764] ss:$16 sps:$4 sm:$0xff]   ;;  %v5499_v52 = vld [vmem:[%s7856_s1 + $0x76c] ss:$16 sps:$4 sm:$0xff]  }
  0xb0   :  { %3687 = vmatprep.subr.bf16.mxu0 %v5403_v53  ;;  %4074 = vmatprep.subr.bf16.mxu1 %v5406_v54  ;;  %v5494_v53 = vld [vmem:[%s7856_s1 + $0x760] ss:$16 sps:$4 sm:$0xff]   ;;  %v5497_v54 = vld [vmem:[%s7856_s1 + $0x768] ss:$16 sps:$4 sm:$0xff]  }
  0xb3   :  { %3688 = vmatpush1.bf16.msra.mxu0 %v5401_v55  ;;  %4075 = vmatpush1.bf16.msra.mxu1 %v5404_v56  ;;  %v5502_v55 = vld [vmem:[%s7856_s1 + $0x784] ss:$16 sps:$4 sm:$0xff]   ;;  %v5505_v56 = vld [vmem:[%s7856_s1 + $0x78c] ss:$16 sps:$4 sm:$0xff]  }
  0xb4   :  { %3689 = vmatprep.subr.bf16.mxu0 %v5409_v57  ;;  %4076 = vmatprep.subr.bf16.mxu1 %v5412_v58  ;;  %v5500_v57 = vld [vmem:[%s7856_s1 + $0x780] ss:$16 sps:$4 sm:$0xff]   ;;  %v5503_v58 = vld [vmem:[%s7856_s1 + $0x788] ss:$16 sps:$4 sm:$0xff]  }
  0xb7   :  { %3690 = vmatpush1.bf16.msra.mxu0 %v5407_v59  ;;  %4077 = vmatpush1.bf16.msra.mxu1 %v5410_v60  ;;  %v5508_v59 = vld [vmem:[%s7856_s1 + $0x7a4] ss:$16 sps:$4 sm:$0xff]   ;;  %v5511_v60 = vld [vmem:[%s7856_s1 + $0x7ac] ss:$16 sps:$4 sm:$0xff]  }
  0xb8   :  { %3691 = vmatprep.subr.bf16.mxu0 %v5415_v61  ;;  %4078 = vmatprep.subr.bf16.mxu1 %v5418_v62  ;;  %v5506_v61 = vld [vmem:[%s7856_s1 + $0x7a0] ss:$16 sps:$4 sm:$0xff]   ;;  %v5509_v62 = vld [vmem:[%s7856_s1 + $0x7a8] ss:$16 sps:$4 sm:$0xff]  }
  0xbb   :  { %3692 = vmatpush1.bf16.msra.mxu0 %v5413_v63  ;;  %4079 = vmatpush1.bf16.msra.mxu1 %v5416_v0  ;;  %v5514_v63 = vld [vmem:[%s7856_s1 + $0x7c4] ss:$16 sps:$4 sm:$0xff]   ;;  %v5517_v0 = vld [vmem:[%s7856_s1 + $0x7cc] ss:$16 sps:$4 sm:$0xff]  }
  0xbc   :  { %3693 = vmatprep.subr.bf16.mxu0 %v5421_v1  ;;  %4080 = vmatprep.subr.bf16.mxu1 %v5424_v2  ;;  %v5512_v1 = vld [vmem:[%s7856_s1 + $0x7c0] ss:$16 sps:$4 sm:$0xff]   ;;  %v5515_v2 = vld [vmem:[%s7856_s1 + $0x7c8] ss:$16 sps:$4 sm:$0xff]  }
  0xbf   :  { %3694 = vmatpush1.bf16.msra.mxu0 %v5419_v3  ;;  %4081 = vmatpush1.bf16.msra.mxu1 %v5422_v4  ;;  %v5520_v3 = vld [vmem:[%s7856_s1 + $0x7e4] ss:$16 sps:$4 sm:$0xff]   ;;  %v5523_v4 = vld [vmem:[%s7856_s1 + $0x7ec] ss:$16 sps:$4 sm:$0xff]  }
  0xc0   :  { %3706 = vmatprep.subr.bf16.mxu0 %v5430_v5  ;;  %4093 = vmatprep.subr.bf16.mxu1 %v5433_v6  ;;  %v5518_v5 = vld [vmem:[%s7856_s1 + $0x7e0] ss:$16 sps:$4 sm:$0xff]   ;;  %v5521_v6 = vld [vmem:[%s7856_s1 + $0x7e8] ss:$16 sps:$4 sm:$0xff]  }
  0xc2   :  { %3696 = vmatmul.mubr.bf16.vlgmr.msra.gmra.mrb[0].mxu0 %v5425_v7  ;;  %4083 = vmatmul.mubr.bf16.vlgmr.msra.gmra.mrb[0].mxu1 %v5425_v7  ;;  %v5529_v7 = vld [vmem:[%s7856_s1 + $0x804] ss:$16 sps:$4 sm:$0xff]  }
  0xc3   :  { %3707 = vmatpush1.bf16.msra.mxu0 %v5428_v8  ;;  %4094 = vmatpush1.bf16.msra.mxu1 %v5431_v9  ;;  %v5532_v8 = vld [vmem:[%s7856_s1 + $0x80c] ss:$16 sps:$4 sm:$0xff]   ;;  %v5524_v9 = vld [vmem:[%s7857_s0 + $0x18] ss:$72 sps:$4 sm:$0xff]  }
  0xc4   :  { %3708 = vmatprep.subr.bf16.mxu0 %v5436_v10  ;;  %4095 = vmatprep.subr.bf16.mxu1 %v5439_v11  ;;  %v5527_v10 = vld [vmem:[%s7856_s1 + $0x800] ss:$16 sps:$4 sm:$0xff]   ;;  %v5530_v11 = vld [vmem:[%s7856_s1 + $0x808] ss:$16 sps:$4 sm:$0xff]  }
  0xc5   :  { %3738 = vmatprep.mubr.bf16.mxu0 %v5526_v12  ;;  %4125 = vmatprep.mubr.bf16.mxu1 %v5526_v12  ;;  %v5535_v12 = vld [vmem:[%s7856_s1 + $0x824] ss:$16 sps:$4 sm:$0xff]  }
  0xc7   :  { %3709 = vmatpush1.bf16.msra.mxu0 %v5434_v13  ;;  %4096 = vmatpush1.bf16.msra.mxu1 %v5437_v14  ;;  %v5538_v13 = vld [vmem:[%s7856_s1 + $0x82c] ss:$16 sps:$4 sm:$0xff]  }
  0xc8   :  { %3710 = vmatprep.subr.bf16.mxu0 %v5442_v15  ;;  %4097 = vmatprep.subr.bf16.mxu1 %v5445_v16  ;;  %v5625_v14 = vld [vmem:[%s7857_s0 + $0x24] ss:$72 sps:$4 sm:$0xff]   ;;  %v5533_v15 = vld [vmem:[%s7856_s1 + $0x820] ss:$16 sps:$4 sm:$0xff]   ;;  %v5536_v16 = vld [vmem:[%s7856_s1 + $0x828] ss:$16 sps:$4 sm:$0xff]  }
  0xcb   :  { %3711 = vmatpush1.bf16.msra.mxu0 %v5440_v17  ;;  %4098 = vmatpush1.bf16.msra.mxu1 %v5443_v18  ;;  %v5541_v17 = vld [vmem:[%s7856_s1 + $0x844] ss:$16 sps:$4 sm:$0xff]   ;;  %v5544_v18 = vld [vmem:[%s7856_s1 + $0x84c] ss:$16 sps:$4 sm:$0xff]  }
  0xcc   :  { %3712 = vmatprep.subr.bf16.mxu0 %v5448_v19  ;;  %4099 = vmatprep.subr.bf16.mxu1 %v5451_v20  ;;  %v5539_v19 = vld [vmem:[%s7856_s1 + $0x840] ss:$16 sps:$4 sm:$0xff]   ;;  %v5542_v20 = vld [vmem:[%s7856_s1 + $0x848] ss:$16 sps:$4 sm:$0xff]  }
  0xcf   :  { %3713 = vmatpush1.bf16.msra.mxu0 %v5446_v21  ;;  %4100 = vmatpush1.bf16.msra.mxu1 %v5449_v22  ;;  %v5547_v21 = vld [vmem:[%s7856_s1 + $0x864] ss:$16 sps:$4 sm:$0xff]   ;;  %v5550_v22 = vld [vmem:[%s7856_s1 + $0x86c] ss:$16 sps:$4 sm:$0xff]  }
  0xd0   :  { %3714 = vmatprep.subr.bf16.mxu0 %v5454_v23  ;;  %4101 = vmatprep.subr.bf16.mxu1 %v5457_v24  ;;  %v5545_v23 = vld [vmem:[%s7856_s1 + $0x860] ss:$16 sps:$4 sm:$0xff]   ;;  %v5548_v24 = vld [vmem:[%s7856_s1 + $0x868] ss:$16 sps:$4 sm:$0xff]  }
  0xd3   :  { %3715 = vmatpush1.bf16.msra.mxu0 %v5452_v25  ;;  %4102 = vmatpush1.bf16.msra.mxu1 %v5455_v26  ;;  %v5553_v25 = vld [vmem:[%s7856_s1 + $0x884] ss:$16 sps:$4 sm:$0xff]   ;;  %v5556_v26 = vld [vmem:[%s7856_s1 + $0x88c] ss:$16 sps:$4 sm:$0xff]  }
  0xd4   :  { %3716 = vmatprep.subr.bf16.mxu0 %v5460_v27  ;;  %4103 = vmatprep.subr.bf16.mxu1 %v5463_v28  ;;  %v5551_v27 = vld [vmem:[%s7856_s1 + $0x880] ss:$16 sps:$4 sm:$0xff]   ;;  %v5554_v28 = vld [vmem:[%s7856_s1 + $0x888] ss:$16 sps:$4 sm:$0xff]  }
  0xd7   :  { %3717 = vmatpush1.bf16.msra.mxu0 %v5458_v29  ;;  %4104 = vmatpush1.bf16.msra.mxu1 %v5461_v30  ;;  %v5559_v29 = vld [vmem:[%s7856_s1 + $0x8a4] ss:$16 sps:$4 sm:$0xff]   ;;  %v5562_v30 = vld [vmem:[%s7856_s1 + $0x8ac] ss:$16 sps:$4 sm:$0xff]  }
  0xd8   :  { %3718 = vmatprep.subr.bf16.mxu0 %v5466_v31  ;;  %4105 = vmatprep.subr.bf16.mxu1 %v5469_v32  ;;  %v5557_v31 = vld [vmem:[%s7856_s1 + $0x8a0] ss:$16 sps:$4 sm:$0xff]   ;;  %v5560_v32 = vld [vmem:[%s7856_s1 + $0x8a8] ss:$16 sps:$4 sm:$0xff]  }
  0xdb   :  { %3719 = vmatpush1.bf16.msra.mxu0 %v5464_v33  ;;  %4106 = vmatpush1.bf16.msra.mxu1 %v5467_v34  ;;  %v5565_v33 = vld [vmem:[%s7856_s1 + $0x8c4] ss:$16 sps:$4 sm:$0xff]   ;;  %v5568_v34 = vld [vmem:[%s7856_s1 + $0x8cc] ss:$16 sps:$4 sm:$0xff]  }
  0xdc   :  { %3720 = vmatprep.subr.bf16.mxu0 %v5472_v35  ;;  %4107 = vmatprep.subr.bf16.mxu1 %v5475_v36  ;;  %v5563_v35 = vld [vmem:[%s7856_s1 + $0x8c0] ss:$16 sps:$4 sm:$0xff]   ;;  %v5566_v36 = vld [vmem:[%s7856_s1 + $0x8c8] ss:$16 sps:$4 sm:$0xff]  }
  0xdf   :  { %3721 = vmatpush1.bf16.msra.mxu0 %v5470_v37  ;;  %4108 = vmatpush1.bf16.msra.mxu1 %v5473_v38  ;;  %v5571_v37 = vld [vmem:[%s7856_s1 + $0x8e4] ss:$16 sps:$4 sm:$0xff]   ;;  %v5574_v38 = vld [vmem:[%s7856_s1 + $0x8ec] ss:$16 sps:$4 sm:$0xff]  }
  0xe0   :  { %3722 = vmatprep.subr.bf16.mxu0 %v5478_v39  ;;  %4109 = vmatprep.subr.bf16.mxu1 %v5481_v40  ;;  %v5569_v39 = vld [vmem:[%s7856_s1 + $0x8e0] ss:$16 sps:$4 sm:$0xff]   ;;  %v5572_v40 = vld [vmem:[%s7856_s1 + $0x8e8] ss:$16 sps:$4 sm:$0xff]  }
  0xe3   :  { %3723 = vmatpush1.bf16.msra.mxu0 %v5476_v41  ;;  %4110 = vmatpush1.bf16.msra.mxu1 %v5479_v42  ;;  %v5577_v41 = vld [vmem:[%s7856_s1 + $0x904] ss:$16 sps:$4 sm:$0xff]   ;;  %v5580_v42 = vld [vmem:[%s7856_s1 + $0x90c] ss:$16 sps:$4 sm:$0xff]  }
  0xe4   :  { %3724 = vmatprep.subr.bf16.mxu0 %v5484_v43  ;;  %4111 = vmatprep.subr.bf16.mxu1 %v5487_v44  ;;  %v5575_v43 = vld [vmem:[%s7856_s1 + $0x900] ss:$16 sps:$4 sm:$0xff]   ;;  %v5578_v44 = vld [vmem:[%s7856_s1 + $0x908] ss:$16 sps:$4 sm:$0xff]  }
  0xe7   :  { %3725 = vmatpush1.bf16.msra.mxu0 %v5482_v45  ;;  %4112 = vmatpush1.bf16.msra.mxu1 %v5485_v46  ;;  %v5583_v45 = vld [vmem:[%s7856_s1 + $0x924] ss:$16 sps:$4 sm:$0xff]   ;;  %v5586_v46 = vld [vmem:[%s7856_s1 + $0x92c] ss:$16 sps:$4 sm:$0xff]  }
  0xe8   :  { %3726 = vmatprep.subr.bf16.mxu0 %v5490_v47  ;;  %4113 = vmatprep.subr.bf16.mxu1 %v5493_v48  ;;  %v5581_v47 = vld [vmem:[%s7856_s1 + $0x920] ss:$16 sps:$4 sm:$0xff]   ;;  %v5584_v48 = vld [vmem:[%s7856_s1 + $0x928] ss:$16 sps:$4 sm:$0xff]  }
  0xeb   :  { %3727 = vmatpush1.bf16.msra.mxu0 %v5488_v49  ;;  %4114 = vmatpush1.bf16.msra.mxu1 %v5491_v50  ;;  %v5589_v49 = vld [vmem:[%s7856_s1 + $0x944] ss:$16 sps:$4 sm:$0xff]   ;;  %v5592_v50 = vld [vmem:[%s7856_s1 + $0x94c] ss:$16 sps:$4 sm:$0xff]  }
  0xec   :  { %3728 = vmatprep.subr.bf16.mxu0 %v5496_v51  ;;  %4115 = vmatprep.subr.bf16.mxu1 %v5499_v52  ;;  %v5587_v51 = vld [vmem:[%s7856_s1 + $0x940] ss:$16 sps:$4 sm:$0xff]   ;;  %v5590_v52 = vld [vmem:[%s7856_s1 + $0x948] ss:$16 sps:$4 sm:$0xff]  }
  0xef   :  { %3729 = vmatpush1.bf16.msra.mxu0 %v5494_v53  ;;  %4116 = vmatpush1.bf16.msra.mxu1 %v5497_v54  ;;  %v5595_v53 = vld [vmem:[%s7856_s1 + $0x964] ss:$16 sps:$4 sm:$0xff]   ;;  %v5598_v54 = vld [vmem:[%s7856_s1 + $0x96c] ss:$16 sps:$4 sm:$0xff]  }
  0xf0   :  { %3730 = vmatprep.subr.bf16.mxu0 %v5502_v55  ;;  %4117 = vmatprep.subr.bf16.mxu1 %v5505_v56  ;;  %v5593_v55 = vld [vmem:[%s7856_s1 + $0x960] ss:$16 sps:$4 sm:$0xff]   ;;  %v5596_v56 = vld [vmem:[%s7856_s1 + $0x968] ss:$16 sps:$4 sm:$0xff]  }
  0xf3   :  { %3731 = vmatpush1.bf16.msra.mxu0 %v5500_v57  ;;  %4118 = vmatpush1.bf16.msra.mxu1 %v5503_v58  ;;  %v5601_v57 = vld [vmem:[%s7856_s1 + $0x984] ss:$16 sps:$4 sm:$0xff]   ;;  %v5604_v58 = vld [vmem:[%s7856_s1 + $0x98c] ss:$16 sps:$4 sm:$0xff]  }
  0xf4   :  { %3732 = vmatprep.subr.bf16.mxu0 %v5508_v59  ;;  %4119 = vmatprep.subr.bf16.mxu1 %v5511_v60  ;;  %v5599_v59 = vld [vmem:[%s7856_s1 + $0x980] ss:$16 sps:$4 sm:$0xff]   ;;  %v5602_v60 = vld [vmem:[%s7856_s1 + $0x988] ss:$16 sps:$4 sm:$0xff]  }
  0xf7   :  { %3733 = vmatpush1.bf16.msra.mxu0 %v5506_v61  ;;  %4120 = vmatpush1.bf16.msra.mxu1 %v5509_v62  ;;  %v5607_v61 = vld [vmem:[%s7856_s1 + $0x9a4] ss:$16 sps:$4 sm:$0xff]   ;;  %v5610_v62 = vld [vmem:[%s7856_s1 + $0x9ac] ss:$16 sps:$4 sm:$0xff]  }
  0xf8   :  { %3734 = vmatprep.subr.bf16.mxu0 %v5514_v63  ;;  %4121 = vmatprep.subr.bf16.mxu1 %v5517_v0  ;;  %v5605_v63 = vld [vmem:[%s7856_s1 + $0x9a0] ss:$16 sps:$4 sm:$0xff]   ;;  %v5608_v0 = vld [vmem:[%s7856_s1 + $0x9a8] ss:$16 sps:$4 sm:$0xff]  }
  0xfb   :  { %3735 = vmatpush1.bf16.msra.mxu0 %v5512_v1  ;;  %4122 = vmatpush1.bf16.msra.mxu1 %v5515_v2  ;;  %v5613_v1 = vld [vmem:[%s7856_s1 + $0x9c4] ss:$16 sps:$4 sm:$0xff]   ;;  %v5616_v2 = vld [vmem:[%s7856_s1 + $0x9cc] ss:$16 sps:$4 sm:$0xff]  }
  0xfc   :  { %3736 = vmatprep.subr.bf16.mxu0 %v5520_v3  ;;  %4123 = vmatprep.subr.bf16.mxu1 %v5523_v4  ;;  %v5611_v3 = vld [vmem:[%s7856_s1 + $0x9c0] ss:$16 sps:$4 sm:$0xff]   ;;  %v5614_v4 = vld [vmem:[%s7856_s1 + $0x9c8] ss:$16 sps:$4 sm:$0xff]  }
  0xff   :  { %3737 = vmatpush1.bf16.msra.mxu0 %v5518_v5  ;;  %4124 = vmatpush1.bf16.msra.mxu1 %v5521_v6  ;;  %v5619_v5 = vld [vmem:[%s7856_s1 + $0x9e4] ss:$16 sps:$4 sm:$0xff]   ;;  %v5622_v6 = vld [vmem:[%s7856_s1 + $0x9ec] ss:$16 sps:$4 sm:$0xff]  }
 0x100   :  { %3749 = vmatprep.subr.bf16.mxu0 %v5529_v7  ;;  %4136 = vmatprep.subr.bf16.mxu1 %v5532_v8  ;;  %v5617_v7 = vld [vmem:[%s7856_s1 + $0x9e0] ss:$16 sps:$4 sm:$0xff]   ;;  %v5620_v8 = vld [vmem:[%s7856_s1 + $0x9e8] ss:$16 sps:$4 sm:$0xff]  }
 0x102   :  { %3739 = vmatmul.mubr.bf16.vlgmr.msra.gmra.mrb[0].mxu0 %v5524_v9  ;;  %4126 = vmatmul.mubr.bf16.vlgmr.msra.gmra.mrb[0].mxu1 %v5524_v9  ;;  %v5623_v9 = vld [vmem:[%s7857_s0 + $0x20] ss:$72 sps:$4 sm:$0xff]  }
 0x103   :  { %3750 = vmatpush1.bf16.msra.mxu0 %v5527_v10  ;;  %4137 = vmatpush1.bf16.msra.mxu1 %v5530_v11  ;;  %v5628_v10 = vld [vmem:[%s7856_s1 + $0xa04] ss:$16 sps:$4 sm:$0xff]   ;;  %v5631_v11 = vld [vmem:[%s7856_s1 + $0xa0c] ss:$16 sps:$4 sm:$0xff]  }
 0x104   :  { %3751 = vmatprep.subr.bf16.mxu0 %v5535_v12  ;;  %4138 = vmatprep.subr.bf16.mxu1 %v5538_v13  ;;  %v5626_v12 = vld [vmem:[%s7856_s1 + $0xa00] ss:$16 sps:$4 sm:$0xff]   ;;  %v5629_v13 = vld [vmem:[%s7856_s1 + $0xa08] ss:$16 sps:$4 sm:$0xff]  }
 0x105   :  { %3781 = vmatprep.mubr.bf16.mxu0 %v5625_v14  ;;  %4168 = vmatprep.mubr.bf16.mxu1 %v5625_v14  ;;  %v5634_v14 = vld [vmem:[%s7856_s1 + $0xa24] ss:$16 sps:$4 sm:$0xff]  }
 0x107   :  { %3752 = vmatpush1.bf16.msra.mxu0 %v5533_v15  ;;  %4139 = vmatpush1.bf16.msra.mxu1 %v5536_v16  ;;  %v5637_v15 = vld [vmem:[%s7856_s1 + $0xa2c] ss:$16 sps:$4 sm:$0xff]  }
 0x108   :  { %3753 = vmatprep.subr.bf16.mxu0 %v5541_v17  ;;  %4140 = vmatprep.subr.bf16.mxu1 %v5544_v18  ;;  %v5724_v16 = vld [vmem:[%s7857_s0 + $0x2c] ss:$72 sps:$4 sm:$0xff]   ;;  %v5632_v17 = vld [vmem:[%s7856_s1 + $0xa20] ss:$16 sps:$4 sm:$0xff]   ;;  %v5635_v18 = vld [vmem:[%s7856_s1 + $0xa28] ss:$16 sps:$4 sm:$0xff]  }
 0x10b   :  { %3754 = vmatpush1.bf16.msra.mxu0 %v5539_v19  ;;  %4141 = vmatpush1.bf16.msra.mxu1 %v5542_v20  ;;  %v5640_v19 = vld [vmem:[%s7856_s1 + $0xa44] ss:$16 sps:$4 sm:$0xff]   ;;  %v5643_v20 = vld [vmem:[%s7856_s1 + $0xa4c] ss:$16 sps:$4 sm:$0xff]  }
 0x10c   :  { %3755 = vmatprep.subr.bf16.mxu0 %v5547_v21  ;;  %4142 = vmatprep.subr.bf16.mxu1 %v5550_v22  ;;  %v5638_v21 = vld [vmem:[%s7856_s1 + $0xa40] ss:$16 sps:$4 sm:$0xff]   ;;  %v5641_v22 = vld [vmem:[%s7856_s1 + $0xa48] ss:$16 sps:$4 sm:$0xff]  }
 0x10f   :  { %3756 = vmatpush1.bf16.msra.mxu0 %v5545_v23  ;;  %4143 = vmatpush1.bf16.msra.mxu1 %v5548_v24  ;;  %v5646_v23 = vld [vmem:[%s7856_s1 + $0xa64] ss:$16 sps:$4 sm:$0xff]   ;;  %v5649_v24 = vld [vmem:[%s7856_s1 + $0xa6c] ss:$16 sps:$4 sm:$0xff]  }
 0x110   :  { %3757 = vmatprep.subr.bf16.mxu0 %v5553_v25  ;;  %4144 = vmatprep.subr.bf16.mxu1 %v5556_v26  ;;  %v5644_v25 = vld [vmem:[%s7856_s1 + $0xa60] ss:$16 sps:$4 sm:$0xff]   ;;  %v5647_v26 = vld [vmem:[%s7856_s1 + $0xa68] ss:$16 sps:$4 sm:$0xff]  }
 0x113   :  { %3758 = vmatpush1.bf16.msra.mxu0 %v5551_v27  ;;  %4145 = vmatpush1.bf16.msra.mxu1 %v5554_v28  ;;  %v5652_v27 = vld [vmem:[%s7856_s1 + $0xa84] ss:$16 sps:$4 sm:$0xff]   ;;  %v5655_v28 = vld [vmem:[%s7856_s1 + $0xa8c] ss:$16 sps:$4 sm:$0xff]  }
 0x114   :  { %3759 = vmatprep.subr.bf16.mxu0 %v5559_v29  ;;  %4146 = vmatprep.subr.bf16.mxu1 %v5562_v30  ;;  %v5650_v29 = vld [vmem:[%s7856_s1 + $0xa80] ss:$16 sps:$4 sm:$0xff]   ;;  %v5653_v30 = vld [vmem:[%s7856_s1 + $0xa88] ss:$16 sps:$4 sm:$0xff]  }
 0x117   :  { %3760 = vmatpush1.bf16.msra.mxu0 %v5557_v31  ;;  %4147 = vmatpush1.bf16.msra.mxu1 %v5560_v32  ;;  %v5658_v31 = vld [vmem:[%s7856_s1 + $0xaa4] ss:$16 sps:$4 sm:$0xff]   ;;  %v5661_v32 = vld [vmem:[%s7856_s1 + $0xaac] ss:$16 sps:$4 sm:$0xff]  }
 0x118   :  { %3761 = vmatprep.subr.bf16.mxu0 %v5565_v33  ;;  %4148 = vmatprep.subr.bf16.mxu1 %v5568_v34  ;;  %v5656_v33 = vld [vmem:[%s7856_s1 + $0xaa0] ss:$16 sps:$4 sm:$0xff]   ;;  %v5659_v34 = vld [vmem:[%s7856_s1 + $0xaa8] ss:$16 sps:$4 sm:$0xff]  }
 0x11b   :  { %3762 = vmatpush1.bf16.msra.mxu0 %v5563_v35  ;;  %4149 = vmatpush1.bf16.msra.mxu1 %v5566_v36  ;;  %v5664_v35 = vld [vmem:[%s7856_s1 + $0xac4] ss:$16 sps:$4 sm:$0xff]   ;;  %v5667_v36 = vld [vmem:[%s7856_s1 + $0xacc] ss:$16 sps:$4 sm:$0xff]  }
 0x11c   :  { %3763 = vmatprep.subr.bf16.mxu0 %v5571_v37  ;;  %4150 = vmatprep.subr.bf16.mxu1 %v5574_v38  ;;  %v5662_v37 = vld [vmem:[%s7856_s1 + $0xac0] ss:$16 sps:$4 sm:$0xff]   ;;  %v5665_v38 = vld [vmem:[%s7856_s1 + $0xac8] ss:$16 sps:$4 sm:$0xff]  }
 0x11f   :  { %3764 = vmatpush1.bf16.msra.mxu0 %v5569_v39  ;;  %4151 = vmatpush1.bf16.msra.mxu1 %v5572_v40  ;;  %v5670_v39 = vld [vmem:[%s7856_s1 + $0xae4] ss:$16 sps:$4 sm:$0xff]   ;;  %v5673_v40 = vld [vmem:[%s7856_s1 + $0xaec] ss:$16 sps:$4 sm:$0xff]  }
 0x120   :  { %3765 = vmatprep.subr.bf16.mxu0 %v5577_v41  ;;  %4152 = vmatprep.subr.bf16.mxu1 %v5580_v42  ;;  %v5668_v41 = vld [vmem:[%s7856_s1 + $0xae0] ss:$16 sps:$4 sm:$0xff]   ;;  %v5671_v42 = vld [vmem:[%s7856_s1 + $0xae8] ss:$16 sps:$4 sm:$0xff]  }
 0x123   :  { %3766 = vmatpush1.bf16.msra.mxu0 %v5575_v43  ;;  %4153 = vmatpush1.bf16.msra.mxu1 %v5578_v44  ;;  %v5676_v43 = vld [vmem:[%s7856_s1 + $0xb04] ss:$16 sps:$4 sm:$0xff]   ;;  %v5679_v44 = vld [vmem:[%s7856_s1 + $0xb0c] ss:$16 sps:$4 sm:$0xff]  }
 0x124   :  { %3767 = vmatprep.subr.bf16.mxu0 %v5583_v45  ;;  %4154 = vmatprep.subr.bf16.mxu1 %v5586_v46  ;;  %v5674_v45 = vld [vmem:[%s7856_s1 + $0xb00] ss:$16 sps:$4 sm:$0xff]   ;;  %v5677_v46 = vld [vmem:[%s7856_s1 + $0xb08] ss:$16 sps:$4 sm:$0xff]  }
 0x127   :  { %3768 = vmatpush1.bf16.msra.mxu0 %v5581_v47  ;;  %4155 = vmatpush1.bf16.msra.mxu1 %v5584_v48  ;;  %v5682_v47 = vld [vmem:[%s7856_s1 + $0xb24] ss:$16 sps:$4 sm:$0xff]   ;;  %v5685_v48 = vld [vmem:[%s7856_s1 + $0xb2c] ss:$16 sps:$4 sm:$0xff]  }
 0x128   :  { %3769 = vmatprep.subr.bf16.mxu0 %v5589_v49  ;;  %4156 = vmatprep.subr.bf16.mxu1 %v5592_v50  ;;  %v5680_v49 = vld [vmem:[%s7856_s1 + $0xb20] ss:$16 sps:$4 sm:$0xff]   ;;  %v5683_v50 = vld [vmem:[%s7856_s1 + $0xb28] ss:$16 sps:$4 sm:$0xff]  }
 0x12b   :  { %3770 = vmatpush1.bf16.msra.mxu0 %v5587_v51  ;;  %4157 = vmatpush1.bf16.msra.mxu1 %v5590_v52  ;;  %v5688_v51 = vld [vmem:[%s7856_s1 + $0xb44] ss:$16 sps:$4 sm:$0xff]   ;;  %v5691_v52 = vld [vmem:[%s7856_s1 + $0xb4c] ss:$16 sps:$4 sm:$0xff]  }
 0x12c   :  { %3771 = vmatprep.subr.bf16.mxu0 %v5595_v53  ;;  %4158 = vmatprep.subr.bf16.mxu1 %v5598_v54  ;;  %v5686_v53 = vld [vmem:[%s7856_s1 + $0xb40] ss:$16 sps:$4 sm:$0xff]   ;;  %v5689_v54 = vld [vmem:[%s7856_s1 + $0xb48] ss:$16 sps:$4 sm:$0xff]  }
 0x12f   :  { %3772 = vmatpush1.bf16.msra.mxu0 %v5593_v55  ;;  %4159 = vmatpush1.bf16.msra.mxu1 %v5596_v56  ;;  %v5694_v55 = vld [vmem:[%s7856_s1 + $0xb64] ss:$16 sps:$4 sm:$0xff]   ;;  %v5697_v56 = vld [vmem:[%s7856_s1 + $0xb6c] ss:$16 sps:$4 sm:$0xff]  }
 0x130   :  { %3773 = vmatprep.subr.bf16.mxu0 %v5601_v57  ;;  %4160 = vmatprep.subr.bf16.mxu1 %v5604_v58  ;;  %v5692_v57 = vld [vmem:[%s7856_s1 + $0xb60] ss:$16 sps:$4 sm:$0xff]   ;;  %v5695_v58 = vld [vmem:[%s7856_s1 + $0xb68] ss:$16 sps:$4 sm:$0xff]  }
 0x133   :  { %3774 = vmatpush1.bf16.msra.mxu0 %v5599_v59  ;;  %4161 = vmatpush1.bf16.msra.mxu1 %v5602_v60  ;;  %v5700_v59 = vld [vmem:[%s7856_s1 + $0xb84] ss:$16 sps:$4 sm:$0xff]   ;;  %v5703_v60 = vld [vmem:[%s7856_s1 + $0xb8c] ss:$16 sps:$4 sm:$0xff]  }
 0x134   :  { %3775 = vmatprep.subr.bf16.mxu0 %v5607_v61  ;;  %4162 = vmatprep.subr.bf16.mxu1 %v5610_v62  ;;  %v5698_v61 = vld [vmem:[%s7856_s1 + $0xb80] ss:$16 sps:$4 sm:$0xff]   ;;  %v5701_v62 = vld [vmem:[%s7856_s1 + $0xb88] ss:$16 sps:$4 sm:$0xff]  }
 0x137   :  { %3776 = vmatpush1.bf16.msra.mxu0 %v5605_v63  ;;  %4163 = vmatpush1.bf16.msra.mxu1 %v5608_v0  ;;  %v5706_v63 = vld [vmem:[%s7856_s1 + $0xba4] ss:$16 sps:$4 sm:$0xff]   ;;  %v5709_v0 = vld [vmem:[%s7856_s1 + $0xbac] ss:$16 sps:$4 sm:$0xff]  }
 0x138   :  { %3777 = vmatprep.subr.bf16.mxu0 %v5613_v1  ;;  %4164 = vmatprep.subr.bf16.mxu1 %v5616_v2  ;;  %v5704_v1 = vld [vmem:[%s7856_s1 + $0xba0] ss:$16 sps:$4 sm:$0xff]   ;;  %v5707_v2 = vld [vmem:[%s7856_s1 + $0xba8] ss:$16 sps:$4 sm:$0xff]  }
 0x13b   :  { %3778 = vmatpush1.bf16.msra.mxu0 %v5611_v3  ;;  %4165 = vmatpush1.bf16.msra.mxu1 %v5614_v4  ;;  %v5712_v3 = vld [vmem:[%s7856_s1 + $0xbc4] ss:$16 sps:$4 sm:$0xff]   ;;  %v5715_v4 = vld [vmem:[%s7856_s1 + $0xbcc] ss:$16 sps:$4 sm:$0xff]  }
 0x13c   :  { %3779 = vmatprep.subr.bf16.mxu0 %v5619_v5  ;;  %4166 = vmatprep.subr.bf16.mxu1 %v5622_v6  ;;  %v5710_v5 = vld [vmem:[%s7856_s1 + $0xbc0] ss:$16 sps:$4 sm:$0xff]   ;;  %v5713_v6 = vld [vmem:[%s7856_s1 + $0xbc8] ss:$16 sps:$4 sm:$0xff]  }
 0x13f   :  { %3780 = vmatpush1.bf16.msra.mxu0 %v5617_v7  ;;  %4167 = vmatpush1.bf16.msra.mxu1 %v5620_v8  ;;  %v5718_v7 = vld [vmem:[%s7856_s1 + $0xbe4] ss:$16 sps:$4 sm:$0xff]   ;;  %v5721_v8 = vld [vmem:[%s7856_s1 + $0xbec] ss:$16 sps:$4 sm:$0xff]  }
 0x140   :  { %3792 = vmatprep.subr.bf16.mxu0 %v5628_v10  ;;  %4179 = vmatprep.subr.bf16.mxu1 %v5631_v11  ;;  %v5719_v10 = vld [vmem:[%s7856_s1 + $0xbe8] ss:$16 sps:$4 sm:$0xff]   ;;  %v5727_v11 = vld [vmem:[%s7856_s1 + $0xc04] ss:$16 sps:$4 sm:$0xff]  }
 0x142   :  { %3782 = vmatmul.mubr.bf16.vlgmr.msra.gmra.mrb[0].mxu0 %v5623_v9  ;;  %4169 = vmatmul.mubr.bf16.vlgmr.msra.gmra.mrb[0].mxu1 %v5623_v9  ;;  %v5716_v9 = vld [vmem:[%s7856_s1 + $0xbe0] ss:$16 sps:$4 sm:$0xff]  }
 0x143   :  { %3793 = vmatpush1.bf16.msra.mxu0 %v5626_v12  ;;  %4180 = vmatpush1.bf16.msra.mxu1 %v5629_v13  ;;  %v5730_v12 = vld [vmem:[%s7856_s1 + $0xc0c] ss:$16 sps:$4 sm:$0xff]   ;;  %v5722_v13 = vld [vmem:[%s7857_s0 + $0x28] ss:$72 sps:$4 sm:$0xff]  }
 0x144   :  { %3794 = vmatprep.subr.bf16.mxu0 %v5634_v14  ;;  %4181 = vmatprep.subr.bf16.mxu1 %v5637_v15  ;;  %v5725_v14 = vld [vmem:[%s7856_s1 + $0xc00] ss:$16 sps:$4 sm:$0xff]   ;;  %v5728_v15 = vld [vmem:[%s7856_s1 + $0xc08] ss:$16 sps:$4 sm:$0xff]  }
 0x145   :  { %3824 = vmatprep.mubr.bf16.mxu0 %v5724_v16  ;;  %4211 = vmatprep.mubr.bf16.mxu1 %v5724_v16  ;;  %v5733_v16 = vld [vmem:[%s7856_s1 + $0xc24] ss:$16 sps:$4 sm:$0xff]  }
 0x147   :  { %3795 = vmatpush1.bf16.msra.mxu0 %v5632_v17  ;;  %4182 = vmatpush1.bf16.msra.mxu1 %v5635_v18  ;;  %v5736_v17 = vld [vmem:[%s7856_s1 + $0xc2c] ss:$16 sps:$4 sm:$0xff]  }
 0x148   :  { %3796 = vmatprep.subr.bf16.mxu0 %v5640_v19  ;;  %4183 = vmatprep.subr.bf16.mxu1 %v5643_v20  ;;  %v5823_v18 = vld [vmem:[%s7857_s0 + $0x34] ss:$72 sps:$4 sm:$0xff]   ;;  %v5731_v19 = vld [vmem:[%s7856_s1 + $0xc20] ss:$16 sps:$4 sm:$0xff]   ;;  %v5734_v20 = vld [vmem:[%s7856_s1 + $0xc28] ss:$16 sps:$4 sm:$0xff]  }
 0x14b   :  { %3797 = vmatpush1.bf16.msra.mxu0 %v5638_v21  ;;  %4184 = vmatpush1.bf16.msra.mxu1 %v5641_v22  ;;  %v5739_v21 = vld [vmem:[%s7856_s1 + $0xc44] ss:$16 sps:$4 sm:$0xff]   ;;  %v5742_v22 = vld [vmem:[%s7856_s1 + $0xc4c] ss:$16 sps:$4 sm:$0xff]  }
 0x14c   :  { %3798 = vmatprep.subr.bf16.mxu0 %v5646_v23  ;;  %4185 = vmatprep.subr.bf16.mxu1 %v5649_v24  ;;  %v5737_v23 = vld [vmem:[%s7856_s1 + $0xc40] ss:$16 sps:$4 sm:$0xff]   ;;  %v5740_v24 = vld [vmem:[%s7856_s1 + $0xc48] ss:$16 sps:$4 sm:$0xff]  }
 0x14f   :  { %3799 = vmatpush1.bf16.msra.mxu0 %v5644_v25  ;;  %4186 = vmatpush1.bf16.msra.mxu1 %v5647_v26  ;;  %v5745_v25 = vld [vmem:[%s7856_s1 + $0xc64] ss:$16 sps:$4 sm:$0xff]   ;;  %v5748_v26 = vld [vmem:[%s7856_s1 + $0xc6c] ss:$16 sps:$4 sm:$0xff]  }
 0x150   :  { %3800 = vmatprep.subr.bf16.mxu0 %v5652_v27  ;;  %4187 = vmatprep.subr.bf16.mxu1 %v5655_v28  ;;  %v5743_v27 = vld [vmem:[%s7856_s1 + $0xc60] ss:$16 sps:$4 sm:$0xff]   ;;  %v5746_v28 = vld [vmem:[%s7856_s1 + $0xc68] ss:$16 sps:$4 sm:$0xff]  }
 0x153   :  { %3801 = vmatpush1.bf16.msra.mxu0 %v5650_v29  ;;  %4188 = vmatpush1.bf16.msra.mxu1 %v5653_v30  ;;  %v5751_v29 = vld [vmem:[%s7856_s1 + $0xc84] ss:$16 sps:$4 sm:$0xff]   ;;  %v5754_v30 = vld [vmem:[%s7856_s1 + $0xc8c] ss:$16 sps:$4 sm:$0xff]  }
 0x154   :  { %3802 = vmatprep.subr.bf16.mxu0 %v5658_v31  ;;  %4189 = vmatprep.subr.bf16.mxu1 %v5661_v32  ;;  %v5749_v31 = vld [vmem:[%s7856_s1 + $0xc80] ss:$16 sps:$4 sm:$0xff]   ;;  %v5752_v32 = vld [vmem:[%s7856_s1 + $0xc88] ss:$16 sps:$4 sm:$0xff]  }
 0x157   :  { %3803 = vmatpush1.bf16.msra.mxu0 %v5656_v33  ;;  %4190 = vmatpush1.bf16.msra.mxu1 %v5659_v34  ;;  %v5757_v33 = vld [vmem:[%s7856_s1 + $0xca4] ss:$16 sps:$4 sm:$0xff]   ;;  %v5760_v34 = vld [vmem:[%s7856_s1 + $0xcac] ss:$16 sps:$4 sm:$0xff]  }
 0x158   :  { %3804 = vmatprep.subr.bf16.mxu0 %v5664_v35  ;;  %4191 = vmatprep.subr.bf16.mxu1 %v5667_v36  ;;  %v5755_v35 = vld [vmem:[%s7856_s1 + $0xca0] ss:$16 sps:$4 sm:$0xff]   ;;  %v5758_v36 = vld [vmem:[%s7856_s1 + $0xca8] ss:$16 sps:$4 sm:$0xff]  }
 0x15b   :  { %3805 = vmatpush1.bf16.msra.mxu0 %v5662_v37  ;;  %4192 = vmatpush1.bf16.msra.mxu1 %v5665_v38  ;;  %v5763_v37 = vld [vmem:[%s7856_s1 + $0xcc4] ss:$16 sps:$4 sm:$0xff]   ;;  %v5766_v38 = vld [vmem:[%s7856_s1 + $0xccc] ss:$16 sps:$4 sm:$0xff]  }
 0x15c   :  { %3806 = vmatprep.subr.bf16.mxu0 %v5670_v39  ;;  %4193 = vmatprep.subr.bf16.mxu1 %v5673_v40  ;;  %v5761_v39 = vld [vmem:[%s7856_s1 + $0xcc0] ss:$16 sps:$4 sm:$0xff]   ;;  %v5764_v40 = vld [vmem:[%s7856_s1 + $0xcc8] ss:$16 sps:$4 sm:$0xff]  }
 0x15f   :  { %3807 = vmatpush1.bf16.msra.mxu0 %v5668_v41  ;;  %4194 = vmatpush1.bf16.msra.mxu1 %v5671_v42  ;;  %v5769_v41 = vld [vmem:[%s7856_s1 + $0xce4] ss:$16 sps:$4 sm:$0xff]   ;;  %v5772_v42 = vld [vmem:[%s7856_s1 + $0xcec] ss:$16 sps:$4 sm:$0xff]  }
 0x160   :  { %3808 = vmatprep.subr.bf16.mxu0 %v5676_v43  ;;  %4195 = vmatprep.subr.bf16.mxu1 %v5679_v44  ;;  %v5767_v43 = vld [vmem:[%s7856_s1 + $0xce0] ss:$16 sps:$4 sm:$0xff]   ;;  %v5770_v44 = vld [vmem:[%s7856_s1 + $0xce8] ss:$16 sps:$4 sm:$0xff]  }
 0x163   :  { %3809 = vmatpush1.bf16.msra.mxu0 %v5674_v45  ;;  %4196 = vmatpush1.bf16.msra.mxu1 %v5677_v46  ;;  %v5775_v45 = vld [vmem:[%s7856_s1 + $0xd04] ss:$16 sps:$4 sm:$0xff]   ;;  %v5778_v46 = vld [vmem:[%s7856_s1 + $0xd0c] ss:$16 sps:$4 sm:$0xff]  }
 0x164   :  { %3810 = vmatprep.subr.bf16.mxu0 %v5682_v47  ;;  %4197 = vmatprep.subr.bf16.mxu1 %v5685_v48  ;;  %v5773_v47 = vld [vmem:[%s7856_s1 + $0xd00] ss:$16 sps:$4 sm:$0xff]   ;;  %v5776_v48 = vld [vmem:[%s7856_s1 + $0xd08] ss:$16 sps:$4 sm:$0xff]  }
 0x167   :  { %3811 = vmatpush1.bf16.msra.mxu0 %v5680_v49  ;;  %4198 = vmatpush1.bf16.msra.mxu1 %v5683_v50  ;;  %v5781_v49 = vld [vmem:[%s7856_s1 + $0xd24] ss:$16 sps:$4 sm:$0xff]   ;;  %v5784_v50 = vld [vmem:[%s7856_s1 + $0xd2c] ss:$16 sps:$4 sm:$0xff]  }
 0x168   :  { %3812 = vmatprep.subr.bf16.mxu0 %v5688_v51  ;;  %4199 = vmatprep.subr.bf16.mxu1 %v5691_v52  ;;  %v5779_v51 = vld [vmem:[%s7856_s1 + $0xd20] ss:$16 sps:$4 sm:$0xff]   ;;  %v5782_v52 = vld [vmem:[%s7856_s1 + $0xd28] ss:$16 sps:$4 sm:$0xff]  }
 0x16b   :  { %3813 = vmatpush1.bf16.msra.mxu0 %v5686_v53  ;;  %4200 = vmatpush1.bf16.msra.mxu1 %v5689_v54  ;;  %v5787_v53 = vld [vmem:[%s7856_s1 + $0xd44] ss:$16 sps:$4 sm:$0xff]   ;;  %v5790_v54 = vld [vmem:[%s7856_s1 + $0xd4c] ss:$16 sps:$4 sm:$0xff]  }
 0x16c   :  { %3814 = vmatprep.subr.bf16.mxu0 %v5694_v55  ;;  %4201 = vmatprep.subr.bf16.mxu1 %v5697_v56  ;;  %v5785_v55 = vld [vmem:[%s7856_s1 + $0xd40] ss:$16 sps:$4 sm:$0xff]   ;;  %v5788_v56 = vld [vmem:[%s7856_s1 + $0xd48] ss:$16 sps:$4 sm:$0xff]  }
 0x16f   :  { %3815 = vmatpush1.bf16.msra.mxu0 %v5692_v57  ;;  %4202 = vmatpush1.bf16.msra.mxu1 %v5695_v58  ;;  %v5793_v57 = vld [vmem:[%s7856_s1 + $0xd64] ss:$16 sps:$4 sm:$0xff]   ;;  %v5796_v58 = vld [vmem:[%s7856_s1 + $0xd6c] ss:$16 sps:$4 sm:$0xff]  }
 0x170   :  { %3816 = vmatprep.subr.bf16.mxu0 %v5700_v59  ;;  %4203 = vmatprep.subr.bf16.mxu1 %v5703_v60  ;;  %v5791_v59 = vld [vmem:[%s7856_s1 + $0xd60] ss:$16 sps:$4 sm:$0xff]   ;;  %v5794_v60 = vld [vmem:[%s7856_s1 + $0xd68] ss:$16 sps:$4 sm:$0xff]  }
 0x173   :  { %3817 = vmatpush1.bf16.msra.mxu0 %v5698_v61  ;;  %4204 = vmatpush1.bf16.msra.mxu1 %v5701_v62  ;;  %v5799_v61 = vld [vmem:[%s7856_s1 + $0xd84] ss:$16 sps:$4 sm:$0xff]   ;;  %v5802_v62 = vld [vmem:[%s7856_s1 + $0xd8c] ss:$16 sps:$4 sm:$0xff]  }
 0x174   :  { %3818 = vmatprep.subr.bf16.mxu0 %v5706_v63  ;;  %4205 = vmatprep.subr.bf16.mxu1 %v5709_v0  ;;  %v5797_v63 = vld [vmem:[%s7856_s1 + $0xd80] ss:$16 sps:$4 sm:$0xff]   ;;  %v5800_v0 = vld [vmem:[%s7856_s1 + $0xd88] ss:$16 sps:$4 sm:$0xff]  }
 0x177   :  { %3819 = vmatpush1.bf16.msra.mxu0 %v5704_v1  ;;  %4206 = vmatpush1.bf16.msra.mxu1 %v5707_v2  ;;  %v5805_v1 = vld [vmem:[%s7856_s1 + $0xda4] ss:$16 sps:$4 sm:$0xff]   ;;  %v5808_v2 = vld [vmem:[%s7856_s1 + $0xdac] ss:$16 sps:$4 sm:$0xff]  }
 0x178   :  { %3820 = vmatprep.subr.bf16.mxu0 %v5712_v3  ;;  %4207 = vmatprep.subr.bf16.mxu1 %v5715_v4  ;;  %v5803_v3 = vld [vmem:[%s7856_s1 + $0xda0] ss:$16 sps:$4 sm:$0xff]   ;;  %v5806_v4 = vld [vmem:[%s7856_s1 + $0xda8] ss:$16 sps:$4 sm:$0xff]  }
 0x17b   :  { %3821 = vmatpush1.bf16.msra.mxu0 %v5710_v5  ;;  %4208 = vmatpush1.bf16.msra.mxu1 %v5713_v6  ;;  %v5811_v5 = vld [vmem:[%s7856_s1 + $0xdc4] ss:$16 sps:$4 sm:$0xff]   ;;  %v5814_v6 = vld [vmem:[%s7856_s1 + $0xdcc] ss:$16 sps:$4 sm:$0xff]  }
 0x17c   :  { %3822 = vmatprep.subr.bf16.mxu0 %v5718_v7  ;;  %4209 = vmatprep.subr.bf16.mxu1 %v5721_v8  ;;  %v5809_v7 = vld [vmem:[%s7856_s1 + $0xdc0] ss:$16 sps:$4 sm:$0xff]   ;;  %v5812_v8 = vld [vmem:[%s7856_s1 + $0xdc8] ss:$16 sps:$4 sm:$0xff]  }
 0x17f   :  { %3823 = vmatpush1.bf16.msra.mxu0 %v5716_v9  ;;  %4210 = vmatpush1.bf16.msra.mxu1 %v5719_v10  ;;  %v5817_v9 = vld [vmem:[%s7856_s1 + $0xde4] ss:$16 sps:$4 sm:$0xff]   ;;  %v5820_v10 = vld [vmem:[%s7856_s1 + $0xdec] ss:$16 sps:$4 sm:$0xff]  }
 0x180   :  { %3835 = vmatprep.subr.bf16.mxu0 %v5727_v11  ;;  %4222 = vmatprep.subr.bf16.mxu1 %v5730_v12  ;;  %v5815_v11 = vld [vmem:[%s7856_s1 + $0xde0] ss:$16 sps:$4 sm:$0xff]   ;;  %v5818_v12 = vld [vmem:[%s7856_s1 + $0xde8] ss:$16 sps:$4 sm:$0xff]  }
 0x182   :  { %3825 = vmatmul.mubr.bf16.vlgmr.msra.gmra.mrb[0].mxu0 %v5722_v13  ;;  %4212 = vmatmul.mubr.bf16.vlgmr.msra.gmra.mrb[0].mxu1 %v5722_v13  ;;  %v5826_v13 = vld [vmem:[%s7856_s1 + $0xe04] ss:$16 sps:$4 sm:$0xff]  }
 0x183   :  { %3836 = vmatpush1.bf16.msra.mxu0 %v5725_v14  ;;  %4223 = vmatpush1.bf16.msra.mxu1 %v5728_v15  ;;  %v5829_v14 = vld [vmem:[%s7856_s1 + $0xe0c] ss:$16 sps:$4 sm:$0xff]   ;;  %v5821_v15 = vld [vmem:[%s7857_s0 + $0x30] ss:$72 sps:$4 sm:$0xff]  }
 0x184   :  { %3837 = vmatprep.subr.bf16.mxu0 %v5733_v16  ;;  %4224 = vmatprep.subr.bf16.mxu1 %v5736_v17  ;;  %v5824_v16 = vld [vmem:[%s7856_s1 + $0xe00] ss:$16 sps:$4 sm:$0xff]   ;;  %v5827_v17 = vld [vmem:[%s7856_s1 + $0xe08] ss:$16 sps:$4 sm:$0xff]  }
 0x185   :  { %3867 = vmatprep.mubr.bf16.mxu0 %v5823_v18  ;;  %4254 = vmatprep.mubr.bf16.mxu1 %v5823_v18  ;;  %v5832_v18 = vld [vmem:[%s7856_s1 + $0xe24] ss:$16 sps:$4 sm:$0xff]  }
 0x187   :  { %3838 = vmatpush1.bf16.msra.mxu0 %v5731_v19  ;;  %4225 = vmatpush1.bf16.msra.mxu1 %v5734_v20  ;;  %v5835_v19 = vld [vmem:[%s7856_s1 + $0xe2c] ss:$16 sps:$4 sm:$0xff]  }
 0x188   :  { %3839 = vmatprep.subr.bf16.mxu0 %v5739_v21  ;;  %4226 = vmatprep.subr.bf16.mxu1 %v5742_v22  ;;  %v5922_v20 = vld [vmem:[%s7857_s0 + $0x3c] ss:$72 sps:$4 sm:$0xff]   ;;  %v5830_v21 = vld [vmem:[%s7856_s1 + $0xe20] ss:$16 sps:$4 sm:$0xff]   ;;  %v5833_v22 = vld [vmem:[%s7856_s1 + $0xe28] ss:$16 sps:$4 sm:$0xff]  }
 0x18b   :  { %3840 = vmatpush1.bf16.msra.mxu0 %v5737_v23  ;;  %4227 = vmatpush1.bf16.msra.mxu1 %v5740_v24  ;;  %v5838_v23 = vld [vmem:[%s7856_s1 + $0xe44] ss:$16 sps:$4 sm:$0xff]   ;;  %v5841_v24 = vld [vmem:[%s7856_s1 + $0xe4c] ss:$16 sps:$4 sm:$0xff]  }
 0x18c   :  { %3841 = vmatprep.subr.bf16.mxu0 %v5745_v25  ;;  %4228 = vmatprep.subr.bf16.mxu1 %v5748_v26  ;;  %v5836_v25 = vld [vmem:[%s7856_s1 + $0xe40] ss:$16 sps:$4 sm:$0xff]   ;;  %v5839_v26 = vld [vmem:[%s7856_s1 + $0xe48] ss:$16 sps:$4 sm:$0xff]  }
 0x18f   :  { %3842 = vmatpush1.bf16.msra.mxu0 %v5743_v27  ;;  %4229 = vmatpush1.bf16.msra.mxu1 %v5746_v28  ;;  %v5844_v27 = vld [vmem:[%s7856_s1 + $0xe64] ss:$16 sps:$4 sm:$0xff]   ;;  %v5847_v28 = vld [vmem:[%s7856_s1 + $0xe6c] ss:$16 sps:$4 sm:$0xff]  }
 0x190   :  { %3843 = vmatprep.subr.bf16.mxu0 %v5751_v29  ;;  %4230 = vmatprep.subr.bf16.mxu1 %v5754_v30  ;;  %v5842_v29 = vld [vmem:[%s7856_s1 + $0xe60] ss:$16 sps:$4 sm:$0xff]   ;;  %v5845_v30 = vld [vmem:[%s7856_s1 + $0xe68] ss:$16 sps:$4 sm:$0xff]  }
 0x193   :  { %3844 = vmatpush1.bf16.msra.mxu0 %v5749_v31  ;;  %4231 = vmatpush1.bf16.msra.mxu1 %v5752_v32  ;;  %v5850_v31 = vld [vmem:[%s7856_s1 + $0xe84] ss:$16 sps:$4 sm:$0xff]   ;;  %v5853_v32 = vld [vmem:[%s7856_s1 + $0xe8c] ss:$16 sps:$4 sm:$0xff]  }
 0x194   :  { %3845 = vmatprep.subr.bf16.mxu0 %v5757_v33  ;;  %4232 = vmatprep.subr.bf16.mxu1 %v5760_v34  ;;  %v5848_v33 = vld [vmem:[%s7856_s1 + $0xe80] ss:$16 sps:$4 sm:$0xff]   ;;  %v5851_v34 = vld [vmem:[%s7856_s1 + $0xe88] ss:$16 sps:$4 sm:$0xff]  }
 0x197   :  { %3846 = vmatpush1.bf16.msra.mxu0 %v5755_v35  ;;  %4233 = vmatpush1.bf16.msra.mxu1 %v5758_v36  ;;  %v5856_v35 = vld [vmem:[%s7856_s1 + $0xea4] ss:$16 sps:$4 sm:$0xff]   ;;  %v5859_v36 = vld [vmem:[%s7856_s1 + $0xeac] ss:$16 sps:$4 sm:$0xff]  }
 0x198   :  { %3847 = vmatprep.subr.bf16.mxu0 %v5763_v37  ;;  %4234 = vmatprep.subr.bf16.mxu1 %v5766_v38  ;;  %v5854_v37 = vld [vmem:[%s7856_s1 + $0xea0] ss:$16 sps:$4 sm:$0xff]   ;;  %v5857_v38 = vld [vmem:[%s7856_s1 + $0xea8] ss:$16 sps:$4 sm:$0xff]  }
 0x19b   :  { %3848 = vmatpush1.bf16.msra.mxu0 %v5761_v39  ;;  %4235 = vmatpush1.bf16.msra.mxu1 %v5764_v40  ;;  %v5862_v39 = vld [vmem:[%s7856_s1 + $0xec4] ss:$16 sps:$4 sm:$0xff]   ;;  %v5865_v40 = vld [vmem:[%s7856_s1 + $0xecc] ss:$16 sps:$4 sm:$0xff]  }
 0x19c   :  { %3849 = vmatprep.subr.bf16.mxu0 %v5769_v41  ;;  %4236 = vmatprep.subr.bf16.mxu1 %v5772_v42  ;;  %v5860_v41 = vld [vmem:[%s7856_s1 + $0xec0] ss:$16 sps:$4 sm:$0xff]   ;;  %v5863_v42 = vld [vmem:[%s7856_s1 + $0xec8] ss:$16 sps:$4 sm:$0xff]  }
 0x19f   :  { %3850 = vmatpush1.bf16.msra.mxu0 %v5767_v43  ;;  %4237 = vmatpush1.bf16.msra.mxu1 %v5770_v44  ;;  %v5868_v43 = vld [vmem:[%s7856_s1 + $0xee4] ss:$16 sps:$4 sm:$0xff]   ;;  %v5871_v44 = vld [vmem:[%s7856_s1 + $0xeec] ss:$16 sps:$4 sm:$0xff]  }
 0x1a0   :  { %3851 = vmatprep.subr.bf16.mxu0 %v5775_v45  ;;  %4238 = vmatprep.subr.bf16.mxu1 %v5778_v46  ;;  %v5866_v45 = vld [vmem:[%s7856_s1 + $0xee0] ss:$16 sps:$4 sm:$0xff]   ;;  %v5869_v46 = vld [vmem:[%s7856_s1 + $0xee8] ss:$16 sps:$4 sm:$0xff]  }
 0x1a3   :  { %3852 = vmatpush1.bf16.msra.mxu0 %v5773_v47  ;;  %4239 = vmatpush1.bf16.msra.mxu1 %v5776_v48  ;;  %v5874_v47 = vld [vmem:[%s7856_s1 + $0xf04] ss:$16 sps:$4 sm:$0xff]   ;;  %v5877_v48 = vld [vmem:[%s7856_s1 + $0xf0c] ss:$16 sps:$4 sm:$0xff]  }
 0x1a4   :  { %3853 = vmatprep.subr.bf16.mxu0 %v5781_v49  ;;  %4240 = vmatprep.subr.bf16.mxu1 %v5784_v50  ;;  %v5872_v49 = vld [vmem:[%s7856_s1 + $0xf00] ss:$16 sps:$4 sm:$0xff]   ;;  %v5875_v50 = vld [vmem:[%s7856_s1 + $0xf08] ss:$16 sps:$4 sm:$0xff]  }
 0x1a7   :  { %3854 = vmatpush1.bf16.msra.mxu0 %v5779_v51  ;;  %4241 = vmatpush1.bf16.msra.mxu1 %v5782_v52  ;;  %v5880_v51 = vld [vmem:[%s7856_s1 + $0xf24] ss:$16 sps:$4 sm:$0xff]   ;;  %v5883_v52 = vld [vmem:[%s7856_s1 + $0xf2c] ss:$16 sps:$4 sm:$0xff]  }
 0x1a8   :  { %3855 = vmatprep.subr.bf16.mxu0 %v5787_v53  ;;  %4242 = vmatprep.subr.bf16.mxu1 %v5790_v54  ;;  %v5878_v53 = vld [vmem:[%s7856_s1 + $0xf20] ss:$16 sps:$4 sm:$0xff]   ;;  %v5881_v54 = vld [vmem:[%s7856_s1 + $0xf28] ss:$16 sps:$4 sm:$0xff]  }
 0x1ab   :  { %3856 = vmatpush1.bf16.msra.mxu0 %v5785_v55  ;;  %4243 = vmatpush1.bf16.msra.mxu1 %v5788_v56  ;;  %v5886_v55 = vld [vmem:[%s7856_s1 + $0xf44] ss:$16 sps:$4 sm:$0xff]   ;;  %v5889_v56 = vld [vmem:[%s7856_s1 + $0xf4c] ss:$16 sps:$4 sm:$0xff]  }
 0x1ac   :  { %3857 = vmatprep.subr.bf16.mxu0 %v5793_v57  ;;  %4244 = vmatprep.subr.bf16.mxu1 %v5796_v58  ;;  %v5884_v57 = vld [vmem:[%s7856_s1 + $0xf40] ss:$16 sps:$4 sm:$0xff]   ;;  %v5887_v58 = vld [vmem:[%s7856_s1 + $0xf48] ss:$16 sps:$4 sm:$0xff]  }
 0x1af   :  { %3858 = vmatpush1.bf16.msra.mxu0 %v5791_v59  ;;  %4245 = vmatpush1.bf16.msra.mxu1 %v5794_v60  ;;  %v5892_v59 = vld [vmem:[%s7856_s1 + $0xf64] ss:$16 sps:$4 sm:$0xff]   ;;  %v5895_v60 = vld [vmem:[%s7856_s1 + $0xf6c] ss:$16 sps:$4 sm:$0xff]  }
 0x1b0   :  { %3859 = vmatprep.subr.bf16.mxu0 %v5799_v61  ;;  %4246 = vmatprep.subr.bf16.mxu1 %v5802_v62  ;;  %v5890_v61 = vld [vmem:[%s7856_s1 + $0xf60] ss:$16 sps:$4 sm:$0xff]   ;;  %v5893_v62 = vld [vmem:[%s7856_s1 + $0xf68] ss:$16 sps:$4 sm:$0xff]  }
 0x1b3   :  { %3860 = vmatpush1.bf16.msra.mxu0 %v5797_v63  ;;  %4247 = vmatpush1.bf16.msra.mxu1 %v5800_v0  ;;  %v5898_v63 = vld [vmem:[%s7856_s1 + $0xf84] ss:$16 sps:$4 sm:$0xff]   ;;  %v5901_v0 = vld [vmem:[%s7856_s1 + $0xf8c] ss:$16 sps:$4 sm:$0xff]  }
 0x1b4   :  { %3861 = vmatprep.subr.bf16.mxu0 %v5805_v1  ;;  %4248 = vmatprep.subr.bf16.mxu1 %v5808_v2  ;;  %v5896_v1 = vld [vmem:[%s7856_s1 + $0xf80] ss:$16 sps:$4 sm:$0xff]   ;;  %v5899_v2 = vld [vmem:[%s7856_s1 + $0xf88] ss:$16 sps:$4 sm:$0xff]  }
 0x1b7   :  { %3862 = vmatpush1.bf16.msra.mxu0 %v5803_v3  ;;  %4249 = vmatpush1.bf16.msra.mxu1 %v5806_v4  ;;  %v5904_v3 = vld [vmem:[%s7856_s1 + $0xfa4] ss:$16 sps:$4 sm:$0xff]   ;;  %v5907_v4 = vld [vmem:[%s7856_s1 + $0xfac] ss:$16 sps:$4 sm:$0xff]  }
 0x1b8   :  { %3863 = vmatprep.subr.bf16.mxu0 %v5811_v5  ;;  %4250 = vmatprep.subr.bf16.mxu1 %v5814_v6  ;;  %v5902_v5 = vld [vmem:[%s7856_s1 + $0xfa0] ss:$16 sps:$4 sm:$0xff]   ;;  %v5905_v6 = vld [vmem:[%s7856_s1 + $0xfa8] ss:$16 sps:$4 sm:$0xff]  }
 0x1bb   :  { %3864 = vmatpush1.bf16.msra.mxu0 %v5809_v7  ;;  %4251 = vmatpush1.bf16.msra.mxu1 %v5812_v8  ;;  %v5910_v7 = vld [vmem:[%s7856_s1 + $0xfc4] ss:$16 sps:$4 sm:$0xff]   ;;  %v5913_v8 = vld [vmem:[%s7856_s1 + $0xfcc] ss:$16 sps:$4 sm:$0xff]  }
 0x1bc   :  { %3865 = vmatprep.subr.bf16.mxu0 %v5817_v9  ;;  %4252 = vmatprep.subr.bf16.mxu1 %v5820_v10  ;;  %v5908_v9 = vld [vmem:[%s7856_s1 + $0xfc0] ss:$16 sps:$4 sm:$0xff]   ;;  %v5911_v10 = vld [vmem:[%s7856_s1 + $0xfc8] ss:$16 sps:$4 sm:$0xff]  }
 0x1bf   :  { %3866 = vmatpush1.bf16.msra.mxu0 %v5815_v11  ;;  %4253 = vmatpush1.bf16.msra.mxu1 %v5818_v12  ;;  %v5916_v11 = vld [vmem:[%s7856_s1 + $0xfe4] ss:$16 sps:$4 sm:$0xff]   ;;  %v5919_v12 = vld [vmem:[%s7856_s1 + $0xfec] ss:$16 sps:$4 sm:$0xff]  }
 0x1c0   :  { %3878 = vmatprep.subr.bf16.mxu0 %v5826_v13  ;;  %4265 = vmatprep.subr.bf16.mxu1 %v5829_v14  ;;  %v5914_v13 = vld [vmem:[%s7856_s1 + $0xfe0] ss:$16 sps:$4 sm:$0xff]   ;;  %v5917_v14 = vld [vmem:[%s7856_s1 + $0xfe8] ss:$16 sps:$4 sm:$0xff]  }
 0x1c2   :  { %3868 = vmatmul.mubr.bf16.vlgmr.msra.gmra.mrb[0].mxu0 %v5821_v15  ;;  %4255 = vmatmul.mubr.bf16.vlgmr.msra.gmra.mrb[0].mxu1 %v5821_v15  ;;  %v5925_v15 = vld [vmem:[%s7856_s1 + $0x1004] ss:$16 sps:$4 sm:$0xff]  }
 0x1c3   :  { %3879 = vmatpush1.bf16.msra.mxu0 %v5824_v16  ;;  %4266 = vmatpush1.bf16.msra.mxu1 %v5827_v17  ;;  %v5928_v16 = vld [vmem:[%s7856_s1 + $0x100c] ss:$16 sps:$4 sm:$0xff]   ;;  %v5920_v17 = vld [vmem:[%s7857_s0 + $0x38] ss:$72 sps:$4 sm:$0xff]  }
 0x1c4   :  { %3880 = vmatprep.subr.bf16.mxu0 %v5832_v18  ;;  %4267 = vmatprep.subr.bf16.mxu1 %v5835_v19  ;;  %v5923_v18 = vld [vmem:[%s7856_s1 + $0x1000] ss:$16 sps:$4 sm:$0xff]   ;;  %v5926_v19 = vld [vmem:[%s7856_s1 + $0x1008] ss:$16 sps:$4 sm:$0xff]  }
 0x1c5   :  { %3910 = vmatprep.mubr.bf16.mxu0 %v5922_v20  ;;  %4297 = vmatprep.mubr.bf16.mxu1 %v5922_v20  ;;  %v5931_v20 = vld [vmem:[%s7856_s1 + $0x1024] ss:$16 sps:$4 sm:$0xff]  }
 0x1c7   :  { %3881 = vmatpush1.bf16.msra.mxu0 %v5830_v21  ;;  %4268 = vmatpush1.bf16.msra.mxu1 %v5833_v22  ;;  %v5934_v21 = vld [vmem:[%s7856_s1 + $0x102c] ss:$16 sps:$4 sm:$0xff]  }
 0x1c8   :  { %3882 = vmatprep.subr.bf16.mxu0 %v5838_v23  ;;  %4269 = vmatprep.subr.bf16.mxu1 %v5841_v24  ;;  %v6021_v22 = vld [vmem:[%s7857_s0 + $0x44] ss:$72 sps:$4 sm:$0xff]   ;;  %v5929_v23 = vld [vmem:[%s7856_s1 + $0x1020] ss:$16 sps:$4 sm:$0xff]   ;;  %v5932_v24 = vld [vmem:[%s7856_s1 + $0x1028] ss:$16 sps:$4 sm:$0xff]  }
 0x1cb   :  { %3883 = vmatpush1.bf16.msra.mxu0 %v5836_v25  ;;  %4270 = vmatpush1.bf16.msra.mxu1 %v5839_v26  ;;  %v5937_v25 = vld [vmem:[%s7856_s1 + $0x1044] ss:$16 sps:$4 sm:$0xff]   ;;  %v5940_v26 = vld [vmem:[%s7856_s1 + $0x104c] ss:$16 sps:$4 sm:$0xff]  }
 0x1cc   :  { %3884 = vmatprep.subr.bf16.mxu0 %v5844_v27  ;;  %4271 = vmatprep.subr.bf16.mxu1 %v5847_v28  ;;  %v5935_v27 = vld [vmem:[%s7856_s1 + $0x1040] ss:$16 sps:$4 sm:$0xff]   ;;  %v5938_v28 = vld [vmem:[%s7856_s1 + $0x1048] ss:$16 sps:$4 sm:$0xff]  }
 0x1cf   :  { %3885 = vmatpush1.bf16.msra.mxu0 %v5842_v29  ;;  %4272 = vmatpush1.bf16.msra.mxu1 %v5845_v30  ;;  %v5943_v29 = vld [vmem:[%s7856_s1 + $0x1064] ss:$16 sps:$4 sm:$0xff]   ;;  %v5946_v30 = vld [vmem:[%s7856_s1 + $0x106c] ss:$16 sps:$4 sm:$0xff]  }
 0x1d0   :  { %3886 = vmatprep.subr.bf16.mxu0 %v5850_v31  ;;  %4273 = vmatprep.subr.bf16.mxu1 %v5853_v32  ;;  %v5941_v31 = vld [vmem:[%s7856_s1 + $0x1060] ss:$16 sps:$4 sm:$0xff]   ;;  %v5944_v32 = vld [vmem:[%s7856_s1 + $0x1068] ss:$16 sps:$4 sm:$0xff]  }
 0x1d3   :  { %3887 = vmatpush1.bf16.msra.mxu0 %v5848_v33  ;;  %4274 = vmatpush1.bf16.msra.mxu1 %v5851_v34  ;;  %v5949_v33 = vld [vmem:[%s7856_s1 + $0x1084] ss:$16 sps:$4 sm:$0xff]   ;;  %v5952_v34 = vld [vmem:[%s7856_s1 + $0x108c] ss:$16 sps:$4 sm:$0xff]  }
 0x1d4   :  { %3888 = vmatprep.subr.bf16.mxu0 %v5856_v35  ;;  %4275 = vmatprep.subr.bf16.mxu1 %v5859_v36  ;;  %v5947_v35 = vld [vmem:[%s7856_s1 + $0x1080] ss:$16 sps:$4 sm:$0xff]   ;;  %v5950_v36 = vld [vmem:[%s7856_s1 + $0x1088] ss:$16 sps:$4 sm:$0xff]  }
 0x1d7   :  { %3889 = vmatpush1.bf16.msra.mxu0 %v5854_v37  ;;  %4276 = vmatpush1.bf16.msra.mxu1 %v5857_v38  ;;  %v5955_v37 = vld [vmem:[%s7856_s1 + $0x10a4] ss:$16 sps:$4 sm:$0xff]   ;;  %v5958_v38 = vld [vmem:[%s7856_s1 + $0x10ac] ss:$16 sps:$4 sm:$0xff]  }
 0x1d8   :  { %3890 = vmatprep.subr.bf16.mxu0 %v5862_v39  ;;  %4277 = vmatprep.subr.bf16.mxu1 %v5865_v40  ;;  %v5953_v39 = vld [vmem:[%s7856_s1 + $0x10a0] ss:$16 sps:$4 sm:$0xff]   ;;  %v5956_v40 = vld [vmem:[%s7856_s1 + $0x10a8] ss:$16 sps:$4 sm:$0xff]  }
 0x1db   :  { %3891 = vmatpush1.bf16.msra.mxu0 %v5860_v41  ;;  %4278 = vmatpush1.bf16.msra.mxu1 %v5863_v42  ;;  %v5961_v41 = vld [vmem:[%s7856_s1 + $0x10c4] ss:$16 sps:$4 sm:$0xff]   ;;  %v5964_v42 = vld [vmem:[%s7856_s1 + $0x10cc] ss:$16 sps:$4 sm:$0xff]  }
 0x1dc   :  { %3892 = vmatprep.subr.bf16.mxu0 %v5868_v43  ;;  %4279 = vmatprep.subr.bf16.mxu1 %v5871_v44  ;;  %v5959_v43 = vld [vmem:[%s7856_s1 + $0x10c0] ss:$16 sps:$4 sm:$0xff]   ;;  %v5962_v44 = vld [vmem:[%s7856_s1 + $0x10c8] ss:$16 sps:$4 sm:$0xff]  }
 0x1df   :  { %3893 = vmatpush1.bf16.msra.mxu0 %v5866_v45  ;;  %4280 = vmatpush1.bf16.msra.mxu1 %v5869_v46  ;;  %v5967_v45 = vld [vmem:[%s7856_s1 + $0x10e4] ss:$16 sps:$4 sm:$0xff]   ;;  %v5970_v46 = vld [vmem:[%s7856_s1 + $0x10ec] ss:$16 sps:$4 sm:$0xff]  }
 0x1e0   :  { %3894 = vmatprep.subr.bf16.mxu0 %v5874_v47  ;;  %4281 = vmatprep.subr.bf16.mxu1 %v5877_v48  ;;  %v5965_v47 = vld [vmem:[%s7856_s1 + $0x10e0] ss:$16 sps:$4 sm:$0xff]   ;;  %v5968_v48 = vld [vmem:[%s7856_s1 + $0x10e8] ss:$16 sps:$4 sm:$0xff]  }
 0x1e3   :  { %3895 = vmatpush1.bf16.msra.mxu0 %v5872_v49  ;;  %4282 = vmatpush1.bf16.msra.mxu1 %v5875_v50  ;;  %v5973_v49 = vld [vmem:[%s7856_s1 + $0x1104] ss:$16 sps:$4 sm:$0xff]   ;;  %v5976_v50 = vld [vmem:[%s7856_s1 + $0x110c] ss:$16 sps:$4 sm:$0xff]  }
 0x1e4   :  { %3896 = vmatprep.subr.bf16.mxu0 %v5880_v51  ;;  %4283 = vmatprep.subr.bf16.mxu1 %v5883_v52  ;;  %v5971_v51 = vld [vmem:[%s7856_s1 + $0x1100] ss:$16 sps:$4 sm:$0xff]   ;;  %v5974_v52 = vld [vmem:[%s7856_s1 + $0x1108] ss:$16 sps:$4 sm:$0xff]  }
 0x1e7   :  { %3897 = vmatpush1.bf16.msra.mxu0 %v5878_v53  ;;  %4284 = vmatpush1.bf16.msra.mxu1 %v5881_v54  ;;  %v5979_v53 = vld [vmem:[%s7856_s1 + $0x1124] ss:$16 sps:$4 sm:$0xff]   ;;  %v5982_v54 = vld [vmem:[%s7856_s1 + $0x112c] ss:$16 sps:$4 sm:$0xff]  }
 0x1e8   :  { %3898 = vmatprep.subr.bf16.mxu0 %v5886_v55  ;;  %4285 = vmatprep.subr.bf16.mxu1 %v5889_v56  ;;  %v5977_v55 = vld [vmem:[%s7856_s1 + $0x1120] ss:$16 sps:$4 sm:$0xff]   ;;  %v5980_v56 = vld [vmem:[%s7856_s1 + $0x1128] ss:$16 sps:$4 sm:$0xff]  }
 0x1eb   :  { %3899 = vmatpush1.bf16.msra.mxu0 %v5884_v57  ;;  %4286 = vmatpush1.bf16.msra.mxu1 %v5887_v58  ;;  %v5985_v57 = vld [vmem:[%s7856_s1 + $0x1144] ss:$16 sps:$4 sm:$0xff]   ;;  %v5988_v58 = vld [vmem:[%s7856_s1 + $0x114c] ss:$16 sps:$4 sm:$0xff]  }
 0x1ec   :  { %3900 = vmatprep.subr.bf16.mxu0 %v5892_v59  ;;  %4287 = vmatprep.subr.bf16.mxu1 %v5895_v60  ;;  %v5983_v59 = vld [vmem:[%s7856_s1 + $0x1140] ss:$16 sps:$4 sm:$0xff]   ;;  %v5986_v60 = vld [vmem:[%s7856_s1 + $0x1148] ss:$16 sps:$4 sm:$0xff]  }
 0x1ef   :  { %3901 = vmatpush1.bf16.msra.mxu0 %v5890_v61  ;;  %4288 = vmatpush1.bf16.msra.mxu1 %v5893_v62  ;;  %v5991_v61 = vld [vmem:[%s7856_s1 + $0x1164] ss:$16 sps:$4 sm:$0xff]   ;;  %v5994_v62 = vld [vmem:[%s7856_s1 + $0x116c] ss:$16 sps:$4 sm:$0xff]  }
 0x1f0   :  { %3902 = vmatprep.subr.bf16.mxu0 %v5898_v63  ;;  %4289 = vmatprep.subr.bf16.mxu1 %v5901_v0  ;;  %v5989_v63 = vld [vmem:[%s7856_s1 + $0x1160] ss:$16 sps:$4 sm:$0xff]   ;;  %v5992_v0 = vld [vmem:[%s7856_s1 + $0x1168] ss:$16 sps:$4 sm:$0xff]  }
 0x1f3   :  { %3903 = vmatpush1.bf16.msra.mxu0 %v5896_v1  ;;  %4290 = vmatpush1.bf16.msra.mxu1 %v5899_v2  ;;  %v5997_v1 = vld [vmem:[%s7856_s1 + $0x1184] ss:$16 sps:$4 sm:$0xff]   ;;  %v6000_v2 = vld [vmem:[%s7856_s1 + $0x118c] ss:$16 sps:$4 sm:$0xff]  }
 0x1f4   :  { %3904 = vmatprep.subr.bf16.mxu0 %v5904_v3  ;;  %4291 = vmatprep.subr.bf16.mxu1 %v5907_v4  ;;  %v5995_v3 = vld [vmem:[%s7856_s1 + $0x1180] ss:$16 sps:$4 sm:$0xff]   ;;  %v5998_v4 = vld [vmem:[%s7856_s1 + $0x1188] ss:$16 sps:$4 sm:$0xff]  }
 0x1f7   :  { %3905 = vmatpush1.bf16.msra.mxu0 %v5902_v5  ;;  %4292 = vmatpush1.bf16.msra.mxu1 %v5905_v6  ;;  %v6003_v5 = vld [vmem:[%s7856_s1 + $0x11a4] ss:$16 sps:$4 sm:$0xff]   ;;  %v6006_v6 = vld [vmem:[%s7856_s1 + $0x11ac] ss:$16 sps:$4 sm:$0xff]  }
 0x1f8   :  { %3906 = vmatprep.subr.bf16.mxu0 %v5910_v7  ;;  %4293 = vmatprep.subr.bf16.mxu1 %v5913_v8  ;;  %v6001_v7 = vld [vmem:[%s7856_s1 + $0x11a0] ss:$16 sps:$4 sm:$0xff]   ;;  %v6004_v8 = vld [vmem:[%s7856_s1 + $0x11a8] ss:$16 sps:$4 sm:$0xff]  }
 0x1fb   :  { %3907 = vmatpush1.bf16.msra.mxu0 %v5908_v9  ;;  %4294 = vmatpush1.bf16.msra.mxu1 %v5911_v10  ;;  %v6009_v9 = vld [vmem:[%s7856_s1 + $0x11c4] ss:$16 sps:$4 sm:$0xff]   ;;  %v6012_v10 = vld [vmem:[%s7856_s1 + $0x11cc] ss:$16 sps:$4 sm:$0xff]  }
 0x1fc   :  { %3908 = vmatprep.subr.bf16.mxu0 %v5916_v11  ;;  %4295 = vmatprep.subr.bf16.mxu1 %v5919_v12  ;;  %v6007_v11 = vld [vmem:[%s7856_s1 + $0x11c0] ss:$16 sps:$4 sm:$0xff]   ;;  %v6010_v12 = vld [vmem:[%s7856_s1 + $0x11c8] ss:$16 sps:$4 sm:$0xff]  }
 0x1ff   :  { %3909 = vmatpush1.bf16.msra.mxu0 %v5914_v13  ;;  %4296 = vmatpush1.bf16.msra.mxu1 %v5917_v14  ;;  %v6015_v13 = vld [vmem:[%s7856_s1 + $0x11e4] ss:$16 sps:$4 sm:$0xff]   ;;  %v6018_v14 = vld [vmem:[%s7856_s1 + $0x11ec] ss:$16 sps:$4 sm:$0xff]  }
 0x200   :  { %3921 = vmatprep.subr.bf16.mxu0 %v5925_v15  ;;  %4308 = vmatprep.subr.bf16.mxu1 %v5928_v16  ;;  %v6013_v15 = vld [vmem:[%s7856_s1 + $0x11e0] ss:$16 sps:$4 sm:$0xff]   ;;  %v6016_v16 = vld [vmem:[%s7856_s1 + $0x11e8] ss:$16 sps:$4 sm:$0xff]  }
 0x202   :  { %3911 = vmatmul.mubr.bf16.vlgmr.msra.gmra.mrb[0].mxu0 %v5920_v17  ;;  %4298 = vmatmul.mubr.bf16.vlgmr.msra.gmra.mrb[0].mxu1 %v5920_v17  ;;  %v6019_v17 = vld [vmem:[%s7857_s0 + $0x40] ss:$72 sps:$4 sm:$0xff]  }
 0x203   :  { %3922 = vmatpush1.bf16.msra.mxu0 %v5923_v18  ;;  %4309 = vmatpush1.bf16.msra.mxu1 %v5926_v19 }
 0x204   :  { %3923 = vmatprep.subr.bf16.mxu0 %v5931_v20  ;;  %4310 = vmatprep.subr.bf16.mxu1 %v5934_v21 }
 0x205   :  { %3953 = vmatprep.mubr.bf16.mxu0 %v6021_v22  ;;  %4340 = vmatprep.mubr.bf16.mxu1 %v6021_v22 }
 0x207   :  { %3924 = vmatpush1.bf16.msra.mxu0 %v5929_v23  ;;  %4311 = vmatpush1.bf16.msra.mxu1 %v5932_v24 }
 0x208   :  { %3925 = vmatprep.subr.bf16.mxu0 %v5937_v25  ;;  %4312 = vmatprep.subr.bf16.mxu1 %v5940_v26 }
 0x20b   :  { %3926 = vmatpush1.bf16.msra.mxu0 %v5935_v27  ;;  %4313 = vmatpush1.bf16.msra.mxu1 %v5938_v28 }
 0x20c   :  { %3927 = vmatprep.subr.bf16.mxu0 %v5943_v29  ;;  %4314 = vmatprep.subr.bf16.mxu1 %v5946_v30 }
 0x20f   :  { %3928 = vmatpush1.bf16.msra.mxu0 %v5941_v31  ;;  %4315 = vmatpush1.bf16.msra.mxu1 %v5944_v32 }
 0x210   :  { %3929 = vmatprep.subr.bf16.mxu0 %v5949_v33  ;;  %4316 = vmatprep.subr.bf16.mxu1 %v5952_v34 }
 0x213   :  { %3930 = vmatpush1.bf16.msra.mxu0 %v5947_v35  ;;  %4317 = vmatpush1.bf16.msra.mxu1 %v5950_v36 }
 0x214   :  { %3931 = vmatprep.subr.bf16.mxu0 %v5955_v37  ;;  %4318 = vmatprep.subr.bf16.mxu1 %v5958_v38 }
 0x217   :  { %3932 = vmatpush1.bf16.msra.mxu0 %v5953_v39  ;;  %4319 = vmatpush1.bf16.msra.mxu1 %v5956_v40 }
 0x218   :  { %3933 = vmatprep.subr.bf16.mxu0 %v5961_v41  ;;  %4320 = vmatprep.subr.bf16.mxu1 %v5964_v42 }
 0x21b   :  { %3934 = vmatpush1.bf16.msra.mxu0 %v5959_v43  ;;  %4321 = vmatpush1.bf16.msra.mxu1 %v5962_v44 }
 0x21c   :  { %3935 = vmatprep.subr.bf16.mxu0 %v5967_v45  ;;  %4322 = vmatprep.subr.bf16.mxu1 %v5970_v46 }
 0x21f   :  { %3936 = vmatpush1.bf16.msra.mxu0 %v5965_v47  ;;  %4323 = vmatpush1.bf16.msra.mxu1 %v5968_v48 }
 0x220   :  { %3937 = vmatprep.subr.bf16.mxu0 %v5973_v49  ;;  %4324 = vmatprep.subr.bf16.mxu1 %v5976_v50 }
 0x223   :  { %3938 = vmatpush1.bf16.msra.mxu0 %v5971_v51  ;;  %4325 = vmatpush1.bf16.msra.mxu1 %v5974_v52 }
 0x224   :  { %3939 = vmatprep.subr.bf16.mxu0 %v5979_v53  ;;  %4326 = vmatprep.subr.bf16.mxu1 %v5982_v54 }
 0x227   :  { %3940 = vmatpush1.bf16.msra.mxu0 %v5977_v55  ;;  %4327 = vmatpush1.bf16.msra.mxu1 %v5980_v56 }
 0x228   :  { %3941 = vmatprep.subr.bf16.mxu0 %v5985_v57  ;;  %4328 = vmatprep.subr.bf16.mxu1 %v5988_v58 }
 0x22b   :  { %3942 = vmatpush1.bf16.msra.mxu0 %v5983_v59  ;;  %4329 = vmatpush1.bf16.msra.mxu1 %v5986_v60 }
 0x22c   :  { %3943 = vmatprep.subr.bf16.mxu0 %v5991_v61  ;;  %4330 = vmatprep.subr.bf16.mxu1 %v5994_v62 }
 0x22f   :  { %3944 = vmatpush1.bf16.msra.mxu0 %v5989_v63  ;;  %4331 = vmatpush1.bf16.msra.mxu1 %v5992_v0 }
 0x230   :  { %3945 = vmatprep.subr.bf16.mxu0 %v5997_v1  ;;  %4332 = vmatprep.subr.bf16.mxu1 %v6000_v2 }
 0x233   :  { %3946 = vmatpush1.bf16.msra.mxu0 %v5995_v3  ;;  %4333 = vmatpush1.bf16.msra.mxu1 %v5998_v4 }
 0x234   :  { %3947 = vmatprep.subr.bf16.mxu0 %v6003_v5  ;;  %4334 = vmatprep.subr.bf16.mxu1 %v6006_v6 }
 0x237   :  { %3948 = vmatpush1.bf16.msra.mxu0 %v6001_v7  ;;  %4335 = vmatpush1.bf16.msra.mxu1 %v6004_v8 }
 0x238   :  { %3949 = vmatprep.subr.bf16.mxu0 %v6009_v9  ;;  %4336 = vmatprep.subr.bf16.mxu1 %v6012_v10 }
 0x23b   :  { %3950 = vmatpush1.bf16.msra.mxu0 %v6007_v11  ;;  %4337 = vmatpush1.bf16.msra.mxu1 %v6010_v12 }
 0x23c   :  { %3951 = vmatprep.subr.bf16.mxu0 %v6015_v13  ;;  %4338 = vmatprep.subr.bf16.mxu1 %v6018_v14 }
 0x23f   :  { %3952 = vmatpush1.bf16.msra.mxu0 %v6013_v15  ;;  %4339 = vmatpush1.bf16.msra.mxu1 %v6016_v16 }
 0x242   :  { %3954 = vmatmul.mubr.bf16.vlgmr.msra.gmra.mrb[0].mxu0 %v6019_v17  ;;  %4341 = vmatmul.mubr.bf16.vlgmr.msra.gmra.mrb[0].mxu1 %v6019_v17 }
 0x315   :  { %v3955_v18 = vpop.f32.mrb[0].mxu0  ;;  %v4342_v19 = vpop.f32.mrb[0].mxu1 }
 0x316   :  { %v4407_v20 = vmul.f32 %v3955_v18, %v3955_v18  ;;  %v4409_v21 = vmul.f32 %v4342_v19, %v4342_v19  ;;  %v3957_v22 = vpop.f32.mrb[1].mxu0  ;;  %v4344_v23 = vpop.f32.mrb[1].mxu1 }
 0x317   :  { %v5063_v24 = vpack.c.bf16 %v3957_v22, %v3955_v18  ;;  %v4408_v25 = vmul.f32 %v3957_v22, %v3957_v22  ;;  %v5064_v26 = vpack.c.bf16 %v4344_v23, %v4342_v19  ;;  %v4410_v27 = vmul.f32 %v4344_v23, %v4344_v23  ;;  %v3959_v28 = vpop.f32.mrb[2].mxu0  ;;  %v4346_v29 = vpop.f32.mrb[2].mxu1 }
 0x318   :  { %v4379_v30 = vadd.f32 %v3959_v28, %v3955_v18  ;;  %v4411_v31 = vmul.f32 %v3959_v28, %v3959_v28  ;;  %v4393_v32 = vadd.f32 %v4346_v29, %v4342_v19  ;;  %v4413_v33 = vmul.f32 %v4346_v29, %v4346_v29  ;;  %v3961_v34 = vpop.f32.mrb[3].mxu0  ;;  %v4348_v35 = vpop.f32.mrb[3].mxu1 }
 0x319   :  { %4375 = vst [vmem:[%s7858_s2] sm:$0xff] %v5063_v24  ;;  %4376 = vst [vmem:[%s7858_s2 + $0x8] sm:$0xff] %v5064_v26  ;;  %v5065_v36 = vpack.c.bf16 %v3961_v34, %v3959_v28  ;;  %v4386_v37 = vadd.f32 %v3961_v34, %v3957_v22  ;;  %v4412_v38 = vmul.f32 %v3961_v34, %v3961_v34 }
 0x31a   :  { %v5066_v39 = vpack.c.bf16 %v4348_v35, %v4346_v29  ;;  %v4380_v40 = vrot.slane %v4379_v30, 4  ;;  %v4415_v41 = vadd.f32 %v4411_v31, %v4407_v20  ;;  %v4394_v42 = vrot.slane %v4393_v32, 4 }
 0x31b   :  { %v4429_v43 = vadd.f32 %v4413_v33, %v4409_v21  ;;  %4377 = vst [vmem:[%s7858_s2 + $0x10] sm:$0xff] %v5065_v36  ;;  %v4387_v44 = vrot.slane %v4386_v37, 4  ;;  %v4422_v45 = vadd.f32 %v4412_v38, %v4408_v25  ;;  %v4400_v46 = vadd.f32 %v4348_v35, %v4344_v23 }
 0x31c   :  { %4378 = vst [vmem:[%s7858_s2 + $0x18] sm:$0xff] %v5066_v39  ;;  %v4414_v47 = vmul.f32 %v4348_v35, %v4348_v35  ;;  %v4381_v48 = vadd.f32 %v4380_v40, %v4379_v30  ;;  %v4416_v49 = vrot.slane %v4415_v41, 4  ;;  %v4395_v50 = vadd.f32 %v4394_v42, %v4393_v32 }
 0x31d   :  { %v4430_v51 = vrot.slane %v4429_v43, 4  ;;  %v4388_v52 = vadd.f32 %v4387_v44, %v4386_v37  ;;  %v4423_v53 = vrot.slane %v4422_v45, 4  ;;  %v4401_v54 = vrot.slane %v4400_v46, 4 }
 0x31e   :  { %v4436_v55 = vadd.f32 %v4414_v47, %v4410_v27  ;;  %v4382_v56 = vrot.slane %v4381_v48, 2  ;;  %v4417_v57 = vadd.f32 %v4416_v49, %v4415_v41  ;;  %v4396_v58 = vrot.slane %v4395_v50, 2 }
 0x31f   :  { %v4431_v59 = vadd.f32 %v4430_v51, %v4429_v43  ;;  %v4389_v60 = vrot.slane %v4388_v52, 2  ;;  %v4424_v61 = vadd.f32 %v4423_v53, %v4422_v45  ;;  %v4402_v62 = vadd.f32 %v4401_v54, %v4400_v46 }
 0x320   :  { %v4437_v63 = vrot.slane %v4436_v55, 4  ;;  %v4383_v0 = vadd.f32 %v4382_v56, %v4381_v48  ;;  %v4418_v1 = vrot.slane %v4417_v57, 2  ;;  %v4397_v2 = vadd.f32 %v4396_v58, %v4395_v50 }
 0x321   :  { %v4432_v3 = vrot.slane %v4431_v59, 2  ;;  %v4390_v4 = vadd.f32 %v4389_v60, %v4388_v52  ;;  %v4425_v5 = vrot.slane %v4424_v61, 2  ;;  %v4403_v6 = vrot.slane %v4402_v62, 2 }
 0x322   :  { %v4438_v7 = vadd.f32 %v4437_v63, %v4436_v55  ;;  %v4384_v8 = vrot.slane %v4383_v0, 1  ;;  %v4419_v9 = vadd.f32 %v4418_v1, %v4417_v57  ;;  %v4398_v10 = vrot.slane %v4397_v2, 1 }
 0x323   :  { %v4433_v11 = vadd.f32 %v4432_v3, %v4431_v59  ;;  %v4391_v12 = vrot.slane %v4390_v4, 1  ;;  %v4426_v13 = vadd.f32 %v4425_v5, %v4424_v61  ;;  %v4404_v14 = vadd.f32 %v4403_v6, %v4402_v62 }
 0x324   :  { %v4439_v15 = vrot.slane %v4438_v7, 2  ;;  %v4420_v16 = vrot.slane %v4419_v9, 1  ;;  %v4385_v21 = vadd.f32 %v4384_v8, %v4383_v0  ;;  %v4399_v23 = vadd.f32 %v4398_v10, %v4397_v2 }
 0x325   :  { %v4434_v17 = vrot.slane %v4433_v11, 1  ;;  %v4427_v18 = vrot.slane %v4426_v13, 1  ;;  %v4405_v19 = vrot.slane %v4404_v14, 1  ;;  %v4392_v25 = vadd.f32 %v4391_v12, %v4390_v4 }
 0x326   :  { %v4440_v20 = vadd.f32 %v4439_v15, %v4438_v7  ;;  %v4421_v22 = vadd.f32 %v4420_v16, %v4419_v9 }
 0x327   :  { %v4435_v24 = vadd.f32 %v4434_v17, %v4433_v11  ;;  %v4428_v26 = vadd.f32 %v4427_v18, %v4426_v13  ;;  %v4406_v30 = vadd.f32 %v4405_v19, %v4404_v14 }
 0x328   :  { %v4441_v27 = vrot.slane %v4440_v20, 1  ;;  %v4444_v28 = vsel %vm4443_vm0, %v4385_v21, %v4421_v22 }
 0x329   :  { %v4446_v29 = vsel %vm4443_vm0, %v4399_v23, %v4435_v24  ;;  %v4449_v31 = vsel %vm4448_vm1, %v4444_v28, 0.0  ;;  %v4445_v33 = vsel %vm4443_vm0, %v4392_v25, %v4428_v26 }
 0x32a   :  { %v4451_v32 = vsel %vm4448_vm1, %v4446_v29, 0.0  ;;  %v4442_v34 = vadd.f32 %v4441_v27, %v4440_v20  ;;  %4453 = vst [vmem:[%s7859_s3] sm:$0xff] %v4449_v31  ;;  %v4450_v35 = vsel %vm4448_vm1, %v4445_v33, 0.0 }
 0x32b   :  { %4455 = vst [vmem:[%s7859_s3 + $0x10] sm:$0xff] %v4451_v32  ;;  %4454 = vst [vmem:[%s7859_s3 + $0x8] sm:$0xff] %v4450_v35 }
 0x32c   :  { %v4447_v36 = vsel %vm4443_vm0, %v4406_v30, %v4442_v34 }
 0x32d   :  { %v4452_v37 = vsel %vm4448_vm1, %v4447_v36, 0.0 }
 0x32e   :  { %4456 = vst [vmem:[%s7859_s3 + $0x18] sm:$0xff] %v4452_v37 }

// kernel: encoder_forward.18
= control target key start
LH: loop header
LB: loop body
LE: loop exit
PB: predicated region body
PF: predicated region fallthrough
CT: control target
= control target key end

     0   :  { %vm3298_vm0 = vcmask 1040384   ;;  %vm3300_vm1 = vcmask 1041408   ;;  %s5389_s1 = inlined_call_operand.vmem [shape: bf16[4608,128], index: 1, kind: input, shape index: {}]   ;;  %s5390_s0 = inlined_call_operand.vmem [shape: bf16[16,4608], index: 0, kind: input, shape index: {}]   ;;  %s5391_s2 = inlined_call_operand.vmem [shape: bf16[16,128], index: 2, kind: output, shape index: {0}]   ;;  %s5392_s3 = inlined_call_operand.vmem [shape: f32[8,128], index: 3, kind: output, shape index: {1}]  }
   0x1   :  { %v4040_v0 = vld [vmem:[%s5389_s1 + $0x40] sm:$0xff]   ;;  %v4044_v4 = vld [vmem:[%s5389_s1 + $0x48] sm:$0xff]   ;;  %v4048_v8 = vld [vmem:[%s5389_s1 + $0x50] sm:$0xff]  }
   0x2   :  { %v4041_v1 = vld [vmem:[%s5389_s1 + $0xc0] sm:$0xff]   ;;  %3644 = vmatprep.subr.bf16.mxu0 %v4040_v0  ;;  %v4045_v5 = vld [vmem:[%s5389_s1 + $0xc8] sm:$0xff]   ;;  %v4049_v9 = vld [vmem:[%s5389_s1 + $0xd0] sm:$0xff]  }
   0x3   :  { %v4042_v2 = vld [vmem:[%s5389_s1] sm:$0xff]   ;;  %3666 = vmatprep.subr.bf16.mxu1 %v4041_v1  ;;  %v4046_v6 = vld [vmem:[%s5389_s1 + $0x8] sm:$0xff]   ;;  %v4050_v10 = vld [vmem:[%s5389_s1 + $0x10] sm:$0xff]  }
   0x4   :  { %v4043_v3 = vld [vmem:[%s5389_s1 + $0x80] sm:$0xff]   ;;  %3645 = vmatpush3.bf16.msra.mxu0 %v4042_v2  ;;  %v4047_v7 = vld [vmem:[%s5389_s1 + $0x88] sm:$0xff]   ;;  %v4051_v11 = vld [vmem:[%s5389_s1 + $0x90] sm:$0xff]  }
   0x5   :  { %3667 = vmatpush3.bf16.msra.mxu1 %v4043_v3  ;;  %3646 = vmatprep.subr.bf16.mxu0 %v4044_v4  ;;  %v4052_v12 = vld [vmem:[%s5389_s1 + $0x58] sm:$0xff]   ;;  %v4056_v16 = vld [vmem:[%s5389_s1 + $0x60] sm:$0xff]   ;;  %v4060_v20 = vld [vmem:[%s5389_s1 + $0x68] sm:$0xff]  }
   0x6   :  { %3668 = vmatprep.subr.bf16.mxu1 %v4045_v5  ;;  %v4053_v13 = vld [vmem:[%s5389_s1 + $0xd8] sm:$0xff]   ;;  %v4057_v17 = vld [vmem:[%s5389_s1 + $0xe0] sm:$0xff]   ;;  %v4061_v21 = vld [vmem:[%s5389_s1 + $0xe8] sm:$0xff]  }
   0x7   :  { %v4054_v14 = vld [vmem:[%s5389_s1 + $0x18] sm:$0xff]   ;;  %v4058_v18 = vld [vmem:[%s5389_s1 + $0x20] sm:$0xff]   ;;  %v4062_v22 = vld [vmem:[%s5389_s1 + $0x28] sm:$0xff]  }
   0x8   :  { %3647 = vmatpush3.bf16.msra.mxu0 %v4046_v6  ;;  %v4055_v15 = vld [vmem:[%s5389_s1 + $0x98] sm:$0xff]   ;;  %v4059_v19 = vld [vmem:[%s5389_s1 + $0xa0] sm:$0xff]   ;;  %v4063_v23 = vld [vmem:[%s5389_s1 + $0xa8] sm:$0xff]  }
   0x9   :  { %3669 = vmatpush3.bf16.msra.mxu1 %v4047_v7  ;;  %3648 = vmatprep.subr.bf16.mxu0 %v4048_v8  ;;  %v4064_v24 = vld [vmem:[%s5389_s1 + $0x70] sm:$0xff]   ;;  %v4068_v28 = vld [vmem:[%s5389_s1 + $0x78] sm:$0xff]   ;;  %v4078_v36 = vld [vmem:[%s5389_s1 + $0x140] sm:$0xff]  }
   0xa   :  { %3670 = vmatprep.subr.bf16.mxu1 %v4049_v9  ;;  %v4065_v25 = vld [vmem:[%s5389_s1 + $0xf0] sm:$0xff]   ;;  %v4069_v29 = vld [vmem:[%s5389_s1 + $0xf8] sm:$0xff]   ;;  %v4079_v37 = vld [vmem:[%s5389_s1 + $0x1c0] sm:$0xff]  }
   0xb   :  { %v4066_v26 = vld [vmem:[%s5389_s1 + $0x30] sm:$0xff]   ;;  %v4070_v30 = vld [vmem:[%s5389_s1 + $0x38] sm:$0xff]   ;;  %v4080_v38 = vld [vmem:[%s5389_s1 + $0x100] sm:$0xff]  }
   0xc   :  { %3649 = vmatpush3.bf16.msra.mxu0 %v4050_v10  ;;  %v4067_v27 = vld [vmem:[%s5389_s1 + $0xb0] sm:$0xff]   ;;  %v4071_v31 = vld [vmem:[%s5389_s1 + $0xb8] sm:$0xff]   ;;  %v4081_v39 = vld [vmem:[%s5389_s1 + $0x180] sm:$0xff]  }
   0xd   :  { %3671 = vmatpush3.bf16.msra.mxu1 %v4051_v11  ;;  %3650 = vmatprep.subr.bf16.mxu0 %v4052_v12  ;;  %v4072_v32 = vld [vmem:[%s5390_s0] ss:$144 sps:$4 sm:$0xff]   ;;  %v4074_v33 = vld [vmem:[%s5390_s0 + $0x4] ss:$144 sps:$4 sm:$0xff]   ;;  %v4075_v34 = vld [vmem:[%s5390_s0 + $0x8] ss:$144 sps:$4 sm:$0xff]  }
   0xe   :  { %3672 = vmatprep.subr.bf16.mxu1 %v4053_v13  ;;  %v4077_v35 = vld [vmem:[%s5390_s0 + $0xc] ss:$144 sps:$4 sm:$0xff]   ;;  %2566 = vmatprep.mubr.bf16.mxu0 %v4074_v33  ;;  %v4086_v44 = vld [vmem:[%s5389_s1 + $0x150] sm:$0xff]   ;;  %v4094_v52 = vld [vmem:[%s5389_s1 + $0x160] sm:$0xff]  }
   0xf   :  { %2607 = vmatprep.mubr.bf16.mxu1 %v4077_v35  ;;  %v4082_v40 = vld [vmem:[%s5389_s1 + $0x148] sm:$0xff]   ;;  %v4087_v45 = vld [vmem:[%s5389_s1 + $0x1d0] sm:$0xff]   ;;  %v4090_v48 = vld [vmem:[%s5389_s1 + $0x158] sm:$0xff]  }
  0x10   :  { %3651 = vmatpush3.bf16.msra.mxu0 %v4054_v14  ;;  %v4083_v41 = vld [vmem:[%s5389_s1 + $0x1c8] sm:$0xff]   ;;  %v4088_v46 = vld [vmem:[%s5389_s1 + $0x110] sm:$0xff]   ;;  %v4091_v49 = vld [vmem:[%s5389_s1 + $0x1d8] sm:$0xff]  }
  0x11   :  { %3673 = vmatpush3.bf16.msra.mxu1 %v4055_v15  ;;  %3652 = vmatprep.subr.bf16.mxu0 %v4056_v16  ;;  %v4084_v42 = vld [vmem:[%s5389_s1 + $0x108] sm:$0xff]   ;;  %v4089_v47 = vld [vmem:[%s5389_s1 + $0x190] sm:$0xff]   ;;  %v4092_v50 = vld [vmem:[%s5389_s1 + $0x118] sm:$0xff]  }
  0x12   :  { %3674 = vmatprep.subr.bf16.mxu1 %v4057_v17  ;;  %v4085_v43 = vld [vmem:[%s5389_s1 + $0x188] sm:$0xff]   ;;  %v4093_v51 = vld [vmem:[%s5389_s1 + $0x198] sm:$0xff]   ;;  %v4095_v53 = vld [vmem:[%s5389_s1 + $0x1e0] sm:$0xff]  }
  0x13   :  { %v4096_v54 = vld [vmem:[%s5389_s1 + $0x120] sm:$0xff]   ;;  %v4098_v56 = vld [vmem:[%s5389_s1 + $0x168] sm:$0xff]   ;;  %v4102_v60 = vld [vmem:[%s5389_s1 + $0x170] sm:$0xff]  }
  0x14   :  { %3653 = vmatpush3.bf16.msra.mxu0 %v4058_v18  ;;  %v4097_v55 = vld [vmem:[%s5389_s1 + $0x1a0] sm:$0xff]   ;;  %v4099_v57 = vld [vmem:[%s5389_s1 + $0x1e8] sm:$0xff]   ;;  %v4103_v61 = vld [vmem:[%s5389_s1 + $0x1f0] sm:$0xff]  }
  0x15   :  { %3675 = vmatpush3.bf16.msra.mxu1 %v4059_v19  ;;  %3654 = vmatprep.subr.bf16.mxu0 %v4060_v20  ;;  %v4100_v58 = vld [vmem:[%s5389_s1 + $0x128] sm:$0xff]   ;;  %v4104_v62 = vld [vmem:[%s5389_s1 + $0x130] sm:$0xff]   ;;  %v4106_v0 = vld [vmem:[%s5389_s1 + $0x178] sm:$0xff]  }
  0x16   :  { %3676 = vmatprep.subr.bf16.mxu1 %v4061_v21  ;;  %v4101_v59 = vld [vmem:[%s5389_s1 + $0x1a8] sm:$0xff]   ;;  %v4105_v63 = vld [vmem:[%s5389_s1 + $0x1b0] sm:$0xff]   ;;  %v4107_v1 = vld [vmem:[%s5389_s1 + $0x1f8] sm:$0xff]  }
  0x17   :  { %v4108_v2 = vld [vmem:[%s5389_s1 + $0x138] sm:$0xff]   ;;  %v4110_v4 = vld [vmem:[%s5390_s0 + $0x10] ss:$144 sps:$4 sm:$0xff]   ;;  %v4112_v5 = vld [vmem:[%s5390_s0 + $0x14] ss:$144 sps:$4 sm:$0xff]  }
  0x18   :  { %3655 = vmatpush3.bf16.msra.mxu0 %v4062_v22  ;;  %v4109_v3 = vld [vmem:[%s5389_s1 + $0x1b8] sm:$0xff]   ;;  %v4116_v8 = vld [vmem:[%s5389_s1 + $0x240] sm:$0xff]   ;;  %v4120_v12 = vld [vmem:[%s5389_s1 + $0x248] sm:$0xff]  }
  0x19   :  { %3677 = vmatpush3.bf16.msra.mxu1 %v4063_v23  ;;  %3656 = vmatprep.subr.bf16.mxu0 %v4064_v24  ;;  %v4113_v6 = vld [vmem:[%s5390_s0 + $0x18] ss:$144 sps:$4 sm:$0xff]   ;;  %v4115_v7 = vld [vmem:[%s5390_s0 + $0x1c] ss:$144 sps:$4 sm:$0xff]   ;;  %v4117_v9 = vld [vmem:[%s5389_s1 + $0x2c0] sm:$0xff]  }
  0x1a   :  { %3678 = vmatprep.subr.bf16.mxu1 %v4065_v25  ;;  %v4118_v10 = vld [vmem:[%s5389_s1 + $0x200] sm:$0xff]   ;;  %v4121_v13 = vld [vmem:[%s5389_s1 + $0x2c8] sm:$0xff]   ;;  %v4124_v16 = vld [vmem:[%s5389_s1 + $0x250] sm:$0xff]  }
  0x1b   :  { %v4119_v11 = vld [vmem:[%s5389_s1 + $0x280] sm:$0xff]   ;;  %v4122_v14 = vld [vmem:[%s5389_s1 + $0x208] sm:$0xff]   ;;  %v4125_v17 = vld [vmem:[%s5389_s1 + $0x2d0] sm:$0xff]  }
  0x1c   :  { %3657 = vmatpush3.bf16.msra.mxu0 %v4066_v26  ;;  %v4123_v15 = vld [vmem:[%s5389_s1 + $0x288] sm:$0xff]   ;;  %v4126_v18 = vld [vmem:[%s5389_s1 + $0x210] sm:$0xff]   ;;  %v4128_v20 = vld [vmem:[%s5389_s1 + $0x258] sm:$0xff]  }
  0x1d   :  { %3679 = vmatpush3.bf16.msra.mxu1 %v4067_v27  ;;  %3658 = vmatprep.subr.bf16.mxu0 %v4068_v28  ;;  %v4127_v19 = vld [vmem:[%s5389_s1 + $0x290] sm:$0xff]   ;;  %v4129_v21 = vld [vmem:[%s5389_s1 + $0x2d8] sm:$0xff]   ;;  %v4132_v24 = vld [vmem:[%s5389_s1 + $0x260] sm:$0xff]  }
  0x1e   :  { %3680 = vmatprep.subr.bf16.mxu1 %v4069_v29  ;;  %v4130_v22 = vld [vmem:[%s5389_s1 + $0x218] sm:$0xff]   ;;  %v4133_v25 = vld [vmem:[%s5389_s1 + $0x2e0] sm:$0xff]   ;;  %v4136_v28 = vld [vmem:[%s5389_s1 + $0x268] sm:$0xff]  }
  0x1f   :  { %v4131_v23 = vld [vmem:[%s5389_s1 + $0x298] sm:$0xff]   ;;  %v4134_v26 = vld [vmem:[%s5389_s1 + $0x220] sm:$0xff]   ;;  %v4137_v29 = vld [vmem:[%s5389_s1 + $0x2e8] sm:$0xff]  }
  0x20   :  { %3659 = vmatpush3.bf16.msra.mxu0 %v4070_v30  ;;  %v4135_v27 = vld [vmem:[%s5389_s1 + $0x2a0] sm:$0xff]   ;;  %v4138_v30 = vld [vmem:[%s5389_s1 + $0x228] sm:$0xff]   ;;  %v4141_v33 = vld [vmem:[%s5389_s1 + $0x2f0] sm:$0xff]  }
  0x21   :  { %3681 = vmatpush3.bf16.msra.mxu1 %v4071_v31  ;;  %3688 = vmatprep.subr.bf16.mxu0 %v4078_v36  ;;  %v4139_v31 = vld [vmem:[%s5389_s1 + $0x2a8] sm:$0xff]   ;;  %v4143_v35 = vld [vmem:[%s5389_s1 + $0x2b0] sm:$0xff]   ;;  %v4144_v36 = vld [vmem:[%s5389_s1 + $0x278] sm:$0xff]  }
  0x22   :  { %3710 = vmatprep.subr.bf16.mxu1 %v4079_v37  ;;  %v4145_v37 = vld [vmem:[%s5389_s1 + $0x2f8] sm:$0xff]  }
  0x23   :  { %2567 = vmatmul.mubr.bf16.vlgmr.msra.gmra.mrb[0].mxu0 %v4072_v32  ;;  %v4140_v32 = vld [vmem:[%s5389_s1 + $0x270] sm:$0xff]  }
  0x24   :  { %2608 = vmatmul.mubr.bf16.vlgmr.msra.gmra.mrb[0].mxu1 %v4075_v34  ;;  %3689 = vmatpush3.bf16.msra.mxu0 %v4080_v38  ;;  %v4142_v34 = vld [vmem:[%s5389_s1 + $0x230] sm:$0xff]   ;;  %v4146_v38 = vld [vmem:[%s5389_s1 + $0x238] sm:$0xff]  }
  0x25   :  { %3711 = vmatpush3.bf16.msra.mxu1 %v4081_v39  ;;  %3690 = vmatprep.subr.bf16.mxu0 %v4082_v40  ;;  %v4147_v39 = vld [vmem:[%s5389_s1 + $0x2b8] sm:$0xff]   ;;  %v4148_v40 = vld [vmem:[%s5390_s0 + $0x20] ss:$144 sps:$4 sm:$0xff]  }
  0x26   :  { %3712 = vmatprep.subr.bf16.mxu1 %v4083_v41  ;;  %2648 = vmatprep.mubr.bf16.mxu0 %v4112_v5  ;;  %v4150_v41 = vld [vmem:[%s5390_s0 + $0x24] ss:$144 sps:$4 sm:$0xff]  }
  0x27   :  { %2689 = vmatprep.mubr.bf16.mxu1 %v4115_v7  ;;  %v4179_v5 = vld [vmem:[%s5389_s1 + $0x3f0] sm:$0xff]  }
  0x28   :  { %3691 = vmatpush3.bf16.msra.mxu0 %v4084_v42  ;;  %v4151_v42 = vld [vmem:[%s5390_s0 + $0x28] ss:$144 sps:$4 sm:$0xff]   ;;  %v4181_v7 = vld [vmem:[%s5389_s1 + $0x3b0] sm:$0xff]  }
  0x29   :  { %3713 = vmatpush3.bf16.msra.mxu1 %v4085_v43  ;;  %3692 = vmatprep.subr.bf16.mxu0 %v4086_v44  ;;  %v4153_v43 = vld [vmem:[%s5390_s0 + $0x2c] ss:$144 sps:$4 sm:$0xff]   ;;  %v4154_v44 = vld [vmem:[%s5389_s1 + $0x340] sm:$0xff]  }
  0x2a   :  { %3714 = vmatprep.subr.bf16.mxu1 %v4087_v45  ;;  %v4155_v45 = vld [vmem:[%s5389_s1 + $0x3c0] sm:$0xff]  }
  0x2c   :  { %3693 = vmatpush3.bf16.msra.mxu0 %v4088_v46  ;;  %v4156_v46 = vld [vmem:[%s5389_s1 + $0x300] sm:$0xff]  }
  0x2d   :  { %3715 = vmatpush3.bf16.msra.mxu1 %v4089_v47  ;;  %3694 = vmatprep.subr.bf16.mxu0 %v4090_v48  ;;  %v4157_v47 = vld [vmem:[%s5389_s1 + $0x380] sm:$0xff]   ;;  %v4158_v48 = vld [vmem:[%s5389_s1 + $0x348] sm:$0xff]  }
  0x2e   :  { %3716 = vmatprep.subr.bf16.mxu1 %v4091_v49  ;;  %v4159_v49 = vld [vmem:[%s5389_s1 + $0x3c8] sm:$0xff]  }
  0x30   :  { %3695 = vmatpush3.bf16.msra.mxu0 %v4092_v50  ;;  %v4160_v50 = vld [vmem:[%s5389_s1 + $0x308] sm:$0xff]  }
  0x31   :  { %3717 = vmatpush3.bf16.msra.mxu1 %v4093_v51  ;;  %3696 = vmatprep.subr.bf16.mxu0 %v4094_v52  ;;  %v4161_v51 = vld [vmem:[%s5389_s1 + $0x388] sm:$0xff]   ;;  %v4162_v52 = vld [vmem:[%s5389_s1 + $0x350] sm:$0xff]  }
  0x32   :  { %3718 = vmatprep.subr.bf16.mxu1 %v4095_v53  ;;  %v4163_v53 = vld [vmem:[%s5389_s1 + $0x3d0] sm:$0xff]  }
  0x34   :  { %3697 = vmatpush3.bf16.msra.mxu0 %v4096_v54  ;;  %v4164_v54 = vld [vmem:[%s5389_s1 + $0x310] sm:$0xff]  }
  0x35   :  { %3719 = vmatpush3.bf16.msra.mxu1 %v4097_v55  ;;  %3698 = vmatprep.subr.bf16.mxu0 %v4098_v56  ;;  %v4165_v55 = vld [vmem:[%s5389_s1 + $0x390] sm:$0xff]   ;;  %v4166_v56 = vld [vmem:[%s5389_s1 + $0x358] sm:$0xff]  }
  0x36   :  { %3720 = vmatprep.subr.bf16.mxu1 %v4099_v57  ;;  %v4167_v57 = vld [vmem:[%s5389_s1 + $0x3d8] sm:$0xff]  }
  0x38   :  { %3699 = vmatpush3.bf16.msra.mxu0 %v4100_v58  ;;  %v4168_v58 = vld [vmem:[%s5389_s1 + $0x318] sm:$0xff]  }
  0x39   :  { %3721 = vmatpush3.bf16.msra.mxu1 %v4101_v59  ;;  %3700 = vmatprep.subr.bf16.mxu0 %v4102_v60  ;;  %v4169_v59 = vld [vmem:[%s5389_s1 + $0x398] sm:$0xff]   ;;  %v4170_v60 = vld [vmem:[%s5389_s1 + $0x360] sm:$0xff]  }
  0x3a   :  { %3722 = vmatprep.subr.bf16.mxu1 %v4103_v61  ;;  %v4171_v61 = vld [vmem:[%s5389_s1 + $0x3e0] sm:$0xff]  }
  0x3c   :  { %3701 = vmatpush3.bf16.msra.mxu0 %v4104_v62  ;;  %v4172_v62 = vld [vmem:[%s5389_s1 + $0x320] sm:$0xff]  }
  0x3d   :  { %3723 = vmatpush3.bf16.msra.mxu1 %v4105_v63  ;;  %3702 = vmatprep.subr.bf16.mxu0 %v4106_v0  ;;  %v4173_v63 = vld [vmem:[%s5389_s1 + $0x3a0] sm:$0xff]   ;;  %v4174_v0 = vld [vmem:[%s5389_s1 + $0x368] sm:$0xff]  }
  0x3e   :  { %3724 = vmatprep.subr.bf16.mxu1 %v4107_v1  ;;  %v4175_v1 = vld [vmem:[%s5389_s1 + $0x3e8] sm:$0xff]  }
  0x40   :  { %3703 = vmatpush3.bf16.msra.mxu0 %v4108_v2  ;;  %v4176_v2 = vld [vmem:[%s5389_s1 + $0x328] sm:$0xff]  }
  0x41   :  { %3725 = vmatpush3.bf16.msra.mxu1 %v4109_v3  ;;  %3732 = vmatprep.subr.bf16.mxu0 %v4116_v8  ;;  %v4177_v3 = vld [vmem:[%s5389_s1 + $0x3a8] sm:$0xff]   ;;  %v4182_v8 = vld [vmem:[%s5389_s1 + $0x378] sm:$0xff]  }
  0x42   :  { %3754 = vmatprep.subr.bf16.mxu1 %v4117_v9  ;;  %v4183_v9 = vld [vmem:[%s5389_s1 + $0x3f8] sm:$0xff]  }
  0x43   :  { %2649 = vmatmul.mubr.bf16.vlgmr.msra.gmra.mrb[4].mxu0 %v4110_v4  ;;  %v4178_v4 = vld [vmem:[%s5389_s1 + $0x370] sm:$0xff]  }
  0x44   :  { %2690 = vmatmul.mubr.bf16.vlgmr.msra.gmra.mrb[4].mxu1 %v4113_v6  ;;  %3733 = vmatpush3.bf16.msra.mxu0 %v4118_v10  ;;  %v4180_v6 = vld [vmem:[%s5389_s1 + $0x330] sm:$0xff]   ;;  %v4184_v10 = vld [vmem:[%s5389_s1 + $0x338] sm:$0xff]  }
  0x45   :  { %3755 = vmatpush3.bf16.msra.mxu1 %v4119_v11  ;;  %3734 = vmatprep.subr.bf16.mxu0 %v4120_v12  ;;  %v4185_v11 = vld [vmem:[%s5389_s1 + $0x3b8] sm:$0xff]   ;;  %v4186_v12 = vld [vmem:[%s5390_s0 + $0x30] ss:$144 sps:$4 sm:$0xff]  }
  0x46   :  { %3756 = vmatprep.subr.bf16.mxu1 %v4121_v13  ;;  %2730 = vmatprep.mubr.bf16.mxu0 %v4150_v41  ;;  %v4188_v13 = vld [vmem:[%s5390_s0 + $0x34] ss:$144 sps:$4 sm:$0xff]  }
  0x47   :  { %2771 = vmatprep.mubr.bf16.mxu1 %v4153_v43  ;;  %v4217_v41 = vld [vmem:[%s5389_s1 + $0x4f0] sm:$0xff]  }
  0x48   :  { %3735 = vmatpush3.bf16.msra.mxu0 %v4122_v14  ;;  %v4189_v14 = vld [vmem:[%s5390_s0 + $0x38] ss:$144 sps:$4 sm:$0xff]   ;;  %v4219_v43 = vld [vmem:[%s5389_s1 + $0x4b0] sm:$0xff]  }
  0x49   :  { %3757 = vmatpush3.bf16.msra.mxu1 %v4123_v15  ;;  %3736 = vmatprep.subr.bf16.mxu0 %v4124_v16  ;;  %v4191_v15 = vld [vmem:[%s5390_s0 + $0x3c] ss:$144 sps:$4 sm:$0xff]   ;;  %v4192_v16 = vld [vmem:[%s5389_s1 + $0x440] sm:$0xff]  }
  0x4a   :  { %3758 = vmatprep.subr.bf16.mxu1 %v4125_v17  ;;  %v4193_v17 = vld [vmem:[%s5389_s1 + $0x4c0] sm:$0xff]  }
  0x4c   :  { %3737 = vmatpush3.bf16.msra.mxu0 %v4126_v18  ;;  %v4194_v18 = vld [vmem:[%s5389_s1 + $0x400] sm:$0xff]  }
  0x4d   :  { %3759 = vmatpush3.bf16.msra.mxu1 %v4127_v19  ;;  %3738 = vmatprep.subr.bf16.mxu0 %v4128_v20  ;;  %v4195_v19 = vld [vmem:[%s5389_s1 + $0x480] sm:$0xff]   ;;  %v4196_v20 = vld [vmem:[%s5389_s1 + $0x448] sm:$0xff]  }
  0x4e   :  { %3760 = vmatprep.subr.bf16.mxu1 %v4129_v21  ;;  %v4197_v21 = vld [vmem:[%s5389_s1 + $0x4c8] sm:$0xff]  }
  0x50   :  { %3739 = vmatpush3.bf16.msra.mxu0 %v4130_v22  ;;  %v4198_v22 = vld [vmem:[%s5389_s1 + $0x408] sm:$0xff]  }
  0x51   :  { %3761 = vmatpush3.bf16.msra.mxu1 %v4131_v23  ;;  %3740 = vmatprep.subr.bf16.mxu0 %v4132_v24  ;;  %v4199_v23 = vld [vmem:[%s5389_s1 + $0x488] sm:$0xff]   ;;  %v4200_v24 = vld [vmem:[%s5389_s1 + $0x450] sm:$0xff]  }
  0x52   :  { %3762 = vmatprep.subr.bf16.mxu1 %v4133_v25  ;;  %v4201_v25 = vld [vmem:[%s5389_s1 + $0x4d0] sm:$0xff]  }
  0x54   :  { %3741 = vmatpush3.bf16.msra.mxu0 %v4134_v26  ;;  %v4202_v26 = vld [vmem:[%s5389_s1 + $0x410] sm:$0xff]  }
  0x55   :  { %3763 = vmatpush3.bf16.msra.mxu1 %v4135_v27  ;;  %3742 = vmatprep.subr.bf16.mxu0 %v4136_v28  ;;  %v4203_v27 = vld [vmem:[%s5389_s1 + $0x490] sm:$0xff]   ;;  %v4204_v28 = vld [vmem:[%s5389_s1 + $0x458] sm:$0xff]  }
  0x56   :  { %3764 = vmatprep.subr.bf16.mxu1 %v4137_v29  ;;  %v4205_v29 = vld [vmem:[%s5389_s1 + $0x4d8] sm:$0xff]  }
  0x58   :  { %3743 = vmatpush3.bf16.msra.mxu0 %v4138_v30  ;;  %v4206_v30 = vld [vmem:[%s5389_s1 + $0x418] sm:$0xff]  }
  0x59   :  { %3765 = vmatpush3.bf16.msra.mxu1 %v4139_v31  ;;  %3744 = vmatprep.subr.bf16.mxu0 %v4140_v32  ;;  %v4207_v31 = vld [vmem:[%s5389_s1 + $0x498] sm:$0xff]   ;;  %v4208_v32 = vld [vmem:[%s5389_s1 + $0x460] sm:$0xff]  }
  0x5a   :  { %3766 = vmatprep.subr.bf16.mxu1 %v4141_v33  ;;  %v4209_v33 = vld [vmem:[%s5389_s1 + $0x4e0] sm:$0xff]  }
  0x5c   :  { %3745 = vmatpush3.bf16.msra.mxu0 %v4142_v34  ;;  %v4210_v34 = vld [vmem:[%s5389_s1 + $0x420] sm:$0xff]  }
  0x5d   :  { %3767 = vmatpush3.bf16.msra.mxu1 %v4143_v35  ;;  %3746 = vmatprep.subr.bf16.mxu0 %v4144_v36  ;;  %v4211_v35 = vld [vmem:[%s5389_s1 + $0x4a0] sm:$0xff]   ;;  %v4212_v36 = vld [vmem:[%s5389_s1 + $0x468] sm:$0xff]  }
  0x5e   :  { %3768 = vmatprep.subr.bf16.mxu1 %v4145_v37  ;;  %v4213_v37 = vld [vmem:[%s5389_s1 + $0x4e8] sm:$0xff]  }
  0x60   :  { %3747 = vmatpush3.bf16.msra.mxu0 %v4146_v38  ;;  %v4214_v38 = vld [vmem:[%s5389_s1 + $0x428] sm:$0xff]  }
  0x61   :  { %3769 = vmatpush3.bf16.msra.mxu1 %v4147_v39  ;;  %3776 = vmatprep.subr.bf16.mxu0 %v4154_v44  ;;  %v4215_v39 = vld [vmem:[%s5389_s1 + $0x4a8] sm:$0xff]   ;;  %v4220_v44 = vld [vmem:[%s5389_s1 + $0x478] sm:$0xff]  }
  0x62   :  { %3798 = vmatprep.subr.bf16.mxu1 %v4155_v45  ;;  %v4221_v45 = vld [vmem:[%s5389_s1 + $0x4f8] sm:$0xff]  }
  0x63   :  { %2731 = vmatmul.mubr.bf16.vlgmr.msra.gmra.mrb[8].mxu0 %v4148_v40  ;;  %v4216_v40 = vld [vmem:[%s5389_s1 + $0x470] sm:$0xff]  }
  0x64   :  { %2772 = vmatmul.mubr.bf16.vlgmr.msra.gmra.mrb[8].mxu1 %v4151_v42  ;;  %3777 = vmatpush3.bf16.msra.mxu0 %v4156_v46  ;;  %v4218_v42 = vld [vmem:[%s5389_s1 + $0x430] sm:$0xff]   ;;  %v4222_v46 = vld [vmem:[%s5389_s1 + $0x438] sm:$0xff]  }
  0x65   :  { %3799 = vmatpush3.bf16.msra.mxu1 %v4157_v47  ;;  %3778 = vmatprep.subr.bf16.mxu0 %v4158_v48  ;;  %v4223_v47 = vld [vmem:[%s5389_s1 + $0x4b8] sm:$0xff]   ;;  %v4224_v48 = vld [vmem:[%s5390_s0 + $0x40] ss:$144 sps:$4 sm:$0xff]  }
  0x66   :  { %3800 = vmatprep.subr.bf16.mxu1 %v4159_v49  ;;  %2812 = vmatprep.mubr.bf16.mxu0 %v4188_v13  ;;  %v4226_v49 = vld [vmem:[%s5390_s0 + $0x44] ss:$144 sps:$4 sm:$0xff]  }
  0x67   :  { %2853 = vmatprep.mubr.bf16.mxu1 %v4191_v15  ;;  %v4255_v13 = vld [vmem:[%s5389_s1 + $0x5f0] sm:$0xff]  }
  0x68   :  { %3779 = vmatpush3.bf16.msra.mxu0 %v4160_v50  ;;  %v4227_v50 = vld [vmem:[%s5390_s0 + $0x48] ss:$144 sps:$4 sm:$0xff]   ;;  %v4257_v15 = vld [vmem:[%s5389_s1 + $0x5b0] sm:$0xff]  }
  0x69   :  { %3801 = vmatpush3.bf16.msra.mxu1 %v4161_v51  ;;  %3780 = vmatprep.subr.bf16.mxu0 %v4162_v52  ;;  %v4229_v51 = vld [vmem:[%s5390_s0 + $0x4c] ss:$144 sps:$4 sm:$0xff]   ;;  %v4230_v52 = vld [vmem:[%s5389_s1 + $0x540] sm:$0xff]  }
  0x6a   :  { %3802 = vmatprep.subr.bf16.mxu1 %v4163_v53  ;;  %v4231_v53 = vld [vmem:[%s5389_s1 + $0x5c0] sm:$0xff]  }
  0x6c   :  { %3781 = vmatpush3.bf16.msra.mxu0 %v4164_v54  ;;  %v4232_v54 = vld [vmem:[%s5389_s1 + $0x500] sm:$0xff]  }
  0x6d   :  { %3803 = vmatpush3.bf16.msra.mxu1 %v4165_v55  ;;  %3782 = vmatprep.subr.bf16.mxu0 %v4166_v56  ;;  %v4233_v55 = vld [vmem:[%s5389_s1 + $0x580] sm:$0xff]   ;;  %v4234_v56 = vld [vmem:[%s5389_s1 + $0x548] sm:$0xff]  }
  0x6e   :  { %3804 = vmatprep.subr.bf16.mxu1 %v4167_v57  ;;  %v4235_v57 = vld [vmem:[%s5389_s1 + $0x5c8] sm:$0xff]  }
  0x70   :  { %3783 = vmatpush3.bf16.msra.mxu0 %v4168_v58  ;;  %v4236_v58 = vld [vmem:[%s5389_s1 + $0x508] sm:$0xff]  }
  0x71   :  { %3805 = vmatpush3.bf16.msra.mxu1 %v4169_v59  ;;  %3784 = vmatprep.subr.bf16.mxu0 %v4170_v60  ;;  %v4237_v59 = vld [vmem:[%s5389_s1 + $0x588] sm:$0xff]   ;;  %v4238_v60 = vld [vmem:[%s5389_s1 + $0x550] sm:$0xff]  }
  0x72   :  { %3806 = vmatprep.subr.bf16.mxu1 %v4171_v61  ;;  %v4239_v61 = vld [vmem:[%s5389_s1 + $0x5d0] sm:$0xff]  }
  0x74   :  { %3785 = vmatpush3.bf16.msra.mxu0 %v4172_v62  ;;  %v4240_v62 = vld [vmem:[%s5389_s1 + $0x510] sm:$0xff]  }
  0x75   :  { %3807 = vmatpush3.bf16.msra.mxu1 %v4173_v63  ;;  %3786 = vmatprep.subr.bf16.mxu0 %v4174_v0  ;;  %v4241_v63 = vld [vmem:[%s5389_s1 + $0x590] sm:$0xff]   ;;  %v4242_v0 = vld [vmem:[%s5389_s1 + $0x558] sm:$0xff]  }
  0x76   :  { %3808 = vmatprep.subr.bf16.mxu1 %v4175_v1  ;;  %v4243_v1 = vld [vmem:[%s5389_s1 + $0x5d8] sm:$0xff]  }
  0x78   :  { %3787 = vmatpush3.bf16.msra.mxu0 %v4176_v2  ;;  %v4244_v2 = vld [vmem:[%s5389_s1 + $0x518] sm:$0xff]  }
  0x79   :  { %3809 = vmatpush3.bf16.msra.mxu1 %v4177_v3  ;;  %3788 = vmatprep.subr.bf16.mxu0 %v4178_v4  ;;  %v4245_v3 = vld [vmem:[%s5389_s1 + $0x598] sm:$0xff]   ;;  %v4246_v4 = vld [vmem:[%s5389_s1 + $0x560] sm:$0xff]  }
  0x7a   :  { %3810 = vmatprep.subr.bf16.mxu1 %v4179_v5  ;;  %v4247_v5 = vld [vmem:[%s5389_s1 + $0x5e0] sm:$0xff]  }
  0x7c   :  { %3789 = vmatpush3.bf16.msra.mxu0 %v4180_v6  ;;  %v4248_v6 = vld [vmem:[%s5389_s1 + $0x520] sm:$0xff]  }
  0x7d   :  { %3811 = vmatpush3.bf16.msra.mxu1 %v4181_v7  ;;  %3790 = vmatprep.subr.bf16.mxu0 %v4182_v8  ;;  %v4249_v7 = vld [vmem:[%s5389_s1 + $0x5a0] sm:$0xff]   ;;  %v4250_v8 = vld [vmem:[%s5389_s1 + $0x568] sm:$0xff]  }
  0x7e   :  { %3812 = vmatprep.subr.bf16.mxu1 %v4183_v9  ;;  %v4251_v9 = vld [vmem:[%s5389_s1 + $0x5e8] sm:$0xff]  }
  0x80   :  { %3791 = vmatpush3.bf16.msra.mxu0 %v4184_v10  ;;  %v4252_v10 = vld [vmem:[%s5389_s1 + $0x528] sm:$0xff]  }
  0x81   :  { %3813 = vmatpush3.bf16.msra.mxu1 %v4185_v11  ;;  %3820 = vmatprep.subr.bf16.mxu0 %v4192_v16  ;;  %v4253_v11 = vld [vmem:[%s5389_s1 + $0x5a8] sm:$0xff]   ;;  %v4258_v16 = vld [vmem:[%s5389_s1 + $0x578] sm:$0xff]  }
  0x82   :  { %3842 = vmatprep.subr.bf16.mxu1 %v4193_v17  ;;  %v4259_v17 = vld [vmem:[%s5389_s1 + $0x5f8] sm:$0xff]  }
  0x83   :  { %2813 = vmatmul.mubr.bf16.vlgmr.msra.gmra.mrb[12].mxu0 %v4186_v12  ;;  %v4254_v12 = vld [vmem:[%s5389_s1 + $0x570] sm:$0xff]  }
  0x84   :  { %2854 = vmatmul.mubr.bf16.vlgmr.msra.gmra.mrb[12].mxu1 %v4189_v14  ;;  %3821 = vmatpush3.bf16.msra.mxu0 %v4194_v18  ;;  %v4256_v14 = vld [vmem:[%s5389_s1 + $0x530] sm:$0xff]   ;;  %v4260_v18 = vld [vmem:[%s5389_s1 + $0x538] sm:$0xff]  }
  0x85   :  { %3843 = vmatpush3.bf16.msra.mxu1 %v4195_v19  ;;  %3822 = vmatprep.subr.bf16.mxu0 %v4196_v20  ;;  %v4261_v19 = vld [vmem:[%s5389_s1 + $0x5b8] sm:$0xff]   ;;  %v4262_v20 = vld [vmem:[%s5390_s0 + $0x50] ss:$144 sps:$4 sm:$0xff]  }
  0x86   :  { %3844 = vmatprep.subr.bf16.mxu1 %v4197_v21  ;;  %2894 = vmatprep.mubr.bf16.mxu0 %v4226_v49  ;;  %v4264_v21 = vld [vmem:[%s5390_s0 + $0x54] ss:$144 sps:$4 sm:$0xff]  }
  0x87   :  { %2935 = vmatprep.mubr.bf16.mxu1 %v4229_v51  ;;  %v4293_v49 = vld [vmem:[%s5389_s1 + $0x6f0] sm:$0xff]  }
  0x88   :  { %3823 = vmatpush3.bf16.msra.mxu0 %v4198_v22  ;;  %v4265_v22 = vld [vmem:[%s5390_s0 + $0x58] ss:$144 sps:$4 sm:$0xff]   ;;  %v4295_v51 = vld [vmem:[%s5389_s1 + $0x6b0] sm:$0xff]  }
  0x89   :  { %3845 = vmatpush3.bf16.msra.mxu1 %v4199_v23  ;;  %3824 = vmatprep.subr.bf16.mxu0 %v4200_v24  ;;  %v4267_v23 = vld [vmem:[%s5390_s0 + $0x5c] ss:$144 sps:$4 sm:$0xff]   ;;  %v4268_v24 = vld [vmem:[%s5389_s1 + $0x640] sm:$0xff]  }
  0x8a   :  { %3846 = vmatprep.subr.bf16.mxu1 %v4201_v25  ;;  %v4269_v25 = vld [vmem:[%s5389_s1 + $0x6c0] sm:$0xff]  }
  0x8c   :  { %3825 = vmatpush3.bf16.msra.mxu0 %v4202_v26  ;;  %v4270_v26 = vld [vmem:[%s5389_s1 + $0x600] sm:$0xff]  }
  0x8d   :  { %3847 = vmatpush3.bf16.msra.mxu1 %v4203_v27  ;;  %3826 = vmatprep.subr.bf16.mxu0 %v4204_v28  ;;  %v4271_v27 = vld [vmem:[%s5389_s1 + $0x680] sm:$0xff]   ;;  %v4272_v28 = vld [vmem:[%s5389_s1 + $0x648] sm:$0xff]  }
  0x8e   :  { %3848 = vmatprep.subr.bf16.mxu1 %v4205_v29  ;;  %v4273_v29 = vld [vmem:[%s5389_s1 + $0x6c8] sm:$0xff]  }
  0x90   :  { %3827 = vmatpush3.bf16.msra.mxu0 %v4206_v30  ;;  %v4274_v30 = vld [vmem:[%s5389_s1 + $0x608] sm:$0xff]  }
  0x91   :  { %3849 = vmatpush3.bf16.msra.mxu1 %v4207_v31  ;;  %3828 = vmatprep.subr.bf16.mxu0 %v4208_v32  ;;  %v4275_v31 = vld [vmem:[%s5389_s1 + $0x688] sm:$0xff]   ;;  %v4276_v32 = vld [vmem:[%s5389_s1 + $0x650] sm:$0xff]  }
  0x92   :  { %3850 = vmatprep.subr.bf16.mxu1 %v4209_v33  ;;  %v4277_v33 = vld [vmem:[%s5389_s1 + $0x6d0] sm:$0xff]  }
  0x94   :  { %3829 = vmatpush3.bf16.msra.mxu0 %v4210_v34  ;;  %v4278_v34 = vld [vmem:[%s5389_s1 + $0x610] sm:$0xff]  }
  0x95   :  { %3851 = vmatpush3.bf16.msra.mxu1 %v4211_v35  ;;  %3830 = vmatprep.subr.bf16.mxu0 %v4212_v36  ;;  %v4279_v35 = vld [vmem:[%s5389_s1 + $0x690] sm:$0xff]   ;;  %v4280_v36 = vld [vmem:[%s5389_s1 + $0x658] sm:$0xff]  }
  0x96   :  { %3852 = vmatprep.subr.bf16.mxu1 %v4213_v37  ;;  %v4281_v37 = vld [vmem:[%s5389_s1 + $0x6d8] sm:$0xff]  }
  0x98   :  { %3831 = vmatpush3.bf16.msra.mxu0 %v4214_v38  ;;  %v4282_v38 = vld [vmem:[%s5389_s1 + $0x618] sm:$0xff]  }
  0x99   :  { %3853 = vmatpush3.bf16.msra.mxu1 %v4215_v39  ;;  %3832 = vmatprep.subr.bf16.mxu0 %v4216_v40  ;;  %v4283_v39 = vld [vmem:[%s5389_s1 + $0x698] sm:$0xff]   ;;  %v4284_v40 = vld [vmem:[%s5389_s1 + $0x660] sm:$0xff]  }
  0x9a   :  { %3854 = vmatprep.subr.bf16.mxu1 %v4217_v41  ;;  %v4285_v41 = vld [vmem:[%s5389_s1 + $0x6e0] sm:$0xff]  }
  0x9c   :  { %3833 = vmatpush3.bf16.msra.mxu0 %v4218_v42  ;;  %v4286_v42 = vld [vmem:[%s5389_s1 + $0x620] sm:$0xff]  }
  0x9d   :  { %3855 = vmatpush3.bf16.msra.mxu1 %v4219_v43  ;;  %3834 = vmatprep.subr.bf16.mxu0 %v4220_v44  ;;  %v4287_v43 = vld [vmem:[%s5389_s1 + $0x6a0] sm:$0xff]   ;;  %v4288_v44 = vld [vmem:[%s5389_s1 + $0x668] sm:$0xff]  }
  0x9e   :  { %3856 = vmatprep.subr.bf16.mxu1 %v4221_v45  ;;  %v4289_v45 = vld [vmem:[%s5389_s1 + $0x6e8] sm:$0xff]  }
  0xa0   :  { %3835 = vmatpush3.bf16.msra.mxu0 %v4222_v46  ;;  %v4290_v46 = vld [vmem:[%s5389_s1 + $0x628] sm:$0xff]  }
  0xa1   :  { %3857 = vmatpush3.bf16.msra.mxu1 %v4223_v47  ;;  %3864 = vmatprep.subr.bf16.mxu0 %v4230_v52  ;;  %v4291_v47 = vld [vmem:[%s5389_s1 + $0x6a8] sm:$0xff]   ;;  %v4296_v52 = vld [vmem:[%s5389_s1 + $0x678] sm:$0xff]  }
  0xa2   :  { %3886 = vmatprep.subr.bf16.mxu1 %v4231_v53  ;;  %v4297_v53 = vld [vmem:[%s5389_s1 + $0x6f8] sm:$0xff]  }
  0xa3   :  { %2895 = vmatmul.mubr.bf16.vlgmr.msra.gmra.mrb[16].mxu0 %v4224_v48  ;;  %v4292_v48 = vld [vmem:[%s5389_s1 + $0x670] sm:$0xff]  }
  0xa4   :  { %2936 = vmatmul.mubr.bf16.vlgmr.msra.gmra.mrb[16].mxu1 %v4227_v50  ;;  %3865 = vmatpush3.bf16.msra.mxu0 %v4232_v54  ;;  %v4294_v50 = vld [vmem:[%s5389_s1 + $0x630] sm:$0xff]   ;;  %v4298_v54 = vld [vmem:[%s5389_s1 + $0x638] sm:$0xff]  }
  0xa5   :  { %3887 = vmatpush3.bf16.msra.mxu1 %v4233_v55  ;;  %3866 = vmatprep.subr.bf16.mxu0 %v4234_v56  ;;  %v4299_v55 = vld [vmem:[%s5389_s1 + $0x6b8] sm:$0xff]   ;;  %v4300_v56 = vld [vmem:[%s5390_s0 + $0x60] ss:$144 sps:$4 sm:$0xff]  }
  0xa6   :  { %3888 = vmatprep.subr.bf16.mxu1 %v4235_v57  ;;  %2976 = vmatprep.mubr.bf16.mxu0 %v4264_v21  ;;  %v4302_v57 = vld [vmem:[%s5390_s0 + $0x64] ss:$144 sps:$4 sm:$0xff]  }
  0xa7   :  { %3017 = vmatprep.mubr.bf16.mxu1 %v4267_v23  ;;  %v4320_v23 = vld [vmem:[%s5389_s1 + $0x718] sm:$0xff]  }
  0xa8   :  { %3867 = vmatpush3.bf16.msra.mxu0 %v4236_v58  ;;  %v4303_v58 = vld [vmem:[%s5390_s0 + $0x68] ss:$144 sps:$4 sm:$0xff]  }
  0xa9   :  { %3889 = vmatpush3.bf16.msra.mxu1 %v4237_v59  ;;  %3868 = vmatprep.subr.bf16.mxu0 %v4238_v60  ;;  %v4305_v59 = vld [vmem:[%s5390_s0 + $0x6c] ss:$144 sps:$4 sm:$0xff]   ;;  %v4306_v60 = vld [vmem:[%s5389_s1 + $0x740] sm:$0xff]  }
  0xaa   :  { %3890 = vmatprep.subr.bf16.mxu1 %v4239_v61  ;;  %v4307_v61 = vld [vmem:[%s5389_s1 + $0x7c0] sm:$0xff]  }
  0xac   :  { %3869 = vmatpush3.bf16.msra.mxu0 %v4240_v62  ;;  %v4308_v62 = vld [vmem:[%s5389_s1 + $0x700] sm:$0xff]  }
  0xad   :  { %3891 = vmatpush3.bf16.msra.mxu1 %v4241_v63  ;;  %3870 = vmatprep.subr.bf16.mxu0 %v4242_v0  ;;  %v4309_v63 = vld [vmem:[%s5389_s1 + $0x780] sm:$0xff]   ;;  %v4310_v0 = vld [vmem:[%s5389_s1 + $0x748] sm:$0xff]  }
  0xae   :  { %3892 = vmatprep.subr.bf16.mxu1 %v4243_v1 }
  0xb0   :  { %3871 = vmatpush3.bf16.msra.mxu0 %v4244_v2  ;;  %v4311_v2 = vld [vmem:[%s5389_s1 + $0x7c8] sm:$0xff]  }
  0xb1   :  { %3893 = vmatpush3.bf16.msra.mxu1 %v4245_v3  ;;  %3872 = vmatprep.subr.bf16.mxu0 %v4246_v4  ;;  %v4312_v4 = vld [vmem:[%s5389_s1 + $0x708] sm:$0xff]  }
  0xb2   :  { %3894 = vmatprep.subr.bf16.mxu1 %v4247_v5 }
  0xb4   :  { %3873 = vmatpush3.bf16.msra.mxu0 %v4248_v6  ;;  %v4313_v6 = vld [vmem:[%s5389_s1 + $0x788] sm:$0xff]  }
  0xb5   :  { %3895 = vmatpush3.bf16.msra.mxu1 %v4249_v7  ;;  %3874 = vmatprep.subr.bf16.mxu0 %v4250_v8 }
  0xb6   :  { %3896 = vmatprep.subr.bf16.mxu1 %v4251_v9  ;;  %v4314_v9 = vld [vmem:[%s5389_s1 + $0x750] sm:$0xff]  }
  0xb8   :  { %3875 = vmatpush3.bf16.msra.mxu0 %v4252_v10 }
  0xb9   :  { %3897 = vmatpush3.bf16.msra.mxu1 %v4253_v11  ;;  %3876 = vmatprep.subr.bf16.mxu0 %v4254_v12  ;;  %v4315_v12 = vld [vmem:[%s5389_s1 + $0x7d0] sm:$0xff]  }
  0xba   :  { %3898 = vmatprep.subr.bf16.mxu1 %v4255_v13 }
  0xbc   :  { %3877 = vmatpush3.bf16.msra.mxu0 %v4256_v14  ;;  %v4316_v14 = vld [vmem:[%s5389_s1 + $0x710] sm:$0xff]  }
  0xbd   :  { %3899 = vmatpush3.bf16.msra.mxu1 %v4257_v15  ;;  %3878 = vmatprep.subr.bf16.mxu0 %v4258_v16 }
  0xbe   :  { %3900 = vmatprep.subr.bf16.mxu1 %v4259_v17  ;;  %v4317_v17 = vld [vmem:[%s5389_s1 + $0x790] sm:$0xff]  }
  0xc0   :  { %3879 = vmatpush3.bf16.msra.mxu0 %v4260_v18 }
  0xc1   :  { %3901 = vmatpush3.bf16.msra.mxu1 %v4261_v19  ;;  %3908 = vmatprep.subr.bf16.mxu0 %v4268_v24 }
  0xc2   :  { %3930 = vmatprep.subr.bf16.mxu1 %v4269_v25  ;;  %v4321_v25 = vld [vmem:[%s5389_s1 + $0x798] sm:$0xff]  }
  0xc3   :  { %2977 = vmatmul.mubr.bf16.vlgmr.msra.gmra.mrb[20].mxu0 %v4262_v20  ;;  %v4318_v20 = vld [vmem:[%s5389_s1 + $0x758] sm:$0xff]  }
  0xc4   :  { %3018 = vmatmul.mubr.bf16.vlgmr.msra.gmra.mrb[20].mxu1 %v4265_v22  ;;  %3909 = vmatpush3.bf16.msra.mxu0 %v4270_v26  ;;  %v4319_v22 = vld [vmem:[%s5389_s1 + $0x7d8] sm:$0xff]   ;;  %v4322_v26 = vld [vmem:[%s5389_s1 + $0x760] sm:$0xff]  }
  0xc5   :  { %3931 = vmatpush3.bf16.msra.mxu1 %v4271_v27  ;;  %3910 = vmatprep.subr.bf16.mxu0 %v4272_v28  ;;  %v4323_v27 = vld [vmem:[%s5389_s1 + $0x7e0] sm:$0xff]  }
  0xc6   :  { %3932 = vmatprep.subr.bf16.mxu1 %v4273_v29  ;;  %3058 = vmatprep.mubr.bf16.mxu0 %v4302_v57  ;;  %v4324_v28 = vld [vmem:[%s5389_s1 + $0x720] sm:$0xff]  }
  0xc7   :  { %3099 = vmatprep.mubr.bf16.mxu1 %v4305_v59  ;;  %v4325_v29 = vld [vmem:[%s5389_s1 + $0x7a0] sm:$0xff]  }
  0xc8   :  { %3911 = vmatpush3.bf16.msra.mxu0 %v4274_v30  ;;  %v4326_v30 = vld [vmem:[%s5389_s1 + $0x768] sm:$0xff]  }
  0xc9   :  { %3933 = vmatpush3.bf16.msra.mxu1 %v4275_v31  ;;  %3912 = vmatprep.subr.bf16.mxu0 %v4276_v32  ;;  %v4327_v31 = vld [vmem:[%s5389_s1 + $0x7e8] sm:$0xff]  }
  0xca   :  { %3934 = vmatprep.subr.bf16.mxu1 %v4277_v33  ;;  %v4328_v32 = vld [vmem:[%s5389_s1 + $0x728] sm:$0xff]  }
  0xcb   :  { %v4329_v33 = vld [vmem:[%s5389_s1 + $0x7a8] sm:$0xff]  }
  0xcc   :  { %3913 = vmatpush3.bf16.msra.mxu0 %v4278_v34  ;;  %v4330_v34 = vld [vmem:[%s5389_s1 + $0x770] sm:$0xff]  }
  0xcd   :  { %3935 = vmatpush3.bf16.msra.mxu1 %v4279_v35  ;;  %3914 = vmatprep.subr.bf16.mxu0 %v4280_v36  ;;  %v4331_v35 = vld [vmem:[%s5389_s1 + $0x7f0] sm:$0xff]  }
  0xce   :  { %3936 = vmatprep.subr.bf16.mxu1 %v4281_v37  ;;  %v4332_v36 = vld [vmem:[%s5389_s1 + $0x730] sm:$0xff]  }
  0xcf   :  { %v4333_v37 = vld [vmem:[%s5389_s1 + $0x7b0] sm:$0xff]  }
  0xd0   :  { %3915 = vmatpush3.bf16.msra.mxu0 %v4282_v38  ;;  %v4334_v38 = vld [vmem:[%s5389_s1 + $0x778] sm:$0xff]  }
  0xd1   :  { %3937 = vmatpush3.bf16.msra.mxu1 %v4283_v39  ;;  %3916 = vmatprep.subr.bf16.mxu0 %v4284_v40  ;;  %v4335_v39 = vld [vmem:[%s5389_s1 + $0x7f8] sm:$0xff]  }
  0xd2   :  { %3938 = vmatprep.subr.bf16.mxu1 %v4285_v41  ;;  %v4336_v40 = vld [vmem:[%s5389_s1 + $0x738] sm:$0xff]  }
  0xd3   :  { %v4337_v41 = vld [vmem:[%s5389_s1 + $0x7b8] sm:$0xff]  }
  0xd4   :  { %3917 = vmatpush3.bf16.msra.mxu0 %v4286_v42  ;;  %v4338_v42 = vld [vmem:[%s5390_s0 + $0x70] ss:$144 sps:$4 sm:$0xff]  }
  0xd5   :  { %3939 = vmatpush3.bf16.msra.mxu1 %v4287_v43  ;;  %3918 = vmatprep.subr.bf16.mxu0 %v4288_v44  ;;  %v4340_v43 = vld [vmem:[%s5390_s0 + $0x74] ss:$144 sps:$4 sm:$0xff]   ;;  %v4341_v44 = vld [vmem:[%s5390_s0 + $0x78] ss:$144 sps:$4 sm:$0xff]  }
  0xd6   :  { %3940 = vmatprep.subr.bf16.mxu1 %v4289_v45  ;;  %v4343_v45 = vld [vmem:[%s5390_s0 + $0x7c] ss:$144 sps:$4 sm:$0xff]  }
  0xd8   :  { %3919 = vmatpush3.bf16.msra.mxu0 %v4290_v46  ;;  %v4344_v46 = vld [vmem:[%s5389_s1 + $0x840] sm:$0xff]  }
  0xd9   :  { %3941 = vmatpush3.bf16.msra.mxu1 %v4291_v47  ;;  %3920 = vmatprep.subr.bf16.mxu0 %v4292_v48  ;;  %v4345_v47 = vld [vmem:[%s5389_s1 + $0x8c0] sm:$0xff]  }
  0xda   :  { %3942 = vmatprep.subr.bf16.mxu1 %v4293_v49  ;;  %v4346_v48 = vld [vmem:[%s5389_s1 + $0x800] sm:$0xff]  }
  0xdb   :  { %v4347_v49 = vld [vmem:[%s5389_s1 + $0x880] sm:$0xff]  }
  0xdc   :  { %3921 = vmatpush3.bf16.msra.mxu0 %v4294_v50 }
  0xdd   :  { %3943 = vmatpush3.bf16.msra.mxu1 %v4295_v51  ;;  %3922 = vmatprep.subr.bf16.mxu0 %v4296_v52  ;;  %v4348_v51 = vld [vmem:[%s5389_s1 + $0x848] sm:$0xff]  }
  0xde   :  { %3944 = vmatprep.subr.bf16.mxu1 %v4297_v53  ;;  %v4349_v53 = vld [vmem:[%s5389_s1 + $0x8c8] sm:$0xff]  }
  0xe0   :  { %3923 = vmatpush3.bf16.msra.mxu0 %v4298_v54 }
  0xe1   :  { %3945 = vmatpush3.bf16.msra.mxu1 %v4299_v55  ;;  %3952 = vmatprep.subr.bf16.mxu0 %v4306_v60 }
  0xe2   :  { %3974 = vmatprep.subr.bf16.mxu1 %v4307_v61 }
  0xe3   :  { %3059 = vmatmul.mubr.bf16.vlgmr.msra.gmra.mrb[24].mxu0 %v4300_v56  ;;  %v4350_v56 = vld [vmem:[%s5389_s1 + $0x808] sm:$0xff]  }
  0xe4   :  { %3100 = vmatmul.mubr.bf16.vlgmr.msra.gmra.mrb[24].mxu1 %v4303_v58  ;;  %3953 = vmatpush3.bf16.msra.mxu0 %v4308_v62  ;;  %v4351_v58 = vld [vmem:[%s5389_s1 + $0x888] sm:$0xff]   ;;  %v4352_v62 = vld [vmem:[%s5389_s1 + $0x850] sm:$0xff]  }
  0xe5   :  { %3975 = vmatpush3.bf16.msra.mxu1 %v4309_v63  ;;  %3954 = vmatprep.subr.bf16.mxu0 %v4310_v0  ;;  %v4353_v0 = vld [vmem:[%s5389_s1 + $0x8d0] sm:$0xff]  }
  0xe6   :  { %3976 = vmatprep.subr.bf16.mxu1 %v4311_v2  ;;  %3140 = vmatprep.mubr.bf16.mxu0 %v4340_v43 }
  0xe7   :  { %3181 = vmatprep.mubr.bf16.mxu1 %v4343_v45 }
  0xe8   :  { %3955 = vmatpush3.bf16.msra.mxu0 %v4312_v4 }
  0xe9   :  { %3977 = vmatpush3.bf16.msra.mxu1 %v4313_v6  ;;  %3956 = vmatprep.subr.bf16.mxu0 %v4314_v9  ;;  %v4355_v6 = vld [vmem:[%s5389_s1 + $0x890] sm:$0xff]  }
  0xea   :  { %3978 = vmatprep.subr.bf16.mxu1 %v4315_v12 }
  0xec   :  { %3957 = vmatpush3.bf16.msra.mxu0 %v4316_v14  ;;  %v4360_v14 = vld [vmem:[%s5389_s1 + $0x860] sm:$0xff]  }
  0xed   :  { %3979 = vmatpush3.bf16.msra.mxu1 %v4317_v17  ;;  %3958 = vmatprep.subr.bf16.mxu0 %v4318_v20  ;;  %v4363_v17 = vld [vmem:[%s5389_s1 + $0x8a0] sm:$0xff]   ;;  %v4366_v20 = vld [vmem:[%s5389_s1 + $0x828] sm:$0xff]  }
  0xee   :  { %3980 = vmatprep.subr.bf16.mxu1 %v4319_v22  ;;  %v4368_v22 = vld [vmem:[%s5389_s1 + $0x870] sm:$0xff]  }
  0xf0   :  { %3959 = vmatpush3.bf16.msra.mxu0 %v4320_v23  ;;  %v4369_v23 = vld [vmem:[%s5389_s1 + $0x8f0] sm:$0xff]  }
  0xf1   :  { %3981 = vmatpush3.bf16.msra.mxu1 %v4321_v25  ;;  %3960 = vmatprep.subr.bf16.mxu0 %v4322_v26  ;;  %v4371_v25 = vld [vmem:[%s5389_s1 + $0x8b0] sm:$0xff]   ;;  %v4372_v26 = vld [vmem:[%s5389_s1 + $0x878] sm:$0xff]  }
  0xf2   :  { %3982 = vmatprep.subr.bf16.mxu1 %v4323_v27  ;;  %v4373_v27 = vld [vmem:[%s5389_s1 + $0x8f8] sm:$0xff]  }
  0xf4   :  { %3961 = vmatpush3.bf16.msra.mxu0 %v4324_v28  ;;  %v4374_v28 = vld [vmem:[%s5389_s1 + $0x838] sm:$0xff]  }
  0xf5   :  { %3983 = vmatpush3.bf16.msra.mxu1 %v4325_v29  ;;  %3962 = vmatprep.subr.bf16.mxu0 %v4326_v30  ;;  %v4375_v29 = vld [vmem:[%s5389_s1 + $0x8b8] sm:$0xff]   ;;  %v4376_v30 = vld [vmem:[%s5390_s0 + $0x80] ss:$144 sps:$4 sm:$0xff]  }
  0xf6   :  { %v3660_v1 = vpop.f32.mrb[0].mxu0  ;;  %3984 = vmatprep.subr.bf16.mxu1 %v4327_v31  ;;  %v4378_v31 = vld [vmem:[%s5390_s0 + $0x84] ss:$144 sps:$4 sm:$0xff]  }
  0xf7   :  { %v3682_v3 = vpop.f32.mrb[0].mxu1  ;;  %v3661_v5 = vpop.f32.mrb[1].mxu0 }
  0xf8   :  { %v3662_v7 = vadd.f32 %v3661_v5, %v3660_v1  ;;  %v3683_v8 = vpop.f32.mrb[1].mxu1  ;;  %v3663_v11 = vpop.f32.mrb[2].mxu0  ;;  %3963 = vmatpush3.bf16.msra.mxu0 %v4328_v32  ;;  %v4379_v32 = vld [vmem:[%s5390_s0 + $0x88] ss:$144 sps:$4 sm:$0xff]  }
  0xf9   :  { %v3684_v10 = vadd.f32 %v3683_v8, %v3682_v3  ;;  %v3685_v13 = vpop.f32.mrb[2].mxu1  ;;  %v3664_v16 = vpop.f32.mrb[3].mxu0  ;;  %3985 = vmatpush3.bf16.msra.mxu1 %v4329_v33  ;;  %3964 = vmatprep.subr.bf16.mxu0 %v4330_v34  ;;  %v4354_v3 = vld [vmem:[%s5389_s1 + $0x810] sm:$0xff]   ;;  %v4356_v8 = vld [vmem:[%s5389_s1 + $0x858] sm:$0xff]  }
  0xfa   :  { %v3665_v18 = vadd.f32 %v3664_v16, %v3663_v11  ;;  %v3686_v19 = vpop.f32.mrb[3].mxu1  ;;  %3986 = vmatprep.subr.bf16.mxu1 %v4331_v35  ;;  %v4358_v11 = vld [vmem:[%s5389_s1 + $0x818] sm:$0xff]   ;;  %v4362_v16 = vld [vmem:[%s5389_s1 + $0x820] sm:$0xff]  }
  0xfb   :  { %v5191_v15 = vadd.f32 %v3684_v10, %v3662_v7  ;;  %v3687_v21 = vadd.f32 %v3686_v19, %v3685_v13  ;;  %v4357_v10 = vld [vmem:[%s5389_s1 + $0x8d8] sm:$0xff]   ;;  %v4365_v19 = vld [vmem:[%s5389_s1 + $0x8e8] sm:$0xff]  }
  0xfc   :  { %3965 = vmatpush3.bf16.msra.mxu0 %v4332_v36  ;;  %v4359_v13 = vld [vmem:[%s5389_s1 + $0x898] sm:$0xff]  }
  0xfd   :  { %v5205_v24 = vadd.f32 %v3687_v21, %v3665_v18  ;;  %3987 = vmatpush3.bf16.msra.mxu1 %v4333_v37  ;;  %3966 = vmatprep.subr.bf16.mxu0 %v4334_v38  ;;  %v4364_v18 = vld [vmem:[%s5389_s1 + $0x868] sm:$0xff]  }
  0xfe   :  { %3988 = vmatprep.subr.bf16.mxu1 %v4335_v39  ;;  %v4367_v21 = vld [vmem:[%s5389_s1 + $0x8a8] sm:$0xff]  }
  0xff   :  { %v4381_v33 = vld [vmem:[%s5390_s0 + $0x8c] ss:$144 sps:$4 sm:$0xff]  }
 0x100   :  { %3967 = vmatpush3.bf16.msra.mxu0 %v4336_v40 }
 0x101   :  { %3989 = vmatpush3.bf16.msra.mxu1 %v4337_v41  ;;  %3996 = vmatprep.subr.bf16.mxu0 %v4344_v46 }
 0x102   :  { %4018 = vmatprep.subr.bf16.mxu1 %v4345_v47 }
 0x103   :  { %3141 = vmatmul.mubr.bf16.vlgmr.msra.gmra.mrb[28].mxu0 %v4338_v42 }
 0x104   :  { %3182 = vmatmul.mubr.bf16.vlgmr.msra.gmra.mrb[28].mxu1 %v4341_v44  ;;  %3997 = vmatpush3.bf16.msra.mxu0 %v4346_v48 }
 0x105   :  { %4019 = vmatpush3.bf16.msra.mxu1 %v4347_v49  ;;  %3998 = vmatprep.subr.bf16.mxu0 %v4348_v51 }
 0x106   :  { %4020 = vmatprep.subr.bf16.mxu1 %v4349_v53  ;;  %3222 = vmatprep.mubr.bf16.mxu0 %v4378_v31 }
 0x107   :  { %3263 = vmatprep.mubr.bf16.mxu1 %v4381_v33 }
 0x108   :  { %3999 = vmatpush3.bf16.msra.mxu0 %v4350_v56 }
 0x109   :  { %4021 = vmatpush3.bf16.msra.mxu1 %v4351_v58  ;;  %4000 = vmatprep.subr.bf16.mxu0 %v4352_v62 }
 0x10a   :  { %4022 = vmatprep.subr.bf16.mxu1 %v4353_v0 }
 0x10c   :  { %4001 = vmatpush3.bf16.msra.mxu0 %v4354_v3 }
 0x10d   :  { %4023 = vmatpush3.bf16.msra.mxu1 %v4355_v6  ;;  %4002 = vmatprep.subr.bf16.mxu0 %v4356_v8 }
 0x10e   :  { %4024 = vmatprep.subr.bf16.mxu1 %v4357_v10 }
 0x110   :  { %4003 = vmatpush3.bf16.msra.mxu0 %v4358_v11 }
 0x111   :  { %4025 = vmatpush3.bf16.msra.mxu1 %v4359_v13  ;;  %4004 = vmatprep.subr.bf16.mxu0 %v4360_v14 }
 0x114   :  { %4005 = vmatpush3.bf16.msra.mxu0 %v4362_v16 }
 0x115   :  { %4006 = vmatprep.subr.bf16.mxu0 %v4364_v18 }
 0x116   :  { %v3704_v50 = vpop.f32.mrb[4].mxu0 }
 0x117   :  { %v3705_v52 = vpop.f32.mrb[5].mxu0  ;;  %v3726_v54 = vpop.f32.mrb[4].mxu1 }
 0x118   :  { %v3706_v55 = vadd.f32 %v3705_v52, %v3704_v50  ;;  %v3727_v57 = vpop.f32.mrb[5].mxu1  ;;  %v3707_v61 = vpop.f32.mrb[6].mxu0  ;;  %4007 = vmatpush3.bf16.msra.mxu0 %v4366_v20 }
 0x119   :  { %v3728_v60 = vadd.f32 %v3727_v57, %v3726_v54  ;;  %v3729_v63 = vpop.f32.mrb[6].mxu1  ;;  %v3708_v2 = vpop.f32.mrb[7].mxu0  ;;  %4008 = vmatprep.subr.bf16.mxu0 %v4368_v22 }
 0x11a   :  { %v2651_v59 = vadd.f32 %v3706_v55, %v5191_v15  ;;  %v3709_v4 = vadd.f32 %v3708_v2, %v3707_v61  ;;  %v3730_v5 = vpop.f32.mrb[7].mxu1  ;;  %v4361_v15 = vld [vmem:[%s5389_s1 + $0x8e0] sm:$0xff]  }
 0x11b   :  { %v3731_v7 = vadd.f32 %v3730_v5, %v3729_v63  ;;  %4026 = vmatprep.subr.bf16.mxu1 %v4361_v15 }
 0x11c   :  { %v5301_v1 = vadd.f32 %v3728_v60, %v2651_v59  ;;  %v2654_v9 = vadd.f32 %v3709_v4, %v5205_v24  ;;  %4027 = vmatpush3.bf16.msra.mxu1 %v4363_v17  ;;  %v4370_v24 = vld [vmem:[%s5389_s1 + $0x830] sm:$0xff]  }
 0x11d   :  { %4028 = vmatprep.subr.bf16.mxu1 %v4365_v19  ;;  %4009 = vmatpush3.bf16.msra.mxu0 %v4370_v24 }
 0x11e   :  { %v2695_v12 = vadd.f32 %v3731_v7, %v2654_v9  ;;  %4010 = vmatprep.subr.bf16.mxu0 %v4372_v26 }
 0x120   :  { %4029 = vmatpush3.bf16.msra.mxu1 %v4367_v21 }
 0x121   :  { %4030 = vmatprep.subr.bf16.mxu1 %v4369_v23  ;;  %4011 = vmatpush3.bf16.msra.mxu0 %v4374_v28 }
 0x124   :  { %4031 = vmatpush3.bf16.msra.mxu1 %v4371_v25  ;;  %3223 = vmatmul.mubr.bf16.vlgmr.msra.gmra.mrb[32].mxu0 %v4376_v30 }
 0x125   :  { %4032 = vmatprep.subr.bf16.mxu1 %v4373_v27 }
 0x128   :  { %4033 = vmatpush3.bf16.msra.mxu1 %v4375_v29 }
 0x12b   :  { %3264 = vmatmul.mubr.bf16.vlgmr.msra.gmra.mrb[32].mxu1 %v4379_v32 }
 0x136   :  { %v3748_v34 = vpop.f32.mrb[8].mxu0 }
 0x137   :  { %v3770_v35 = vpop.f32.mrb[8].mxu1  ;;  %v3749_v36 = vpop.f32.mrb[9].mxu0 }
 0x138   :  { %v3750_v37 = vadd.f32 %v3749_v36, %v3748_v34  ;;  %v3771_v38 = vpop.f32.mrb[9].mxu1  ;;  %v3751_v39 = vpop.f32.mrb[10].mxu0 }
 0x139   :  { %v3772_v40 = vadd.f32 %v3771_v38, %v3770_v35  ;;  %v3773_v41 = vpop.f32.mrb[10].mxu1  ;;  %v3752_v42 = vpop.f32.mrb[11].mxu0 }
 0x13a   :  { %v2733_v43 = vadd.f32 %v3750_v37, %v5301_v1  ;;  %v3753_v44 = vadd.f32 %v3752_v42, %v3751_v39  ;;  %v3774_v45 = vpop.f32.mrb[11].mxu1 }
 0x13b   :  { %v3775_v46 = vadd.f32 %v3774_v45, %v3773_v41 }
 0x13c   :  { %v2774_v47 = vadd.f32 %v3772_v40, %v2733_v43  ;;  %v2736_v48 = vadd.f32 %v3753_v44, %v2695_v12 }
 0x13e   :  { %v2777_v49 = vadd.f32 %v3775_v46, %v2736_v48 }
 0x156   :  { %v3792_v50 = vpop.f32.mrb[12].mxu0 }
 0x157   :  { %v3814_v51 = vpop.f32.mrb[12].mxu1  ;;  %v3793_v52 = vpop.f32.mrb[13].mxu0 }
 0x158   :  { %v3794_v53 = vadd.f32 %v3793_v52, %v3792_v50  ;;  %v3815_v54 = vpop.f32.mrb[13].mxu1  ;;  %v3795_v55 = vpop.f32.mrb[14].mxu0 }
 0x159   :  { %v3816_v56 = vadd.f32 %v3815_v54, %v3814_v51  ;;  %v3817_v57 = vpop.f32.mrb[14].mxu1  ;;  %v3796_v58 = vpop.f32.mrb[15].mxu0 }
 0x15a   :  { %v2815_v59 = vadd.f32 %v3794_v53, %v2774_v47  ;;  %v3797_v60 = vadd.f32 %v3796_v58, %v3795_v55  ;;  %v3818_v61 = vpop.f32.mrb[15].mxu1 }
 0x15b   :  { %v3819_v62 = vadd.f32 %v3818_v61, %v3817_v57 }
 0x15c   :  { %v2856_v63 = vadd.f32 %v3816_v56, %v2815_v59  ;;  %v2818_v0 = vadd.f32 %v3797_v60, %v2777_v49 }
 0x15e   :  { %v2859_v1 = vadd.f32 %v3819_v62, %v2818_v0 }
 0x176   :  { %v3836_v2 = vpop.f32.mrb[16].mxu0 }
 0x177   :  { %v3837_v3 = vpop.f32.mrb[17].mxu0  ;;  %v3858_v4 = vpop.f32.mrb[16].mxu1 }
 0x178   :  { %v3838_v5 = vadd.f32 %v3837_v3, %v3836_v2  ;;  %v3839_v6 = vpop.f32.mrb[18].mxu0  ;;  %v3859_v7 = vpop.f32.mrb[17].mxu1 }
 0x179   :  { %v3840_v8 = vpop.f32.mrb[19].mxu0  ;;  %v3860_v10 = vadd.f32 %v3859_v7, %v3858_v4  ;;  %v3861_v11 = vpop.f32.mrb[18].mxu1 }
 0x17a   :  { %v2897_v9 = vadd.f32 %v3838_v5, %v2856_v63  ;;  %v3841_v12 = vadd.f32 %v3840_v8, %v3839_v6  ;;  %v3862_v13 = vpop.f32.mrb[19].mxu1 }
 0x17b   :  { %v3863_v16 = vadd.f32 %v3862_v13, %v3861_v11 }
 0x17c   :  { %v2938_v14 = vadd.f32 %v3860_v10, %v2897_v9  ;;  %v2900_v15 = vadd.f32 %v3841_v12, %v2859_v1 }
 0x17e   :  { %v2941_v17 = vadd.f32 %v3863_v16, %v2900_v15 }
 0x196   :  { %v3880_v18 = vpop.f32.mrb[20].mxu0 }
 0x197   :  { %v3902_v19 = vpop.f32.mrb[20].mxu1  ;;  %v3881_v20 = vpop.f32.mrb[21].mxu0 }
 0x198   :  { %v3882_v21 = vadd.f32 %v3881_v20, %v3880_v18  ;;  %v3903_v22 = vpop.f32.mrb[21].mxu1  ;;  %v3883_v23 = vpop.f32.mrb[22].mxu0 }
 0x199   :  { %v3904_v24 = vadd.f32 %v3903_v22, %v3902_v19  ;;  %v3905_v25 = vpop.f32.mrb[22].mxu1  ;;  %v3884_v26 = vpop.f32.mrb[23].mxu0 }
 0x19a   :  { %v2979_v27 = vadd.f32 %v3882_v21, %v2938_v14  ;;  %v3885_v28 = vadd.f32 %v3884_v26, %v3883_v23  ;;  %v3906_v29 = vpop.f32.mrb[23].mxu1 }
 0x19b   :  { %v3907_v30 = vadd.f32 %v3906_v29, %v3905_v25 }
 0x19c   :  { %v3020_v31 = vadd.f32 %v3904_v24, %v2979_v27  ;;  %v2982_v32 = vadd.f32 %v3885_v28, %v2941_v17 }
 0x19e   :  { %v3023_v33 = vadd.f32 %v3907_v30, %v2982_v32 }
 0x1b6   :  { %v3924_v34 = vpop.f32.mrb[24].mxu0 }
 0x1b7   :  { %v3946_v35 = vpop.f32.mrb[24].mxu1  ;;  %v3925_v36 = vpop.f32.mrb[25].mxu0 }
 0x1b8   :  { %v3926_v37 = vadd.f32 %v3925_v36, %v3924_v34  ;;  %v3947_v38 = vpop.f32.mrb[25].mxu1  ;;  %v3927_v39 = vpop.f32.mrb[26].mxu0 }
 0x1b9   :  { %v3948_v40 = vadd.f32 %v3947_v38, %v3946_v35  ;;  %v3949_v41 = vpop.f32.mrb[26].mxu1  ;;  %v3928_v42 = vpop.f32.mrb[27].mxu0 }
 0x1ba   :  { %v3061_v43 = vadd.f32 %v3926_v37, %v3020_v31  ;;  %v3929_v44 = vadd.f32 %v3928_v42, %v3927_v39  ;;  %v3950_v45 = vpop.f32.mrb[27].mxu1 }
 0x1bb   :  { %v3951_v46 = vadd.f32 %v3950_v45, %v3949_v41 }
 0x1bc   :  { %v3102_v47 = vadd.f32 %v3948_v40, %v3061_v43  ;;  %v3064_v48 = vadd.f32 %v3929_v44, %v3023_v33 }
 0x1be   :  { %v3105_v49 = vadd.f32 %v3951_v46, %v3064_v48 }
 0x1d6   :  { %v3968_v50 = vpop.f32.mrb[28].mxu0 }
 0x1d7   :  { %v3969_v51 = vpop.f32.mrb[29].mxu0  ;;  %v3990_v52 = vpop.f32.mrb[28].mxu1 }
 0x1d8   :  { %v3970_v53 = vadd.f32 %v3969_v51, %v3968_v50  ;;  %v3971_v54 = vpop.f32.mrb[30].mxu0  ;;  %v3991_v55 = vpop.f32.mrb[29].mxu1 }
 0x1d9   :  { %v3972_v56 = vpop.f32.mrb[31].mxu0  ;;  %v3992_v58 = vadd.f32 %v3991_v55, %v3990_v52  ;;  %v3993_v59 = vpop.f32.mrb[30].mxu1 }
 0x1da   :  { %v3143_v57 = vadd.f32 %v3970_v53, %v3102_v47  ;;  %v3973_v60 = vadd.f32 %v3972_v56, %v3971_v54  ;;  %v3994_v61 = vpop.f32.mrb[31].mxu1 }
 0x1db   :  { %v3995_v0 = vadd.f32 %v3994_v61, %v3993_v59 }
 0x1dc   :  { %v3184_v62 = vadd.f32 %v3992_v58, %v3143_v57  ;;  %v3146_v63 = vadd.f32 %v3973_v60, %v3105_v49 }
 0x1de   :  { %v3187_v1 = vadd.f32 %v3995_v0, %v3146_v63 }
 0x1f7   :  { %v4012_v2 = vpop.f32.mrb[32].mxu0 }
 0x1f8   :  { %v4013_v4 = vpop.f32.mrb[33].mxu0 }
 0x1f9   :  { %v4014_v5 = vadd.f32 %v4013_v4, %v4012_v2  ;;  %v4015_v7 = vpop.f32.mrb[34].mxu0 }
 0x1fa   :  { %v4016_v10 = vpop.f32.mrb[35].mxu0 }
 0x1fb   :  { %v3225_v11 = vadd.f32 %v4014_v5, %v3184_v62  ;;  %v4017_v12 = vadd.f32 %v4016_v10, %v4015_v7 }
 0x1fd   :  { %v3228_v16 = vadd.f32 %v4017_v12, %v3187_v1 }
 0x1fe   :  { %v4034_v3 = vpop.f32.mrb[32].mxu1 }
 0x1ff   :  { %v4035_v6 = vpop.f32.mrb[33].mxu1 }
 0x200   :  { %v4036_v8 = vadd.f32 %v4035_v6, %v4034_v3  ;;  %v4037_v9 = vpop.f32.mrb[34].mxu1 }
 0x201   :  { %v4038_v13 = vpop.f32.mrb[35].mxu1 }
 0x202   :  { %v4039_v14 = vadd.f32 %v4038_v13, %v4037_v9  ;;  %v3266_v15 = vadd.f32 %v4036_v8, %v3225_v11 }
 0x204   :  { %v3269_v17 = vadd.f32 %v4039_v14, %v3228_v16  ;;  %v3289_v18 = vmul.f32 %v3266_v15, %v3266_v15 }
 0x206   :  { %v3642_v19 = vpack.c.bf16 %v3269_v17, %v3266_v15  ;;  %v3282_v20 = vadd.f32 %v3269_v17, %v3266_v15  ;;  %v3290_v21 = vmul.f32 %v3269_v17, %v3269_v17 }
 0x208   :  { %3643 = vst [vmem:[%s5391_s2] sm:$0xff] %v3642_v19   ;;  %v3283_v22 = vrot.slane %v3282_v20, 4  ;;  %v3291_v23 = vadd.f32 %v3290_v21, %v3289_v18 }
 0x20a   :  { %v3284_v24 = vadd.f32 %v3283_v22, %v3282_v20  ;;  %v3292_v25 = vrot.slane %v3291_v23, 4 }
 0x20c   :  { %v3285_v26 = vrot.slane %v3284_v24, 2  ;;  %v3293_v27 = vadd.f32 %v3292_v25, %v3291_v23 }
 0x20e   :  { %v3286_v28 = vadd.f32 %v3285_v26, %v3284_v24  ;;  %v3294_v29 = vrot.slane %v3293_v27, 2 }
 0x210   :  { %v3287_v30 = vrot.slane %v3286_v28, 1  ;;  %v3295_v31 = vadd.f32 %v3294_v29, %v3293_v27 }
 0x212   :  { %v3296_v32 = vrot.slane %v3295_v31, 1  ;;  %v3288_v33 = vadd.f32 %v3287_v30, %v3286_v28 }
 0x214   :  { %v3297_v34 = vadd.f32 %v3296_v32, %v3295_v31 }
 0x216   :  { %v3299_v35 = vsel %vm3298_vm0, %v3288_v33, %v3297_v34 }
 0x217   :  { %v3301_v36 = vsel %vm3300_vm1, %v3299_v35, 0.0 }
 0x218   :  { %3302 = vst [vmem:[%s5392_s3] sm:$0xff] %v3301_v36 }

// kernel: encoder_forward.17
= control target key start
LH: loop header
LB: loop body
LE: loop exit
PB: predicated region body
PF: predicated region fallthrough
CT: control target
= control target key end

     0   :  { %s15489_s1 = inlined_call_operand.vmem [shape: bf16[4608,512], index: 1, kind: input, shape index: {}]   ;;  %s15490_s0 = inlined_call_operand.vmem [shape: bf16[16,4608], index: 0, kind: input, shape index: {}]   ;;  %s15491_s2 = inlined_call_operand.vmem [shape: f32[1,512], index: 2, kind: input, shape index: {}]   ;;  %s15492_s3 = inlined_call_operand.vmem [shape: bf16[16,512], index: 3, kind: output, shape index: {}]  }
   0x1   :  { %v10108_v0 = vld [vmem:[%s15489_s1 + $0x4] ss:$16 sps:$4 sm:$0xff]   ;;  %v10110_v1 = vld [vmem:[%s15489_s1 + $0xc] ss:$16 sps:$4 sm:$0xff]   ;;  %v10112_v2 = vld [vmem:[%s15489_s1] ss:$16 sps:$4 sm:$0xff]  }
   0x2   :  { %7164 = vmatprep.subr.bf16.mxu0 %v10108_v0  ;;  %v10113_v3 = vld [vmem:[%s15489_s1 + $0x8] ss:$16 sps:$4 sm:$0xff]   ;;  %7938 = vmatprep.subr.bf16.mxu1 %v10110_v1  ;;  %v10114_v4 = vld [vmem:[%s15489_s1 + $0x24] ss:$16 sps:$4 sm:$0xff]   ;;  %v10116_v5 = vld [vmem:[%s15489_s1 + $0x2c] ss:$16 sps:$4 sm:$0xff]  }
   0x3   :  { %7165 = vmatpush1.bf16.msra.mxu0 %v10112_v2  ;;  %7939 = vmatpush1.bf16.msra.mxu1 %v10113_v3  ;;  %v10118_v6 = vld [vmem:[%s15489_s1 + $0x20] ss:$16 sps:$4 sm:$0xff]   ;;  %v10119_v7 = vld [vmem:[%s15489_s1 + $0x28] ss:$16 sps:$4 sm:$0xff]   ;;  %v10120_v8 = vld [vmem:[%s15489_s1 + $0x44] ss:$16 sps:$4 sm:$0xff]  }
   0x4   :  { %7166 = vmatprep.subr.bf16.mxu0 %v10114_v4  ;;  %7940 = vmatprep.subr.bf16.mxu1 %v10116_v5  ;;  %v10122_v9 = vld [vmem:[%s15489_s1 + $0x4c] ss:$16 sps:$4 sm:$0xff]   ;;  %v10124_v10 = vld [vmem:[%s15489_s1 + $0x40] ss:$16 sps:$4 sm:$0xff]   ;;  %v10125_v11 = vld [vmem:[%s15489_s1 + $0x48] ss:$16 sps:$4 sm:$0xff]  }
   0x5   :  { %v10126_v12 = vld [vmem:[%s15489_s1 + $0x64] ss:$16 sps:$4 sm:$0xff]   ;;  %v10128_v13 = vld [vmem:[%s15489_s1 + $0x6c] ss:$16 sps:$4 sm:$0xff]   ;;  %v10130_v14 = vld [vmem:[%s15489_s1 + $0x60] ss:$16 sps:$4 sm:$0xff]  }
   0x6   :  { %v10131_v15 = vld [vmem:[%s15489_s1 + $0x68] ss:$16 sps:$4 sm:$0xff]   ;;  %v10132_v16 = vld [vmem:[%s15489_s1 + $0x84] ss:$16 sps:$4 sm:$0xff]   ;;  %v10134_v17 = vld [vmem:[%s15489_s1 + $0x8c] ss:$16 sps:$4 sm:$0xff]  }
   0x7   :  { %7167 = vmatpush1.bf16.msra.mxu0 %v10118_v6  ;;  %7941 = vmatpush1.bf16.msra.mxu1 %v10119_v7  ;;  %v10136_v18 = vld [vmem:[%s15489_s1 + $0x80] ss:$16 sps:$4 sm:$0xff]   ;;  %v10137_v19 = vld [vmem:[%s15489_s1 + $0x88] ss:$16 sps:$4 sm:$0xff]   ;;  %v10138_v20 = vld [vmem:[%s15489_s1 + $0xa4] ss:$16 sps:$4 sm:$0xff]  }
   0x8   :  { %7168 = vmatprep.subr.bf16.mxu0 %v10120_v8  ;;  %7942 = vmatprep.subr.bf16.mxu1 %v10122_v9  ;;  %v10140_v21 = vld [vmem:[%s15489_s1 + $0xac] ss:$16 sps:$4 sm:$0xff]   ;;  %v10142_v22 = vld [vmem:[%s15489_s1 + $0xa0] ss:$16 sps:$4 sm:$0xff]   ;;  %v10143_v23 = vld [vmem:[%s15489_s1 + $0xa8] ss:$16 sps:$4 sm:$0xff]  }
   0x9   :  { %v10144_v24 = vld [vmem:[%s15489_s1 + $0xc4] ss:$16 sps:$4 sm:$0xff]   ;;  %v10146_v25 = vld [vmem:[%s15489_s1 + $0xcc] ss:$16 sps:$4 sm:$0xff]   ;;  %v10148_v26 = vld [vmem:[%s15489_s1 + $0xc0] ss:$16 sps:$4 sm:$0xff]  }
   0xa   :  { %v10149_v27 = vld [vmem:[%s15489_s1 + $0xc8] ss:$16 sps:$4 sm:$0xff]   ;;  %v10150_v28 = vld [vmem:[%s15489_s1 + $0xe4] ss:$16 sps:$4 sm:$0xff]   ;;  %v10152_v29 = vld [vmem:[%s15489_s1 + $0xec] ss:$16 sps:$4 sm:$0xff]  }
   0xb   :  { %7169 = vmatpush1.bf16.msra.mxu0 %v10124_v10  ;;  %7943 = vmatpush1.bf16.msra.mxu1 %v10125_v11  ;;  %v10154_v30 = vld [vmem:[%s15489_s1 + $0xe0] ss:$16 sps:$4 sm:$0xff]   ;;  %v10155_v31 = vld [vmem:[%s15489_s1 + $0xe8] ss:$16 sps:$4 sm:$0xff]   ;;  %v10156_v32 = vld [vmem:[%s15489_s1 + $0x104] ss:$16 sps:$4 sm:$0xff]  }
   0xc   :  { %7170 = vmatprep.subr.bf16.mxu0 %v10126_v12  ;;  %7944 = vmatprep.subr.bf16.mxu1 %v10128_v13  ;;  %v10158_v33 = vld [vmem:[%s15489_s1 + $0x10c] ss:$16 sps:$4 sm:$0xff]   ;;  %v10160_v34 = vld [vmem:[%s15489_s1 + $0x100] ss:$16 sps:$4 sm:$0xff]   ;;  %v10161_v35 = vld [vmem:[%s15489_s1 + $0x108] ss:$16 sps:$4 sm:$0xff]  }
   0xd   :  { %v10162_v36 = vld [vmem:[%s15489_s1 + $0x124] ss:$16 sps:$4 sm:$0xff]   ;;  %v10164_v37 = vld [vmem:[%s15489_s1 + $0x12c] ss:$16 sps:$4 sm:$0xff]   ;;  %v10166_v38 = vld [vmem:[%s15489_s1 + $0x120] ss:$16 sps:$4 sm:$0xff]  }
   0xe   :  { %v10167_v39 = vld [vmem:[%s15489_s1 + $0x128] ss:$16 sps:$4 sm:$0xff]   ;;  %v10168_v40 = vld [vmem:[%s15489_s1 + $0x144] ss:$16 sps:$4 sm:$0xff]   ;;  %v10170_v41 = vld [vmem:[%s15489_s1 + $0x14c] ss:$16 sps:$4 sm:$0xff]  }
   0xf   :  { %7171 = vmatpush1.bf16.msra.mxu0 %v10130_v14  ;;  %7945 = vmatpush1.bf16.msra.mxu1 %v10131_v15  ;;  %v10172_v42 = vld [vmem:[%s15489_s1 + $0x140] ss:$16 sps:$4 sm:$0xff]   ;;  %v10173_v43 = vld [vmem:[%s15489_s1 + $0x148] ss:$16 sps:$4 sm:$0xff]   ;;  %v10174_v44 = vld [vmem:[%s15489_s1 + $0x164] ss:$16 sps:$4 sm:$0xff]  }
  0x10   :  { %7172 = vmatprep.subr.bf16.mxu0 %v10132_v16  ;;  %7946 = vmatprep.subr.bf16.mxu1 %v10134_v17  ;;  %v10176_v45 = vld [vmem:[%s15489_s1 + $0x16c] ss:$16 sps:$4 sm:$0xff]   ;;  %v10178_v46 = vld [vmem:[%s15489_s1 + $0x160] ss:$16 sps:$4 sm:$0xff]   ;;  %v10179_v47 = vld [vmem:[%s15489_s1 + $0x168] ss:$16 sps:$4 sm:$0xff]  }
  0x11   :  { %v10206_v48 = vld [vmem:[%s15490_s0 + $0x4] ss:$144 sps:$4 sm:$0xff]   ;;  %v10182_v50 = vld [vmem:[%s15489_s1 + $0x18c] ss:$16 sps:$4 sm:$0xff]   ;;  %v10184_v51 = vld [vmem:[%s15489_s1 + $0x180] ss:$16 sps:$4 sm:$0xff]  }
  0x12   :  { %v10180_v49 = vld [vmem:[%s15489_s1 + $0x184] ss:$16 sps:$4 sm:$0xff]   ;;  %7196 = vmatprep.mubr.bf16.mxu0 %v10206_v48  ;;  %7970 = vmatprep.mubr.bf16.mxu1 %v10206_v48  ;;  %v10185_v52 = vld [vmem:[%s15489_s1 + $0x188] ss:$16 sps:$4 sm:$0xff]   ;;  %v10188_v54 = vld [vmem:[%s15489_s1 + $0x1ac] ss:$16 sps:$4 sm:$0xff]  }
  0x13   :  { %7173 = vmatpush1.bf16.msra.mxu0 %v10136_v18  ;;  %7947 = vmatpush1.bf16.msra.mxu1 %v10137_v19  ;;  %v10186_v53 = vld [vmem:[%s15489_s1 + $0x1a4] ss:$16 sps:$4 sm:$0xff]   ;;  %v10190_v55 = vld [vmem:[%s15489_s1 + $0x1a0] ss:$16 sps:$4 sm:$0xff]   ;;  %v10191_v56 = vld [vmem:[%s15489_s1 + $0x1a8] ss:$16 sps:$4 sm:$0xff]  }
  0x14   :  { %7174 = vmatprep.subr.bf16.mxu0 %v10138_v20  ;;  %7948 = vmatprep.subr.bf16.mxu1 %v10140_v21  ;;  %v10192_v57 = vld [vmem:[%s15489_s1 + $0x1c4] ss:$16 sps:$4 sm:$0xff]   ;;  %v10194_v58 = vld [vmem:[%s15489_s1 + $0x1cc] ss:$16 sps:$4 sm:$0xff]   ;;  %v10196_v59 = vld [vmem:[%s15489_s1 + $0x1c0] ss:$16 sps:$4 sm:$0xff]  }
  0x15   :  { %v10197_v60 = vld [vmem:[%s15489_s1 + $0x1c8] ss:$16 sps:$4 sm:$0xff]   ;;  %v10198_v61 = vld [vmem:[%s15489_s1 + $0x1e4] ss:$16 sps:$4 sm:$0xff]   ;;  %v10200_v62 = vld [vmem:[%s15489_s1 + $0x1ec] ss:$16 sps:$4 sm:$0xff]  }
  0x16   :  { %v10202_v63 = vld [vmem:[%s15489_s1 + $0x1e0] ss:$16 sps:$4 sm:$0xff]   ;;  %v10203_v0 = vld [vmem:[%s15489_s1 + $0x1e8] ss:$16 sps:$4 sm:$0xff]   ;;  %v10209_v1 = vld [vmem:[%s15489_s1 + $0x204] ss:$16 sps:$4 sm:$0xff]  }
  0x17   :  { %7175 = vmatpush1.bf16.msra.mxu0 %v10142_v22  ;;  %7949 = vmatpush1.bf16.msra.mxu1 %v10143_v23  ;;  %v10212_v2 = vld [vmem:[%s15489_s1 + $0x20c] ss:$16 sps:$4 sm:$0xff]   ;;  %v10204_v3 = vld [vmem:[%s15490_s0] ss:$144 sps:$4 sm:$0xff]   ;;  %v10210_v5 = vld [vmem:[%s15489_s1 + $0x208] ss:$16 sps:$4 sm:$0xff]  }
  0x18   :  { %7176 = vmatprep.subr.bf16.mxu0 %v10144_v24  ;;  %7950 = vmatprep.subr.bf16.mxu1 %v10146_v25  ;;  %v10207_v4 = vld [vmem:[%s15489_s1 + $0x200] ss:$16 sps:$4 sm:$0xff]   ;;  %v10215_v6 = vld [vmem:[%s15489_s1 + $0x224] ss:$16 sps:$4 sm:$0xff]   ;;  %v10218_v7 = vld [vmem:[%s15489_s1 + $0x22c] ss:$16 sps:$4 sm:$0xff]  }
  0x19   :  { %v10213_v8 = vld [vmem:[%s15489_s1 + $0x220] ss:$16 sps:$4 sm:$0xff]   ;;  %v10216_v9 = vld [vmem:[%s15489_s1 + $0x228] ss:$16 sps:$4 sm:$0xff]   ;;  %v10221_v10 = vld [vmem:[%s15489_s1 + $0x244] ss:$16 sps:$4 sm:$0xff]  }
  0x1a   :  { %v10224_v11 = vld [vmem:[%s15489_s1 + $0x24c] ss:$16 sps:$4 sm:$0xff]   ;;  %v10219_v12 = vld [vmem:[%s15489_s1 + $0x240] ss:$16 sps:$4 sm:$0xff]   ;;  %v10222_v13 = vld [vmem:[%s15489_s1 + $0x248] ss:$16 sps:$4 sm:$0xff]  }
  0x1b   :  { %7177 = vmatpush1.bf16.msra.mxu0 %v10148_v26  ;;  %7951 = vmatpush1.bf16.msra.mxu1 %v10149_v27  ;;  %v10227_v14 = vld [vmem:[%s15489_s1 + $0x264] ss:$16 sps:$4 sm:$0xff]   ;;  %v10230_v15 = vld [vmem:[%s15489_s1 + $0x26c] ss:$16 sps:$4 sm:$0xff]   ;;  %v10225_v16 = vld [vmem:[%s15489_s1 + $0x260] ss:$16 sps:$4 sm:$0xff]  }
  0x1c   :  { %7178 = vmatprep.subr.bf16.mxu0 %v10150_v28  ;;  %7952 = vmatprep.subr.bf16.mxu1 %v10152_v29  ;;  %v10228_v17 = vld [vmem:[%s15489_s1 + $0x268] ss:$16 sps:$4 sm:$0xff]   ;;  %v10233_v18 = vld [vmem:[%s15489_s1 + $0x284] ss:$16 sps:$4 sm:$0xff]   ;;  %v10236_v19 = vld [vmem:[%s15489_s1 + $0x28c] ss:$16 sps:$4 sm:$0xff]  }
  0x1d   :  { %v10231_v20 = vld [vmem:[%s15489_s1 + $0x280] ss:$16 sps:$4 sm:$0xff]   ;;  %v10234_v21 = vld [vmem:[%s15489_s1 + $0x288] ss:$16 sps:$4 sm:$0xff]   ;;  %v10239_v22 = vld [vmem:[%s15489_s1 + $0x2a4] ss:$16 sps:$4 sm:$0xff]  }
  0x1e   :  { %v10242_v23 = vld [vmem:[%s15489_s1 + $0x2ac] ss:$16 sps:$4 sm:$0xff]   ;;  %v10237_v24 = vld [vmem:[%s15489_s1 + $0x2a0] ss:$16 sps:$4 sm:$0xff]   ;;  %v10240_v25 = vld [vmem:[%s15489_s1 + $0x2a8] ss:$16 sps:$4 sm:$0xff]  }
  0x1f   :  { %7179 = vmatpush1.bf16.msra.mxu0 %v10154_v30  ;;  %7953 = vmatpush1.bf16.msra.mxu1 %v10155_v31  ;;  %v10245_v26 = vld [vmem:[%s15489_s1 + $0x2c4] ss:$16 sps:$4 sm:$0xff]   ;;  %v10248_v27 = vld [vmem:[%s15489_s1 + $0x2cc] ss:$16 sps:$4 sm:$0xff]   ;;  %v10243_v28 = vld [vmem:[%s15489_s1 + $0x2c0] ss:$16 sps:$4 sm:$0xff]  }
  0x20   :  { %7180 = vmatprep.subr.bf16.mxu0 %v10156_v32  ;;  %7954 = vmatprep.subr.bf16.mxu1 %v10158_v33  ;;  %v10246_v29 = vld [vmem:[%s15489_s1 + $0x2c8] ss:$16 sps:$4 sm:$0xff]   ;;  %v10305_v30 = vld [vmem:[%s15490_s0 + $0xc] ss:$144 sps:$4 sm:$0xff]   ;;  %v10251_v31 = vld [vmem:[%s15489_s1 + $0x2e4] ss:$16 sps:$4 sm:$0xff]  }
  0x21   :  { %v10254_v32 = vld [vmem:[%s15489_s1 + $0x2ec] ss:$16 sps:$4 sm:$0xff]   ;;  %v10249_v33 = vld [vmem:[%s15489_s1 + $0x2e0] ss:$16 sps:$4 sm:$0xff]  }
  0x22   :  { %v10278_v48 = vld [vmem:[%s15489_s1 + $0x36c] ss:$16 sps:$4 sm:$0xff]  }
  0x23   :  { %7181 = vmatpush1.bf16.msra.mxu0 %v10160_v34  ;;  %7955 = vmatpush1.bf16.msra.mxu1 %v10161_v35  ;;  %v10252_v34 = vld [vmem:[%s15489_s1 + $0x2e8] ss:$16 sps:$4 sm:$0xff]   ;;  %v10257_v35 = vld [vmem:[%s15489_s1 + $0x304] ss:$16 sps:$4 sm:$0xff]  }
  0x24   :  { %7182 = vmatprep.subr.bf16.mxu0 %v10162_v36  ;;  %7956 = vmatprep.subr.bf16.mxu1 %v10164_v37  ;;  %v10260_v36 = vld [vmem:[%s15489_s1 + $0x30c] ss:$16 sps:$4 sm:$0xff]   ;;  %v10255_v37 = vld [vmem:[%s15489_s1 + $0x300] ss:$16 sps:$4 sm:$0xff]  }
  0x27   :  { %7183 = vmatpush1.bf16.msra.mxu0 %v10166_v38  ;;  %7957 = vmatpush1.bf16.msra.mxu1 %v10167_v39  ;;  %v10258_v38 = vld [vmem:[%s15489_s1 + $0x308] ss:$16 sps:$4 sm:$0xff]   ;;  %v10263_v39 = vld [vmem:[%s15489_s1 + $0x324] ss:$16 sps:$4 sm:$0xff]  }
  0x28   :  { %7184 = vmatprep.subr.bf16.mxu0 %v10168_v40  ;;  %7958 = vmatprep.subr.bf16.mxu1 %v10170_v41  ;;  %v10266_v40 = vld [vmem:[%s15489_s1 + $0x32c] ss:$16 sps:$4 sm:$0xff]   ;;  %v10261_v41 = vld [vmem:[%s15489_s1 + $0x320] ss:$16 sps:$4 sm:$0xff]  }
  0x2b   :  { %7185 = vmatpush1.bf16.msra.mxu0 %v10172_v42  ;;  %7959 = vmatpush1.bf16.msra.mxu1 %v10173_v43  ;;  %v10264_v42 = vld [vmem:[%s15489_s1 + $0x328] ss:$16 sps:$4 sm:$0xff]   ;;  %v10269_v43 = vld [vmem:[%s15489_s1 + $0x344] ss:$16 sps:$4 sm:$0xff]  }
  0x2c   :  { %7186 = vmatprep.subr.bf16.mxu0 %v10174_v44  ;;  %7960 = vmatprep.subr.bf16.mxu1 %v10176_v45  ;;  %v10272_v44 = vld [vmem:[%s15489_s1 + $0x34c] ss:$16 sps:$4 sm:$0xff]   ;;  %v10267_v45 = vld [vmem:[%s15489_s1 + $0x340] ss:$16 sps:$4 sm:$0xff]  }
  0x2f   :  { %7187 = vmatpush1.bf16.msra.mxu0 %v10178_v46  ;;  %7961 = vmatpush1.bf16.msra.mxu1 %v10179_v47  ;;  %v10270_v46 = vld [vmem:[%s15489_s1 + $0x348] ss:$16 sps:$4 sm:$0xff]   ;;  %v10275_v47 = vld [vmem:[%s15489_s1 + $0x364] ss:$16 sps:$4 sm:$0xff]  }
  0x30   :  { %7188 = vmatprep.subr.bf16.mxu0 %v10180_v49  ;;  %7962 = vmatprep.subr.bf16.mxu1 %v10182_v50  ;;  %v10273_v49 = vld [vmem:[%s15489_s1 + $0x360] ss:$16 sps:$4 sm:$0xff]   ;;  %v10276_v50 = vld [vmem:[%s15489_s1 + $0x368] ss:$16 sps:$4 sm:$0xff]  }
  0x33   :  { %7189 = vmatpush1.bf16.msra.mxu0 %v10184_v51  ;;  %7963 = vmatpush1.bf16.msra.mxu1 %v10185_v52  ;;  %v10281_v51 = vld [vmem:[%s15489_s1 + $0x384] ss:$16 sps:$4 sm:$0xff]   ;;  %v10284_v52 = vld [vmem:[%s15489_s1 + $0x38c] ss:$16 sps:$4 sm:$0xff]  }
  0x34   :  { %7190 = vmatprep.subr.bf16.mxu0 %v10186_v53  ;;  %7964 = vmatprep.subr.bf16.mxu1 %v10188_v54  ;;  %v10279_v53 = vld [vmem:[%s15489_s1 + $0x380] ss:$16 sps:$4 sm:$0xff]   ;;  %v10282_v54 = vld [vmem:[%s15489_s1 + $0x388] ss:$16 sps:$4 sm:$0xff]  }
  0x37   :  { %7191 = vmatpush1.bf16.msra.mxu0 %v10190_v55  ;;  %7965 = vmatpush1.bf16.msra.mxu1 %v10191_v56  ;;  %v10287_v55 = vld [vmem:[%s15489_s1 + $0x3a4] ss:$16 sps:$4 sm:$0xff]   ;;  %v10290_v56 = vld [vmem:[%s15489_s1 + $0x3ac] ss:$16 sps:$4 sm:$0xff]  }
  0x38   :  { %7192 = vmatprep.subr.bf16.mxu0 %v10192_v57  ;;  %7966 = vmatprep.subr.bf16.mxu1 %v10194_v58  ;;  %v10285_v57 = vld [vmem:[%s15489_s1 + $0x3a0] ss:$16 sps:$4 sm:$0xff]   ;;  %v10288_v58 = vld [vmem:[%s15489_s1 + $0x3a8] ss:$16 sps:$4 sm:$0xff]  }
  0x3b   :  { %7193 = vmatpush1.bf16.msra.mxu0 %v10196_v59  ;;  %7967 = vmatpush1.bf16.msra.mxu1 %v10197_v60  ;;  %v10293_v59 = vld [vmem:[%s15489_s1 + $0x3c4] ss:$16 sps:$4 sm:$0xff]   ;;  %v10296_v60 = vld [vmem:[%s15489_s1 + $0x3cc] ss:$16 sps:$4 sm:$0xff]  }
  0x3c   :  { %7194 = vmatprep.subr.bf16.mxu0 %v10198_v61  ;;  %7968 = vmatprep.subr.bf16.mxu1 %v10200_v62  ;;  %v10291_v61 = vld [vmem:[%s15489_s1 + $0x3c0] ss:$16 sps:$4 sm:$0xff]   ;;  %v10294_v62 = vld [vmem:[%s15489_s1 + $0x3c8] ss:$16 sps:$4 sm:$0xff]  }
  0x3f   :  { %7195 = vmatpush1.bf16.msra.mxu0 %v10202_v63  ;;  %7969 = vmatpush1.bf16.msra.mxu1 %v10203_v0  ;;  %v10299_v63 = vld [vmem:[%s15489_s1 + $0x3e4] ss:$16 sps:$4 sm:$0xff]   ;;  %v10302_v0 = vld [vmem:[%s15489_s1 + $0x3ec] ss:$16 sps:$4 sm:$0xff]  }
  0x40   :  { %7207 = vmatprep.subr.bf16.mxu0 %v10209_v1  ;;  %7981 = vmatprep.subr.bf16.mxu1 %v10212_v2  ;;  %v10297_v1 = vld [vmem:[%s15489_s1 + $0x3e0] ss:$16 sps:$4 sm:$0xff]   ;;  %v10300_v2 = vld [vmem:[%s15489_s1 + $0x3e8] ss:$16 sps:$4 sm:$0xff]  }
  0x42   :  { %7197 = vmatmul.mubr.bf16.vlgmr.msra.gmra.mrb[0].mxu0 %v10204_v3  ;;  %7971 = vmatmul.mubr.bf16.vlgmr.msra.gmra.mrb[0].mxu1 %v10204_v3  ;;  %v10308_v3 = vld [vmem:[%s15489_s1 + $0x404] ss:$16 sps:$4 sm:$0xff]  }
  0x43   :  { %7208 = vmatpush1.bf16.msra.mxu0 %v10207_v4  ;;  %7982 = vmatpush1.bf16.msra.mxu1 %v10210_v5  ;;  %v10311_v4 = vld [vmem:[%s15489_s1 + $0x40c] ss:$16 sps:$4 sm:$0xff]   ;;  %v10303_v5 = vld [vmem:[%s15490_s0 + $0x8] ss:$144 sps:$4 sm:$0xff]  }
  0x44   :  { %7209 = vmatprep.subr.bf16.mxu0 %v10215_v6  ;;  %7983 = vmatprep.subr.bf16.mxu1 %v10218_v7  ;;  %v10306_v6 = vld [vmem:[%s15489_s1 + $0x400] ss:$16 sps:$4 sm:$0xff]   ;;  %v10309_v7 = vld [vmem:[%s15489_s1 + $0x408] ss:$16 sps:$4 sm:$0xff]  }
  0x45   :  { %7239 = vmatprep.mubr.bf16.mxu0 %v10305_v30  ;;  %8013 = vmatprep.mubr.bf16.mxu1 %v10305_v30  ;;  %v10347_v30 = vld [vmem:[%s15489_s1 + $0x4cc] ss:$16 sps:$4 sm:$0xff]  }
  0x47   :  { %7210 = vmatpush1.bf16.msra.mxu0 %v10213_v8  ;;  %7984 = vmatpush1.bf16.msra.mxu1 %v10216_v9  ;;  %v10314_v8 = vld [vmem:[%s15489_s1 + $0x424] ss:$16 sps:$4 sm:$0xff]   ;;  %v10317_v9 = vld [vmem:[%s15489_s1 + $0x42c] ss:$16 sps:$4 sm:$0xff]  }
  0x48   :  { %7211 = vmatprep.subr.bf16.mxu0 %v10221_v10  ;;  %7985 = vmatprep.subr.bf16.mxu1 %v10224_v11  ;;  %v10312_v10 = vld [vmem:[%s15489_s1 + $0x420] ss:$16 sps:$4 sm:$0xff]   ;;  %v10315_v11 = vld [vmem:[%s15489_s1 + $0x428] ss:$16 sps:$4 sm:$0xff]  }
  0x4b   :  { %7212 = vmatpush1.bf16.msra.mxu0 %v10219_v12  ;;  %7986 = vmatpush1.bf16.msra.mxu1 %v10222_v13  ;;  %v10404_v12 = vld [vmem:[%s15490_s0 + $0x14] ss:$144 sps:$4 sm:$0xff]  }
  0x4c   :  { %7213 = vmatprep.subr.bf16.mxu0 %v10227_v14  ;;  %7987 = vmatprep.subr.bf16.mxu1 %v10230_v15  ;;  %v10320_v13 = vld [vmem:[%s15489_s1 + $0x444] ss:$16 sps:$4 sm:$0xff]   ;;  %v10323_v14 = vld [vmem:[%s15489_s1 + $0x44c] ss:$16 sps:$4 sm:$0xff]   ;;  %v10318_v15 = vld [vmem:[%s15489_s1 + $0x440] ss:$16 sps:$4 sm:$0xff]  }
  0x4f   :  { %7214 = vmatpush1.bf16.msra.mxu0 %v10225_v16  ;;  %7988 = vmatpush1.bf16.msra.mxu1 %v10228_v17  ;;  %v10321_v16 = vld [vmem:[%s15489_s1 + $0x448] ss:$16 sps:$4 sm:$0xff]   ;;  %v10326_v17 = vld [vmem:[%s15489_s1 + $0x464] ss:$16 sps:$4 sm:$0xff]  }
  0x50   :  { %7215 = vmatprep.subr.bf16.mxu0 %v10233_v18  ;;  %7989 = vmatprep.subr.bf16.mxu1 %v10236_v19  ;;  %v10329_v18 = vld [vmem:[%s15489_s1 + $0x46c] ss:$16 sps:$4 sm:$0xff]   ;;  %v10324_v19 = vld [vmem:[%s15489_s1 + $0x460] ss:$16 sps:$4 sm:$0xff]  }
  0x53   :  { %7216 = vmatpush1.bf16.msra.mxu0 %v10231_v20  ;;  %7990 = vmatpush1.bf16.msra.mxu1 %v10234_v21  ;;  %v10327_v20 = vld [vmem:[%s15489_s1 + $0x468] ss:$16 sps:$4 sm:$0xff]   ;;  %v10332_v21 = vld [vmem:[%s15489_s1 + $0x484] ss:$16 sps:$4 sm:$0xff]  }
  0x54   :  { %7217 = vmatprep.subr.bf16.mxu0 %v10239_v22  ;;  %7991 = vmatprep.subr.bf16.mxu1 %v10242_v23  ;;  %v10335_v22 = vld [vmem:[%s15489_s1 + $0x48c] ss:$16 sps:$4 sm:$0xff]   ;;  %v10330_v23 = vld [vmem:[%s15489_s1 + $0x480] ss:$16 sps:$4 sm:$0xff]  }
  0x57   :  { %7218 = vmatpush1.bf16.msra.mxu0 %v10237_v24  ;;  %7992 = vmatpush1.bf16.msra.mxu1 %v10240_v25  ;;  %v10333_v24 = vld [vmem:[%s15489_s1 + $0x488] ss:$16 sps:$4 sm:$0xff]   ;;  %v10338_v25 = vld [vmem:[%s15489_s1 + $0x4a4] ss:$16 sps:$4 sm:$0xff]  }
  0x58   :  { %7219 = vmatprep.subr.bf16.mxu0 %v10245_v26  ;;  %7993 = vmatprep.subr.bf16.mxu1 %v10248_v27  ;;  %v10341_v26 = vld [vmem:[%s15489_s1 + $0x4ac] ss:$16 sps:$4 sm:$0xff]   ;;  %v10336_v27 = vld [vmem:[%s15489_s1 + $0x4a0] ss:$16 sps:$4 sm:$0xff]  }
  0x5b   :  { %7220 = vmatpush1.bf16.msra.mxu0 %v10243_v28  ;;  %7994 = vmatpush1.bf16.msra.mxu1 %v10246_v29  ;;  %v10339_v28 = vld [vmem:[%s15489_s1 + $0x4a8] ss:$16 sps:$4 sm:$0xff]   ;;  %v10344_v29 = vld [vmem:[%s15489_s1 + $0x4c4] ss:$16 sps:$4 sm:$0xff]  }
  0x5c   :  { %7221 = vmatprep.subr.bf16.mxu0 %v10251_v31  ;;  %7995 = vmatprep.subr.bf16.mxu1 %v10254_v32  ;;  %v10342_v31 = vld [vmem:[%s15489_s1 + $0x4c0] ss:$16 sps:$4 sm:$0xff]   ;;  %v10345_v32 = vld [vmem:[%s15489_s1 + $0x4c8] ss:$16 sps:$4 sm:$0xff]  }
  0x5f   :  { %7222 = vmatpush1.bf16.msra.mxu0 %v10249_v33  ;;  %7996 = vmatpush1.bf16.msra.mxu1 %v10252_v34  ;;  %v10350_v33 = vld [vmem:[%s15489_s1 + $0x4e4] ss:$16 sps:$4 sm:$0xff]   ;;  %v10353_v34 = vld [vmem:[%s15489_s1 + $0x4ec] ss:$16 sps:$4 sm:$0xff]  }
  0x60   :  { %7223 = vmatprep.subr.bf16.mxu0 %v10257_v35  ;;  %7997 = vmatprep.subr.bf16.mxu1 %v10260_v36  ;;  %v10348_v35 = vld [vmem:[%s15489_s1 + $0x4e0] ss:$16 sps:$4 sm:$0xff]   ;;  %v10351_v36 = vld [vmem:[%s15489_s1 + $0x4e8] ss:$16 sps:$4 sm:$0xff]  }
  0x63   :  { %7224 = vmatpush1.bf16.msra.mxu0 %v10255_v37  ;;  %7998 = vmatpush1.bf16.msra.mxu1 %v10258_v38  ;;  %v10356_v37 = vld [vmem:[%s15489_s1 + $0x504] ss:$16 sps:$4 sm:$0xff]   ;;  %v10359_v38 = vld [vmem:[%s15489_s1 + $0x50c] ss:$16 sps:$4 sm:$0xff]  }
  0x64   :  { %7225 = vmatprep.subr.bf16.mxu0 %v10263_v39  ;;  %7999 = vmatprep.subr.bf16.mxu1 %v10266_v40  ;;  %v10354_v39 = vld [vmem:[%s15489_s1 + $0x500] ss:$16 sps:$4 sm:$0xff]   ;;  %v10357_v40 = vld [vmem:[%s15489_s1 + $0x508] ss:$16 sps:$4 sm:$0xff]  }
  0x67   :  { %7226 = vmatpush1.bf16.msra.mxu0 %v10261_v41  ;;  %8000 = vmatpush1.bf16.msra.mxu1 %v10264_v42  ;;  %v10362_v41 = vld [vmem:[%s15489_s1 + $0x524] ss:$16 sps:$4 sm:$0xff]   ;;  %v10365_v42 = vld [vmem:[%s15489_s1 + $0x52c] ss:$16 sps:$4 sm:$0xff]  }
  0x68   :  { %7227 = vmatprep.subr.bf16.mxu0 %v10269_v43  ;;  %8001 = vmatprep.subr.bf16.mxu1 %v10272_v44  ;;  %v10360_v43 = vld [vmem:[%s15489_s1 + $0x520] ss:$16 sps:$4 sm:$0xff]   ;;  %v10363_v44 = vld [vmem:[%s15489_s1 + $0x528] ss:$16 sps:$4 sm:$0xff]  }
  0x6b   :  { %7228 = vmatpush1.bf16.msra.mxu0 %v10267_v45  ;;  %8002 = vmatpush1.bf16.msra.mxu1 %v10270_v46  ;;  %v10368_v45 = vld [vmem:[%s15489_s1 + $0x544] ss:$16 sps:$4 sm:$0xff]   ;;  %v10371_v46 = vld [vmem:[%s15489_s1 + $0x54c] ss:$16 sps:$4 sm:$0xff]  }
  0x6c   :  { %7229 = vmatprep.subr.bf16.mxu0 %v10275_v47  ;;  %8003 = vmatprep.subr.bf16.mxu1 %v10278_v48  ;;  %v10366_v47 = vld [vmem:[%s15489_s1 + $0x540] ss:$16 sps:$4 sm:$0xff]   ;;  %v10369_v48 = vld [vmem:[%s15489_s1 + $0x548] ss:$16 sps:$4 sm:$0xff]  }
  0x6f   :  { %7230 = vmatpush1.bf16.msra.mxu0 %v10273_v49  ;;  %8004 = vmatpush1.bf16.msra.mxu1 %v10276_v50  ;;  %v10374_v49 = vld [vmem:[%s15489_s1 + $0x564] ss:$16 sps:$4 sm:$0xff]   ;;  %v10377_v50 = vld [vmem:[%s15489_s1 + $0x56c] ss:$16 sps:$4 sm:$0xff]  }
  0x70   :  { %7231 = vmatprep.subr.bf16.mxu0 %v10281_v51  ;;  %8005 = vmatprep.subr.bf16.mxu1 %v10284_v52  ;;  %v10372_v51 = vld [vmem:[%s15489_s1 + $0x560] ss:$16 sps:$4 sm:$0xff]   ;;  %v10375_v52 = vld [vmem:[%s15489_s1 + $0x568] ss:$16 sps:$4 sm:$0xff]  }
  0x73   :  { %7232 = vmatpush1.bf16.msra.mxu0 %v10279_v53  ;;  %8006 = vmatpush1.bf16.msra.mxu1 %v10282_v54  ;;  %v10380_v53 = vld [vmem:[%s15489_s1 + $0x584] ss:$16 sps:$4 sm:$0xff]   ;;  %v10383_v54 = vld [vmem:[%s15489_s1 + $0x58c] ss:$16 sps:$4 sm:$0xff]  }
  0x74   :  { %7233 = vmatprep.subr.bf16.mxu0 %v10287_v55  ;;  %8007 = vmatprep.subr.bf16.mxu1 %v10290_v56  ;;  %v10378_v55 = vld [vmem:[%s15489_s1 + $0x580] ss:$16 sps:$4 sm:$0xff]   ;;  %v10381_v56 = vld [vmem:[%s15489_s1 + $0x588] ss:$16 sps:$4 sm:$0xff]  }
  0x77   :  { %7234 = vmatpush1.bf16.msra.mxu0 %v10285_v57  ;;  %8008 = vmatpush1.bf16.msra.mxu1 %v10288_v58  ;;  %v10386_v57 = vld [vmem:[%s15489_s1 + $0x5a4] ss:$16 sps:$4 sm:$0xff]   ;;  %v10389_v58 = vld [vmem:[%s15489_s1 + $0x5ac] ss:$16 sps:$4 sm:$0xff]  }
  0x78   :  { %7235 = vmatprep.subr.bf16.mxu0 %v10293_v59  ;;  %8009 = vmatprep.subr.bf16.mxu1 %v10296_v60  ;;  %v10384_v59 = vld [vmem:[%s15489_s1 + $0x5a0] ss:$16 sps:$4 sm:$0xff]   ;;  %v10387_v60 = vld [vmem:[%s15489_s1 + $0x5a8] ss:$16 sps:$4 sm:$0xff]  }
  0x7b   :  { %7236 = vmatpush1.bf16.msra.mxu0 %v10291_v61  ;;  %8010 = vmatpush1.bf16.msra.mxu1 %v10294_v62  ;;  %v10392_v61 = vld [vmem:[%s15489_s1 + $0x5c4] ss:$16 sps:$4 sm:$0xff]   ;;  %v10395_v62 = vld [vmem:[%s15489_s1 + $0x5cc] ss:$16 sps:$4 sm:$0xff]  }
  0x7c   :  { %7237 = vmatprep.subr.bf16.mxu0 %v10299_v63  ;;  %8011 = vmatprep.subr.bf16.mxu1 %v10302_v0  ;;  %v10390_v63 = vld [vmem:[%s15489_s1 + $0x5c0] ss:$16 sps:$4 sm:$0xff]   ;;  %v10393_v0 = vld [vmem:[%s15489_s1 + $0x5c8] ss:$16 sps:$4 sm:$0xff]  }
  0x7f   :  { %7238 = vmatpush1.bf16.msra.mxu0 %v10297_v1  ;;  %8012 = vmatpush1.bf16.msra.mxu1 %v10300_v2  ;;  %v10398_v1 = vld [vmem:[%s15489_s1 + $0x5e4] ss:$16 sps:$4 sm:$0xff]   ;;  %v10401_v2 = vld [vmem:[%s15489_s1 + $0x5ec] ss:$16 sps:$4 sm:$0xff]  }
  0x80   :  { %7250 = vmatprep.subr.bf16.mxu0 %v10308_v3  ;;  %8024 = vmatprep.subr.bf16.mxu1 %v10311_v4  ;;  %v10396_v3 = vld [vmem:[%s15489_s1 + $0x5e0] ss:$16 sps:$4 sm:$0xff]   ;;  %v10399_v4 = vld [vmem:[%s15489_s1 + $0x5e8] ss:$16 sps:$4 sm:$0xff]  }
  0x82   :  { %7240 = vmatmul.mubr.bf16.vlgmr.msra.gmra.mrb[0].mxu0 %v10303_v5  ;;  %8014 = vmatmul.mubr.bf16.vlgmr.msra.gmra.mrb[0].mxu1 %v10303_v5  ;;  %v10407_v5 = vld [vmem:[%s15489_s1 + $0x604] ss:$16 sps:$4 sm:$0xff]  }
  0x83   :  { %7251 = vmatpush1.bf16.msra.mxu0 %v10306_v6  ;;  %8025 = vmatpush1.bf16.msra.mxu1 %v10309_v7  ;;  %v10410_v6 = vld [vmem:[%s15489_s1 + $0x60c] ss:$16 sps:$4 sm:$0xff]   ;;  %v10402_v7 = vld [vmem:[%s15490_s0 + $0x10] ss:$144 sps:$4 sm:$0xff]  }
  0x84   :  { %7252 = vmatprep.subr.bf16.mxu0 %v10314_v8  ;;  %8026 = vmatprep.subr.bf16.mxu1 %v10317_v9  ;;  %v10405_v8 = vld [vmem:[%s15489_s1 + $0x600] ss:$16 sps:$4 sm:$0xff]   ;;  %v10408_v9 = vld [vmem:[%s15489_s1 + $0x608] ss:$16 sps:$4 sm:$0xff]  }
  0x85   :  { %7282 = vmatprep.mubr.bf16.mxu0 %v10404_v12  ;;  %8056 = vmatprep.mubr.bf16.mxu1 %v10404_v12  ;;  %v10503_v12 = vld [vmem:[%s15490_s0 + $0x1c] ss:$144 sps:$4 sm:$0xff]  }
  0x87   :  { %7253 = vmatpush1.bf16.msra.mxu0 %v10312_v10  ;;  %8027 = vmatpush1.bf16.msra.mxu1 %v10315_v11  ;;  %v10413_v10 = vld [vmem:[%s15489_s1 + $0x624] ss:$16 sps:$4 sm:$0xff]   ;;  %v10416_v11 = vld [vmem:[%s15489_s1 + $0x62c] ss:$16 sps:$4 sm:$0xff]  }
  0x88   :  { %7254 = vmatprep.subr.bf16.mxu0 %v10320_v13  ;;  %8028 = vmatprep.subr.bf16.mxu1 %v10323_v14  ;;  %v10411_v13 = vld [vmem:[%s15489_s1 + $0x620] ss:$16 sps:$4 sm:$0xff]   ;;  %v10414_v14 = vld [vmem:[%s15489_s1 + $0x628] ss:$16 sps:$4 sm:$0xff]  }
  0x8b   :  { %7255 = vmatpush1.bf16.msra.mxu0 %v10318_v15  ;;  %8029 = vmatpush1.bf16.msra.mxu1 %v10321_v16  ;;  %v10419_v15 = vld [vmem:[%s15489_s1 + $0x644] ss:$16 sps:$4 sm:$0xff]   ;;  %v10422_v16 = vld [vmem:[%s15489_s1 + $0x64c] ss:$16 sps:$4 sm:$0xff]  }
  0x8c   :  { %7256 = vmatprep.subr.bf16.mxu0 %v10326_v17  ;;  %8030 = vmatprep.subr.bf16.mxu1 %v10329_v18  ;;  %v10417_v17 = vld [vmem:[%s15489_s1 + $0x640] ss:$16 sps:$4 sm:$0xff]   ;;  %v10420_v18 = vld [vmem:[%s15489_s1 + $0x648] ss:$16 sps:$4 sm:$0xff]  }
  0x8f   :  { %7257 = vmatpush1.bf16.msra.mxu0 %v10324_v19  ;;  %8031 = vmatpush1.bf16.msra.mxu1 %v10327_v20  ;;  %v10425_v19 = vld [vmem:[%s15489_s1 + $0x664] ss:$16 sps:$4 sm:$0xff]   ;;  %v10428_v20 = vld [vmem:[%s15489_s1 + $0x66c] ss:$16 sps:$4 sm:$0xff]  }
  0x90   :  { %7258 = vmatprep.subr.bf16.mxu0 %v10332_v21  ;;  %8032 = vmatprep.subr.bf16.mxu1 %v10335_v22  ;;  %v10423_v21 = vld [vmem:[%s15489_s1 + $0x660] ss:$16 sps:$4 sm:$0xff]   ;;  %v10426_v22 = vld [vmem:[%s15489_s1 + $0x668] ss:$16 sps:$4 sm:$0xff]  }
  0x93   :  { %7259 = vmatpush1.bf16.msra.mxu0 %v10330_v23  ;;  %8033 = vmatpush1.bf16.msra.mxu1 %v10333_v24  ;;  %v10431_v23 = vld [vmem:[%s15489_s1 + $0x684] ss:$16 sps:$4 sm:$0xff]   ;;  %v10434_v24 = vld [vmem:[%s15489_s1 + $0x68c] ss:$16 sps:$4 sm:$0xff]  }
  0x94   :  { %7260 = vmatprep.subr.bf16.mxu0 %v10338_v25  ;;  %8034 = vmatprep.subr.bf16.mxu1 %v10341_v26  ;;  %v10429_v25 = vld [vmem:[%s15489_s1 + $0x680] ss:$16 sps:$4 sm:$0xff]   ;;  %v10432_v26 = vld [vmem:[%s15489_s1 + $0x688] ss:$16 sps:$4 sm:$0xff]  }
  0x97   :  { %7261 = vmatpush1.bf16.msra.mxu0 %v10336_v27  ;;  %8035 = vmatpush1.bf16.msra.mxu1 %v10339_v28  ;;  %v10437_v27 = vld [vmem:[%s15489_s1 + $0x6a4] ss:$16 sps:$4 sm:$0xff]   ;;  %v10440_v28 = vld [vmem:[%s15489_s1 + $0x6ac] ss:$16 sps:$4 sm:$0xff]  }
  0x98   :  { %7262 = vmatprep.subr.bf16.mxu0 %v10344_v29  ;;  %8036 = vmatprep.subr.bf16.mxu1 %v10347_v30  ;;  %v10435_v29 = vld [vmem:[%s15489_s1 + $0x6a0] ss:$16 sps:$4 sm:$0xff]   ;;  %v10438_v30 = vld [vmem:[%s15489_s1 + $0x6a8] ss:$16 sps:$4 sm:$0xff]  }
  0x9b   :  { %7263 = vmatpush1.bf16.msra.mxu0 %v10342_v31  ;;  %8037 = vmatpush1.bf16.msra.mxu1 %v10345_v32  ;;  %v10443_v31 = vld [vmem:[%s15489_s1 + $0x6c4] ss:$16 sps:$4 sm:$0xff]   ;;  %v10446_v32 = vld [vmem:[%s15489_s1 + $0x6cc] ss:$16 sps:$4 sm:$0xff]  }
  0x9c   :  { %7264 = vmatprep.subr.bf16.mxu0 %v10350_v33  ;;  %8038 = vmatprep.subr.bf16.mxu1 %v10353_v34  ;;  %v10441_v33 = vld [vmem:[%s15489_s1 + $0x6c0] ss:$16 sps:$4 sm:$0xff]   ;;  %v10444_v34 = vld [vmem:[%s15489_s1 + $0x6c8] ss:$16 sps:$4 sm:$0xff]  }
  0x9f   :  { %7265 = vmatpush1.bf16.msra.mxu0 %v10348_v35  ;;  %8039 = vmatpush1.bf16.msra.mxu1 %v10351_v36  ;;  %v10449_v35 = vld [vmem:[%s15489_s1 + $0x6e4] ss:$16 sps:$4 sm:$0xff]   ;;  %v10452_v36 = vld [vmem:[%s15489_s1 + $0x6ec] ss:$16 sps:$4 sm:$0xff]  }
  0xa0   :  { %7266 = vmatprep.subr.bf16.mxu0 %v10356_v37  ;;  %8040 = vmatprep.subr.bf16.mxu1 %v10359_v38  ;;  %v10447_v37 = vld [vmem:[%s15489_s1 + $0x6e0] ss:$16 sps:$4 sm:$0xff]   ;;  %v10450_v38 = vld [vmem:[%s15489_s1 + $0x6e8] ss:$16 sps:$4 sm:$0xff]  }
  0xa3   :  { %7267 = vmatpush1.bf16.msra.mxu0 %v10354_v39  ;;  %8041 = vmatpush1.bf16.msra.mxu1 %v10357_v40  ;;  %v10455_v39 = vld [vmem:[%s15489_s1 + $0x704] ss:$16 sps:$4 sm:$0xff]   ;;  %v10458_v40 = vld [vmem:[%s15489_s1 + $0x70c] ss:$16 sps:$4 sm:$0xff]  }
  0xa4   :  { %7268 = vmatprep.subr.bf16.mxu0 %v10362_v41  ;;  %8042 = vmatprep.subr.bf16.mxu1 %v10365_v42  ;;  %v10453_v41 = vld [vmem:[%s15489_s1 + $0x700] ss:$16 sps:$4 sm:$0xff]   ;;  %v10456_v42 = vld [vmem:[%s15489_s1 + $0x708] ss:$16 sps:$4 sm:$0xff]  }
  0xa7   :  { %7269 = vmatpush1.bf16.msra.mxu0 %v10360_v43  ;;  %8043 = vmatpush1.bf16.msra.mxu1 %v10363_v44  ;;  %v10461_v43 = vld [vmem:[%s15489_s1 + $0x724] ss:$16 sps:$4 sm:$0xff]   ;;  %v10464_v44 = vld [vmem:[%s15489_s1 + $0x72c] ss:$16 sps:$4 sm:$0xff]  }
  0xa8   :  { %7270 = vmatprep.subr.bf16.mxu0 %v10368_v45  ;;  %8044 = vmatprep.subr.bf16.mxu1 %v10371_v46  ;;  %v10459_v45 = vld [vmem:[%s15489_s1 + $0x720] ss:$16 sps:$4 sm:$0xff]   ;;  %v10462_v46 = vld [vmem:[%s15489_s1 + $0x728] ss:$16 sps:$4 sm:$0xff]  }
  0xab   :  { %7271 = vmatpush1.bf16.msra.mxu0 %v10366_v47  ;;  %8045 = vmatpush1.bf16.msra.mxu1 %v10369_v48  ;;  %v10467_v47 = vld [vmem:[%s15489_s1 + $0x744] ss:$16 sps:$4 sm:$0xff]   ;;  %v10470_v48 = vld [vmem:[%s15489_s1 + $0x74c] ss:$16 sps:$4 sm:$0xff]  }
  0xac   :  { %7272 = vmatprep.subr.bf16.mxu0 %v10374_v49  ;;  %8046 = vmatprep.subr.bf16.mxu1 %v10377_v50  ;;  %v10465_v49 = vld [vmem:[%s15489_s1 + $0x740] ss:$16 sps:$4 sm:$0xff]   ;;  %v10468_v50 = vld [vmem:[%s15489_s1 + $0x748] ss:$16 sps:$4 sm:$0xff]  }
  0xaf   :  { %7273 = vmatpush1.bf16.msra.mxu0 %v10372_v51  ;;  %8047 = vmatpush1.bf16.msra.mxu1 %v10375_v52  ;;  %v10473_v51 = vld [vmem:[%s15489_s1 + $0x764] ss:$16 sps:$4 sm:$0xff]   ;;  %v10476_v52 = vld [vmem:[%s15489_s1 + $0x76c] ss:$16 sps:$4 sm:$0xff]  }
  0xb0   :  { %7274 = vmatprep.subr.bf16.mxu0 %v10380_v53  ;;  %8048 = vmatprep.subr.bf16.mxu1 %v10383_v54  ;;  %v10471_v53 = vld [vmem:[%s15489_s1 + $0x760] ss:$16 sps:$4 sm:$0xff]   ;;  %v10474_v54 = vld [vmem:[%s15489_s1 + $0x768] ss:$16 sps:$4 sm:$0xff]  }
  0xb3   :  { %7275 = vmatpush1.bf16.msra.mxu0 %v10378_v55  ;;  %8049 = vmatpush1.bf16.msra.mxu1 %v10381_v56  ;;  %v10479_v55 = vld [vmem:[%s15489_s1 + $0x784] ss:$16 sps:$4 sm:$0xff]   ;;  %v10482_v56 = vld [vmem:[%s15489_s1 + $0x78c] ss:$16 sps:$4 sm:$0xff]  }
  0xb4   :  { %7276 = vmatprep.subr.bf16.mxu0 %v10386_v57  ;;  %8050 = vmatprep.subr.bf16.mxu1 %v10389_v58  ;;  %v10477_v57 = vld [vmem:[%s15489_s1 + $0x780] ss:$16 sps:$4 sm:$0xff]   ;;  %v10480_v58 = vld [vmem:[%s15489_s1 + $0x788] ss:$16 sps:$4 sm:$0xff]  }
  0xb7   :  { %7277 = vmatpush1.bf16.msra.mxu0 %v10384_v59  ;;  %8051 = vmatpush1.bf16.msra.mxu1 %v10387_v60  ;;  %v10485_v59 = vld [vmem:[%s15489_s1 + $0x7a4] ss:$16 sps:$4 sm:$0xff]   ;;  %v10488_v60 = vld [vmem:[%s15489_s1 + $0x7ac] ss:$16 sps:$4 sm:$0xff]  }
  0xb8   :  { %7278 = vmatprep.subr.bf16.mxu0 %v10392_v61  ;;  %8052 = vmatprep.subr.bf16.mxu1 %v10395_v62  ;;  %v10483_v61 = vld [vmem:[%s15489_s1 + $0x7a0] ss:$16 sps:$4 sm:$0xff]   ;;  %v10486_v62 = vld [vmem:[%s15489_s1 + $0x7a8] ss:$16 sps:$4 sm:$0xff]  }
  0xbb   :  { %7279 = vmatpush1.bf16.msra.mxu0 %v10390_v63  ;;  %8053 = vmatpush1.bf16.msra.mxu1 %v10393_v0  ;;  %v10491_v63 = vld [vmem:[%s15489_s1 + $0x7c4] ss:$16 sps:$4 sm:$0xff]   ;;  %v10494_v0 = vld [vmem:[%s15489_s1 + $0x7cc] ss:$16 sps:$4 sm:$0xff]  }
  0xbc   :  { %7280 = vmatprep.subr.bf16.mxu0 %v10398_v1  ;;  %8054 = vmatprep.subr.bf16.mxu1 %v10401_v2  ;;  %v10489_v1 = vld [vmem:[%s15489_s1 + $0x7c0] ss:$16 sps:$4 sm:$0xff]   ;;  %v10492_v2 = vld [vmem:[%s15489_s1 + $0x7c8] ss:$16 sps:$4 sm:$0xff]  }
  0xbf   :  { %7281 = vmatpush1.bf16.msra.mxu0 %v10396_v3  ;;  %8055 = vmatpush1.bf16.msra.mxu1 %v10399_v4  ;;  %v10497_v3 = vld [vmem:[%s15489_s1 + $0x7e4] ss:$16 sps:$4 sm:$0xff]   ;;  %v10500_v4 = vld [vmem:[%s15489_s1 + $0x7ec] ss:$16 sps:$4 sm:$0xff]  }
  0xc0   :  { %7293 = vmatprep.subr.bf16.mxu0 %v10407_v5  ;;  %8067 = vmatprep.subr.bf16.mxu1 %v10410_v6  ;;  %v10495_v5 = vld [vmem:[%s15489_s1 + $0x7e0] ss:$16 sps:$4 sm:$0xff]   ;;  %v10498_v6 = vld [vmem:[%s15489_s1 + $0x7e8] ss:$16 sps:$4 sm:$0xff]  }
  0xc2   :  { %7283 = vmatmul.mubr.bf16.vlgmr.msra.gmra.mrb[0].mxu0 %v10402_v7  ;;  %8057 = vmatmul.mubr.bf16.vlgmr.msra.gmra.mrb[0].mxu1 %v10402_v7  ;;  %v10506_v7 = vld [vmem:[%s15489_s1 + $0x804] ss:$16 sps:$4 sm:$0xff]  }
  0xc3   :  { %7294 = vmatpush1.bf16.msra.mxu0 %v10405_v8  ;;  %8068 = vmatpush1.bf16.msra.mxu1 %v10408_v9  ;;  %v10509_v8 = vld [vmem:[%s15489_s1 + $0x80c] ss:$16 sps:$4 sm:$0xff]   ;;  %v10501_v9 = vld [vmem:[%s15490_s0 + $0x18] ss:$144 sps:$4 sm:$0xff]  }
  0xc4   :  { %7295 = vmatprep.subr.bf16.mxu0 %v10413_v10  ;;  %8069 = vmatprep.subr.bf16.mxu1 %v10416_v11  ;;  %v10504_v10 = vld [vmem:[%s15489_s1 + $0x800] ss:$16 sps:$4 sm:$0xff]   ;;  %v10507_v11 = vld [vmem:[%s15489_s1 + $0x808] ss:$16 sps:$4 sm:$0xff]  }
  0xc5   :  { %7325 = vmatprep.mubr.bf16.mxu0 %v10503_v12  ;;  %8099 = vmatprep.mubr.bf16.mxu1 %v10503_v12  ;;  %v10512_v12 = vld [vmem:[%s15489_s1 + $0x824] ss:$16 sps:$4 sm:$0xff]  }
  0xc7   :  { %7296 = vmatpush1.bf16.msra.mxu0 %v10411_v13  ;;  %8070 = vmatpush1.bf16.msra.mxu1 %v10414_v14  ;;  %v10515_v13 = vld [vmem:[%s15489_s1 + $0x82c] ss:$16 sps:$4 sm:$0xff]   ;;  %v10602_v14 = vld [vmem:[%s15490_s0 + $0x24] ss:$144 sps:$4 sm:$0xff]  }
  0xc8   :  { %7297 = vmatprep.subr.bf16.mxu0 %v10419_v15  ;;  %8071 = vmatprep.subr.bf16.mxu1 %v10422_v16  ;;  %v10510_v15 = vld [vmem:[%s15489_s1 + $0x820] ss:$16 sps:$4 sm:$0xff]   ;;  %v10513_v16 = vld [vmem:[%s15489_s1 + $0x828] ss:$16 sps:$4 sm:$0xff]  }
  0xcb   :  { %7298 = vmatpush1.bf16.msra.mxu0 %v10417_v17  ;;  %8072 = vmatpush1.bf16.msra.mxu1 %v10420_v18  ;;  %v10518_v17 = vld [vmem:[%s15489_s1 + $0x844] ss:$16 sps:$4 sm:$0xff]   ;;  %v10521_v18 = vld [vmem:[%s15489_s1 + $0x84c] ss:$16 sps:$4 sm:$0xff]  }
  0xcc   :  { %7299 = vmatprep.subr.bf16.mxu0 %v10425_v19  ;;  %8073 = vmatprep.subr.bf16.mxu1 %v10428_v20  ;;  %v10516_v19 = vld [vmem:[%s15489_s1 + $0x840] ss:$16 sps:$4 sm:$0xff]   ;;  %v10519_v20 = vld [vmem:[%s15489_s1 + $0x848] ss:$16 sps:$4 sm:$0xff]  }
  0xcf   :  { %7300 = vmatpush1.bf16.msra.mxu0 %v10423_v21  ;;  %8074 = vmatpush1.bf16.msra.mxu1 %v10426_v22  ;;  %v10524_v21 = vld [vmem:[%s15489_s1 + $0x864] ss:$16 sps:$4 sm:$0xff]   ;;  %v10527_v22 = vld [vmem:[%s15489_s1 + $0x86c] ss:$16 sps:$4 sm:$0xff]  }
  0xd0   :  { %7301 = vmatprep.subr.bf16.mxu0 %v10431_v23  ;;  %8075 = vmatprep.subr.bf16.mxu1 %v10434_v24  ;;  %v10522_v23 = vld [vmem:[%s15489_s1 + $0x860] ss:$16 sps:$4 sm:$0xff]   ;;  %v10525_v24 = vld [vmem:[%s15489_s1 + $0x868] ss:$16 sps:$4 sm:$0xff]  }
  0xd3   :  { %7302 = vmatpush1.bf16.msra.mxu0 %v10429_v25  ;;  %8076 = vmatpush1.bf16.msra.mxu1 %v10432_v26  ;;  %v10530_v25 = vld [vmem:[%s15489_s1 + $0x884] ss:$16 sps:$4 sm:$0xff]   ;;  %v10533_v26 = vld [vmem:[%s15489_s1 + $0x88c] ss:$16 sps:$4 sm:$0xff]  }
  0xd4   :  { %7303 = vmatprep.subr.bf16.mxu0 %v10437_v27  ;;  %8077 = vmatprep.subr.bf16.mxu1 %v10440_v28  ;;  %v10528_v27 = vld [vmem:[%s15489_s1 + $0x880] ss:$16 sps:$4 sm:$0xff]   ;;  %v10531_v28 = vld [vmem:[%s15489_s1 + $0x888] ss:$16 sps:$4 sm:$0xff]  }
  0xd7   :  { %7304 = vmatpush1.bf16.msra.mxu0 %v10435_v29  ;;  %8078 = vmatpush1.bf16.msra.mxu1 %v10438_v30  ;;  %v10536_v29 = vld [vmem:[%s15489_s1 + $0x8a4] ss:$16 sps:$4 sm:$0xff]   ;;  %v10539_v30 = vld [vmem:[%s15489_s1 + $0x8ac] ss:$16 sps:$4 sm:$0xff]  }
  0xd8   :  { %7305 = vmatprep.subr.bf16.mxu0 %v10443_v31  ;;  %8079 = vmatprep.subr.bf16.mxu1 %v10446_v32  ;;  %v10534_v31 = vld [vmem:[%s15489_s1 + $0x8a0] ss:$16 sps:$4 sm:$0xff]   ;;  %v10537_v32 = vld [vmem:[%s15489_s1 + $0x8a8] ss:$16 sps:$4 sm:$0xff]  }
  0xdb   :  { %7306 = vmatpush1.bf16.msra.mxu0 %v10441_v33  ;;  %8080 = vmatpush1.bf16.msra.mxu1 %v10444_v34  ;;  %v10542_v33 = vld [vmem:[%s15489_s1 + $0x8c4] ss:$16 sps:$4 sm:$0xff]   ;;  %v10545_v34 = vld [vmem:[%s15489_s1 + $0x8cc] ss:$16 sps:$4 sm:$0xff]  }
  0xdc   :  { %7307 = vmatprep.subr.bf16.mxu0 %v10449_v35  ;;  %8081 = vmatprep.subr.bf16.mxu1 %v10452_v36  ;;  %v10540_v35 = vld [vmem:[%s15489_s1 + $0x8c0] ss:$16 sps:$4 sm:$0xff]   ;;  %v10543_v36 = vld [vmem:[%s15489_s1 + $0x8c8] ss:$16 sps:$4 sm:$0xff]  }
  0xdf   :  { %7308 = vmatpush1.bf16.msra.mxu0 %v10447_v37  ;;  %8082 = vmatpush1.bf16.msra.mxu1 %v10450_v38  ;;  %v10548_v37 = vld [vmem:[%s15489_s1 + $0x8e4] ss:$16 sps:$4 sm:$0xff]   ;;  %v10551_v38 = vld [vmem:[%s15489_s1 + $0x8ec] ss:$16 sps:$4 sm:$0xff]  }
  0xe0   :  { %7309 = vmatprep.subr.bf16.mxu0 %v10455_v39  ;;  %8083 = vmatprep.subr.bf16.mxu1 %v10458_v40  ;;  %v10546_v39 = vld [vmem:[%s15489_s1 + $0x8e0] ss:$16 sps:$4 sm:$0xff]   ;;  %v10549_v40 = vld [vmem:[%s15489_s1 + $0x8e8] ss:$16 sps:$4 sm:$0xff]  }
  0xe3   :  { %7310 = vmatpush1.bf16.msra.mxu0 %v10453_v41  ;;  %8084 = vmatpush1.bf16.msra.mxu1 %v10456_v42  ;;  %v10554_v41 = vld [vmem:[%s15489_s1 + $0x904] ss:$16 sps:$4 sm:$0xff]   ;;  %v10557_v42 = vld [vmem:[%s15489_s1 + $0x90c] ss:$16 sps:$4 sm:$0xff]  }
  0xe4   :  { %7311 = vmatprep.subr.bf16.mxu0 %v10461_v43  ;;  %8085 = vmatprep.subr.bf16.mxu1 %v10464_v44  ;;  %v10552_v43 = vld [vmem:[%s15489_s1 + $0x900] ss:$16 sps:$4 sm:$0xff]   ;;  %v10555_v44 = vld [vmem:[%s15489_s1 + $0x908] ss:$16 sps:$4 sm:$0xff]  }
  0xe7   :  { %7312 = vmatpush1.bf16.msra.mxu0 %v10459_v45  ;;  %8086 = vmatpush1.bf16.msra.mxu1 %v10462_v46  ;;  %v10560_v45 = vld [vmem:[%s15489_s1 + $0x924] ss:$16 sps:$4 sm:$0xff]   ;;  %v10563_v46 = vld [vmem:[%s15489_s1 + $0x92c] ss:$16 sps:$4 sm:$0xff]  }
  0xe8   :  { %7313 = vmatprep.subr.bf16.mxu0 %v10467_v47  ;;  %8087 = vmatprep.subr.bf16.mxu1 %v10470_v48  ;;  %v10558_v47 = vld [vmem:[%s15489_s1 + $0x920] ss:$16 sps:$4 sm:$0xff]   ;;  %v10561_v48 = vld [vmem:[%s15489_s1 + $0x928] ss:$16 sps:$4 sm:$0xff]  }
  0xeb   :  { %7314 = vmatpush1.bf16.msra.mxu0 %v10465_v49  ;;  %8088 = vmatpush1.bf16.msra.mxu1 %v10468_v50  ;;  %v10566_v49 = vld [vmem:[%s15489_s1 + $0x944] ss:$16 sps:$4 sm:$0xff]   ;;  %v10569_v50 = vld [vmem:[%s15489_s1 + $0x94c] ss:$16 sps:$4 sm:$0xff]  }
  0xec   :  { %7315 = vmatprep.subr.bf16.mxu0 %v10473_v51  ;;  %8089 = vmatprep.subr.bf16.mxu1 %v10476_v52  ;;  %v10564_v51 = vld [vmem:[%s15489_s1 + $0x940] ss:$16 sps:$4 sm:$0xff]   ;;  %v10567_v52 = vld [vmem:[%s15489_s1 + $0x948] ss:$16 sps:$4 sm:$0xff]  }
  0xef   :  { %7316 = vmatpush1.bf16.msra.mxu0 %v10471_v53  ;;  %8090 = vmatpush1.bf16.msra.mxu1 %v10474_v54  ;;  %v10572_v53 = vld [vmem:[%s15489_s1 + $0x964] ss:$16 sps:$4 sm:$0xff]   ;;  %v10575_v54 = vld [vmem:[%s15489_s1 + $0x96c] ss:$16 sps:$4 sm:$0xff]  }
  0xf0   :  { %7317 = vmatprep.subr.bf16.mxu0 %v10479_v55  ;;  %8091 = vmatprep.subr.bf16.mxu1 %v10482_v56  ;;  %v10570_v55 = vld [vmem:[%s15489_s1 + $0x960] ss:$16 sps:$4 sm:$0xff]   ;;  %v10573_v56 = vld [vmem:[%s15489_s1 + $0x968] ss:$16 sps:$4 sm:$0xff]  }
  0xf3   :  { %7318 = vmatpush1.bf16.msra.mxu0 %v10477_v57  ;;  %8092 = vmatpush1.bf16.msra.mxu1 %v10480_v58  ;;  %v10578_v57 = vld [vmem:[%s15489_s1 + $0x984] ss:$16 sps:$4 sm:$0xff]   ;;  %v10581_v58 = vld [vmem:[%s15489_s1 + $0x98c] ss:$16 sps:$4 sm:$0xff]  }
  0xf4   :  { %7319 = vmatprep.subr.bf16.mxu0 %v10485_v59  ;;  %8093 = vmatprep.subr.bf16.mxu1 %v10488_v60  ;;  %v10576_v59 = vld [vmem:[%s15489_s1 + $0x980] ss:$16 sps:$4 sm:$0xff]   ;;  %v10579_v60 = vld [vmem:[%s15489_s1 + $0x988] ss:$16 sps:$4 sm:$0xff]  }
  0xf7   :  { %7320 = vmatpush1.bf16.msra.mxu0 %v10483_v61  ;;  %8094 = vmatpush1.bf16.msra.mxu1 %v10486_v62  ;;  %v10584_v61 = vld [vmem:[%s15489_s1 + $0x9a4] ss:$16 sps:$4 sm:$0xff]   ;;  %v10587_v62 = vld [vmem:[%s15489_s1 + $0x9ac] ss:$16 sps:$4 sm:$0xff]  }
  0xf8   :  { %7321 = vmatprep.subr.bf16.mxu0 %v10491_v63  ;;  %8095 = vmatprep.subr.bf16.mxu1 %v10494_v0  ;;  %v10582_v63 = vld [vmem:[%s15489_s1 + $0x9a0] ss:$16 sps:$4 sm:$0xff]   ;;  %v10585_v0 = vld [vmem:[%s15489_s1 + $0x9a8] ss:$16 sps:$4 sm:$0xff]  }
  0xfb   :  { %7322 = vmatpush1.bf16.msra.mxu0 %v10489_v1  ;;  %8096 = vmatpush1.bf16.msra.mxu1 %v10492_v2  ;;  %v10590_v1 = vld [vmem:[%s15489_s1 + $0x9c4] ss:$16 sps:$4 sm:$0xff]   ;;  %v10593_v2 = vld [vmem:[%s15489_s1 + $0x9cc] ss:$16 sps:$4 sm:$0xff]  }
  0xfc   :  { %7323 = vmatprep.subr.bf16.mxu0 %v10497_v3  ;;  %8097 = vmatprep.subr.bf16.mxu1 %v10500_v4  ;;  %v10588_v3 = vld [vmem:[%s15489_s1 + $0x9c0] ss:$16 sps:$4 sm:$0xff]   ;;  %v10591_v4 = vld [vmem:[%s15489_s1 + $0x9c8] ss:$16 sps:$4 sm:$0xff]  }
  0xff   :  { %7324 = vmatpush1.bf16.msra.mxu0 %v10495_v5  ;;  %8098 = vmatpush1.bf16.msra.mxu1 %v10498_v6  ;;  %v10596_v5 = vld [vmem:[%s15489_s1 + $0x9e4] ss:$16 sps:$4 sm:$0xff]   ;;  %v10599_v6 = vld [vmem:[%s15489_s1 + $0x9ec] ss:$16 sps:$4 sm:$0xff]  }
 0x100   :  { %7336 = vmatprep.subr.bf16.mxu0 %v10506_v7  ;;  %8110 = vmatprep.subr.bf16.mxu1 %v10509_v8  ;;  %v10594_v7 = vld [vmem:[%s15489_s1 + $0x9e0] ss:$16 sps:$4 sm:$0xff]   ;;  %v10597_v8 = vld [vmem:[%s15489_s1 + $0x9e8] ss:$16 sps:$4 sm:$0xff]  }
 0x102   :  { %7326 = vmatmul.mubr.bf16.vlgmr.msra.gmra.mrb[0].mxu0 %v10501_v9  ;;  %8100 = vmatmul.mubr.bf16.vlgmr.msra.gmra.mrb[0].mxu1 %v10501_v9  ;;  %v10600_v9 = vld [vmem:[%s15490_s0 + $0x20] ss:$144 sps:$4 sm:$0xff]  }
 0x103   :  { %7337 = vmatpush1.bf16.msra.mxu0 %v10504_v10  ;;  %8111 = vmatpush1.bf16.msra.mxu1 %v10507_v11  ;;  %v10605_v10 = vld [vmem:[%s15489_s1 + $0xa04] ss:$16 sps:$4 sm:$0xff]   ;;  %v10608_v11 = vld [vmem:[%s15489_s1 + $0xa0c] ss:$16 sps:$4 sm:$0xff]  }
 0x104   :  { %7338 = vmatprep.subr.bf16.mxu0 %v10512_v12  ;;  %8112 = vmatprep.subr.bf16.mxu1 %v10515_v13  ;;  %v10603_v12 = vld [vmem:[%s15489_s1 + $0xa00] ss:$16 sps:$4 sm:$0xff]   ;;  %v10606_v13 = vld [vmem:[%s15489_s1 + $0xa08] ss:$16 sps:$4 sm:$0xff]  }
 0x105   :  { %7368 = vmatprep.mubr.bf16.mxu0 %v10602_v14  ;;  %8142 = vmatprep.mubr.bf16.mxu1 %v10602_v14  ;;  %v10611_v14 = vld [vmem:[%s15489_s1 + $0xa24] ss:$16 sps:$4 sm:$0xff]  }
 0x107   :  { %7339 = vmatpush1.bf16.msra.mxu0 %v10510_v15  ;;  %8113 = vmatpush1.bf16.msra.mxu1 %v10513_v16  ;;  %v10614_v15 = vld [vmem:[%s15489_s1 + $0xa2c] ss:$16 sps:$4 sm:$0xff]  }
 0x108   :  { %7340 = vmatprep.subr.bf16.mxu0 %v10518_v17  ;;  %8114 = vmatprep.subr.bf16.mxu1 %v10521_v18  ;;  %v10701_v16 = vld [vmem:[%s15490_s0 + $0x2c] ss:$144 sps:$4 sm:$0xff]   ;;  %v10609_v17 = vld [vmem:[%s15489_s1 + $0xa20] ss:$16 sps:$4 sm:$0xff]   ;;  %v10612_v18 = vld [vmem:[%s15489_s1 + $0xa28] ss:$16 sps:$4 sm:$0xff]  }
 0x10b   :  { %7341 = vmatpush1.bf16.msra.mxu0 %v10516_v19  ;;  %8115 = vmatpush1.bf16.msra.mxu1 %v10519_v20  ;;  %v10617_v19 = vld [vmem:[%s15489_s1 + $0xa44] ss:$16 sps:$4 sm:$0xff]   ;;  %v10620_v20 = vld [vmem:[%s15489_s1 + $0xa4c] ss:$16 sps:$4 sm:$0xff]  }
 0x10c   :  { %7342 = vmatprep.subr.bf16.mxu0 %v10524_v21  ;;  %8116 = vmatprep.subr.bf16.mxu1 %v10527_v22  ;;  %v10615_v21 = vld [vmem:[%s15489_s1 + $0xa40] ss:$16 sps:$4 sm:$0xff]   ;;  %v10618_v22 = vld [vmem:[%s15489_s1 + $0xa48] ss:$16 sps:$4 sm:$0xff]  }
 0x10f   :  { %7343 = vmatpush1.bf16.msra.mxu0 %v10522_v23  ;;  %8117 = vmatpush1.bf16.msra.mxu1 %v10525_v24  ;;  %v10623_v23 = vld [vmem:[%s15489_s1 + $0xa64] ss:$16 sps:$4 sm:$0xff]   ;;  %v10626_v24 = vld [vmem:[%s15489_s1 + $0xa6c] ss:$16 sps:$4 sm:$0xff]  }
 0x110   :  { %7344 = vmatprep.subr.bf16.mxu0 %v10530_v25  ;;  %8118 = vmatprep.subr.bf16.mxu1 %v10533_v26  ;;  %v10621_v25 = vld [vmem:[%s15489_s1 + $0xa60] ss:$16 sps:$4 sm:$0xff]   ;;  %v10624_v26 = vld [vmem:[%s15489_s1 + $0xa68] ss:$16 sps:$4 sm:$0xff]  }
 0x113   :  { %7345 = vmatpush1.bf16.msra.mxu0 %v10528_v27  ;;  %8119 = vmatpush1.bf16.msra.mxu1 %v10531_v28  ;;  %v10629_v27 = vld [vmem:[%s15489_s1 + $0xa84] ss:$16 sps:$4 sm:$0xff]   ;;  %v10632_v28 = vld [vmem:[%s15489_s1 + $0xa8c] ss:$16 sps:$4 sm:$0xff]  }
 0x114   :  { %7346 = vmatprep.subr.bf16.mxu0 %v10536_v29  ;;  %8120 = vmatprep.subr.bf16.mxu1 %v10539_v30  ;;  %v10627_v29 = vld [vmem:[%s15489_s1 + $0xa80] ss:$16 sps:$4 sm:$0xff]   ;;  %v10630_v30 = vld [vmem:[%s15489_s1 + $0xa88] ss:$16 sps:$4 sm:$0xff]  }
 0x117   :  { %7347 = vmatpush1.bf16.msra.mxu0 %v10534_v31  ;;  %8121 = vmatpush1.bf16.msra.mxu1 %v10537_v32  ;;  %v10635_v31 = vld [vmem:[%s15489_s1 + $0xaa4] ss:$16 sps:$4 sm:$0xff]   ;;  %v10638_v32 = vld [vmem:[%s15489_s1 + $0xaac] ss:$16 sps:$4 sm:$0xff]  }
 0x118   :  { %7348 = vmatprep.subr.bf16.mxu0 %v10542_v33  ;;  %8122 = vmatprep.subr.bf16.mxu1 %v10545_v34  ;;  %v10633_v33 = vld [vmem:[%s15489_s1 + $0xaa0] ss:$16 sps:$4 sm:$0xff]   ;;  %v10636_v34 = vld [vmem:[%s15489_s1 + $0xaa8] ss:$16 sps:$4 sm:$0xff]  }
 0x11b   :  { %7349 = vmatpush1.bf16.msra.mxu0 %v10540_v35  ;;  %8123 = vmatpush1.bf16.msra.mxu1 %v10543_v36  ;;  %v10641_v35 = vld [vmem:[%s15489_s1 + $0xac4] ss:$16 sps:$4 sm:$0xff]   ;;  %v10644_v36 = vld [vmem:[%s15489_s1 + $0xacc] ss:$16 sps:$4 sm:$0xff]  }
 0x11c   :  { %7350 = vmatprep.subr.bf16.mxu0 %v10548_v37  ;;  %8124 = vmatprep.subr.bf16.mxu1 %v10551_v38  ;;  %v10639_v37 = vld [vmem:[%s15489_s1 + $0xac0] ss:$16 sps:$4 sm:$0xff]   ;;  %v10642_v38 = vld [vmem:[%s15489_s1 + $0xac8] ss:$16 sps:$4 sm:$0xff]  }
 0x11f   :  { %7351 = vmatpush1.bf16.msra.mxu0 %v10546_v39  ;;  %8125 = vmatpush1.bf16.msra.mxu1 %v10549_v40  ;;  %v10647_v39 = vld [vmem:[%s15489_s1 + $0xae4] ss:$16 sps:$4 sm:$0xff]   ;;  %v10650_v40 = vld [vmem:[%s15489_s1 + $0xaec] ss:$16 sps:$4 sm:$0xff]  }
 0x120   :  { %7352 = vmatprep.subr.bf16.mxu0 %v10554_v41  ;;  %8126 = vmatprep.subr.bf16.mxu1 %v10557_v42  ;;  %v10645_v41 = vld [vmem:[%s15489_s1 + $0xae0] ss:$16 sps:$4 sm:$0xff]   ;;  %v10648_v42 = vld [vmem:[%s15489_s1 + $0xae8] ss:$16 sps:$4 sm:$0xff]  }
 0x123   :  { %7353 = vmatpush1.bf16.msra.mxu0 %v10552_v43  ;;  %8127 = vmatpush1.bf16.msra.mxu1 %v10555_v44  ;;  %v10653_v43 = vld [vmem:[%s15489_s1 + $0xb04] ss:$16 sps:$4 sm:$0xff]   ;;  %v10656_v44 = vld [vmem:[%s15489_s1 + $0xb0c] ss:$16 sps:$4 sm:$0xff]  }
 0x124   :  { %7354 = vmatprep.subr.bf16.mxu0 %v10560_v45  ;;  %8128 = vmatprep.subr.bf16.mxu1 %v10563_v46  ;;  %v10651_v45 = vld [vmem:[%s15489_s1 + $0xb00] ss:$16 sps:$4 sm:$0xff]   ;;  %v10654_v46 = vld [vmem:[%s15489_s1 + $0xb08] ss:$16 sps:$4 sm:$0xff]  }
 0x127   :  { %7355 = vmatpush1.bf16.msra.mxu0 %v10558_v47  ;;  %8129 = vmatpush1.bf16.msra.mxu1 %v10561_v48  ;;  %v10659_v47 = vld [vmem:[%s15489_s1 + $0xb24] ss:$16 sps:$4 sm:$0xff]   ;;  %v10662_v48 = vld [vmem:[%s15489_s1 + $0xb2c] ss:$16 sps:$4 sm:$0xff]  }
 0x128   :  { %7356 = vmatprep.subr.bf16.mxu0 %v10566_v49  ;;  %8130 = vmatprep.subr.bf16.mxu1 %v10569_v50  ;;  %v10657_v49 = vld [vmem:[%s15489_s1 + $0xb20] ss:$16 sps:$4 sm:$0xff]   ;;  %v10660_v50 = vld [vmem:[%s15489_s1 + $0xb28] ss:$16 sps:$4 sm:$0xff]  }
 0x12b   :  { %7357 = vmatpush1.bf16.msra.mxu0 %v10564_v51  ;;  %8131 = vmatpush1.bf16.msra.mxu1 %v10567_v52  ;;  %v10665_v51 = vld [vmem:[%s15489_s1 + $0xb44] ss:$16 sps:$4 sm:$0xff]   ;;  %v10668_v52 = vld [vmem:[%s15489_s1 + $0xb4c] ss:$16 sps:$4 sm:$0xff]  }
 0x12c   :  { %7358 = vmatprep.subr.bf16.mxu0 %v10572_v53  ;;  %8132 = vmatprep.subr.bf16.mxu1 %v10575_v54  ;;  %v10663_v53 = vld [vmem:[%s15489_s1 + $0xb40] ss:$16 sps:$4 sm:$0xff]   ;;  %v10666_v54 = vld [vmem:[%s15489_s1 + $0xb48] ss:$16 sps:$4 sm:$0xff]  }
 0x12f   :  { %7359 = vmatpush1.bf16.msra.mxu0 %v10570_v55  ;;  %8133 = vmatpush1.bf16.msra.mxu1 %v10573_v56  ;;  %v10671_v55 = vld [vmem:[%s15489_s1 + $0xb64] ss:$16 sps:$4 sm:$0xff]   ;;  %v10674_v56 = vld [vmem:[%s15489_s1 + $0xb6c] ss:$16 sps:$4 sm:$0xff]  }
 0x130   :  { %7360 = vmatprep.subr.bf16.mxu0 %v10578_v57  ;;  %8134 = vmatprep.subr.bf16.mxu1 %v10581_v58  ;;  %v10669_v57 = vld [vmem:[%s15489_s1 + $0xb60] ss:$16 sps:$4 sm:$0xff]   ;;  %v10672_v58 = vld [vmem:[%s15489_s1 + $0xb68] ss:$16 sps:$4 sm:$0xff]  }
 0x133   :  { %7361 = vmatpush1.bf16.msra.mxu0 %v10576_v59  ;;  %8135 = vmatpush1.bf16.msra.mxu1 %v10579_v60  ;;  %v10677_v59 = vld [vmem:[%s15489_s1 + $0xb84] ss:$16 sps:$4 sm:$0xff]   ;;  %v10680_v60 = vld [vmem:[%s15489_s1 + $0xb8c] ss:$16 sps:$4 sm:$0xff]  }
 0x134   :  { %7362 = vmatprep.subr.bf16.mxu0 %v10584_v61  ;;  %8136 = vmatprep.subr.bf16.mxu1 %v10587_v62  ;;  %v10675_v61 = vld [vmem:[%s15489_s1 + $0xb80] ss:$16 sps:$4 sm:$0xff]   ;;  %v10678_v62 = vld [vmem:[%s15489_s1 + $0xb88] ss:$16 sps:$4 sm:$0xff]  }
 0x137   :  { %7363 = vmatpush1.bf16.msra.mxu0 %v10582_v63  ;;  %8137 = vmatpush1.bf16.msra.mxu1 %v10585_v0  ;;  %v10683_v63 = vld [vmem:[%s15489_s1 + $0xba4] ss:$16 sps:$4 sm:$0xff]   ;;  %v10686_v0 = vld [vmem:[%s15489_s1 + $0xbac] ss:$16 sps:$4 sm:$0xff]  }
 0x138   :  { %7364 = vmatprep.subr.bf16.mxu0 %v10590_v1  ;;  %8138 = vmatprep.subr.bf16.mxu1 %v10593_v2  ;;  %v10681_v1 = vld [vmem:[%s15489_s1 + $0xba0] ss:$16 sps:$4 sm:$0xff]   ;;  %v10684_v2 = vld [vmem:[%s15489_s1 + $0xba8] ss:$16 sps:$4 sm:$0xff]  }
 0x13b   :  { %7365 = vmatpush1.bf16.msra.mxu0 %v10588_v3  ;;  %8139 = vmatpush1.bf16.msra.mxu1 %v10591_v4  ;;  %v10689_v3 = vld [vmem:[%s15489_s1 + $0xbc4] ss:$16 sps:$4 sm:$0xff]   ;;  %v10692_v4 = vld [vmem:[%s15489_s1 + $0xbcc] ss:$16 sps:$4 sm:$0xff]  }
 0x13c   :  { %7366 = vmatprep.subr.bf16.mxu0 %v10596_v5  ;;  %8140 = vmatprep.subr.bf16.mxu1 %v10599_v6  ;;  %v10687_v5 = vld [vmem:[%s15489_s1 + $0xbc0] ss:$16 sps:$4 sm:$0xff]   ;;  %v10690_v6 = vld [vmem:[%s15489_s1 + $0xbc8] ss:$16 sps:$4 sm:$0xff]  }
 0x13f   :  { %7367 = vmatpush1.bf16.msra.mxu0 %v10594_v7  ;;  %8141 = vmatpush1.bf16.msra.mxu1 %v10597_v8  ;;  %v10695_v7 = vld [vmem:[%s15489_s1 + $0xbe4] ss:$16 sps:$4 sm:$0xff]   ;;  %v10698_v8 = vld [vmem:[%s15489_s1 + $0xbec] ss:$16 sps:$4 sm:$0xff]  }
 0x140   :  { %7379 = vmatprep.subr.bf16.mxu0 %v10605_v10  ;;  %8153 = vmatprep.subr.bf16.mxu1 %v10608_v11  ;;  %v10696_v10 = vld [vmem:[%s15489_s1 + $0xbe8] ss:$16 sps:$4 sm:$0xff]  }
 0x141   :  { %v10699_v11 = vld [vmem:[%s15490_s0 + $0x28] ss:$144 sps:$4 sm:$0xff]  }
 0x142   :  { %7369 = vmatmul.mubr.bf16.vlgmr.msra.gmra.mrb[0].mxu0 %v10600_v9  ;;  %8143 = vmatmul.mubr.bf16.vlgmr.msra.gmra.mrb[0].mxu1 %v10600_v9  ;;  %v10693_v9 = vld [vmem:[%s15489_s1 + $0xbe0] ss:$16 sps:$4 sm:$0xff]  }
 0x143   :  { %7380 = vmatpush1.bf16.msra.mxu0 %v10603_v12  ;;  %8154 = vmatpush1.bf16.msra.mxu1 %v10606_v13  ;;  %v10704_v12 = vld [vmem:[%s15489_s1 + $0xc04] ss:$16 sps:$4 sm:$0xff]   ;;  %v10707_v13 = vld [vmem:[%s15489_s1 + $0xc0c] ss:$16 sps:$4 sm:$0xff]  }
 0x144   :  { %7381 = vmatprep.subr.bf16.mxu0 %v10611_v14  ;;  %8155 = vmatprep.subr.bf16.mxu1 %v10614_v15  ;;  %v10702_v14 = vld [vmem:[%s15489_s1 + $0xc00] ss:$16 sps:$4 sm:$0xff]   ;;  %v10705_v15 = vld [vmem:[%s15489_s1 + $0xc08] ss:$16 sps:$4 sm:$0xff]  }
 0x145   :  { %7411 = vmatprep.mubr.bf16.mxu0 %v10701_v16  ;;  %8185 = vmatprep.mubr.bf16.mxu1 %v10701_v16  ;;  %v10710_v16 = vld [vmem:[%s15489_s1 + $0xc24] ss:$16 sps:$4 sm:$0xff]  }
 0x147   :  { %7382 = vmatpush1.bf16.msra.mxu0 %v10609_v17  ;;  %8156 = vmatpush1.bf16.msra.mxu1 %v10612_v18  ;;  %v10713_v17 = vld [vmem:[%s15489_s1 + $0xc2c] ss:$16 sps:$4 sm:$0xff]   ;;  %v10800_v18 = vld [vmem:[%s15490_s0 + $0x34] ss:$144 sps:$4 sm:$0xff]  }
 0x148   :  { %7383 = vmatprep.subr.bf16.mxu0 %v10617_v19  ;;  %8157 = vmatprep.subr.bf16.mxu1 %v10620_v20  ;;  %v10708_v19 = vld [vmem:[%s15489_s1 + $0xc20] ss:$16 sps:$4 sm:$0xff]   ;;  %v10711_v20 = vld [vmem:[%s15489_s1 + $0xc28] ss:$16 sps:$4 sm:$0xff]  }
 0x14b   :  { %7384 = vmatpush1.bf16.msra.mxu0 %v10615_v21  ;;  %8158 = vmatpush1.bf16.msra.mxu1 %v10618_v22  ;;  %v10716_v21 = vld [vmem:[%s15489_s1 + $0xc44] ss:$16 sps:$4 sm:$0xff]   ;;  %v10719_v22 = vld [vmem:[%s15489_s1 + $0xc4c] ss:$16 sps:$4 sm:$0xff]  }
 0x14c   :  { %7385 = vmatprep.subr.bf16.mxu0 %v10623_v23  ;;  %8159 = vmatprep.subr.bf16.mxu1 %v10626_v24  ;;  %v10714_v23 = vld [vmem:[%s15489_s1 + $0xc40] ss:$16 sps:$4 sm:$0xff]   ;;  %v10717_v24 = vld [vmem:[%s15489_s1 + $0xc48] ss:$16 sps:$4 sm:$0xff]  }
 0x14f   :  { %7386 = vmatpush1.bf16.msra.mxu0 %v10621_v25  ;;  %8160 = vmatpush1.bf16.msra.mxu1 %v10624_v26  ;;  %v10722_v25 = vld [vmem:[%s15489_s1 + $0xc64] ss:$16 sps:$4 sm:$0xff]   ;;  %v10725_v26 = vld [vmem:[%s15489_s1 + $0xc6c] ss:$16 sps:$4 sm:$0xff]  }
 0x150   :  { %7387 = vmatprep.subr.bf16.mxu0 %v10629_v27  ;;  %8161 = vmatprep.subr.bf16.mxu1 %v10632_v28  ;;  %v10720_v27 = vld [vmem:[%s15489_s1 + $0xc60] ss:$16 sps:$4 sm:$0xff]   ;;  %v10723_v28 = vld [vmem:[%s15489_s1 + $0xc68] ss:$16 sps:$4 sm:$0xff]  }
 0x153   :  { %7388 = vmatpush1.bf16.msra.mxu0 %v10627_v29  ;;  %8162 = vmatpush1.bf16.msra.mxu1 %v10630_v30  ;;  %v10728_v29 = vld [vmem:[%s15489_s1 + $0xc84] ss:$16 sps:$4 sm:$0xff]   ;;  %v10731_v30 = vld [vmem:[%s15489_s1 + $0xc8c] ss:$16 sps:$4 sm:$0xff]  }
 0x154   :  { %7389 = vmatprep.subr.bf16.mxu0 %v10635_v31  ;;  %8163 = vmatprep.subr.bf16.mxu1 %v10638_v32  ;;  %v10726_v31 = vld [vmem:[%s15489_s1 + $0xc80] ss:$16 sps:$4 sm:$0xff]   ;;  %v10729_v32 = vld [vmem:[%s15489_s1 + $0xc88] ss:$16 sps:$4 sm:$0xff]  }
 0x157   :  { %7390 = vmatpush1.bf16.msra.mxu0 %v10633_v33  ;;  %8164 = vmatpush1.bf16.msra.mxu1 %v10636_v34  ;;  %v10734_v33 = vld [vmem:[%s15489_s1 + $0xca4] ss:$16 sps:$4 sm:$0xff]   ;;  %v10737_v34 = vld [vmem:[%s15489_s1 + $0xcac] ss:$16 sps:$4 sm:$0xff]  }
 0x158   :  { %7391 = vmatprep.subr.bf16.mxu0 %v10641_v35  ;;  %8165 = vmatprep.subr.bf16.mxu1 %v10644_v36  ;;  %v10732_v35 = vld [vmem:[%s15489_s1 + $0xca0] ss:$16 sps:$4 sm:$0xff]   ;;  %v10735_v36 = vld [vmem:[%s15489_s1 + $0xca8] ss:$16 sps:$4 sm:$0xff]  }
 0x15b   :  { %7392 = vmatpush1.bf16.msra.mxu0 %v10639_v37  ;;  %8166 = vmatpush1.bf16.msra.mxu1 %v10642_v38  ;;  %v10740_v37 = vld [vmem:[%s15489_s1 + $0xcc4] ss:$16 sps:$4 sm:$0xff]   ;;  %v10743_v38 = vld [vmem:[%s15489_s1 + $0xccc] ss:$16 sps:$4 sm:$0xff]  }
 0x15c   :  { %7393 = vmatprep.subr.bf16.mxu0 %v10647_v39  ;;  %8167 = vmatprep.subr.bf16.mxu1 %v10650_v40  ;;  %v10738_v39 = vld [vmem:[%s15489_s1 + $0xcc0] ss:$16 sps:$4 sm:$0xff]   ;;  %v10741_v40 = vld [vmem:[%s15489_s1 + $0xcc8] ss:$16 sps:$4 sm:$0xff]  }
 0x15f   :  { %7394 = vmatpush1.bf16.msra.mxu0 %v10645_v41  ;;  %8168 = vmatpush1.bf16.msra.mxu1 %v10648_v42  ;;  %v10746_v41 = vld [vmem:[%s15489_s1 + $0xce4] ss:$16 sps:$4 sm:$0xff]   ;;  %v10749_v42 = vld [vmem:[%s15489_s1 + $0xcec] ss:$16 sps:$4 sm:$0xff]  }
 0x160   :  { %7395 = vmatprep.subr.bf16.mxu0 %v10653_v43  ;;  %8169 = vmatprep.subr.bf16.mxu1 %v10656_v44  ;;  %v10744_v43 = vld [vmem:[%s15489_s1 + $0xce0] ss:$16 sps:$4 sm:$0xff]   ;;  %v10747_v44 = vld [vmem:[%s15489_s1 + $0xce8] ss:$16 sps:$4 sm:$0xff]  }
 0x163   :  { %7396 = vmatpush1.bf16.msra.mxu0 %v10651_v45  ;;  %8170 = vmatpush1.bf16.msra.mxu1 %v10654_v46  ;;  %v10752_v45 = vld [vmem:[%s15489_s1 + $0xd04] ss:$16 sps:$4 sm:$0xff]   ;;  %v10755_v46 = vld [vmem:[%s15489_s1 + $0xd0c] ss:$16 sps:$4 sm:$0xff]  }
 0x164   :  { %7397 = vmatprep.subr.bf16.mxu0 %v10659_v47  ;;  %8171 = vmatprep.subr.bf16.mxu1 %v10662_v48  ;;  %v10750_v47 = vld [vmem:[%s15489_s1 + $0xd00] ss:$16 sps:$4 sm:$0xff]   ;;  %v10753_v48 = vld [vmem:[%s15489_s1 + $0xd08] ss:$16 sps:$4 sm:$0xff]  }
 0x167   :  { %7398 = vmatpush1.bf16.msra.mxu0 %v10657_v49  ;;  %8172 = vmatpush1.bf16.msra.mxu1 %v10660_v50  ;;  %v10758_v49 = vld [vmem:[%s15489_s1 + $0xd24] ss:$16 sps:$4 sm:$0xff]   ;;  %v10761_v50 = vld [vmem:[%s15489_s1 + $0xd2c] ss:$16 sps:$4 sm:$0xff]  }
 0x168   :  { %7399 = vmatprep.subr.bf16.mxu0 %v10665_v51  ;;  %8173 = vmatprep.subr.bf16.mxu1 %v10668_v52  ;;  %v10756_v51 = vld [vmem:[%s15489_s1 + $0xd20] ss:$16 sps:$4 sm:$0xff]   ;;  %v10759_v52 = vld [vmem:[%s15489_s1 + $0xd28] ss:$16 sps:$4 sm:$0xff]  }
 0x16b   :  { %7400 = vmatpush1.bf16.msra.mxu0 %v10663_v53  ;;  %8174 = vmatpush1.bf16.msra.mxu1 %v10666_v54  ;;  %v10764_v53 = vld [vmem:[%s15489_s1 + $0xd44] ss:$16 sps:$4 sm:$0xff]   ;;  %v10767_v54 = vld [vmem:[%s15489_s1 + $0xd4c] ss:$16 sps:$4 sm:$0xff]  }
 0x16c   :  { %7401 = vmatprep.subr.bf16.mxu0 %v10671_v55  ;;  %8175 = vmatprep.subr.bf16.mxu1 %v10674_v56  ;;  %v10762_v55 = vld [vmem:[%s15489_s1 + $0xd40] ss:$16 sps:$4 sm:$0xff]   ;;  %v10765_v56 = vld [vmem:[%s15489_s1 + $0xd48] ss:$16 sps:$4 sm:$0xff]  }
 0x16f   :  { %7402 = vmatpush1.bf16.msra.mxu0 %v10669_v57  ;;  %8176 = vmatpush1.bf16.msra.mxu1 %v10672_v58  ;;  %v10770_v57 = vld [vmem:[%s15489_s1 + $0xd64] ss:$16 sps:$4 sm:$0xff]   ;;  %v10773_v58 = vld [vmem:[%s15489_s1 + $0xd6c] ss:$16 sps:$4 sm:$0xff]  }
 0x170   :  { %7403 = vmatprep.subr.bf16.mxu0 %v10677_v59  ;;  %8177 = vmatprep.subr.bf16.mxu1 %v10680_v60  ;;  %v10768_v59 = vld [vmem:[%s15489_s1 + $0xd60] ss:$16 sps:$4 sm:$0xff]   ;;  %v10771_v60 = vld [vmem:[%s15489_s1 + $0xd68] ss:$16 sps:$4 sm:$0xff]  }
 0x173   :  { %7404 = vmatpush1.bf16.msra.mxu0 %v10675_v61  ;;  %8178 = vmatpush1.bf16.msra.mxu1 %v10678_v62  ;;  %v10776_v61 = vld [vmem:[%s15489_s1 + $0xd84] ss:$16 sps:$4 sm:$0xff]   ;;  %v10779_v62 = vld [vmem:[%s15489_s1 + $0xd8c] ss:$16 sps:$4 sm:$0xff]  }
 0x174   :  { %7405 = vmatprep.subr.bf16.mxu0 %v10683_v63  ;;  %8179 = vmatprep.subr.bf16.mxu1 %v10686_v0  ;;  %v10774_v63 = vld [vmem:[%s15489_s1 + $0xd80] ss:$16 sps:$4 sm:$0xff]   ;;  %v10777_v0 = vld [vmem:[%s15489_s1 + $0xd88] ss:$16 sps:$4 sm:$0xff]  }
 0x177   :  { %7406 = vmatpush1.bf16.msra.mxu0 %v10681_v1  ;;  %8180 = vmatpush1.bf16.msra.mxu1 %v10684_v2  ;;  %v10782_v1 = vld [vmem:[%s15489_s1 + $0xda4] ss:$16 sps:$4 sm:$0xff]   ;;  %v10785_v2 = vld [vmem:[%s15489_s1 + $0xdac] ss:$16 sps:$4 sm:$0xff]  }
 0x178   :  { %7407 = vmatprep.subr.bf16.mxu0 %v10689_v3  ;;  %8181 = vmatprep.subr.bf16.mxu1 %v10692_v4  ;;  %v10780_v3 = vld [vmem:[%s15489_s1 + $0xda0] ss:$16 sps:$4 sm:$0xff]   ;;  %v10783_v4 = vld [vmem:[%s15489_s1 + $0xda8] ss:$16 sps:$4 sm:$0xff]  }
 0x17b   :  { %7408 = vmatpush1.bf16.msra.mxu0 %v10687_v5  ;;  %8182 = vmatpush1.bf16.msra.mxu1 %v10690_v6  ;;  %v10788_v5 = vld [vmem:[%s15489_s1 + $0xdc4] ss:$16 sps:$4 sm:$0xff]   ;;  %v10791_v6 = vld [vmem:[%s15489_s1 + $0xdcc] ss:$16 sps:$4 sm:$0xff]  }
 0x17c   :  { %7409 = vmatprep.subr.bf16.mxu0 %v10695_v7  ;;  %8183 = vmatprep.subr.bf16.mxu1 %v10698_v8  ;;  %v10786_v7 = vld [vmem:[%s15489_s1 + $0xdc0] ss:$16 sps:$4 sm:$0xff]   ;;  %v10789_v8 = vld [vmem:[%s15489_s1 + $0xdc8] ss:$16 sps:$4 sm:$0xff]  }
 0x17f   :  { %7410 = vmatpush1.bf16.msra.mxu0 %v10693_v9  ;;  %8184 = vmatpush1.bf16.msra.mxu1 %v10696_v10  ;;  %v10794_v9 = vld [vmem:[%s15489_s1 + $0xde4] ss:$16 sps:$4 sm:$0xff]   ;;  %v10797_v10 = vld [vmem:[%s15489_s1 + $0xdec] ss:$16 sps:$4 sm:$0xff]  }
 0x180   :  { %7422 = vmatprep.subr.bf16.mxu0 %v10704_v12  ;;  %8196 = vmatprep.subr.bf16.mxu1 %v10707_v13  ;;  %v10795_v12 = vld [vmem:[%s15489_s1 + $0xde8] ss:$16 sps:$4 sm:$0xff]   ;;  %v10798_v13 = vld [vmem:[%s15490_s0 + $0x30] ss:$144 sps:$4 sm:$0xff]  }
 0x182   :  { %7412 = vmatmul.mubr.bf16.vlgmr.msra.gmra.mrb[0].mxu0 %v10699_v11  ;;  %8186 = vmatmul.mubr.bf16.vlgmr.msra.gmra.mrb[0].mxu1 %v10699_v11  ;;  %v10792_v11 = vld [vmem:[%s15489_s1 + $0xde0] ss:$16 sps:$4 sm:$0xff]  }
 0x183   :  { %7423 = vmatpush1.bf16.msra.mxu0 %v10702_v14  ;;  %8197 = vmatpush1.bf16.msra.mxu1 %v10705_v15  ;;  %v10803_v14 = vld [vmem:[%s15489_s1 + $0xe04] ss:$16 sps:$4 sm:$0xff]   ;;  %v10806_v15 = vld [vmem:[%s15489_s1 + $0xe0c] ss:$16 sps:$4 sm:$0xff]  }
 0x184   :  { %7424 = vmatprep.subr.bf16.mxu0 %v10710_v16  ;;  %8198 = vmatprep.subr.bf16.mxu1 %v10713_v17  ;;  %v10801_v16 = vld [vmem:[%s15489_s1 + $0xe00] ss:$16 sps:$4 sm:$0xff]   ;;  %v10804_v17 = vld [vmem:[%s15489_s1 + $0xe08] ss:$16 sps:$4 sm:$0xff]  }
 0x185   :  { %7454 = vmatprep.mubr.bf16.mxu0 %v10800_v18  ;;  %8228 = vmatprep.mubr.bf16.mxu1 %v10800_v18  ;;  %v10809_v18 = vld [vmem:[%s15489_s1 + $0xe24] ss:$16 sps:$4 sm:$0xff]  }
 0x187   :  { %7425 = vmatpush1.bf16.msra.mxu0 %v10708_v19  ;;  %8199 = vmatpush1.bf16.msra.mxu1 %v10711_v20  ;;  %v10812_v19 = vld [vmem:[%s15489_s1 + $0xe2c] ss:$16 sps:$4 sm:$0xff]  }
 0x188   :  { %7426 = vmatprep.subr.bf16.mxu0 %v10716_v21  ;;  %8200 = vmatprep.subr.bf16.mxu1 %v10719_v22  ;;  %v10899_v20 = vld [vmem:[%s15490_s0 + $0x3c] ss:$144 sps:$4 sm:$0xff]   ;;  %v10807_v21 = vld [vmem:[%s15489_s1 + $0xe20] ss:$16 sps:$4 sm:$0xff]   ;;  %v10810_v22 = vld [vmem:[%s15489_s1 + $0xe28] ss:$16 sps:$4 sm:$0xff]  }
 0x18b   :  { %7427 = vmatpush1.bf16.msra.mxu0 %v10714_v23  ;;  %8201 = vmatpush1.bf16.msra.mxu1 %v10717_v24  ;;  %v10815_v23 = vld [vmem:[%s15489_s1 + $0xe44] ss:$16 sps:$4 sm:$0xff]   ;;  %v10818_v24 = vld [vmem:[%s15489_s1 + $0xe4c] ss:$16 sps:$4 sm:$0xff]  }
 0x18c   :  { %7428 = vmatprep.subr.bf16.mxu0 %v10722_v25  ;;  %8202 = vmatprep.subr.bf16.mxu1 %v10725_v26  ;;  %v10813_v25 = vld [vmem:[%s15489_s1 + $0xe40] ss:$16 sps:$4 sm:$0xff]   ;;  %v10816_v26 = vld [vmem:[%s15489_s1 + $0xe48] ss:$16 sps:$4 sm:$0xff]  }
 0x18f   :  { %7429 = vmatpush1.bf16.msra.mxu0 %v10720_v27  ;;  %8203 = vmatpush1.bf16.msra.mxu1 %v10723_v28  ;;  %v10821_v27 = vld [vmem:[%s15489_s1 + $0xe64] ss:$16 sps:$4 sm:$0xff]   ;;  %v10824_v28 = vld [vmem:[%s15489_s1 + $0xe6c] ss:$16 sps:$4 sm:$0xff]  }
 0x190   :  { %7430 = vmatprep.subr.bf16.mxu0 %v10728_v29  ;;  %8204 = vmatprep.subr.bf16.mxu1 %v10731_v30  ;;  %v10819_v29 = vld [vmem:[%s15489_s1 + $0xe60] ss:$16 sps:$4 sm:$0xff]   ;;  %v10822_v30 = vld [vmem:[%s15489_s1 + $0xe68] ss:$16 sps:$4 sm:$0xff]  }
 0x193   :  { %7431 = vmatpush1.bf16.msra.mxu0 %v10726_v31  ;;  %8205 = vmatpush1.bf16.msra.mxu1 %v10729_v32  ;;  %v10827_v31 = vld [vmem:[%s15489_s1 + $0xe84] ss:$16 sps:$4 sm:$0xff]   ;;  %v10830_v32 = vld [vmem:[%s15489_s1 + $0xe8c] ss:$16 sps:$4 sm:$0xff]  }
 0x194   :  { %7432 = vmatprep.subr.bf16.mxu0 %v10734_v33  ;;  %8206 = vmatprep.subr.bf16.mxu1 %v10737_v34  ;;  %v10825_v33 = vld [vmem:[%s15489_s1 + $0xe80] ss:$16 sps:$4 sm:$0xff]   ;;  %v10828_v34 = vld [vmem:[%s15489_s1 + $0xe88] ss:$16 sps:$4 sm:$0xff]  }
 0x197   :  { %7433 = vmatpush1.bf16.msra.mxu0 %v10732_v35  ;;  %8207 = vmatpush1.bf16.msra.mxu1 %v10735_v36  ;;  %v10833_v35 = vld [vmem:[%s15489_s1 + $0xea4] ss:$16 sps:$4 sm:$0xff]   ;;  %v10836_v36 = vld [vmem:[%s15489_s1 + $0xeac] ss:$16 sps:$4 sm:$0xff]  }
 0x198   :  { %7434 = vmatprep.subr.bf16.mxu0 %v10740_v37  ;;  %8208 = vmatprep.subr.bf16.mxu1 %v10743_v38  ;;  %v10831_v37 = vld [vmem:[%s15489_s1 + $0xea0] ss:$16 sps:$4 sm:$0xff]   ;;  %v10834_v38 = vld [vmem:[%s15489_s1 + $0xea8] ss:$16 sps:$4 sm:$0xff]  }
 0x19b   :  { %7435 = vmatpush1.bf16.msra.mxu0 %v10738_v39  ;;  %8209 = vmatpush1.bf16.msra.mxu1 %v10741_v40  ;;  %v10839_v39 = vld [vmem:[%s15489_s1 + $0xec4] ss:$16 sps:$4 sm:$0xff]   ;;  %v10842_v40 = vld [vmem:[%s15489_s1 + $0xecc] ss:$16 sps:$4 sm:$0xff]  }
 0x19c   :  { %7436 = vmatprep.subr.bf16.mxu0 %v10746_v41  ;;  %8210 = vmatprep.subr.bf16.mxu1 %v10749_v42  ;;  %v10837_v41 = vld [vmem:[%s15489_s1 + $0xec0] ss:$16 sps:$4 sm:$0xff]   ;;  %v10840_v42 = vld [vmem:[%s15489_s1 + $0xec8] ss:$16 sps:$4 sm:$0xff]  }
 0x19f   :  { %7437 = vmatpush1.bf16.msra.mxu0 %v10744_v43  ;;  %8211 = vmatpush1.bf16.msra.mxu1 %v10747_v44  ;;  %v10845_v43 = vld [vmem:[%s15489_s1 + $0xee4] ss:$16 sps:$4 sm:$0xff]   ;;  %v10848_v44 = vld [vmem:[%s15489_s1 + $0xeec] ss:$16 sps:$4 sm:$0xff]  }
 0x1a0   :  { %7438 = vmatprep.subr.bf16.mxu0 %v10752_v45  ;;  %8212 = vmatprep.subr.bf16.mxu1 %v10755_v46  ;;  %v10843_v45 = vld [vmem:[%s15489_s1 + $0xee0] ss:$16 sps:$4 sm:$0xff]   ;;  %v10846_v46 = vld [vmem:[%s15489_s1 + $0xee8] ss:$16 sps:$4 sm:$0xff]  }
 0x1a3   :  { %7439 = vmatpush1.bf16.msra.mxu0 %v10750_v47  ;;  %8213 = vmatpush1.bf16.msra.mxu1 %v10753_v48  ;;  %v10851_v47 = vld [vmem:[%s15489_s1 + $0xf04] ss:$16 sps:$4 sm:$0xff]   ;;  %v10854_v48 = vld [vmem:[%s15489_s1 + $0xf0c] ss:$16 sps:$4 sm:$0xff]  }
 0x1a4   :  { %7440 = vmatprep.subr.bf16.mxu0 %v10758_v49  ;;  %8214 = vmatprep.subr.bf16.mxu1 %v10761_v50  ;;  %v10849_v49 = vld [vmem:[%s15489_s1 + $0xf00] ss:$16 sps:$4 sm:$0xff]   ;;  %v10852_v50 = vld [vmem:[%s15489_s1 + $0xf08] ss:$16 sps:$4 sm:$0xff]  }
 0x1a7   :  { %7441 = vmatpush1.bf16.msra.mxu0 %v10756_v51  ;;  %8215 = vmatpush1.bf16.msra.mxu1 %v10759_v52  ;;  %v10857_v51 = vld [vmem:[%s15489_s1 + $0xf24] ss:$16 sps:$4 sm:$0xff]   ;;  %v10860_v52 = vld [vmem:[%s15489_s1 + $0xf2c] ss:$16 sps:$4 sm:$0xff]  }
 0x1a8   :  { %7442 = vmatprep.subr.bf16.mxu0 %v10764_v53  ;;  %8216 = vmatprep.subr.bf16.mxu1 %v10767_v54  ;;  %v10855_v53 = vld [vmem:[%s15489_s1 + $0xf20] ss:$16 sps:$4 sm:$0xff]   ;;  %v10858_v54 = vld [vmem:[%s15489_s1 + $0xf28] ss:$16 sps:$4 sm:$0xff]  }
 0x1ab   :  { %7443 = vmatpush1.bf16.msra.mxu0 %v10762_v55  ;;  %8217 = vmatpush1.bf16.msra.mxu1 %v10765_v56  ;;  %v10863_v55 = vld [vmem:[%s15489_s1 + $0xf44] ss:$16 sps:$4 sm:$0xff]   ;;  %v10866_v56 = vld [vmem:[%s15489_s1 + $0xf4c] ss:$16 sps:$4 sm:$0xff]  }
 0x1ac   :  { %7444 = vmatprep.subr.bf16.mxu0 %v10770_v57  ;;  %8218 = vmatprep.subr.bf16.mxu1 %v10773_v58  ;;  %v10861_v57 = vld [vmem:[%s15489_s1 + $0xf40] ss:$16 sps:$4 sm:$0xff]   ;;  %v10864_v58 = vld [vmem:[%s15489_s1 + $0xf48] ss:$16 sps:$4 sm:$0xff]  }
 0x1af   :  { %7445 = vmatpush1.bf16.msra.mxu0 %v10768_v59  ;;  %8219 = vmatpush1.bf16.msra.mxu1 %v10771_v60  ;;  %v10869_v59 = vld [vmem:[%s15489_s1 + $0xf64] ss:$16 sps:$4 sm:$0xff]   ;;  %v10872_v60 = vld [vmem:[%s15489_s1 + $0xf6c] ss:$16 sps:$4 sm:$0xff]  }
 0x1b0   :  { %7446 = vmatprep.subr.bf16.mxu0 %v10776_v61  ;;  %8220 = vmatprep.subr.bf16.mxu1 %v10779_v62  ;;  %v10867_v61 = vld [vmem:[%s15489_s1 + $0xf60] ss:$16 sps:$4 sm:$0xff]   ;;  %v10870_v62 = vld [vmem:[%s15489_s1 + $0xf68] ss:$16 sps:$4 sm:$0xff]  }
 0x1b3   :  { %7447 = vmatpush1.bf16.msra.mxu0 %v10774_v63  ;;  %8221 = vmatpush1.bf16.msra.mxu1 %v10777_v0  ;;  %v10875_v63 = vld [vmem:[%s15489_s1 + $0xf84] ss:$16 sps:$4 sm:$0xff]   ;;  %v10878_v0 = vld [vmem:[%s15489_s1 + $0xf8c] ss:$16 sps:$4 sm:$0xff]  }
 0x1b4   :  { %7448 = vmatprep.subr.bf16.mxu0 %v10782_v1  ;;  %8222 = vmatprep.subr.bf16.mxu1 %v10785_v2  ;;  %v10873_v1 = vld [vmem:[%s15489_s1 + $0xf80] ss:$16 sps:$4 sm:$0xff]   ;;  %v10876_v2 = vld [vmem:[%s15489_s1 + $0xf88] ss:$16 sps:$4 sm:$0xff]  }
 0x1b7   :  { %7449 = vmatpush1.bf16.msra.mxu0 %v10780_v3  ;;  %8223 = vmatpush1.bf16.msra.mxu1 %v10783_v4  ;;  %v10881_v3 = vld [vmem:[%s15489_s1 + $0xfa4] ss:$16 sps:$4 sm:$0xff]   ;;  %v10884_v4 = vld [vmem:[%s15489_s1 + $0xfac] ss:$16 sps:$4 sm:$0xff]  }
 0x1b8   :  { %7450 = vmatprep.subr.bf16.mxu0 %v10788_v5  ;;  %8224 = vmatprep.subr.bf16.mxu1 %v10791_v6  ;;  %v10879_v5 = vld [vmem:[%s15489_s1 + $0xfa0] ss:$16 sps:$4 sm:$0xff]   ;;  %v10882_v6 = vld [vmem:[%s15489_s1 + $0xfa8] ss:$16 sps:$4 sm:$0xff]  }
 0x1bb   :  { %7451 = vmatpush1.bf16.msra.mxu0 %v10786_v7  ;;  %8225 = vmatpush1.bf16.msra.mxu1 %v10789_v8  ;;  %v10887_v7 = vld [vmem:[%s15489_s1 + $0xfc4] ss:$16 sps:$4 sm:$0xff]   ;;  %v10890_v8 = vld [vmem:[%s15489_s1 + $0xfcc] ss:$16 sps:$4 sm:$0xff]  }
 0x1bc   :  { %7452 = vmatprep.subr.bf16.mxu0 %v10794_v9  ;;  %8226 = vmatprep.subr.bf16.mxu1 %v10797_v10  ;;  %v10885_v9 = vld [vmem:[%s15489_s1 + $0xfc0] ss:$16 sps:$4 sm:$0xff]   ;;  %v10888_v10 = vld [vmem:[%s15489_s1 + $0xfc8] ss:$16 sps:$4 sm:$0xff]  }
 0x1bf   :  { %7453 = vmatpush1.bf16.msra.mxu0 %v10792_v11  ;;  %8227 = vmatpush1.bf16.msra.mxu1 %v10795_v12  ;;  %v10893_v11 = vld [vmem:[%s15489_s1 + $0xfe4] ss:$16 sps:$4 sm:$0xff]   ;;  %v10896_v12 = vld [vmem:[%s15489_s1 + $0xfec] ss:$16 sps:$4 sm:$0xff]  }
 0x1c0   :  { %7465 = vmatprep.subr.bf16.mxu0 %v10803_v14  ;;  %8239 = vmatprep.subr.bf16.mxu1 %v10806_v15  ;;  %v10894_v14 = vld [vmem:[%s15489_s1 + $0xfe8] ss:$16 sps:$4 sm:$0xff]  }
 0x1c1   :  { %v10897_v15 = vld [vmem:[%s15490_s0 + $0x38] ss:$144 sps:$4 sm:$0xff]  }
 0x1c2   :  { %7455 = vmatmul.mubr.bf16.vlgmr.msra.gmra.mrb[0].mxu0 %v10798_v13  ;;  %8229 = vmatmul.mubr.bf16.vlgmr.msra.gmra.mrb[0].mxu1 %v10798_v13  ;;  %v10891_v13 = vld [vmem:[%s15489_s1 + $0xfe0] ss:$16 sps:$4 sm:$0xff]  }
 0x1c3   :  { %7466 = vmatpush1.bf16.msra.mxu0 %v10801_v16  ;;  %8240 = vmatpush1.bf16.msra.mxu1 %v10804_v17  ;;  %v10902_v16 = vld [vmem:[%s15489_s1 + $0x1004] ss:$16 sps:$4 sm:$0xff]   ;;  %v10905_v17 = vld [vmem:[%s15489_s1 + $0x100c] ss:$16 sps:$4 sm:$0xff]  }
 0x1c4   :  { %7467 = vmatprep.subr.bf16.mxu0 %v10809_v18  ;;  %8241 = vmatprep.subr.bf16.mxu1 %v10812_v19  ;;  %v10900_v18 = vld [vmem:[%s15489_s1 + $0x1000] ss:$16 sps:$4 sm:$0xff]   ;;  %v10903_v19 = vld [vmem:[%s15489_s1 + $0x1008] ss:$16 sps:$4 sm:$0xff]  }
 0x1c5   :  { %7497 = vmatprep.mubr.bf16.mxu0 %v10899_v20  ;;  %8271 = vmatprep.mubr.bf16.mxu1 %v10899_v20  ;;  %v10908_v20 = vld [vmem:[%s15489_s1 + $0x1024] ss:$16 sps:$4 sm:$0xff]  }
 0x1c7   :  { %7468 = vmatpush1.bf16.msra.mxu0 %v10807_v21  ;;  %8242 = vmatpush1.bf16.msra.mxu1 %v10810_v22  ;;  %v10911_v21 = vld [vmem:[%s15489_s1 + $0x102c] ss:$16 sps:$4 sm:$0xff]   ;;  %v10998_v22 = vld [vmem:[%s15490_s0 + $0x44] ss:$144 sps:$4 sm:$0xff]  }
 0x1c8   :  { %7469 = vmatprep.subr.bf16.mxu0 %v10815_v23  ;;  %8243 = vmatprep.subr.bf16.mxu1 %v10818_v24  ;;  %v10906_v23 = vld [vmem:[%s15489_s1 + $0x1020] ss:$16 sps:$4 sm:$0xff]   ;;  %v10909_v24 = vld [vmem:[%s15489_s1 + $0x1028] ss:$16 sps:$4 sm:$0xff]  }
 0x1cb   :  { %7470 = vmatpush1.bf16.msra.mxu0 %v10813_v25  ;;  %8244 = vmatpush1.bf16.msra.mxu1 %v10816_v26  ;;  %v10914_v25 = vld [vmem:[%s15489_s1 + $0x1044] ss:$16 sps:$4 sm:$0xff]   ;;  %v10917_v26 = vld [vmem:[%s15489_s1 + $0x104c] ss:$16 sps:$4 sm:$0xff]  }
 0x1cc   :  { %7471 = vmatprep.subr.bf16.mxu0 %v10821_v27  ;;  %8245 = vmatprep.subr.bf16.mxu1 %v10824_v28  ;;  %v10912_v27 = vld [vmem:[%s15489_s1 + $0x1040] ss:$16 sps:$4 sm:$0xff]   ;;  %v10915_v28 = vld [vmem:[%s15489_s1 + $0x1048] ss:$16 sps:$4 sm:$0xff]  }
 0x1cf   :  { %7472 = vmatpush1.bf16.msra.mxu0 %v10819_v29  ;;  %8246 = vmatpush1.bf16.msra.mxu1 %v10822_v30  ;;  %v10920_v29 = vld [vmem:[%s15489_s1 + $0x1064] ss:$16 sps:$4 sm:$0xff]   ;;  %v10923_v30 = vld [vmem:[%s15489_s1 + $0x106c] ss:$16 sps:$4 sm:$0xff]  }
 0x1d0   :  { %7473 = vmatprep.subr.bf16.mxu0 %v10827_v31  ;;  %8247 = vmatprep.subr.bf16.mxu1 %v10830_v32  ;;  %v10918_v31 = vld [vmem:[%s15489_s1 + $0x1060] ss:$16 sps:$4 sm:$0xff]   ;;  %v10921_v32 = vld [vmem:[%s15489_s1 + $0x1068] ss:$16 sps:$4 sm:$0xff]  }
 0x1d3   :  { %7474 = vmatpush1.bf16.msra.mxu0 %v10825_v33  ;;  %8248 = vmatpush1.bf16.msra.mxu1 %v10828_v34  ;;  %v10926_v33 = vld [vmem:[%s15489_s1 + $0x1084] ss:$16 sps:$4 sm:$0xff]   ;;  %v10929_v34 = vld [vmem:[%s15489_s1 + $0x108c] ss:$16 sps:$4 sm:$0xff]  }
 0x1d4   :  { %7475 = vmatprep.subr.bf16.mxu0 %v10833_v35  ;;  %8249 = vmatprep.subr.bf16.mxu1 %v10836_v36  ;;  %v10924_v35 = vld [vmem:[%s15489_s1 + $0x1080] ss:$16 sps:$4 sm:$0xff]   ;;  %v10927_v36 = vld [vmem:[%s15489_s1 + $0x1088] ss:$16 sps:$4 sm:$0xff]  }
 0x1d7   :  { %7476 = vmatpush1.bf16.msra.mxu0 %v10831_v37  ;;  %8250 = vmatpush1.bf16.msra.mxu1 %v10834_v38  ;;  %v10932_v37 = vld [vmem:[%s15489_s1 + $0x10a4] ss:$16 sps:$4 sm:$0xff]   ;;  %v10935_v38 = vld [vmem:[%s15489_s1 + $0x10ac] ss:$16 sps:$4 sm:$0xff]  }
 0x1d8   :  { %7477 = vmatprep.subr.bf16.mxu0 %v10839_v39  ;;  %8251 = vmatprep.subr.bf16.mxu1 %v10842_v40  ;;  %v10930_v39 = vld [vmem:[%s15489_s1 + $0x10a0] ss:$16 sps:$4 sm:$0xff]   ;;  %v10933_v40 = vld [vmem:[%s15489_s1 + $0x10a8] ss:$16 sps:$4 sm:$0xff]  }
 0x1db   :  { %7478 = vmatpush1.bf16.msra.mxu0 %v10837_v41  ;;  %8252 = vmatpush1.bf16.msra.mxu1 %v10840_v42  ;;  %v10938_v41 = vld [vmem:[%s15489_s1 + $0x10c4] ss:$16 sps:$4 sm:$0xff]   ;;  %v10941_v42 = vld [vmem:[%s15489_s1 + $0x10cc] ss:$16 sps:$4 sm:$0xff]  }
 0x1dc   :  { %7479 = vmatprep.subr.bf16.mxu0 %v10845_v43  ;;  %8253 = vmatprep.subr.bf16.mxu1 %v10848_v44  ;;  %v10936_v43 = vld [vmem:[%s15489_s1 + $0x10c0] ss:$16 sps:$4 sm:$0xff]   ;;  %v10939_v44 = vld [vmem:[%s15489_s1 + $0x10c8] ss:$16 sps:$4 sm:$0xff]  }
 0x1df   :  { %7480 = vmatpush1.bf16.msra.mxu0 %v10843_v45  ;;  %8254 = vmatpush1.bf16.msra.mxu1 %v10846_v46  ;;  %v10944_v45 = vld [vmem:[%s15489_s1 + $0x10e4] ss:$16 sps:$4 sm:$0xff]   ;;  %v10947_v46 = vld [vmem:[%s15489_s1 + $0x10ec] ss:$16 sps:$4 sm:$0xff]  }
 0x1e0   :  { %7481 = vmatprep.subr.bf16.mxu0 %v10851_v47  ;;  %8255 = vmatprep.subr.bf16.mxu1 %v10854_v48  ;;  %v10942_v47 = vld [vmem:[%s15489_s1 + $0x10e0] ss:$16 sps:$4 sm:$0xff]   ;;  %v10945_v48 = vld [vmem:[%s15489_s1 + $0x10e8] ss:$16 sps:$4 sm:$0xff]  }
 0x1e3   :  { %7482 = vmatpush1.bf16.msra.mxu0 %v10849_v49  ;;  %8256 = vmatpush1.bf16.msra.mxu1 %v10852_v50  ;;  %v10950_v49 = vld [vmem:[%s15489_s1 + $0x1104] ss:$16 sps:$4 sm:$0xff]   ;;  %v10953_v50 = vld [vmem:[%s15489_s1 + $0x110c] ss:$16 sps:$4 sm:$0xff]  }
 0x1e4   :  { %7483 = vmatprep.subr.bf16.mxu0 %v10857_v51  ;;  %8257 = vmatprep.subr.bf16.mxu1 %v10860_v52  ;;  %v10948_v51 = vld [vmem:[%s15489_s1 + $0x1100] ss:$16 sps:$4 sm:$0xff]   ;;  %v10951_v52 = vld [vmem:[%s15489_s1 + $0x1108] ss:$16 sps:$4 sm:$0xff]  }
 0x1e7   :  { %7484 = vmatpush1.bf16.msra.mxu0 %v10855_v53  ;;  %8258 = vmatpush1.bf16.msra.mxu1 %v10858_v54  ;;  %v10956_v53 = vld [vmem:[%s15489_s1 + $0x1124] ss:$16 sps:$4 sm:$0xff]   ;;  %v10959_v54 = vld [vmem:[%s15489_s1 + $0x112c] ss:$16 sps:$4 sm:$0xff]  }
 0x1e8   :  { %7485 = vmatprep.subr.bf16.mxu0 %v10863_v55  ;;  %8259 = vmatprep.subr.bf16.mxu1 %v10866_v56  ;;  %v10954_v55 = vld [vmem:[%s15489_s1 + $0x1120] ss:$16 sps:$4 sm:$0xff]   ;;  %v10957_v56 = vld [vmem:[%s15489_s1 + $0x1128] ss:$16 sps:$4 sm:$0xff]  }
 0x1eb   :  { %7486 = vmatpush1.bf16.msra.mxu0 %v10861_v57  ;;  %8260 = vmatpush1.bf16.msra.mxu1 %v10864_v58  ;;  %v10962_v57 = vld [vmem:[%s15489_s1 + $0x1144] ss:$16 sps:$4 sm:$0xff]   ;;  %v10965_v58 = vld [vmem:[%s15489_s1 + $0x114c] ss:$16 sps:$4 sm:$0xff]  }
 0x1ec   :  { %7487 = vmatprep.subr.bf16.mxu0 %v10869_v59  ;;  %8261 = vmatprep.subr.bf16.mxu1 %v10872_v60  ;;  %v10960_v59 = vld [vmem:[%s15489_s1 + $0x1140] ss:$16 sps:$4 sm:$0xff]   ;;  %v10963_v60 = vld [vmem:[%s15489_s1 + $0x1148] ss:$16 sps:$4 sm:$0xff]  }
 0x1ef   :  { %7488 = vmatpush1.bf16.msra.mxu0 %v10867_v61  ;;  %8262 = vmatpush1.bf16.msra.mxu1 %v10870_v62  ;;  %v10968_v61 = vld [vmem:[%s15489_s1 + $0x1164] ss:$16 sps:$4 sm:$0xff]   ;;  %v10971_v62 = vld [vmem:[%s15489_s1 + $0x116c] ss:$16 sps:$4 sm:$0xff]  }
 0x1f0   :  { %7489 = vmatprep.subr.bf16.mxu0 %v10875_v63  ;;  %8263 = vmatprep.subr.bf16.mxu1 %v10878_v0  ;;  %v10966_v63 = vld [vmem:[%s15489_s1 + $0x1160] ss:$16 sps:$4 sm:$0xff]   ;;  %v10969_v0 = vld [vmem:[%s15489_s1 + $0x1168] ss:$16 sps:$4 sm:$0xff]  }
 0x1f3   :  { %7490 = vmatpush1.bf16.msra.mxu0 %v10873_v1  ;;  %8264 = vmatpush1.bf16.msra.mxu1 %v10876_v2  ;;  %v10974_v1 = vld [vmem:[%s15489_s1 + $0x1184] ss:$16 sps:$4 sm:$0xff]   ;;  %v10977_v2 = vld [vmem:[%s15489_s1 + $0x118c] ss:$16 sps:$4 sm:$0xff]  }
 0x1f4   :  { %7491 = vmatprep.subr.bf16.mxu0 %v10881_v3  ;;  %8265 = vmatprep.subr.bf16.mxu1 %v10884_v4  ;;  %v10972_v3 = vld [vmem:[%s15489_s1 + $0x1180] ss:$16 sps:$4 sm:$0xff]   ;;  %v10975_v4 = vld [vmem:[%s15489_s1 + $0x1188] ss:$16 sps:$4 sm:$0xff]  }
 0x1f7   :  { %7492 = vmatpush1.bf16.msra.mxu0 %v10879_v5  ;;  %8266 = vmatpush1.bf16.msra.mxu1 %v10882_v6  ;;  %v10980_v5 = vld [vmem:[%s15489_s1 + $0x11a4] ss:$16 sps:$4 sm:$0xff]   ;;  %v10983_v6 = vld [vmem:[%s15489_s1 + $0x11ac] ss:$16 sps:$4 sm:$0xff]  }
 0x1f8   :  { %7493 = vmatprep.subr.bf16.mxu0 %v10887_v7  ;;  %8267 = vmatprep.subr.bf16.mxu1 %v10890_v8  ;;  %v10978_v7 = vld [vmem:[%s15489_s1 + $0x11a0] ss:$16 sps:$4 sm:$0xff]   ;;  %v10981_v8 = vld [vmem:[%s15489_s1 + $0x11a8] ss:$16 sps:$4 sm:$0xff]  }
 0x1fb   :  { %7494 = vmatpush1.bf16.msra.mxu0 %v10885_v9  ;;  %8268 = vmatpush1.bf16.msra.mxu1 %v10888_v10  ;;  %v10986_v9 = vld [vmem:[%s15489_s1 + $0x11c4] ss:$16 sps:$4 sm:$0xff]   ;;  %v10989_v10 = vld [vmem:[%s15489_s1 + $0x11cc] ss:$16 sps:$4 sm:$0xff]  }
 0x1fc   :  { %7495 = vmatprep.subr.bf16.mxu0 %v10893_v11  ;;  %8269 = vmatprep.subr.bf16.mxu1 %v10896_v12  ;;  %v10984_v11 = vld [vmem:[%s15489_s1 + $0x11c0] ss:$16 sps:$4 sm:$0xff]   ;;  %v10987_v12 = vld [vmem:[%s15489_s1 + $0x11c8] ss:$16 sps:$4 sm:$0xff]  }
 0x1ff   :  { %7496 = vmatpush1.bf16.msra.mxu0 %v10891_v13  ;;  %8270 = vmatpush1.bf16.msra.mxu1 %v10894_v14  ;;  %v10992_v13 = vld [vmem:[%s15489_s1 + $0x11e4] ss:$16 sps:$4 sm:$0xff]   ;;  %v10995_v14 = vld [vmem:[%s15489_s1 + $0x11ec] ss:$16 sps:$4 sm:$0xff]  }
 0x200   :  { %7508 = vmatprep.subr.bf16.mxu0 %v10902_v16  ;;  %8282 = vmatprep.subr.bf16.mxu1 %v10905_v17  ;;  %v10993_v16 = vld [vmem:[%s15489_s1 + $0x11e8] ss:$16 sps:$4 sm:$0xff]   ;;  %v10996_v17 = vld [vmem:[%s15490_s0 + $0x40] ss:$144 sps:$4 sm:$0xff]  }
 0x202   :  { %7498 = vmatmul.mubr.bf16.vlgmr.msra.gmra.mrb[0].mxu0 %v10897_v15  ;;  %8272 = vmatmul.mubr.bf16.vlgmr.msra.gmra.mrb[0].mxu1 %v10897_v15  ;;  %v10990_v15 = vld [vmem:[%s15489_s1 + $0x11e0] ss:$16 sps:$4 sm:$0xff]  }
 0x203   :  { %7509 = vmatpush1.bf16.msra.mxu0 %v10900_v18  ;;  %8283 = vmatpush1.bf16.msra.mxu1 %v10903_v19  ;;  %v11001_v18 = vld [vmem:[%s15489_s1 + $0x1204] ss:$16 sps:$4 sm:$0xff]   ;;  %v11004_v19 = vld [vmem:[%s15489_s1 + $0x120c] ss:$16 sps:$4 sm:$0xff]  }
 0x204   :  { %7510 = vmatprep.subr.bf16.mxu0 %v10908_v20  ;;  %8284 = vmatprep.subr.bf16.mxu1 %v10911_v21  ;;  %v10999_v20 = vld [vmem:[%s15489_s1 + $0x1200] ss:$16 sps:$4 sm:$0xff]   ;;  %v11002_v21 = vld [vmem:[%s15489_s1 + $0x1208] ss:$16 sps:$4 sm:$0xff]  }
 0x205   :  { %7540 = vmatprep.mubr.bf16.mxu0 %v10998_v22  ;;  %8314 = vmatprep.mubr.bf16.mxu1 %v10998_v22  ;;  %v11007_v22 = vld [vmem:[%s15489_s1 + $0x1224] ss:$16 sps:$4 sm:$0xff]  }
 0x207   :  { %7511 = vmatpush1.bf16.msra.mxu0 %v10906_v23  ;;  %8285 = vmatpush1.bf16.msra.mxu1 %v10909_v24  ;;  %v11010_v23 = vld [vmem:[%s15489_s1 + $0x122c] ss:$16 sps:$4 sm:$0xff]  }
 0x208   :  { %7512 = vmatprep.subr.bf16.mxu0 %v10914_v25  ;;  %8286 = vmatprep.subr.bf16.mxu1 %v10917_v26  ;;  %v11097_v24 = vld [vmem:[%s15490_s0 + $0x4c] ss:$144 sps:$4 sm:$0xff]   ;;  %v11005_v25 = vld [vmem:[%s15489_s1 + $0x1220] ss:$16 sps:$4 sm:$0xff]   ;;  %v11008_v26 = vld [vmem:[%s15489_s1 + $0x1228] ss:$16 sps:$4 sm:$0xff]  }
 0x20b   :  { %7513 = vmatpush1.bf16.msra.mxu0 %v10912_v27  ;;  %8287 = vmatpush1.bf16.msra.mxu1 %v10915_v28  ;;  %v11013_v27 = vld [vmem:[%s15489_s1 + $0x1244] ss:$16 sps:$4 sm:$0xff]   ;;  %v11016_v28 = vld [vmem:[%s15489_s1 + $0x124c] ss:$16 sps:$4 sm:$0xff]  }
 0x20c   :  { %7514 = vmatprep.subr.bf16.mxu0 %v10920_v29  ;;  %8288 = vmatprep.subr.bf16.mxu1 %v10923_v30  ;;  %v11011_v29 = vld [vmem:[%s15489_s1 + $0x1240] ss:$16 sps:$4 sm:$0xff]   ;;  %v11014_v30 = vld [vmem:[%s15489_s1 + $0x1248] ss:$16 sps:$4 sm:$0xff]  }
 0x20f   :  { %7515 = vmatpush1.bf16.msra.mxu0 %v10918_v31  ;;  %8289 = vmatpush1.bf16.msra.mxu1 %v10921_v32  ;;  %v11019_v31 = vld [vmem:[%s15489_s1 + $0x1264] ss:$16 sps:$4 sm:$0xff]   ;;  %v11022_v32 = vld [vmem:[%s15489_s1 + $0x126c] ss:$16 sps:$4 sm:$0xff]  }
 0x210   :  { %7516 = vmatprep.subr.bf16.mxu0 %v10926_v33  ;;  %8290 = vmatprep.subr.bf16.mxu1 %v10929_v34  ;;  %v11017_v33 = vld [vmem:[%s15489_s1 + $0x1260] ss:$16 sps:$4 sm:$0xff]   ;;  %v11020_v34 = vld [vmem:[%s15489_s1 + $0x1268] ss:$16 sps:$4 sm:$0xff]  }
 0x213   :  { %7517 = vmatpush1.bf16.msra.mxu0 %v10924_v35  ;;  %8291 = vmatpush1.bf16.msra.mxu1 %v10927_v36  ;;  %v11025_v35 = vld [vmem:[%s15489_s1 + $0x1284] ss:$16 sps:$4 sm:$0xff]   ;;  %v11028_v36 = vld [vmem:[%s15489_s1 + $0x128c] ss:$16 sps:$4 sm:$0xff]  }
 0x214   :  { %7518 = vmatprep.subr.bf16.mxu0 %v10932_v37  ;;  %8292 = vmatprep.subr.bf16.mxu1 %v10935_v38  ;;  %v11023_v37 = vld [vmem:[%s15489_s1 + $0x1280] ss:$16 sps:$4 sm:$0xff]   ;;  %v11026_v38 = vld [vmem:[%s15489_s1 + $0x1288] ss:$16 sps:$4 sm:$0xff]  }
 0x217   :  { %7519 = vmatpush1.bf16.msra.mxu0 %v10930_v39  ;;  %8293 = vmatpush1.bf16.msra.mxu1 %v10933_v40  ;;  %v11031_v39 = vld [vmem:[%s15489_s1 + $0x12a4] ss:$16 sps:$4 sm:$0xff]   ;;  %v11034_v40 = vld [vmem:[%s15489_s1 + $0x12ac] ss:$16 sps:$4 sm:$0xff]  }
 0x218   :  { %7520 = vmatprep.subr.bf16.mxu0 %v10938_v41  ;;  %8294 = vmatprep.subr.bf16.mxu1 %v10941_v42  ;;  %v11029_v41 = vld [vmem:[%s15489_s1 + $0x12a0] ss:$16 sps:$4 sm:$0xff]   ;;  %v11032_v42 = vld [vmem:[%s15489_s1 + $0x12a8] ss:$16 sps:$4 sm:$0xff]  }
 0x21b   :  { %7521 = vmatpush1.bf16.msra.mxu0 %v10936_v43  ;;  %8295 = vmatpush1.bf16.msra.mxu1 %v10939_v44  ;;  %v11037_v43 = vld [vmem:[%s15489_s1 + $0x12c4] ss:$16 sps:$4 sm:$0xff]   ;;  %v11040_v44 = vld [vmem:[%s15489_s1 + $0x12cc] ss:$16 sps:$4 sm:$0xff]  }
 0x21c   :  { %7522 = vmatprep.subr.bf16.mxu0 %v10944_v45  ;;  %8296 = vmatprep.subr.bf16.mxu1 %v10947_v46  ;;  %v11035_v45 = vld [vmem:[%s15489_s1 + $0x12c0] ss:$16 sps:$4 sm:$0xff]   ;;  %v11038_v46 = vld [vmem:[%s15489_s1 + $0x12c8] ss:$16 sps:$4 sm:$0xff]  }
 0x21f   :  { %7523 = vmatpush1.bf16.msra.mxu0 %v10942_v47  ;;  %8297 = vmatpush1.bf16.msra.mxu1 %v10945_v48  ;;  %v11043_v47 = vld [vmem:[%s15489_s1 + $0x12e4] ss:$16 sps:$4 sm:$0xff]   ;;  %v11046_v48 = vld [vmem:[%s15489_s1 + $0x12ec] ss:$16 sps:$4 sm:$0xff]  }
 0x220   :  { %7524 = vmatprep.subr.bf16.mxu0 %v10950_v49  ;;  %8298 = vmatprep.subr.bf16.mxu1 %v10953_v50  ;;  %v11041_v49 = vld [vmem:[%s15489_s1 + $0x12e0] ss:$16 sps:$4 sm:$0xff]   ;;  %v11044_v50 = vld [vmem:[%s15489_s1 + $0x12e8] ss:$16 sps:$4 sm:$0xff]  }
 0x223   :  { %7525 = vmatpush1.bf16.msra.mxu0 %v10948_v51  ;;  %8299 = vmatpush1.bf16.msra.mxu1 %v10951_v52  ;;  %v11049_v51 = vld [vmem:[%s15489_s1 + $0x1304] ss:$16 sps:$4 sm:$0xff]   ;;  %v11052_v52 = vld [vmem:[%s15489_s1 + $0x130c] ss:$16 sps:$4 sm:$0xff]  }
 0x224   :  { %7526 = vmatprep.subr.bf16.mxu0 %v10956_v53  ;;  %8300 = vmatprep.subr.bf16.mxu1 %v10959_v54  ;;  %v11047_v53 = vld [vmem:[%s15489_s1 + $0x1300] ss:$16 sps:$4 sm:$0xff]   ;;  %v11050_v54 = vld [vmem:[%s15489_s1 + $0x1308] ss:$16 sps:$4 sm:$0xff]  }
 0x227   :  { %7527 = vmatpush1.bf16.msra.mxu0 %v10954_v55  ;;  %8301 = vmatpush1.bf16.msra.mxu1 %v10957_v56  ;;  %v11055_v55 = vld [vmem:[%s15489_s1 + $0x1324] ss:$16 sps:$4 sm:$0xff]   ;;  %v11058_v56 = vld [vmem:[%s15489_s1 + $0x132c] ss:$16 sps:$4 sm:$0xff]  }
 0x228   :  { %7528 = vmatprep.subr.bf16.mxu0 %v10962_v57  ;;  %8302 = vmatprep.subr.bf16.mxu1 %v10965_v58  ;;  %v11053_v57 = vld [vmem:[%s15489_s1 + $0x1320] ss:$16 sps:$4 sm:$0xff]   ;;  %v11056_v58 = vld [vmem:[%s15489_s1 + $0x1328] ss:$16 sps:$4 sm:$0xff]  }
 0x22b   :  { %7529 = vmatpush1.bf16.msra.mxu0 %v10960_v59  ;;  %8303 = vmatpush1.bf16.msra.mxu1 %v10963_v60  ;;  %v11061_v59 = vld [vmem:[%s15489_s1 + $0x1344] ss:$16 sps:$4 sm:$0xff]   ;;  %v11064_v60 = vld [vmem:[%s15489_s1 + $0x134c] ss:$16 sps:$4 sm:$0xff]  }
 0x22c   :  { %7530 = vmatprep.subr.bf16.mxu0 %v10968_v61  ;;  %8304 = vmatprep.subr.bf16.mxu1 %v10971_v62  ;;  %v11059_v61 = vld [vmem:[%s15489_s1 + $0x1340] ss:$16 sps:$4 sm:$0xff]   ;;  %v11062_v62 = vld [vmem:[%s15489_s1 + $0x1348] ss:$16 sps:$4 sm:$0xff]  }
 0x22f   :  { %7531 = vmatpush1.bf16.msra.mxu0 %v10966_v63  ;;  %8305 = vmatpush1.bf16.msra.mxu1 %v10969_v0  ;;  %v11067_v63 = vld [vmem:[%s15489_s1 + $0x1364] ss:$16 sps:$4 sm:$0xff]   ;;  %v11070_v0 = vld [vmem:[%s15489_s1 + $0x136c] ss:$16 sps:$4 sm:$0xff]  }
 0x230   :  { %7532 = vmatprep.subr.bf16.mxu0 %v10974_v1  ;;  %8306 = vmatprep.subr.bf16.mxu1 %v10977_v2  ;;  %v11065_v1 = vld [vmem:[%s15489_s1 + $0x1360] ss:$16 sps:$4 sm:$0xff]   ;;  %v11068_v2 = vld [vmem:[%s15489_s1 + $0x1368] ss:$16 sps:$4 sm:$0xff]  }
 0x233   :  { %7533 = vmatpush1.bf16.msra.mxu0 %v10972_v3  ;;  %8307 = vmatpush1.bf16.msra.mxu1 %v10975_v4  ;;  %v11073_v3 = vld [vmem:[%s15489_s1 + $0x1384] ss:$16 sps:$4 sm:$0xff]   ;;  %v11076_v4 = vld [vmem:[%s15489_s1 + $0x138c] ss:$16 sps:$4 sm:$0xff]  }
 0x234   :  { %7534 = vmatprep.subr.bf16.mxu0 %v10980_v5  ;;  %8308 = vmatprep.subr.bf16.mxu1 %v10983_v6  ;;  %v11071_v5 = vld [vmem:[%s15489_s1 + $0x1380] ss:$16 sps:$4 sm:$0xff]   ;;  %v11074_v6 = vld [vmem:[%s15489_s1 + $0x1388] ss:$16 sps:$4 sm:$0xff]  }
 0x237   :  { %7535 = vmatpush1.bf16.msra.mxu0 %v10978_v7  ;;  %8309 = vmatpush1.bf16.msra.mxu1 %v10981_v8  ;;  %v11079_v7 = vld [vmem:[%s15489_s1 + $0x13a4] ss:$16 sps:$4 sm:$0xff]   ;;  %v11082_v8 = vld [vmem:[%s15489_s1 + $0x13ac] ss:$16 sps:$4 sm:$0xff]  }
 0x238   :  { %7536 = vmatprep.subr.bf16.mxu0 %v10986_v9  ;;  %8310 = vmatprep.subr.bf16.mxu1 %v10989_v10  ;;  %v11077_v9 = vld [vmem:[%s15489_s1 + $0x13a0] ss:$16 sps:$4 sm:$0xff]   ;;  %v11080_v10 = vld [vmem:[%s15489_s1 + $0x13a8] ss:$16 sps:$4 sm:$0xff]  }
 0x23b   :  { %7537 = vmatpush1.bf16.msra.mxu0 %v10984_v11  ;;  %8311 = vmatpush1.bf16.msra.mxu1 %v10987_v12  ;;  %v11085_v11 = vld [vmem:[%s15489_s1 + $0x13c4] ss:$16 sps:$4 sm:$0xff]   ;;  %v11088_v12 = vld [vmem:[%s15489_s1 + $0x13cc] ss:$16 sps:$4 sm:$0xff]  }
 0x23c   :  { %7538 = vmatprep.subr.bf16.mxu0 %v10992_v13  ;;  %8312 = vmatprep.subr.bf16.mxu1 %v10995_v14  ;;  %v11083_v13 = vld [vmem:[%s15489_s1 + $0x13c0] ss:$16 sps:$4 sm:$0xff]   ;;  %v11086_v14 = vld [vmem:[%s15489_s1 + $0x13c8] ss:$16 sps:$4 sm:$0xff]  }
 0x23f   :  { %7539 = vmatpush1.bf16.msra.mxu0 %v10990_v15  ;;  %8313 = vmatpush1.bf16.msra.mxu1 %v10993_v16  ;;  %v11091_v15 = vld [vmem:[%s15489_s1 + $0x13e4] ss:$16 sps:$4 sm:$0xff]   ;;  %v11094_v16 = vld [vmem:[%s15489_s1 + $0x13ec] ss:$16 sps:$4 sm:$0xff]  }
 0x240   :  { %7551 = vmatprep.subr.bf16.mxu0 %v11001_v18  ;;  %8325 = vmatprep.subr.bf16.mxu1 %v11004_v19  ;;  %v11092_v18 = vld [vmem:[%s15489_s1 + $0x13e8] ss:$16 sps:$4 sm:$0xff]  }
 0x241   :  { %v11095_v19 = vld [vmem:[%s15490_s0 + $0x48] ss:$144 sps:$4 sm:$0xff]  }
 0x242   :  { %7541 = vmatmul.mubr.bf16.vlgmr.msra.gmra.mrb[0].mxu0 %v10996_v17  ;;  %8315 = vmatmul.mubr.bf16.vlgmr.msra.gmra.mrb[0].mxu1 %v10996_v17  ;;  %v11089_v17 = vld [vmem:[%s15489_s1 + $0x13e0] ss:$16 sps:$4 sm:$0xff]  }
 0x243   :  { %7552 = vmatpush1.bf16.msra.mxu0 %v10999_v20  ;;  %8326 = vmatpush1.bf16.msra.mxu1 %v11002_v21  ;;  %v11100_v20 = vld [vmem:[%s15489_s1 + $0x1404] ss:$16 sps:$4 sm:$0xff]   ;;  %v11103_v21 = vld [vmem:[%s15489_s1 + $0x140c] ss:$16 sps:$4 sm:$0xff]  }
 0x244   :  { %7553 = vmatprep.subr.bf16.mxu0 %v11007_v22  ;;  %8327 = vmatprep.subr.bf16.mxu1 %v11010_v23  ;;  %v11098_v22 = vld [vmem:[%s15489_s1 + $0x1400] ss:$16 sps:$4 sm:$0xff]   ;;  %v11101_v23 = vld [vmem:[%s15489_s1 + $0x1408] ss:$16 sps:$4 sm:$0xff]  }
 0x245   :  { %7583 = vmatprep.mubr.bf16.mxu0 %v11097_v24  ;;  %8357 = vmatprep.mubr.bf16.mxu1 %v11097_v24  ;;  %v11106_v24 = vld [vmem:[%s15489_s1 + $0x1424] ss:$16 sps:$4 sm:$0xff]  }
 0x247   :  { %7554 = vmatpush1.bf16.msra.mxu0 %v11005_v25  ;;  %8328 = vmatpush1.bf16.msra.mxu1 %v11008_v26  ;;  %v11109_v25 = vld [vmem:[%s15489_s1 + $0x142c] ss:$16 sps:$4 sm:$0xff]   ;;  %v11196_v26 = vld [vmem:[%s15490_s0 + $0x54] ss:$144 sps:$4 sm:$0xff]  }
 0x248   :  { %7555 = vmatprep.subr.bf16.mxu0 %v11013_v27  ;;  %8329 = vmatprep.subr.bf16.mxu1 %v11016_v28  ;;  %v11104_v27 = vld [vmem:[%s15489_s1 + $0x1420] ss:$16 sps:$4 sm:$0xff]   ;;  %v11107_v28 = vld [vmem:[%s15489_s1 + $0x1428] ss:$16 sps:$4 sm:$0xff]  }
 0x24b   :  { %7556 = vmatpush1.bf16.msra.mxu0 %v11011_v29  ;;  %8330 = vmatpush1.bf16.msra.mxu1 %v11014_v30  ;;  %v11112_v29 = vld [vmem:[%s15489_s1 + $0x1444] ss:$16 sps:$4 sm:$0xff]   ;;  %v11115_v30 = vld [vmem:[%s15489_s1 + $0x144c] ss:$16 sps:$4 sm:$0xff]  }
 0x24c   :  { %7557 = vmatprep.subr.bf16.mxu0 %v11019_v31  ;;  %8331 = vmatprep.subr.bf16.mxu1 %v11022_v32  ;;  %v11110_v31 = vld [vmem:[%s15489_s1 + $0x1440] ss:$16 sps:$4 sm:$0xff]   ;;  %v11113_v32 = vld [vmem:[%s15489_s1 + $0x1448] ss:$16 sps:$4 sm:$0xff]  }
 0x24f   :  { %7558 = vmatpush1.bf16.msra.mxu0 %v11017_v33  ;;  %8332 = vmatpush1.bf16.msra.mxu1 %v11020_v34  ;;  %v11118_v33 = vld [vmem:[%s15489_s1 + $0x1464] ss:$16 sps:$4 sm:$0xff]   ;;  %v11121_v34 = vld [vmem:[%s15489_s1 + $0x146c] ss:$16 sps:$4 sm:$0xff]  }
 0x250   :  { %7559 = vmatprep.subr.bf16.mxu0 %v11025_v35  ;;  %8333 = vmatprep.subr.bf16.mxu1 %v11028_v36  ;;  %v11116_v35 = vld [vmem:[%s15489_s1 + $0x1460] ss:$16 sps:$4 sm:$0xff]   ;;  %v11119_v36 = vld [vmem:[%s15489_s1 + $0x1468] ss:$16 sps:$4 sm:$0xff]  }
 0x253   :  { %7560 = vmatpush1.bf16.msra.mxu0 %v11023_v37  ;;  %8334 = vmatpush1.bf16.msra.mxu1 %v11026_v38  ;;  %v11124_v37 = vld [vmem:[%s15489_s1 + $0x1484] ss:$16 sps:$4 sm:$0xff]   ;;  %v11127_v38 = vld [vmem:[%s15489_s1 + $0x148c] ss:$16 sps:$4 sm:$0xff]  }
 0x254   :  { %7561 = vmatprep.subr.bf16.mxu0 %v11031_v39  ;;  %8335 = vmatprep.subr.bf16.mxu1 %v11034_v40  ;;  %v11122_v39 = vld [vmem:[%s15489_s1 + $0x1480] ss:$16 sps:$4 sm:$0xff]   ;;  %v11125_v40 = vld [vmem:[%s15489_s1 + $0x1488] ss:$16 sps:$4 sm:$0xff]  }
 0x257   :  { %7562 = vmatpush1.bf16.msra.mxu0 %v11029_v41  ;;  %8336 = vmatpush1.bf16.msra.mxu1 %v11032_v42  ;;  %v11130_v41 = vld [vmem:[%s15489_s1 + $0x14a4] ss:$16 sps:$4 sm:$0xff]   ;;  %v11133_v42 = vld [vmem:[%s15489_s1 + $0x14ac] ss:$16 sps:$4 sm:$0xff]  }
 0x258   :  { %7563 = vmatprep.subr.bf16.mxu0 %v11037_v43  ;;  %8337 = vmatprep.subr.bf16.mxu1 %v11040_v44  ;;  %v11128_v43 = vld [vmem:[%s15489_s1 + $0x14a0] ss:$16 sps:$4 sm:$0xff]   ;;  %v11131_v44 = vld [vmem:[%s15489_s1 + $0x14a8] ss:$16 sps:$4 sm:$0xff]  }
 0x25b   :  { %7564 = vmatpush1.bf16.msra.mxu0 %v11035_v45  ;;  %8338 = vmatpush1.bf16.msra.mxu1 %v11038_v46  ;;  %v11136_v45 = vld [vmem:[%s15489_s1 + $0x14c4] ss:$16 sps:$4 sm:$0xff]   ;;  %v11139_v46 = vld [vmem:[%s15489_s1 + $0x14cc] ss:$16 sps:$4 sm:$0xff]  }
 0x25c   :  { %7565 = vmatprep.subr.bf16.mxu0 %v11043_v47  ;;  %8339 = vmatprep.subr.bf16.mxu1 %v11046_v48  ;;  %v11134_v47 = vld [vmem:[%s15489_s1 + $0x14c0] ss:$16 sps:$4 sm:$0xff]   ;;  %v11137_v48 = vld [vmem:[%s15489_s1 + $0x14c8] ss:$16 sps:$4 sm:$0xff]  }
 0x25f   :  { %7566 = vmatpush1.bf16.msra.mxu0 %v11041_v49  ;;  %8340 = vmatpush1.bf16.msra.mxu1 %v11044_v50  ;;  %v11142_v49 = vld [vmem:[%s15489_s1 + $0x14e4] ss:$16 sps:$4 sm:$0xff]   ;;  %v11145_v50 = vld [vmem:[%s15489_s1 + $0x14ec] ss:$16 sps:$4 sm:$0xff]  }
 0x260   :  { %7567 = vmatprep.subr.bf16.mxu0 %v11049_v51  ;;  %8341 = vmatprep.subr.bf16.mxu1 %v11052_v52  ;;  %v11140_v51 = vld [vmem:[%s15489_s1 + $0x14e0] ss:$16 sps:$4 sm:$0xff]   ;;  %v11143_v52 = vld [vmem:[%s15489_s1 + $0x14e8] ss:$16 sps:$4 sm:$0xff]  }
 0x263   :  { %7568 = vmatpush1.bf16.msra.mxu0 %v11047_v53  ;;  %8342 = vmatpush1.bf16.msra.mxu1 %v11050_v54  ;;  %v11148_v53 = vld [vmem:[%s15489_s1 + $0x1504] ss:$16 sps:$4 sm:$0xff]   ;;  %v11151_v54 = vld [vmem:[%s15489_s1 + $0x150c] ss:$16 sps:$4 sm:$0xff]  }
 0x264   :  { %7569 = vmatprep.subr.bf16.mxu0 %v11055_v55  ;;  %8343 = vmatprep.subr.bf16.mxu1 %v11058_v56  ;;  %v11146_v55 = vld [vmem:[%s15489_s1 + $0x1500] ss:$16 sps:$4 sm:$0xff]   ;;  %v11149_v56 = vld [vmem:[%s15489_s1 + $0x1508] ss:$16 sps:$4 sm:$0xff]  }
 0x267   :  { %7570 = vmatpush1.bf16.msra.mxu0 %v11053_v57  ;;  %8344 = vmatpush1.bf16.msra.mxu1 %v11056_v58  ;;  %v11154_v57 = vld [vmem:[%s15489_s1 + $0x1524] ss:$16 sps:$4 sm:$0xff]   ;;  %v11157_v58 = vld [vmem:[%s15489_s1 + $0x152c] ss:$16 sps:$4 sm:$0xff]  }
 0x268   :  { %7571 = vmatprep.subr.bf16.mxu0 %v11061_v59  ;;  %8345 = vmatprep.subr.bf16.mxu1 %v11064_v60  ;;  %v11152_v59 = vld [vmem:[%s15489_s1 + $0x1520] ss:$16 sps:$4 sm:$0xff]   ;;  %v11155_v60 = vld [vmem:[%s15489_s1 + $0x1528] ss:$16 sps:$4 sm:$0xff]  }
 0x26b   :  { %7572 = vmatpush1.bf16.msra.mxu0 %v11059_v61  ;;  %8346 = vmatpush1.bf16.msra.mxu1 %v11062_v62  ;;  %v11160_v61 = vld [vmem:[%s15489_s1 + $0x1544] ss:$16 sps:$4 sm:$0xff]   ;;  %v11163_v62 = vld [vmem:[%s15489_s1 + $0x154c] ss:$16 sps:$4 sm:$0xff]  }
 0x26c   :  { %7573 = vmatprep.subr.bf16.mxu0 %v11067_v63  ;;  %8347 = vmatprep.subr.bf16.mxu1 %v11070_v0  ;;  %v11158_v63 = vld [vmem:[%s15489_s1 + $0x1540] ss:$16 sps:$4 sm:$0xff]   ;;  %v11161_v0 = vld [vmem:[%s15489_s1 + $0x1548] ss:$16 sps:$4 sm:$0xff]  }
 0x26f   :  { %7574 = vmatpush1.bf16.msra.mxu0 %v11065_v1  ;;  %8348 = vmatpush1.bf16.msra.mxu1 %v11068_v2  ;;  %v11166_v1 = vld [vmem:[%s15489_s1 + $0x1564] ss:$16 sps:$4 sm:$0xff]   ;;  %v11169_v2 = vld [vmem:[%s15489_s1 + $0x156c] ss:$16 sps:$4 sm:$0xff]  }
 0x270   :  { %7575 = vmatprep.subr.bf16.mxu0 %v11073_v3  ;;  %8349 = vmatprep.subr.bf16.mxu1 %v11076_v4  ;;  %v11164_v3 = vld [vmem:[%s15489_s1 + $0x1560] ss:$16 sps:$4 sm:$0xff]   ;;  %v11167_v4 = vld [vmem:[%s15489_s1 + $0x1568] ss:$16 sps:$4 sm:$0xff]  }
 0x273   :  { %7576 = vmatpush1.bf16.msra.mxu0 %v11071_v5  ;;  %8350 = vmatpush1.bf16.msra.mxu1 %v11074_v6  ;;  %v11172_v5 = vld [vmem:[%s15489_s1 + $0x1584] ss:$16 sps:$4 sm:$0xff]   ;;  %v11175_v6 = vld [vmem:[%s15489_s1 + $0x158c] ss:$16 sps:$4 sm:$0xff]  }
 0x274   :  { %7577 = vmatprep.subr.bf16.mxu0 %v11079_v7  ;;  %8351 = vmatprep.subr.bf16.mxu1 %v11082_v8  ;;  %v11170_v7 = vld [vmem:[%s15489_s1 + $0x1580] ss:$16 sps:$4 sm:$0xff]   ;;  %v11173_v8 = vld [vmem:[%s15489_s1 + $0x1588] ss:$16 sps:$4 sm:$0xff]  }
 0x277   :  { %7578 = vmatpush1.bf16.msra.mxu0 %v11077_v9  ;;  %8352 = vmatpush1.bf16.msra.mxu1 %v11080_v10  ;;  %v11178_v9 = vld [vmem:[%s15489_s1 + $0x15a4] ss:$16 sps:$4 sm:$0xff]   ;;  %v11181_v10 = vld [vmem:[%s15489_s1 + $0x15ac] ss:$16 sps:$4 sm:$0xff]  }
 0x278   :  { %7579 = vmatprep.subr.bf16.mxu0 %v11085_v11  ;;  %8353 = vmatprep.subr.bf16.mxu1 %v11088_v12  ;;  %v11176_v11 = vld [vmem:[%s15489_s1 + $0x15a0] ss:$16 sps:$4 sm:$0xff]   ;;  %v11179_v12 = vld [vmem:[%s15489_s1 + $0x15a8] ss:$16 sps:$4 sm:$0xff]  }
 0x27b   :  { %7580 = vmatpush1.bf16.msra.mxu0 %v11083_v13  ;;  %8354 = vmatpush1.bf16.msra.mxu1 %v11086_v14  ;;  %v11184_v13 = vld [vmem:[%s15489_s1 + $0x15c4] ss:$16 sps:$4 sm:$0xff]   ;;  %v11187_v14 = vld [vmem:[%s15489_s1 + $0x15cc] ss:$16 sps:$4 sm:$0xff]  }
 0x27c   :  { %7581 = vmatprep.subr.bf16.mxu0 %v11091_v15  ;;  %8355 = vmatprep.subr.bf16.mxu1 %v11094_v16  ;;  %v11182_v15 = vld [vmem:[%s15489_s1 + $0x15c0] ss:$16 sps:$4 sm:$0xff]   ;;  %v11185_v16 = vld [vmem:[%s15489_s1 + $0x15c8] ss:$16 sps:$4 sm:$0xff]  }
 0x27f   :  { %7582 = vmatpush1.bf16.msra.mxu0 %v11089_v17  ;;  %8356 = vmatpush1.bf16.msra.mxu1 %v11092_v18  ;;  %v11190_v17 = vld [vmem:[%s15489_s1 + $0x15e4] ss:$16 sps:$4 sm:$0xff]   ;;  %v11193_v18 = vld [vmem:[%s15489_s1 + $0x15ec] ss:$16 sps:$4 sm:$0xff]  }
 0x280   :  { %7594 = vmatprep.subr.bf16.mxu0 %v11100_v20  ;;  %8368 = vmatprep.subr.bf16.mxu1 %v11103_v21  ;;  %v11191_v20 = vld [vmem:[%s15489_s1 + $0x15e8] ss:$16 sps:$4 sm:$0xff]   ;;  %v11199_v21 = vld [vmem:[%s15489_s1 + $0x1604] ss:$16 sps:$4 sm:$0xff]  }
 0x282   :  { %7584 = vmatmul.mubr.bf16.vlgmr.msra.gmra.mrb[0].mxu0 %v11095_v19  ;;  %8358 = vmatmul.mubr.bf16.vlgmr.msra.gmra.mrb[0].mxu1 %v11095_v19  ;;  %v11188_v19 = vld [vmem:[%s15489_s1 + $0x15e0] ss:$16 sps:$4 sm:$0xff]  }
 0x283   :  { %7595 = vmatpush1.bf16.msra.mxu0 %v11098_v22  ;;  %8369 = vmatpush1.bf16.msra.mxu1 %v11101_v23  ;;  %v11202_v22 = vld [vmem:[%s15489_s1 + $0x160c] ss:$16 sps:$4 sm:$0xff]   ;;  %v11194_v23 = vld [vmem:[%s15490_s0 + $0x50] ss:$144 sps:$4 sm:$0xff]  }
 0x284   :  { %7596 = vmatprep.subr.bf16.mxu0 %v11106_v24  ;;  %8370 = vmatprep.subr.bf16.mxu1 %v11109_v25  ;;  %v11197_v24 = vld [vmem:[%s15489_s1 + $0x1600] ss:$16 sps:$4 sm:$0xff]   ;;  %v11200_v25 = vld [vmem:[%s15489_s1 + $0x1608] ss:$16 sps:$4 sm:$0xff]  }
 0x285   :  { %7626 = vmatprep.mubr.bf16.mxu0 %v11196_v26  ;;  %8400 = vmatprep.mubr.bf16.mxu1 %v11196_v26  ;;  %v11205_v26 = vld [vmem:[%s15489_s1 + $0x1624] ss:$16 sps:$4 sm:$0xff]  }
 0x287   :  { %7597 = vmatpush1.bf16.msra.mxu0 %v11104_v27  ;;  %8371 = vmatpush1.bf16.msra.mxu1 %v11107_v28  ;;  %v11208_v27 = vld [vmem:[%s15489_s1 + $0x162c] ss:$16 sps:$4 sm:$0xff]  }
 0x288   :  { %7598 = vmatprep.subr.bf16.mxu0 %v11112_v29  ;;  %8372 = vmatprep.subr.bf16.mxu1 %v11115_v30  ;;  %v11295_v28 = vld [vmem:[%s15490_s0 + $0x5c] ss:$144 sps:$4 sm:$0xff]   ;;  %v11203_v29 = vld [vmem:[%s15489_s1 + $0x1620] ss:$16 sps:$4 sm:$0xff]   ;;  %v11206_v30 = vld [vmem:[%s15489_s1 + $0x1628] ss:$16 sps:$4 sm:$0xff]  }
 0x28b   :  { %7599 = vmatpush1.bf16.msra.mxu0 %v11110_v31  ;;  %8373 = vmatpush1.bf16.msra.mxu1 %v11113_v32  ;;  %v11211_v31 = vld [vmem:[%s15489_s1 + $0x1644] ss:$16 sps:$4 sm:$0xff]   ;;  %v11214_v32 = vld [vmem:[%s15489_s1 + $0x164c] ss:$16 sps:$4 sm:$0xff]  }
 0x28c   :  { %7600 = vmatprep.subr.bf16.mxu0 %v11118_v33  ;;  %8374 = vmatprep.subr.bf16.mxu1 %v11121_v34  ;;  %v11209_v33 = vld [vmem:[%s15489_s1 + $0x1640] ss:$16 sps:$4 sm:$0xff]   ;;  %v11212_v34 = vld [vmem:[%s15489_s1 + $0x1648] ss:$16 sps:$4 sm:$0xff]  }
 0x28f   :  { %7601 = vmatpush1.bf16.msra.mxu0 %v11116_v35  ;;  %8375 = vmatpush1.bf16.msra.mxu1 %v11119_v36  ;;  %v11217_v35 = vld [vmem:[%s15489_s1 + $0x1664] ss:$16 sps:$4 sm:$0xff]   ;;  %v11220_v36 = vld [vmem:[%s15489_s1 + $0x166c] ss:$16 sps:$4 sm:$0xff]  }
 0x290   :  { %7602 = vmatprep.subr.bf16.mxu0 %v11124_v37  ;;  %8376 = vmatprep.subr.bf16.mxu1 %v11127_v38  ;;  %v11215_v37 = vld [vmem:[%s15489_s1 + $0x1660] ss:$16 sps:$4 sm:$0xff]   ;;  %v11218_v38 = vld [vmem:[%s15489_s1 + $0x1668] ss:$16 sps:$4 sm:$0xff]  }
 0x293   :  { %7603 = vmatpush1.bf16.msra.mxu0 %v11122_v39  ;;  %8377 = vmatpush1.bf16.msra.mxu1 %v11125_v40  ;;  %v11223_v39 = vld [vmem:[%s15489_s1 + $0x1684] ss:$16 sps:$4 sm:$0xff]   ;;  %v11226_v40 = vld [vmem:[%s15489_s1 + $0x168c] ss:$16 sps:$4 sm:$0xff]  }
 0x294   :  { %7604 = vmatprep.subr.bf16.mxu0 %v11130_v41  ;;  %8378 = vmatprep.subr.bf16.mxu1 %v11133_v42  ;;  %v11221_v41 = vld [vmem:[%s15489_s1 + $0x1680] ss:$16 sps:$4 sm:$0xff]   ;;  %v11224_v42 = vld [vmem:[%s15489_s1 + $0x1688] ss:$16 sps:$4 sm:$0xff]  }
 0x297   :  { %7605 = vmatpush1.bf16.msra.mxu0 %v11128_v43  ;;  %8379 = vmatpush1.bf16.msra.mxu1 %v11131_v44  ;;  %v11229_v43 = vld [vmem:[%s15489_s1 + $0x16a4] ss:$16 sps:$4 sm:$0xff]   ;;  %v11232_v44 = vld [vmem:[%s15489_s1 + $0x16ac] ss:$16 sps:$4 sm:$0xff]  }
 0x298   :  { %7606 = vmatprep.subr.bf16.mxu0 %v11136_v45  ;;  %8380 = vmatprep.subr.bf16.mxu1 %v11139_v46  ;;  %v11227_v45 = vld [vmem:[%s15489_s1 + $0x16a0] ss:$16 sps:$4 sm:$0xff]   ;;  %v11230_v46 = vld [vmem:[%s15489_s1 + $0x16a8] ss:$16 sps:$4 sm:$0xff]  }
 0x29b   :  { %7607 = vmatpush1.bf16.msra.mxu0 %v11134_v47  ;;  %8381 = vmatpush1.bf16.msra.mxu1 %v11137_v48  ;;  %v11235_v47 = vld [vmem:[%s15489_s1 + $0x16c4] ss:$16 sps:$4 sm:$0xff]   ;;  %v11238_v48 = vld [vmem:[%s15489_s1 + $0x16cc] ss:$16 sps:$4 sm:$0xff]  }
 0x29c   :  { %7608 = vmatprep.subr.bf16.mxu0 %v11142_v49  ;;  %8382 = vmatprep.subr.bf16.mxu1 %v11145_v50  ;;  %v11233_v49 = vld [vmem:[%s15489_s1 + $0x16c0] ss:$16 sps:$4 sm:$0xff]   ;;  %v11236_v50 = vld [vmem:[%s15489_s1 + $0x16c8] ss:$16 sps:$4 sm:$0xff]  }
 0x29f   :  { %7609 = vmatpush1.bf16.msra.mxu0 %v11140_v51  ;;  %8383 = vmatpush1.bf16.msra.mxu1 %v11143_v52  ;;  %v11241_v51 = vld [vmem:[%s15489_s1 + $0x16e4] ss:$16 sps:$4 sm:$0xff]   ;;  %v11244_v52 = vld [vmem:[%s15489_s1 + $0x16ec] ss:$16 sps:$4 sm:$0xff]  }
 0x2a0   :  { %7610 = vmatprep.subr.bf16.mxu0 %v11148_v53  ;;  %8384 = vmatprep.subr.bf16.mxu1 %v11151_v54  ;;  %v11239_v53 = vld [vmem:[%s15489_s1 + $0x16e0] ss:$16 sps:$4 sm:$0xff]   ;;  %v11242_v54 = vld [vmem:[%s15489_s1 + $0x16e8] ss:$16 sps:$4 sm:$0xff]  }
 0x2a3   :  { %7611 = vmatpush1.bf16.msra.mxu0 %v11146_v55  ;;  %8385 = vmatpush1.bf16.msra.mxu1 %v11149_v56  ;;  %v11247_v55 = vld [vmem:[%s15489_s1 + $0x1704] ss:$16 sps:$4 sm:$0xff]   ;;  %v11250_v56 = vld [vmem:[%s15489_s1 + $0x170c] ss:$16 sps:$4 sm:$0xff]  }
 0x2a4   :  { %7612 = vmatprep.subr.bf16.mxu0 %v11154_v57  ;;  %8386 = vmatprep.subr.bf16.mxu1 %v11157_v58  ;;  %v11245_v57 = vld [vmem:[%s15489_s1 + $0x1700] ss:$16 sps:$4 sm:$0xff]   ;;  %v11248_v58 = vld [vmem:[%s15489_s1 + $0x1708] ss:$16 sps:$4 sm:$0xff]  }
 0x2a7   :  { %7613 = vmatpush1.bf16.msra.mxu0 %v11152_v59  ;;  %8387 = vmatpush1.bf16.msra.mxu1 %v11155_v60  ;;  %v11253_v59 = vld [vmem:[%s15489_s1 + $0x1724] ss:$16 sps:$4 sm:$0xff]   ;;  %v11256_v60 = vld [vmem:[%s15489_s1 + $0x172c] ss:$16 sps:$4 sm:$0xff]  }
 0x2a8   :  { %7614 = vmatprep.subr.bf16.mxu0 %v11160_v61  ;;  %8388 = vmatprep.subr.bf16.mxu1 %v11163_v62  ;;  %v11251_v61 = vld [vmem:[%s15489_s1 + $0x1720] ss:$16 sps:$4 sm:$0xff]   ;;  %v11254_v62 = vld [vmem:[%s15489_s1 + $0x1728] ss:$16 sps:$4 sm:$0xff]  }
 0x2ab   :  { %7615 = vmatpush1.bf16.msra.mxu0 %v11158_v63  ;;  %8389 = vmatpush1.bf16.msra.mxu1 %v11161_v0  ;;  %v11259_v63 = vld [vmem:[%s15489_s1 + $0x1744] ss:$16 sps:$4 sm:$0xff]   ;;  %v11262_v0 = vld [vmem:[%s15489_s1 + $0x174c] ss:$16 sps:$4 sm:$0xff]  }
 0x2ac   :  { %7616 = vmatprep.subr.bf16.mxu0 %v11166_v1  ;;  %8390 = vmatprep.subr.bf16.mxu1 %v11169_v2  ;;  %v11257_v1 = vld [vmem:[%s15489_s1 + $0x1740] ss:$16 sps:$4 sm:$0xff]   ;;  %v11260_v2 = vld [vmem:[%s15489_s1 + $0x1748] ss:$16 sps:$4 sm:$0xff]  }
 0x2af   :  { %7617 = vmatpush1.bf16.msra.mxu0 %v11164_v3  ;;  %8391 = vmatpush1.bf16.msra.mxu1 %v11167_v4  ;;  %v11265_v3 = vld [vmem:[%s15489_s1 + $0x1764] ss:$16 sps:$4 sm:$0xff]   ;;  %v11268_v4 = vld [vmem:[%s15489_s1 + $0x176c] ss:$16 sps:$4 sm:$0xff]  }
 0x2b0   :  { %7618 = vmatprep.subr.bf16.mxu0 %v11172_v5  ;;  %8392 = vmatprep.subr.bf16.mxu1 %v11175_v6  ;;  %v11263_v5 = vld [vmem:[%s15489_s1 + $0x1760] ss:$16 sps:$4 sm:$0xff]   ;;  %v11266_v6 = vld [vmem:[%s15489_s1 + $0x1768] ss:$16 sps:$4 sm:$0xff]  }
 0x2b3   :  { %7619 = vmatpush1.bf16.msra.mxu0 %v11170_v7  ;;  %8393 = vmatpush1.bf16.msra.mxu1 %v11173_v8  ;;  %v11271_v7 = vld [vmem:[%s15489_s1 + $0x1784] ss:$16 sps:$4 sm:$0xff]   ;;  %v11274_v8 = vld [vmem:[%s15489_s1 + $0x178c] ss:$16 sps:$4 sm:$0xff]  }
 0x2b4   :  { %7620 = vmatprep.subr.bf16.mxu0 %v11178_v9  ;;  %8394 = vmatprep.subr.bf16.mxu1 %v11181_v10  ;;  %v11269_v9 = vld [vmem:[%s15489_s1 + $0x1780] ss:$16 sps:$4 sm:$0xff]   ;;  %v11272_v10 = vld [vmem:[%s15489_s1 + $0x1788] ss:$16 sps:$4 sm:$0xff]  }
 0x2b7   :  { %7621 = vmatpush1.bf16.msra.mxu0 %v11176_v11  ;;  %8395 = vmatpush1.bf16.msra.mxu1 %v11179_v12  ;;  %v11277_v11 = vld [vmem:[%s15489_s1 + $0x17a4] ss:$16 sps:$4 sm:$0xff]   ;;  %v11280_v12 = vld [vmem:[%s15489_s1 + $0x17ac] ss:$16 sps:$4 sm:$0xff]  }
 0x2b8   :  { %7622 = vmatprep.subr.bf16.mxu0 %v11184_v13  ;;  %8396 = vmatprep.subr.bf16.mxu1 %v11187_v14  ;;  %v11275_v13 = vld [vmem:[%s15489_s1 + $0x17a0] ss:$16 sps:$4 sm:$0xff]   ;;  %v11278_v14 = vld [vmem:[%s15489_s1 + $0x17a8] ss:$16 sps:$4 sm:$0xff]  }
 0x2bb   :  { %7623 = vmatpush1.bf16.msra.mxu0 %v11182_v15  ;;  %8397 = vmatpush1.bf16.msra.mxu1 %v11185_v16  ;;  %v11283_v15 = vld [vmem:[%s15489_s1 + $0x17c4] ss:$16 sps:$4 sm:$0xff]   ;;  %v11286_v16 = vld [vmem:[%s15489_s1 + $0x17cc] ss:$16 sps:$4 sm:$0xff]  }
 0x2bc   :  { %7624 = vmatprep.subr.bf16.mxu0 %v11190_v17  ;;  %8398 = vmatprep.subr.bf16.mxu1 %v11193_v18  ;;  %v11281_v17 = vld [vmem:[%s15489_s1 + $0x17c0] ss:$16 sps:$4 sm:$0xff]   ;;  %v11284_v18 = vld [vmem:[%s15489_s1 + $0x17c8] ss:$16 sps:$4 sm:$0xff]  }
 0x2bf   :  { %7625 = vmatpush1.bf16.msra.mxu0 %v11188_v19  ;;  %8399 = vmatpush1.bf16.msra.mxu1 %v11191_v20  ;;  %v11289_v19 = vld [vmem:[%s15489_s1 + $0x17e4] ss:$16 sps:$4 sm:$0xff]   ;;  %v11292_v20 = vld [vmem:[%s15489_s1 + $0x17ec] ss:$16 sps:$4 sm:$0xff]  }
 0x2c0   :  { %7637 = vmatprep.subr.bf16.mxu0 %v11199_v21  ;;  %8411 = vmatprep.subr.bf16.mxu1 %v11202_v22  ;;  %v11287_v21 = vld [vmem:[%s15489_s1 + $0x17e0] ss:$16 sps:$4 sm:$0xff]   ;;  %v11290_v22 = vld [vmem:[%s15489_s1 + $0x17e8] ss:$16 sps:$4 sm:$0xff]  }
 0x2c2   :  { %7627 = vmatmul.mubr.bf16.vlgmr.msra.gmra.mrb[0].mxu0 %v11194_v23  ;;  %8401 = vmatmul.mubr.bf16.vlgmr.msra.gmra.mrb[0].mxu1 %v11194_v23  ;;  %v11298_v23 = vld [vmem:[%s15489_s1 + $0x1804] ss:$16 sps:$4 sm:$0xff]  }
 0x2c3   :  { %7638 = vmatpush1.bf16.msra.mxu0 %v11197_v24  ;;  %8412 = vmatpush1.bf16.msra.mxu1 %v11200_v25  ;;  %v11301_v24 = vld [vmem:[%s15489_s1 + $0x180c] ss:$16 sps:$4 sm:$0xff]   ;;  %v11293_v25 = vld [vmem:[%s15490_s0 + $0x58] ss:$144 sps:$4 sm:$0xff]  }
 0x2c4   :  { %7639 = vmatprep.subr.bf16.mxu0 %v11205_v26  ;;  %8413 = vmatprep.subr.bf16.mxu1 %v11208_v27  ;;  %v11296_v26 = vld [vmem:[%s15489_s1 + $0x1800] ss:$16 sps:$4 sm:$0xff]   ;;  %v11299_v27 = vld [vmem:[%s15489_s1 + $0x1808] ss:$16 sps:$4 sm:$0xff]  }
 0x2c5   :  { %7669 = vmatprep.mubr.bf16.mxu0 %v11295_v28  ;;  %8443 = vmatprep.mubr.bf16.mxu1 %v11295_v28  ;;  %v11304_v28 = vld [vmem:[%s15489_s1 + $0x1824] ss:$16 sps:$4 sm:$0xff]  }
 0x2c7   :  { %7640 = vmatpush1.bf16.msra.mxu0 %v11203_v29  ;;  %8414 = vmatpush1.bf16.msra.mxu1 %v11206_v30  ;;  %v11307_v29 = vld [vmem:[%s15489_s1 + $0x182c] ss:$16 sps:$4 sm:$0xff]   ;;  %v11394_v30 = vld [vmem:[%s15490_s0 + $0x64] ss:$144 sps:$4 sm:$0xff]  }
 0x2c8   :  { %7641 = vmatprep.subr.bf16.mxu0 %v11211_v31  ;;  %8415 = vmatprep.subr.bf16.mxu1 %v11214_v32  ;;  %v11302_v31 = vld [vmem:[%s15489_s1 + $0x1820] ss:$16 sps:$4 sm:$0xff]   ;;  %v11305_v32 = vld [vmem:[%s15489_s1 + $0x1828] ss:$16 sps:$4 sm:$0xff]  }
 0x2cb   :  { %7642 = vmatpush1.bf16.msra.mxu0 %v11209_v33  ;;  %8416 = vmatpush1.bf16.msra.mxu1 %v11212_v34  ;;  %v11310_v33 = vld [vmem:[%s15489_s1 + $0x1844] ss:$16 sps:$4 sm:$0xff]   ;;  %v11313_v34 = vld [vmem:[%s15489_s1 + $0x184c] ss:$16 sps:$4 sm:$0xff]  }
 0x2cc   :  { %7643 = vmatprep.subr.bf16.mxu0 %v11217_v35  ;;  %8417 = vmatprep.subr.bf16.mxu1 %v11220_v36  ;;  %v11308_v35 = vld [vmem:[%s15489_s1 + $0x1840] ss:$16 sps:$4 sm:$0xff]   ;;  %v11311_v36 = vld [vmem:[%s15489_s1 + $0x1848] ss:$16 sps:$4 sm:$0xff]  }
 0x2cf   :  { %7644 = vmatpush1.bf16.msra.mxu0 %v11215_v37  ;;  %8418 = vmatpush1.bf16.msra.mxu1 %v11218_v38  ;;  %v11316_v37 = vld [vmem:[%s15489_s1 + $0x1864] ss:$16 sps:$4 sm:$0xff]   ;;  %v11319_v38 = vld [vmem:[%s15489_s1 + $0x186c] ss:$16 sps:$4 sm:$0xff]  }
 0x2d0   :  { %7645 = vmatprep.subr.bf16.mxu0 %v11223_v39  ;;  %8419 = vmatprep.subr.bf16.mxu1 %v11226_v40  ;;  %v11314_v39 = vld [vmem:[%s15489_s1 + $0x1860] ss:$16 sps:$4 sm:$0xff]   ;;  %v11317_v40 = vld [vmem:[%s15489_s1 + $0x1868] ss:$16 sps:$4 sm:$0xff]  }
 0x2d3   :  { %7646 = vmatpush1.bf16.msra.mxu0 %v11221_v41  ;;  %8420 = vmatpush1.bf16.msra.mxu1 %v11224_v42  ;;  %v11322_v41 = vld [vmem:[%s15489_s1 + $0x1884] ss:$16 sps:$4 sm:$0xff]   ;;  %v11325_v42 = vld [vmem:[%s15489_s1 + $0x188c] ss:$16 sps:$4 sm:$0xff]  }
 0x2d4   :  { %7647 = vmatprep.subr.bf16.mxu0 %v11229_v43  ;;  %8421 = vmatprep.subr.bf16.mxu1 %v11232_v44  ;;  %v11320_v43 = vld [vmem:[%s15489_s1 + $0x1880] ss:$16 sps:$4 sm:$0xff]   ;;  %v11323_v44 = vld [vmem:[%s15489_s1 + $0x1888] ss:$16 sps:$4 sm:$0xff]  }
 0x2d7   :  { %7648 = vmatpush1.bf16.msra.mxu0 %v11227_v45  ;;  %8422 = vmatpush1.bf16.msra.mxu1 %v11230_v46  ;;  %v11328_v45 = vld [vmem:[%s15489_s1 + $0x18a4] ss:$16 sps:$4 sm:$0xff]   ;;  %v11331_v46 = vld [vmem:[%s15489_s1 + $0x18ac] ss:$16 sps:$4 sm:$0xff]  }
 0x2d8   :  { %7649 = vmatprep.subr.bf16.mxu0 %v11235_v47  ;;  %8423 = vmatprep.subr.bf16.mxu1 %v11238_v48  ;;  %v11326_v47 = vld [vmem:[%s15489_s1 + $0x18a0] ss:$16 sps:$4 sm:$0xff]   ;;  %v11329_v48 = vld [vmem:[%s15489_s1 + $0x18a8] ss:$16 sps:$4 sm:$0xff]  }
 0x2db   :  { %7650 = vmatpush1.bf16.msra.mxu0 %v11233_v49  ;;  %8424 = vmatpush1.bf16.msra.mxu1 %v11236_v50  ;;  %v11334_v49 = vld [vmem:[%s15489_s1 + $0x18c4] ss:$16 sps:$4 sm:$0xff]   ;;  %v11337_v50 = vld [vmem:[%s15489_s1 + $0x18cc] ss:$16 sps:$4 sm:$0xff]  }
 0x2dc   :  { %7651 = vmatprep.subr.bf16.mxu0 %v11241_v51  ;;  %8425 = vmatprep.subr.bf16.mxu1 %v11244_v52  ;;  %v11332_v51 = vld [vmem:[%s15489_s1 + $0x18c0] ss:$16 sps:$4 sm:$0xff]   ;;  %v11335_v52 = vld [vmem:[%s15489_s1 + $0x18c8] ss:$16 sps:$4 sm:$0xff]  }
 0x2df   :  { %7652 = vmatpush1.bf16.msra.mxu0 %v11239_v53  ;;  %8426 = vmatpush1.bf16.msra.mxu1 %v11242_v54  ;;  %v11340_v53 = vld [vmem:[%s15489_s1 + $0x18e4] ss:$16 sps:$4 sm:$0xff]   ;;  %v11343_v54 = vld [vmem:[%s15489_s1 + $0x18ec] ss:$16 sps:$4 sm:$0xff]  }
 0x2e0   :  { %7653 = vmatprep.subr.bf16.mxu0 %v11247_v55  ;;  %8427 = vmatprep.subr.bf16.mxu1 %v11250_v56  ;;  %v11338_v55 = vld [vmem:[%s15489_s1 + $0x18e0] ss:$16 sps:$4 sm:$0xff]   ;;  %v11341_v56 = vld [vmem:[%s15489_s1 + $0x18e8] ss:$16 sps:$4 sm:$0xff]  }
 0x2e3   :  { %7654 = vmatpush1.bf16.msra.mxu0 %v11245_v57  ;;  %8428 = vmatpush1.bf16.msra.mxu1 %v11248_v58  ;;  %v11346_v57 = vld [vmem:[%s15489_s1 + $0x1904] ss:$16 sps:$4 sm:$0xff]   ;;  %v11349_v58 = vld [vmem:[%s15489_s1 + $0x190c] ss:$16 sps:$4 sm:$0xff]  }
 0x2e4   :  { %7655 = vmatprep.subr.bf16.mxu0 %v11253_v59  ;;  %8429 = vmatprep.subr.bf16.mxu1 %v11256_v60  ;;  %v11344_v59 = vld [vmem:[%s15489_s1 + $0x1900] ss:$16 sps:$4 sm:$0xff]   ;;  %v11347_v60 = vld [vmem:[%s15489_s1 + $0x1908] ss:$16 sps:$4 sm:$0xff]  }
 0x2e7   :  { %7656 = vmatpush1.bf16.msra.mxu0 %v11251_v61  ;;  %8430 = vmatpush1.bf16.msra.mxu1 %v11254_v62  ;;  %v11352_v61 = vld [vmem:[%s15489_s1 + $0x1924] ss:$16 sps:$4 sm:$0xff]   ;;  %v11355_v62 = vld [vmem:[%s15489_s1 + $0x192c] ss:$16 sps:$4 sm:$0xff]  }
 0x2e8   :  { %7657 = vmatprep.subr.bf16.mxu0 %v11259_v63  ;;  %8431 = vmatprep.subr.bf16.mxu1 %v11262_v0  ;;  %v11350_v63 = vld [vmem:[%s15489_s1 + $0x1920] ss:$16 sps:$4 sm:$0xff]   ;;  %v11353_v0 = vld [vmem:[%s15489_s1 + $0x1928] ss:$16 sps:$4 sm:$0xff]  }
 0x2eb   :  { %7658 = vmatpush1.bf16.msra.mxu0 %v11257_v1  ;;  %8432 = vmatpush1.bf16.msra.mxu1 %v11260_v2  ;;  %v11358_v1 = vld [vmem:[%s15489_s1 + $0x1944] ss:$16 sps:$4 sm:$0xff]   ;;  %v11361_v2 = vld [vmem:[%s15489_s1 + $0x194c] ss:$16 sps:$4 sm:$0xff]  }
 0x2ec   :  { %7659 = vmatprep.subr.bf16.mxu0 %v11265_v3  ;;  %8433 = vmatprep.subr.bf16.mxu1 %v11268_v4  ;;  %v11356_v3 = vld [vmem:[%s15489_s1 + $0x1940] ss:$16 sps:$4 sm:$0xff]   ;;  %v11359_v4 = vld [vmem:[%s15489_s1 + $0x1948] ss:$16 sps:$4 sm:$0xff]  }
 0x2ef   :  { %7660 = vmatpush1.bf16.msra.mxu0 %v11263_v5  ;;  %8434 = vmatpush1.bf16.msra.mxu1 %v11266_v6  ;;  %v11364_v5 = vld [vmem:[%s15489_s1 + $0x1964] ss:$16 sps:$4 sm:$0xff]   ;;  %v11367_v6 = vld [vmem:[%s15489_s1 + $0x196c] ss:$16 sps:$4 sm:$0xff]  }
 0x2f0   :  { %7661 = vmatprep.subr.bf16.mxu0 %v11271_v7  ;;  %8435 = vmatprep.subr.bf16.mxu1 %v11274_v8  ;;  %v11362_v7 = vld [vmem:[%s15489_s1 + $0x1960] ss:$16 sps:$4 sm:$0xff]   ;;  %v11365_v8 = vld [vmem:[%s15489_s1 + $0x1968] ss:$16 sps:$4 sm:$0xff]  }
 0x2f3   :  { %7662 = vmatpush1.bf16.msra.mxu0 %v11269_v9  ;;  %8436 = vmatpush1.bf16.msra.mxu1 %v11272_v10  ;;  %v11370_v9 = vld [vmem:[%s15489_s1 + $0x1984] ss:$16 sps:$4 sm:$0xff]   ;;  %v11373_v10 = vld [vmem:[%s15489_s1 + $0x198c] ss:$16 sps:$4 sm:$0xff]  }
 0x2f4   :  { %7663 = vmatprep.subr.bf16.mxu0 %v11277_v11  ;;  %8437 = vmatprep.subr.bf16.mxu1 %v11280_v12  ;;  %v11368_v11 = vld [vmem:[%s15489_s1 + $0x1980] ss:$16 sps:$4 sm:$0xff]   ;;  %v11371_v12 = vld [vmem:[%s15489_s1 + $0x1988] ss:$16 sps:$4 sm:$0xff]  }
 0x2f7   :  { %7664 = vmatpush1.bf16.msra.mxu0 %v11275_v13  ;;  %8438 = vmatpush1.bf16.msra.mxu1 %v11278_v14  ;;  %v11376_v13 = vld [vmem:[%s15489_s1 + $0x19a4] ss:$16 sps:$4 sm:$0xff]   ;;  %v11379_v14 = vld [vmem:[%s15489_s1 + $0x19ac] ss:$16 sps:$4 sm:$0xff]  }
 0x2f8   :  { %7665 = vmatprep.subr.bf16.mxu0 %v11283_v15  ;;  %8439 = vmatprep.subr.bf16.mxu1 %v11286_v16  ;;  %v11374_v15 = vld [vmem:[%s15489_s1 + $0x19a0] ss:$16 sps:$4 sm:$0xff]   ;;  %v11377_v16 = vld [vmem:[%s15489_s1 + $0x19a8] ss:$16 sps:$4 sm:$0xff]  }
 0x2fb   :  { %7666 = vmatpush1.bf16.msra.mxu0 %v11281_v17  ;;  %8440 = vmatpush1.bf16.msra.mxu1 %v11284_v18  ;;  %v11382_v17 = vld [vmem:[%s15489_s1 + $0x19c4] ss:$16 sps:$4 sm:$0xff]   ;;  %v11385_v18 = vld [vmem:[%s15489_s1 + $0x19cc] ss:$16 sps:$4 sm:$0xff]  }
 0x2fc   :  { %7667 = vmatprep.subr.bf16.mxu0 %v11289_v19  ;;  %8441 = vmatprep.subr.bf16.mxu1 %v11292_v20  ;;  %v11380_v19 = vld [vmem:[%s15489_s1 + $0x19c0] ss:$16 sps:$4 sm:$0xff]   ;;  %v11383_v20 = vld [vmem:[%s15489_s1 + $0x19c8] ss:$16 sps:$4 sm:$0xff]  }
 0x2ff   :  { %7668 = vmatpush1.bf16.msra.mxu0 %v11287_v21  ;;  %8442 = vmatpush1.bf16.msra.mxu1 %v11290_v22  ;;  %v11388_v21 = vld [vmem:[%s15489_s1 + $0x19e4] ss:$16 sps:$4 sm:$0xff]   ;;  %v11391_v22 = vld [vmem:[%s15489_s1 + $0x19ec] ss:$16 sps:$4 sm:$0xff]  }
 0x300   :  { %7680 = vmatprep.subr.bf16.mxu0 %v11298_v23  ;;  %8454 = vmatprep.subr.bf16.mxu1 %v11301_v24  ;;  %v11386_v23 = vld [vmem:[%s15489_s1 + $0x19e0] ss:$16 sps:$4 sm:$0xff]   ;;  %v11389_v24 = vld [vmem:[%s15489_s1 + $0x19e8] ss:$16 sps:$4 sm:$0xff]  }
 0x302   :  { %7670 = vmatmul.mubr.bf16.vlgmr.msra.gmra.mrb[0].mxu0 %v11293_v25  ;;  %8444 = vmatmul.mubr.bf16.vlgmr.msra.gmra.mrb[0].mxu1 %v11293_v25  ;;  %v11397_v25 = vld [vmem:[%s15489_s1 + $0x1a04] ss:$16 sps:$4 sm:$0xff]  }
 0x303   :  { %7681 = vmatpush1.bf16.msra.mxu0 %v11296_v26  ;;  %8455 = vmatpush1.bf16.msra.mxu1 %v11299_v27  ;;  %v11400_v26 = vld [vmem:[%s15489_s1 + $0x1a0c] ss:$16 sps:$4 sm:$0xff]   ;;  %v11392_v27 = vld [vmem:[%s15490_s0 + $0x60] ss:$144 sps:$4 sm:$0xff]  }
 0x304   :  { %7682 = vmatprep.subr.bf16.mxu0 %v11304_v28  ;;  %8456 = vmatprep.subr.bf16.mxu1 %v11307_v29  ;;  %v11395_v28 = vld [vmem:[%s15489_s1 + $0x1a00] ss:$16 sps:$4 sm:$0xff]   ;;  %v11398_v29 = vld [vmem:[%s15489_s1 + $0x1a08] ss:$16 sps:$4 sm:$0xff]  }
 0x305   :  { %7712 = vmatprep.mubr.bf16.mxu0 %v11394_v30  ;;  %8486 = vmatprep.mubr.bf16.mxu1 %v11394_v30  ;;  %v11403_v30 = vld [vmem:[%s15489_s1 + $0x1a24] ss:$16 sps:$4 sm:$0xff]  }
 0x307   :  { %7683 = vmatpush1.bf16.msra.mxu0 %v11302_v31  ;;  %8457 = vmatpush1.bf16.msra.mxu1 %v11305_v32  ;;  %v11406_v31 = vld [vmem:[%s15489_s1 + $0x1a2c] ss:$16 sps:$4 sm:$0xff]  }
 0x308   :  { %7684 = vmatprep.subr.bf16.mxu0 %v11310_v33  ;;  %8458 = vmatprep.subr.bf16.mxu1 %v11313_v34  ;;  %v11493_v32 = vld [vmem:[%s15490_s0 + $0x6c] ss:$144 sps:$4 sm:$0xff]   ;;  %v11401_v33 = vld [vmem:[%s15489_s1 + $0x1a20] ss:$16 sps:$4 sm:$0xff]   ;;  %v11404_v34 = vld [vmem:[%s15489_s1 + $0x1a28] ss:$16 sps:$4 sm:$0xff]  }
 0x30b   :  { %7685 = vmatpush1.bf16.msra.mxu0 %v11308_v35  ;;  %8459 = vmatpush1.bf16.msra.mxu1 %v11311_v36  ;;  %v11409_v35 = vld [vmem:[%s15489_s1 + $0x1a44] ss:$16 sps:$4 sm:$0xff]   ;;  %v11412_v36 = vld [vmem:[%s15489_s1 + $0x1a4c] ss:$16 sps:$4 sm:$0xff]  }
 0x30c   :  { %7686 = vmatprep.subr.bf16.mxu0 %v11316_v37  ;;  %8460 = vmatprep.subr.bf16.mxu1 %v11319_v38  ;;  %v11407_v37 = vld [vmem:[%s15489_s1 + $0x1a40] ss:$16 sps:$4 sm:$0xff]   ;;  %v11410_v38 = vld [vmem:[%s15489_s1 + $0x1a48] ss:$16 sps:$4 sm:$0xff]  }
 0x30f   :  { %7687 = vmatpush1.bf16.msra.mxu0 %v11314_v39  ;;  %8461 = vmatpush1.bf16.msra.mxu1 %v11317_v40  ;;  %v11415_v39 = vld [vmem:[%s15489_s1 + $0x1a64] ss:$16 sps:$4 sm:$0xff]   ;;  %v11418_v40 = vld [vmem:[%s15489_s1 + $0x1a6c] ss:$16 sps:$4 sm:$0xff]  }
 0x310   :  { %7688 = vmatprep.subr.bf16.mxu0 %v11322_v41  ;;  %8462 = vmatprep.subr.bf16.mxu1 %v11325_v42  ;;  %v11413_v41 = vld [vmem:[%s15489_s1 + $0x1a60] ss:$16 sps:$4 sm:$0xff]   ;;  %v11416_v42 = vld [vmem:[%s15489_s1 + $0x1a68] ss:$16 sps:$4 sm:$0xff]  }
 0x313   :  { %7689 = vmatpush1.bf16.msra.mxu0 %v11320_v43  ;;  %8463 = vmatpush1.bf16.msra.mxu1 %v11323_v44  ;;  %v11421_v43 = vld [vmem:[%s15489_s1 + $0x1a84] ss:$16 sps:$4 sm:$0xff]   ;;  %v11424_v44 = vld [vmem:[%s15489_s1 + $0x1a8c] ss:$16 sps:$4 sm:$0xff]  }
 0x314   :  { %7690 = vmatprep.subr.bf16.mxu0 %v11328_v45  ;;  %8464 = vmatprep.subr.bf16.mxu1 %v11331_v46  ;;  %v11419_v45 = vld [vmem:[%s15489_s1 + $0x1a80] ss:$16 sps:$4 sm:$0xff]   ;;  %v11422_v46 = vld [vmem:[%s15489_s1 + $0x1a88] ss:$16 sps:$4 sm:$0xff]  }
 0x317   :  { %7691 = vmatpush1.bf16.msra.mxu0 %v11326_v47  ;;  %8465 = vmatpush1.bf16.msra.mxu1 %v11329_v48  ;;  %v11427_v47 = vld [vmem:[%s15489_s1 + $0x1aa4] ss:$16 sps:$4 sm:$0xff]   ;;  %v11430_v48 = vld [vmem:[%s15489_s1 + $0x1aac] ss:$16 sps:$4 sm:$0xff]  }
 0x318   :  { %7692 = vmatprep.subr.bf16.mxu0 %v11334_v49  ;;  %8466 = vmatprep.subr.bf16.mxu1 %v11337_v50  ;;  %v11425_v49 = vld [vmem:[%s15489_s1 + $0x1aa0] ss:$16 sps:$4 sm:$0xff]   ;;  %v11428_v50 = vld [vmem:[%s15489_s1 + $0x1aa8] ss:$16 sps:$4 sm:$0xff]  }
 0x31b   :  { %7693 = vmatpush1.bf16.msra.mxu0 %v11332_v51  ;;  %8467 = vmatpush1.bf16.msra.mxu1 %v11335_v52  ;;  %v11433_v51 = vld [vmem:[%s15489_s1 + $0x1ac4] ss:$16 sps:$4 sm:$0xff]   ;;  %v11436_v52 = vld [vmem:[%s15489_s1 + $0x1acc] ss:$16 sps:$4 sm:$0xff]  }
 0x31c   :  { %7694 = vmatprep.subr.bf16.mxu0 %v11340_v53  ;;  %8468 = vmatprep.subr.bf16.mxu1 %v11343_v54  ;;  %v11431_v53 = vld [vmem:[%s15489_s1 + $0x1ac0] ss:$16 sps:$4 sm:$0xff]   ;;  %v11434_v54 = vld [vmem:[%s15489_s1 + $0x1ac8] ss:$16 sps:$4 sm:$0xff]  }
 0x31f   :  { %7695 = vmatpush1.bf16.msra.mxu0 %v11338_v55  ;;  %8469 = vmatpush1.bf16.msra.mxu1 %v11341_v56  ;;  %v11439_v55 = vld [vmem:[%s15489_s1 + $0x1ae4] ss:$16 sps:$4 sm:$0xff]   ;;  %v11442_v56 = vld [vmem:[%s15489_s1 + $0x1aec] ss:$16 sps:$4 sm:$0xff]  }
 0x320   :  { %7696 = vmatprep.subr.bf16.mxu0 %v11346_v57  ;;  %8470 = vmatprep.subr.bf16.mxu1 %v11349_v58  ;;  %v11437_v57 = vld [vmem:[%s15489_s1 + $0x1ae0] ss:$16 sps:$4 sm:$0xff]   ;;  %v11440_v58 = vld [vmem:[%s15489_s1 + $0x1ae8] ss:$16 sps:$4 sm:$0xff]  }
 0x323   :  { %7697 = vmatpush1.bf16.msra.mxu0 %v11344_v59  ;;  %8471 = vmatpush1.bf16.msra.mxu1 %v11347_v60  ;;  %v11445_v59 = vld [vmem:[%s15489_s1 + $0x1b04] ss:$16 sps:$4 sm:$0xff]   ;;  %v11448_v60 = vld [vmem:[%s15489_s1 + $0x1b0c] ss:$16 sps:$4 sm:$0xff]  }
 0x324   :  { %7698 = vmatprep.subr.bf16.mxu0 %v11352_v61  ;;  %8472 = vmatprep.subr.bf16.mxu1 %v11355_v62  ;;  %v11443_v61 = vld [vmem:[%s15489_s1 + $0x1b00] ss:$16 sps:$4 sm:$0xff]   ;;  %v11446_v62 = vld [vmem:[%s15489_s1 + $0x1b08] ss:$16 sps:$4 sm:$0xff]  }
 0x327   :  { %7699 = vmatpush1.bf16.msra.mxu0 %v11350_v63  ;;  %8473 = vmatpush1.bf16.msra.mxu1 %v11353_v0  ;;  %v11451_v63 = vld [vmem:[%s15489_s1 + $0x1b24] ss:$16 sps:$4 sm:$0xff]   ;;  %v11454_v0 = vld [vmem:[%s15489_s1 + $0x1b2c] ss:$16 sps:$4 sm:$0xff]  }
 0x328   :  { %7700 = vmatprep.subr.bf16.mxu0 %v11358_v1  ;;  %8474 = vmatprep.subr.bf16.mxu1 %v11361_v2  ;;  %v11449_v1 = vld [vmem:[%s15489_s1 + $0x1b20] ss:$16 sps:$4 sm:$0xff]   ;;  %v11452_v2 = vld [vmem:[%s15489_s1 + $0x1b28] ss:$16 sps:$4 sm:$0xff]  }
 0x32b   :  { %7701 = vmatpush1.bf16.msra.mxu0 %v11356_v3  ;;  %8475 = vmatpush1.bf16.msra.mxu1 %v11359_v4  ;;  %v11457_v3 = vld [vmem:[%s15489_s1 + $0x1b44] ss:$16 sps:$4 sm:$0xff]   ;;  %v11460_v4 = vld [vmem:[%s15489_s1 + $0x1b4c] ss:$16 sps:$4 sm:$0xff]  }
 0x32c   :  { %7702 = vmatprep.subr.bf16.mxu0 %v11364_v5  ;;  %8476 = vmatprep.subr.bf16.mxu1 %v11367_v6  ;;  %v11455_v5 = vld [vmem:[%s15489_s1 + $0x1b40] ss:$16 sps:$4 sm:$0xff]   ;;  %v11458_v6 = vld [vmem:[%s15489_s1 + $0x1b48] ss:$16 sps:$4 sm:$0xff]  }
 0x32f   :  { %7703 = vmatpush1.bf16.msra.mxu0 %v11362_v7  ;;  %8477 = vmatpush1.bf16.msra.mxu1 %v11365_v8  ;;  %v11463_v7 = vld [vmem:[%s15489_s1 + $0x1b64] ss:$16 sps:$4 sm:$0xff]   ;;  %v11466_v8 = vld [vmem:[%s15489_s1 + $0x1b6c] ss:$16 sps:$4 sm:$0xff]  }
 0x330   :  { %7704 = vmatprep.subr.bf16.mxu0 %v11370_v9  ;;  %8478 = vmatprep.subr.bf16.mxu1 %v11373_v10  ;;  %v11461_v9 = vld [vmem:[%s15489_s1 + $0x1b60] ss:$16 sps:$4 sm:$0xff]   ;;  %v11464_v10 = vld [vmem:[%s15489_s1 + $0x1b68] ss:$16 sps:$4 sm:$0xff]  }
 0x333   :  { %7705 = vmatpush1.bf16.msra.mxu0 %v11368_v11  ;;  %8479 = vmatpush1.bf16.msra.mxu1 %v11371_v12  ;;  %v11469_v11 = vld [vmem:[%s15489_s1 + $0x1b84] ss:$16 sps:$4 sm:$0xff]   ;;  %v11472_v12 = vld [vmem:[%s15489_s1 + $0x1b8c] ss:$16 sps:$4 sm:$0xff]  }
 0x334   :  { %7706 = vmatprep.subr.bf16.mxu0 %v11376_v13  ;;  %8480 = vmatprep.subr.bf16.mxu1 %v11379_v14  ;;  %v11467_v13 = vld [vmem:[%s15489_s1 + $0x1b80] ss:$16 sps:$4 sm:$0xff]   ;;  %v11470_v14 = vld [vmem:[%s15489_s1 + $0x1b88] ss:$16 sps:$4 sm:$0xff]  }
 0x337   :  { %7707 = vmatpush1.bf16.msra.mxu0 %v11374_v15  ;;  %8481 = vmatpush1.bf16.msra.mxu1 %v11377_v16  ;;  %v11475_v15 = vld [vmem:[%s15489_s1 + $0x1ba4] ss:$16 sps:$4 sm:$0xff]   ;;  %v11478_v16 = vld [vmem:[%s15489_s1 + $0x1bac] ss:$16 sps:$4 sm:$0xff]  }
 0x338   :  { %7708 = vmatprep.subr.bf16.mxu0 %v11382_v17  ;;  %8482 = vmatprep.subr.bf16.mxu1 %v11385_v18  ;;  %v11473_v17 = vld [vmem:[%s15489_s1 + $0x1ba0] ss:$16 sps:$4 sm:$0xff]   ;;  %v11476_v18 = vld [vmem:[%s15489_s1 + $0x1ba8] ss:$16 sps:$4 sm:$0xff]  }
 0x33b   :  { %7709 = vmatpush1.bf16.msra.mxu0 %v11380_v19  ;;  %8483 = vmatpush1.bf16.msra.mxu1 %v11383_v20  ;;  %v11481_v19 = vld [vmem:[%s15489_s1 + $0x1bc4] ss:$16 sps:$4 sm:$0xff]   ;;  %v11484_v20 = vld [vmem:[%s15489_s1 + $0x1bcc] ss:$16 sps:$4 sm:$0xff]  }
 0x33c   :  { %7710 = vmatprep.subr.bf16.mxu0 %v11388_v21  ;;  %8484 = vmatprep.subr.bf16.mxu1 %v11391_v22  ;;  %v11479_v21 = vld [vmem:[%s15489_s1 + $0x1bc0] ss:$16 sps:$4 sm:$0xff]   ;;  %v11482_v22 = vld [vmem:[%s15489_s1 + $0x1bc8] ss:$16 sps:$4 sm:$0xff]  }
 0x33f   :  { %7711 = vmatpush1.bf16.msra.mxu0 %v11386_v23  ;;  %8485 = vmatpush1.bf16.msra.mxu1 %v11389_v24  ;;  %v11487_v23 = vld [vmem:[%s15489_s1 + $0x1be4] ss:$16 sps:$4 sm:$0xff]   ;;  %v11490_v24 = vld [vmem:[%s15489_s1 + $0x1bec] ss:$16 sps:$4 sm:$0xff]  }
 0x340   :  { %7723 = vmatprep.subr.bf16.mxu0 %v11397_v25  ;;  %8497 = vmatprep.subr.bf16.mxu1 %v11400_v26  ;;  %v11485_v25 = vld [vmem:[%s15489_s1 + $0x1be0] ss:$16 sps:$4 sm:$0xff]   ;;  %v11488_v26 = vld [vmem:[%s15489_s1 + $0x1be8] ss:$16 sps:$4 sm:$0xff]  }
 0x342   :  { %7713 = vmatmul.mubr.bf16.vlgmr.msra.gmra.mrb[0].mxu0 %v11392_v27  ;;  %8487 = vmatmul.mubr.bf16.vlgmr.msra.gmra.mrb[0].mxu1 %v11392_v27  ;;  %v11496_v27 = vld [vmem:[%s15489_s1 + $0x1c04] ss:$16 sps:$4 sm:$0xff]  }
 0x343   :  { %7724 = vmatpush1.bf16.msra.mxu0 %v11395_v28  ;;  %8498 = vmatpush1.bf16.msra.mxu1 %v11398_v29  ;;  %v11499_v28 = vld [vmem:[%s15489_s1 + $0x1c0c] ss:$16 sps:$4 sm:$0xff]   ;;  %v11491_v29 = vld [vmem:[%s15490_s0 + $0x68] ss:$144 sps:$4 sm:$0xff]  }
 0x344   :  { %7725 = vmatprep.subr.bf16.mxu0 %v11403_v30  ;;  %8499 = vmatprep.subr.bf16.mxu1 %v11406_v31  ;;  %v11494_v30 = vld [vmem:[%s15489_s1 + $0x1c00] ss:$16 sps:$4 sm:$0xff]   ;;  %v11497_v31 = vld [vmem:[%s15489_s1 + $0x1c08] ss:$16 sps:$4 sm:$0xff]  }
 0x345   :  { %7755 = vmatprep.mubr.bf16.mxu0 %v11493_v32  ;;  %8529 = vmatprep.mubr.bf16.mxu1 %v11493_v32  ;;  %v11502_v32 = vld [vmem:[%s15489_s1 + $0x1c24] ss:$16 sps:$4 sm:$0xff]  }
 0x347   :  { %7726 = vmatpush1.bf16.msra.mxu0 %v11401_v33  ;;  %8500 = vmatpush1.bf16.msra.mxu1 %v11404_v34  ;;  %v11505_v33 = vld [vmem:[%s15489_s1 + $0x1c2c] ss:$16 sps:$4 sm:$0xff]   ;;  %v11592_v34 = vld [vmem:[%s15490_s0 + $0x74] ss:$144 sps:$4 sm:$0xff]  }
 0x348   :  { %7727 = vmatprep.subr.bf16.mxu0 %v11409_v35  ;;  %8501 = vmatprep.subr.bf16.mxu1 %v11412_v36  ;;  %v11500_v35 = vld [vmem:[%s15489_s1 + $0x1c20] ss:$16 sps:$4 sm:$0xff]   ;;  %v11503_v36 = vld [vmem:[%s15489_s1 + $0x1c28] ss:$16 sps:$4 sm:$0xff]  }
 0x34b   :  { %7728 = vmatpush1.bf16.msra.mxu0 %v11407_v37  ;;  %8502 = vmatpush1.bf16.msra.mxu1 %v11410_v38  ;;  %v11508_v37 = vld [vmem:[%s15489_s1 + $0x1c44] ss:$16 sps:$4 sm:$0xff]   ;;  %v11511_v38 = vld [vmem:[%s15489_s1 + $0x1c4c] ss:$16 sps:$4 sm:$0xff]  }
 0x34c   :  { %7729 = vmatprep.subr.bf16.mxu0 %v11415_v39  ;;  %8503 = vmatprep.subr.bf16.mxu1 %v11418_v40  ;;  %v11506_v39 = vld [vmem:[%s15489_s1 + $0x1c40] ss:$16 sps:$4 sm:$0xff]   ;;  %v11509_v40 = vld [vmem:[%s15489_s1 + $0x1c48] ss:$16 sps:$4 sm:$0xff]  }
 0x34f   :  { %7730 = vmatpush1.bf16.msra.mxu0 %v11413_v41  ;;  %8504 = vmatpush1.bf16.msra.mxu1 %v11416_v42  ;;  %v11514_v41 = vld [vmem:[%s15489_s1 + $0x1c64] ss:$16 sps:$4 sm:$0xff]   ;;  %v11517_v42 = vld [vmem:[%s15489_s1 + $0x1c6c] ss:$16 sps:$4 sm:$0xff]  }
 0x350   :  { %7731 = vmatprep.subr.bf16.mxu0 %v11421_v43  ;;  %8505 = vmatprep.subr.bf16.mxu1 %v11424_v44  ;;  %v11512_v43 = vld [vmem:[%s15489_s1 + $0x1c60] ss:$16 sps:$4 sm:$0xff]   ;;  %v11515_v44 = vld [vmem:[%s15489_s1 + $0x1c68] ss:$16 sps:$4 sm:$0xff]  }
 0x353   :  { %7732 = vmatpush1.bf16.msra.mxu0 %v11419_v45  ;;  %8506 = vmatpush1.bf16.msra.mxu1 %v11422_v46  ;;  %v11520_v45 = vld [vmem:[%s15489_s1 + $0x1c84] ss:$16 sps:$4 sm:$0xff]   ;;  %v11523_v46 = vld [vmem:[%s15489_s1 + $0x1c8c] ss:$16 sps:$4 sm:$0xff]  }
 0x354   :  { %7733 = vmatprep.subr.bf16.mxu0 %v11427_v47  ;;  %8507 = vmatprep.subr.bf16.mxu1 %v11430_v48  ;;  %v11518_v47 = vld [vmem:[%s15489_s1 + $0x1c80] ss:$16 sps:$4 sm:$0xff]   ;;  %v11521_v48 = vld [vmem:[%s15489_s1 + $0x1c88] ss:$16 sps:$4 sm:$0xff]  }
 0x357   :  { %7734 = vmatpush1.bf16.msra.mxu0 %v11425_v49  ;;  %8508 = vmatpush1.bf16.msra.mxu1 %v11428_v50  ;;  %v11526_v49 = vld [vmem:[%s15489_s1 + $0x1ca4] ss:$16 sps:$4 sm:$0xff]   ;;  %v11529_v50 = vld [vmem:[%s15489_s1 + $0x1cac] ss:$16 sps:$4 sm:$0xff]  }
 0x358   :  { %7735 = vmatprep.subr.bf16.mxu0 %v11433_v51  ;;  %8509 = vmatprep.subr.bf16.mxu1 %v11436_v52  ;;  %v11524_v51 = vld [vmem:[%s15489_s1 + $0x1ca0] ss:$16 sps:$4 sm:$0xff]   ;;  %v11527_v52 = vld [vmem:[%s15489_s1 + $0x1ca8] ss:$16 sps:$4 sm:$0xff]  }
 0x35b   :  { %7736 = vmatpush1.bf16.msra.mxu0 %v11431_v53  ;;  %8510 = vmatpush1.bf16.msra.mxu1 %v11434_v54  ;;  %v11532_v53 = vld [vmem:[%s15489_s1 + $0x1cc4] ss:$16 sps:$4 sm:$0xff]   ;;  %v11535_v54 = vld [vmem:[%s15489_s1 + $0x1ccc] ss:$16 sps:$4 sm:$0xff]  }
 0x35c   :  { %7737 = vmatprep.subr.bf16.mxu0 %v11439_v55  ;;  %8511 = vmatprep.subr.bf16.mxu1 %v11442_v56  ;;  %v11530_v55 = vld [vmem:[%s15489_s1 + $0x1cc0] ss:$16 sps:$4 sm:$0xff]   ;;  %v11533_v56 = vld [vmem:[%s15489_s1 + $0x1cc8] ss:$16 sps:$4 sm:$0xff]  }
 0x35f   :  { %7738 = vmatpush1.bf16.msra.mxu0 %v11437_v57  ;;  %8512 = vmatpush1.bf16.msra.mxu1 %v11440_v58  ;;  %v11538_v57 = vld [vmem:[%s15489_s1 + $0x1ce4] ss:$16 sps:$4 sm:$0xff]   ;;  %v11541_v58 = vld [vmem:[%s15489_s1 + $0x1cec] ss:$16 sps:$4 sm:$0xff]  }
 0x360   :  { %7739 = vmatprep.subr.bf16.mxu0 %v11445_v59  ;;  %8513 = vmatprep.subr.bf16.mxu1 %v11448_v60  ;;  %v11536_v59 = vld [vmem:[%s15489_s1 + $0x1ce0] ss:$16 sps:$4 sm:$0xff]   ;;  %v11539_v60 = vld [vmem:[%s15489_s1 + $0x1ce8] ss:$16 sps:$4 sm:$0xff]  }
 0x363   :  { %7740 = vmatpush1.bf16.msra.mxu0 %v11443_v61  ;;  %8514 = vmatpush1.bf16.msra.mxu1 %v11446_v62  ;;  %v11544_v61 = vld [vmem:[%s15489_s1 + $0x1d04] ss:$16 sps:$4 sm:$0xff]   ;;  %v11547_v62 = vld [vmem:[%s15489_s1 + $0x1d0c] ss:$16 sps:$4 sm:$0xff]  }
 0x364   :  { %7741 = vmatprep.subr.bf16.mxu0 %v11451_v63  ;;  %8515 = vmatprep.subr.bf16.mxu1 %v11454_v0  ;;  %v11542_v63 = vld [vmem:[%s15489_s1 + $0x1d00] ss:$16 sps:$4 sm:$0xff]   ;;  %v11545_v0 = vld [vmem:[%s15489_s1 + $0x1d08] ss:$16 sps:$4 sm:$0xff]  }
 0x367   :  { %7742 = vmatpush1.bf16.msra.mxu0 %v11449_v1  ;;  %8516 = vmatpush1.bf16.msra.mxu1 %v11452_v2  ;;  %v11550_v1 = vld [vmem:[%s15489_s1 + $0x1d24] ss:$16 sps:$4 sm:$0xff]   ;;  %v11553_v2 = vld [vmem:[%s15489_s1 + $0x1d2c] ss:$16 sps:$4 sm:$0xff]  }
 0x368   :  { %7743 = vmatprep.subr.bf16.mxu0 %v11457_v3  ;;  %8517 = vmatprep.subr.bf16.mxu1 %v11460_v4  ;;  %v11548_v3 = vld [vmem:[%s15489_s1 + $0x1d20] ss:$16 sps:$4 sm:$0xff]   ;;  %v11551_v4 = vld [vmem:[%s15489_s1 + $0x1d28] ss:$16 sps:$4 sm:$0xff]  }
 0x36b   :  { %7744 = vmatpush1.bf16.msra.mxu0 %v11455_v5  ;;  %8518 = vmatpush1.bf16.msra.mxu1 %v11458_v6  ;;  %v11556_v5 = vld [vmem:[%s15489_s1 + $0x1d44] ss:$16 sps:$4 sm:$0xff]   ;;  %v11559_v6 = vld [vmem:[%s15489_s1 + $0x1d4c] ss:$16 sps:$4 sm:$0xff]  }
 0x36c   :  { %7745 = vmatprep.subr.bf16.mxu0 %v11463_v7  ;;  %8519 = vmatprep.subr.bf16.mxu1 %v11466_v8  ;;  %v11554_v7 = vld [vmem:[%s15489_s1 + $0x1d40] ss:$16 sps:$4 sm:$0xff]   ;;  %v11557_v8 = vld [vmem:[%s15489_s1 + $0x1d48] ss:$16 sps:$4 sm:$0xff]  }
 0x36f   :  { %7746 = vmatpush1.bf16.msra.mxu0 %v11461_v9  ;;  %8520 = vmatpush1.bf16.msra.mxu1 %v11464_v10  ;;  %v11562_v9 = vld [vmem:[%s15489_s1 + $0x1d64] ss:$16 sps:$4 sm:$0xff]   ;;  %v11565_v10 = vld [vmem:[%s15489_s1 + $0x1d6c] ss:$16 sps:$4 sm:$0xff]  }
 0x370   :  { %7747 = vmatprep.subr.bf16.mxu0 %v11469_v11  ;;  %8521 = vmatprep.subr.bf16.mxu1 %v11472_v12  ;;  %v11560_v11 = vld [vmem:[%s15489_s1 + $0x1d60] ss:$16 sps:$4 sm:$0xff]   ;;  %v11563_v12 = vld [vmem:[%s15489_s1 + $0x1d68] ss:$16 sps:$4 sm:$0xff]  }
 0x373   :  { %7748 = vmatpush1.bf16.msra.mxu0 %v11467_v13  ;;  %8522 = vmatpush1.bf16.msra.mxu1 %v11470_v14  ;;  %v11568_v13 = vld [vmem:[%s15489_s1 + $0x1d84] ss:$16 sps:$4 sm:$0xff]   ;;  %v11571_v14 = vld [vmem:[%s15489_s1 + $0x1d8c] ss:$16 sps:$4 sm:$0xff]  }
 0x374   :  { %7749 = vmatprep.subr.bf16.mxu0 %v11475_v15  ;;  %8523 = vmatprep.subr.bf16.mxu1 %v11478_v16  ;;  %v11566_v15 = vld [vmem:[%s15489_s1 + $0x1d80] ss:$16 sps:$4 sm:$0xff]   ;;  %v11569_v16 = vld [vmem:[%s15489_s1 + $0x1d88] ss:$16 sps:$4 sm:$0xff]  }
 0x377   :  { %7750 = vmatpush1.bf16.msra.mxu0 %v11473_v17  ;;  %8524 = vmatpush1.bf16.msra.mxu1 %v11476_v18  ;;  %v11574_v17 = vld [vmem:[%s15489_s1 + $0x1da4] ss:$16 sps:$4 sm:$0xff]   ;;  %v11577_v18 = vld [vmem:[%s15489_s1 + $0x1dac] ss:$16 sps:$4 sm:$0xff]  }
 0x378   :  { %7751 = vmatprep.subr.bf16.mxu0 %v11481_v19  ;;  %8525 = vmatprep.subr.bf16.mxu1 %v11484_v20  ;;  %v11572_v19 = vld [vmem:[%s15489_s1 + $0x1da0] ss:$16 sps:$4 sm:$0xff]   ;;  %v11575_v20 = vld [vmem:[%s15489_s1 + $0x1da8] ss:$16 sps:$4 sm:$0xff]  }
 0x37b   :  { %7752 = vmatpush1.bf16.msra.mxu0 %v11479_v21  ;;  %8526 = vmatpush1.bf16.msra.mxu1 %v11482_v22  ;;  %v11580_v21 = vld [vmem:[%s15489_s1 + $0x1dc4] ss:$16 sps:$4 sm:$0xff]   ;;  %v11583_v22 = vld [vmem:[%s15489_s1 + $0x1dcc] ss:$16 sps:$4 sm:$0xff]  }
 0x37c   :  { %7753 = vmatprep.subr.bf16.mxu0 %v11487_v23  ;;  %8527 = vmatprep.subr.bf16.mxu1 %v11490_v24  ;;  %v11578_v23 = vld [vmem:[%s15489_s1 + $0x1dc0] ss:$16 sps:$4 sm:$0xff]   ;;  %v11581_v24 = vld [vmem:[%s15489_s1 + $0x1dc8] ss:$16 sps:$4 sm:$0xff]  }
 0x37f   :  { %7754 = vmatpush1.bf16.msra.mxu0 %v11485_v25  ;;  %8528 = vmatpush1.bf16.msra.mxu1 %v11488_v26  ;;  %v11586_v25 = vld [vmem:[%s15489_s1 + $0x1de4] ss:$16 sps:$4 sm:$0xff]   ;;  %v11589_v26 = vld [vmem:[%s15489_s1 + $0x1dec] ss:$16 sps:$4 sm:$0xff]  }
 0x380   :  { %7766 = vmatprep.subr.bf16.mxu0 %v11496_v27  ;;  %8540 = vmatprep.subr.bf16.mxu1 %v11499_v28  ;;  %v11584_v27 = vld [vmem:[%s15489_s1 + $0x1de0] ss:$16 sps:$4 sm:$0xff]   ;;  %v11587_v28 = vld [vmem:[%s15489_s1 + $0x1de8] ss:$16 sps:$4 sm:$0xff]  }
 0x382   :  { %7756 = vmatmul.mubr.bf16.vlgmr.msra.gmra.mrb[0].mxu0 %v11491_v29  ;;  %8530 = vmatmul.mubr.bf16.vlgmr.msra.gmra.mrb[0].mxu1 %v11491_v29  ;;  %v11595_v29 = vld [vmem:[%s15489_s1 + $0x1e04] ss:$16 sps:$4 sm:$0xff]  }
 0x383   :  { %7767 = vmatpush1.bf16.msra.mxu0 %v11494_v30  ;;  %8541 = vmatpush1.bf16.msra.mxu1 %v11497_v31  ;;  %v11598_v30 = vld [vmem:[%s15489_s1 + $0x1e0c] ss:$16 sps:$4 sm:$0xff]   ;;  %v11590_v31 = vld [vmem:[%s15490_s0 + $0x70] ss:$144 sps:$4 sm:$0xff]  }
 0x384   :  { %7768 = vmatprep.subr.bf16.mxu0 %v11502_v32  ;;  %8542 = vmatprep.subr.bf16.mxu1 %v11505_v33  ;;  %v11593_v32 = vld [vmem:[%s15489_s1 + $0x1e00] ss:$16 sps:$4 sm:$0xff]   ;;  %v11596_v33 = vld [vmem:[%s15489_s1 + $0x1e08] ss:$16 sps:$4 sm:$0xff]  }
 0x385   :  { %7798 = vmatprep.mubr.bf16.mxu0 %v11592_v34  ;;  %8572 = vmatprep.mubr.bf16.mxu1 %v11592_v34  ;;  %v11601_v34 = vld [vmem:[%s15489_s1 + $0x1e24] ss:$16 sps:$4 sm:$0xff]  }
 0x387   :  { %7769 = vmatpush1.bf16.msra.mxu0 %v11500_v35  ;;  %8543 = vmatpush1.bf16.msra.mxu1 %v11503_v36  ;;  %v11604_v35 = vld [vmem:[%s15489_s1 + $0x1e2c] ss:$16 sps:$4 sm:$0xff]  }
 0x388   :  { %7770 = vmatprep.subr.bf16.mxu0 %v11508_v37  ;;  %8544 = vmatprep.subr.bf16.mxu1 %v11511_v38  ;;  %v11691_v36 = vld [vmem:[%s15490_s0 + $0x7c] ss:$144 sps:$4 sm:$0xff]   ;;  %v11599_v37 = vld [vmem:[%s15489_s1 + $0x1e20] ss:$16 sps:$4 sm:$0xff]   ;;  %v11602_v38 = vld [vmem:[%s15489_s1 + $0x1e28] ss:$16 sps:$4 sm:$0xff]  }
 0x38b   :  { %7771 = vmatpush1.bf16.msra.mxu0 %v11506_v39  ;;  %8545 = vmatpush1.bf16.msra.mxu1 %v11509_v40  ;;  %v11607_v39 = vld [vmem:[%s15489_s1 + $0x1e44] ss:$16 sps:$4 sm:$0xff]   ;;  %v11610_v40 = vld [vmem:[%s15489_s1 + $0x1e4c] ss:$16 sps:$4 sm:$0xff]  }
 0x38c   :  { %7772 = vmatprep.subr.bf16.mxu0 %v11514_v41  ;;  %8546 = vmatprep.subr.bf16.mxu1 %v11517_v42  ;;  %v11605_v41 = vld [vmem:[%s15489_s1 + $0x1e40] ss:$16 sps:$4 sm:$0xff]   ;;  %v11608_v42 = vld [vmem:[%s15489_s1 + $0x1e48] ss:$16 sps:$4 sm:$0xff]  }
 0x38f   :  { %7773 = vmatpush1.bf16.msra.mxu0 %v11512_v43  ;;  %8547 = vmatpush1.bf16.msra.mxu1 %v11515_v44  ;;  %v11613_v43 = vld [vmem:[%s15489_s1 + $0x1e64] ss:$16 sps:$4 sm:$0xff]   ;;  %v11616_v44 = vld [vmem:[%s15489_s1 + $0x1e6c] ss:$16 sps:$4 sm:$0xff]  }
 0x390   :  { %7774 = vmatprep.subr.bf16.mxu0 %v11520_v45  ;;  %8548 = vmatprep.subr.bf16.mxu1 %v11523_v46  ;;  %v11611_v45 = vld [vmem:[%s15489_s1 + $0x1e60] ss:$16 sps:$4 sm:$0xff]   ;;  %v11614_v46 = vld [vmem:[%s15489_s1 + $0x1e68] ss:$16 sps:$4 sm:$0xff]  }
 0x393   :  { %7775 = vmatpush1.bf16.msra.mxu0 %v11518_v47  ;;  %8549 = vmatpush1.bf16.msra.mxu1 %v11521_v48  ;;  %v11619_v47 = vld [vmem:[%s15489_s1 + $0x1e84] ss:$16 sps:$4 sm:$0xff]   ;;  %v11622_v48 = vld [vmem:[%s15489_s1 + $0x1e8c] ss:$16 sps:$4 sm:$0xff]  }
 0x394   :  { %7776 = vmatprep.subr.bf16.mxu0 %v11526_v49  ;;  %8550 = vmatprep.subr.bf16.mxu1 %v11529_v50  ;;  %v11617_v49 = vld [vmem:[%s15489_s1 + $0x1e80] ss:$16 sps:$4 sm:$0xff]   ;;  %v11620_v50 = vld [vmem:[%s15489_s1 + $0x1e88] ss:$16 sps:$4 sm:$0xff]  }
 0x397   :  { %7777 = vmatpush1.bf16.msra.mxu0 %v11524_v51  ;;  %8551 = vmatpush1.bf16.msra.mxu1 %v11527_v52  ;;  %v11625_v51 = vld [vmem:[%s15489_s1 + $0x1ea4] ss:$16 sps:$4 sm:$0xff]   ;;  %v11628_v52 = vld [vmem:[%s15489_s1 + $0x1eac] ss:$16 sps:$4 sm:$0xff]  }
 0x398   :  { %7778 = vmatprep.subr.bf16.mxu0 %v11532_v53  ;;  %8552 = vmatprep.subr.bf16.mxu1 %v11535_v54  ;;  %v11623_v53 = vld [vmem:[%s15489_s1 + $0x1ea0] ss:$16 sps:$4 sm:$0xff]   ;;  %v11626_v54 = vld [vmem:[%s15489_s1 + $0x1ea8] ss:$16 sps:$4 sm:$0xff]  }
 0x39b   :  { %7779 = vmatpush1.bf16.msra.mxu0 %v11530_v55  ;;  %8553 = vmatpush1.bf16.msra.mxu1 %v11533_v56  ;;  %v11631_v55 = vld [vmem:[%s15489_s1 + $0x1ec4] ss:$16 sps:$4 sm:$0xff]   ;;  %v11634_v56 = vld [vmem:[%s15489_s1 + $0x1ecc] ss:$16 sps:$4 sm:$0xff]  }
 0x39c   :  { %7780 = vmatprep.subr.bf16.mxu0 %v11538_v57  ;;  %8554 = vmatprep.subr.bf16.mxu1 %v11541_v58  ;;  %v11629_v57 = vld [vmem:[%s15489_s1 + $0x1ec0] ss:$16 sps:$4 sm:$0xff]   ;;  %v11632_v58 = vld [vmem:[%s15489_s1 + $0x1ec8] ss:$16 sps:$4 sm:$0xff]  }
 0x39f   :  { %7781 = vmatpush1.bf16.msra.mxu0 %v11536_v59  ;;  %8555 = vmatpush1.bf16.msra.mxu1 %v11539_v60  ;;  %v11637_v59 = vld [vmem:[%s15489_s1 + $0x1ee4] ss:$16 sps:$4 sm:$0xff]   ;;  %v11640_v60 = vld [vmem:[%s15489_s1 + $0x1eec] ss:$16 sps:$4 sm:$0xff]  }
 0x3a0   :  { %7782 = vmatprep.subr.bf16.mxu0 %v11544_v61  ;;  %8556 = vmatprep.subr.bf16.mxu1 %v11547_v62  ;;  %v11635_v61 = vld [vmem:[%s15489_s1 + $0x1ee0] ss:$16 sps:$4 sm:$0xff]   ;;  %v11638_v62 = vld [vmem:[%s15489_s1 + $0x1ee8] ss:$16 sps:$4 sm:$0xff]  }
 0x3a3   :  { %7783 = vmatpush1.bf16.msra.mxu0 %v11542_v63  ;;  %8557 = vmatpush1.bf16.msra.mxu1 %v11545_v0  ;;  %v11643_v63 = vld [vmem:[%s15489_s1 + $0x1f04] ss:$16 sps:$4 sm:$0xff]   ;;  %v11646_v0 = vld [vmem:[%s15489_s1 + $0x1f0c] ss:$16 sps:$4 sm:$0xff]  }
 0x3a4   :  { %7784 = vmatprep.subr.bf16.mxu0 %v11550_v1  ;;  %8558 = vmatprep.subr.bf16.mxu1 %v11553_v2  ;;  %v11641_v1 = vld [vmem:[%s15489_s1 + $0x1f00] ss:$16 sps:$4 sm:$0xff]   ;;  %v11644_v2 = vld [vmem:[%s15489_s1 + $0x1f08] ss:$16 sps:$4 sm:$0xff]  }
 0x3a7   :  { %7785 = vmatpush1.bf16.msra.mxu0 %v11548_v3  ;;  %8559 = vmatpush1.bf16.msra.mxu1 %v11551_v4  ;;  %v11649_v3 = vld [vmem:[%s15489_s1 + $0x1f24] ss:$16 sps:$4 sm:$0xff]   ;;  %v11652_v4 = vld [vmem:[%s15489_s1 + $0x1f2c] ss:$16 sps:$4 sm:$0xff]  }
 0x3a8   :  { %7786 = vmatprep.subr.bf16.mxu0 %v11556_v5  ;;  %8560 = vmatprep.subr.bf16.mxu1 %v11559_v6  ;;  %v11647_v5 = vld [vmem:[%s15489_s1 + $0x1f20] ss:$16 sps:$4 sm:$0xff]   ;;  %v11650_v6 = vld [vmem:[%s15489_s1 + $0x1f28] ss:$16 sps:$4 sm:$0xff]  }
 0x3ab   :  { %7787 = vmatpush1.bf16.msra.mxu0 %v11554_v7  ;;  %8561 = vmatpush1.bf16.msra.mxu1 %v11557_v8  ;;  %v11655_v7 = vld [vmem:[%s15489_s1 + $0x1f44] ss:$16 sps:$4 sm:$0xff]   ;;  %v11658_v8 = vld [vmem:[%s15489_s1 + $0x1f4c] ss:$16 sps:$4 sm:$0xff]  }
 0x3ac   :  { %7788 = vmatprep.subr.bf16.mxu0 %v11562_v9  ;;  %8562 = vmatprep.subr.bf16.mxu1 %v11565_v10  ;;  %v11653_v9 = vld [vmem:[%s15489_s1 + $0x1f40] ss:$16 sps:$4 sm:$0xff]   ;;  %v11656_v10 = vld [vmem:[%s15489_s1 + $0x1f48] ss:$16 sps:$4 sm:$0xff]  }
 0x3af   :  { %7789 = vmatpush1.bf16.msra.mxu0 %v11560_v11  ;;  %8563 = vmatpush1.bf16.msra.mxu1 %v11563_v12  ;;  %v11661_v11 = vld [vmem:[%s15489_s1 + $0x1f64] ss:$16 sps:$4 sm:$0xff]   ;;  %v11664_v12 = vld [vmem:[%s15489_s1 + $0x1f6c] ss:$16 sps:$4 sm:$0xff]  }
 0x3b0   :  { %7790 = vmatprep.subr.bf16.mxu0 %v11568_v13  ;;  %8564 = vmatprep.subr.bf16.mxu1 %v11571_v14  ;;  %v11659_v13 = vld [vmem:[%s15489_s1 + $0x1f60] ss:$16 sps:$4 sm:$0xff]   ;;  %v11662_v14 = vld [vmem:[%s15489_s1 + $0x1f68] ss:$16 sps:$4 sm:$0xff]  }
 0x3b3   :  { %7791 = vmatpush1.bf16.msra.mxu0 %v11566_v15  ;;  %8565 = vmatpush1.bf16.msra.mxu1 %v11569_v16  ;;  %v11667_v15 = vld [vmem:[%s15489_s1 + $0x1f84] ss:$16 sps:$4 sm:$0xff]   ;;  %v11670_v16 = vld [vmem:[%s15489_s1 + $0x1f8c] ss:$16 sps:$4 sm:$0xff]  }
 0x3b4   :  { %7792 = vmatprep.subr.bf16.mxu0 %v11574_v17  ;;  %8566 = vmatprep.subr.bf16.mxu1 %v11577_v18  ;;  %v11665_v17 = vld [vmem:[%s15489_s1 + $0x1f80] ss:$16 sps:$4 sm:$0xff]   ;;  %v11668_v18 = vld [vmem:[%s15489_s1 + $0x1f88] ss:$16 sps:$4 sm:$0xff]  }
 0x3b7   :  { %7793 = vmatpush1.bf16.msra.mxu0 %v11572_v19  ;;  %8567 = vmatpush1.bf16.msra.mxu1 %v11575_v20  ;;  %v11673_v19 = vld [vmem:[%s15489_s1 + $0x1fa4] ss:$16 sps:$4 sm:$0xff]   ;;  %v11676_v20 = vld [vmem:[%s15489_s1 + $0x1fac] ss:$16 sps:$4 sm:$0xff]  }
 0x3b8   :  { %7794 = vmatprep.subr.bf16.mxu0 %v11580_v21  ;;  %8568 = vmatprep.subr.bf16.mxu1 %v11583_v22  ;;  %v11671_v21 = vld [vmem:[%s15489_s1 + $0x1fa0] ss:$16 sps:$4 sm:$0xff]   ;;  %v11674_v22 = vld [vmem:[%s15489_s1 + $0x1fa8] ss:$16 sps:$4 sm:$0xff]  }
 0x3bb   :  { %7795 = vmatpush1.bf16.msra.mxu0 %v11578_v23  ;;  %8569 = vmatpush1.bf16.msra.mxu1 %v11581_v24  ;;  %v11679_v23 = vld [vmem:[%s15489_s1 + $0x1fc4] ss:$16 sps:$4 sm:$0xff]   ;;  %v11682_v24 = vld [vmem:[%s15489_s1 + $0x1fcc] ss:$16 sps:$4 sm:$0xff]  }
 0x3bc   :  { %7796 = vmatprep.subr.bf16.mxu0 %v11586_v25  ;;  %8570 = vmatprep.subr.bf16.mxu1 %v11589_v26  ;;  %v11677_v25 = vld [vmem:[%s15489_s1 + $0x1fc0] ss:$16 sps:$4 sm:$0xff]   ;;  %v11680_v26 = vld [vmem:[%s15489_s1 + $0x1fc8] ss:$16 sps:$4 sm:$0xff]  }
 0x3bf   :  { %7797 = vmatpush1.bf16.msra.mxu0 %v11584_v27  ;;  %8571 = vmatpush1.bf16.msra.mxu1 %v11587_v28  ;;  %v11685_v27 = vld [vmem:[%s15489_s1 + $0x1fe4] ss:$16 sps:$4 sm:$0xff]   ;;  %v11688_v28 = vld [vmem:[%s15489_s1 + $0x1fec] ss:$16 sps:$4 sm:$0xff]  }
 0x3c0   :  { %7809 = vmatprep.subr.bf16.mxu0 %v11595_v29  ;;  %8583 = vmatprep.subr.bf16.mxu1 %v11598_v30  ;;  %v11683_v29 = vld [vmem:[%s15489_s1 + $0x1fe0] ss:$16 sps:$4 sm:$0xff]   ;;  %v11686_v30 = vld [vmem:[%s15489_s1 + $0x1fe8] ss:$16 sps:$4 sm:$0xff]  }
 0x3c2   :  { %7799 = vmatmul.mubr.bf16.vlgmr.msra.gmra.mrb[0].mxu0 %v11590_v31  ;;  %8573 = vmatmul.mubr.bf16.vlgmr.msra.gmra.mrb[0].mxu1 %v11590_v31  ;;  %v11694_v31 = vld [vmem:[%s15489_s1 + $0x2004] ss:$16 sps:$4 sm:$0xff]  }
 0x3c3   :  { %7810 = vmatpush1.bf16.msra.mxu0 %v11593_v32  ;;  %8584 = vmatpush1.bf16.msra.mxu1 %v11596_v33  ;;  %v11697_v32 = vld [vmem:[%s15489_s1 + $0x200c] ss:$16 sps:$4 sm:$0xff]   ;;  %v11689_v33 = vld [vmem:[%s15490_s0 + $0x78] ss:$144 sps:$4 sm:$0xff]  }
 0x3c4   :  { %7811 = vmatprep.subr.bf16.mxu0 %v11601_v34  ;;  %8585 = vmatprep.subr.bf16.mxu1 %v11604_v35  ;;  %v11692_v34 = vld [vmem:[%s15489_s1 + $0x2000] ss:$16 sps:$4 sm:$0xff]   ;;  %v11695_v35 = vld [vmem:[%s15489_s1 + $0x2008] ss:$16 sps:$4 sm:$0xff]  }
 0x3c5   :  { %7841 = vmatprep.mubr.bf16.mxu0 %v11691_v36  ;;  %8615 = vmatprep.mubr.bf16.mxu1 %v11691_v36  ;;  %v11700_v36 = vld [vmem:[%s15489_s1 + $0x2024] ss:$16 sps:$4 sm:$0xff]  }
 0x3c7   :  { %7812 = vmatpush1.bf16.msra.mxu0 %v11599_v37  ;;  %8586 = vmatpush1.bf16.msra.mxu1 %v11602_v38  ;;  %v11703_v37 = vld [vmem:[%s15489_s1 + $0x202c] ss:$16 sps:$4 sm:$0xff]   ;;  %v11790_v38 = vld [vmem:[%s15490_s0 + $0x84] ss:$144 sps:$4 sm:$0xff]  }
 0x3c8   :  { %7813 = vmatprep.subr.bf16.mxu0 %v11607_v39  ;;  %8587 = vmatprep.subr.bf16.mxu1 %v11610_v40  ;;  %v11698_v39 = vld [vmem:[%s15489_s1 + $0x2020] ss:$16 sps:$4 sm:$0xff]   ;;  %v11701_v40 = vld [vmem:[%s15489_s1 + $0x2028] ss:$16 sps:$4 sm:$0xff]  }
 0x3cb   :  { %7814 = vmatpush1.bf16.msra.mxu0 %v11605_v41  ;;  %8588 = vmatpush1.bf16.msra.mxu1 %v11608_v42  ;;  %v11706_v41 = vld [vmem:[%s15489_s1 + $0x2044] ss:$16 sps:$4 sm:$0xff]   ;;  %v11709_v42 = vld [vmem:[%s15489_s1 + $0x204c] ss:$16 sps:$4 sm:$0xff]  }
 0x3cc   :  { %7815 = vmatprep.subr.bf16.mxu0 %v11613_v43  ;;  %8589 = vmatprep.subr.bf16.mxu1 %v11616_v44  ;;  %v11704_v43 = vld [vmem:[%s15489_s1 + $0x2040] ss:$16 sps:$4 sm:$0xff]   ;;  %v11707_v44 = vld [vmem:[%s15489_s1 + $0x2048] ss:$16 sps:$4 sm:$0xff]  }
 0x3cf   :  { %7816 = vmatpush1.bf16.msra.mxu0 %v11611_v45  ;;  %8590 = vmatpush1.bf16.msra.mxu1 %v11614_v46  ;;  %v11712_v45 = vld [vmem:[%s15489_s1 + $0x2064] ss:$16 sps:$4 sm:$0xff]   ;;  %v11715_v46 = vld [vmem:[%s15489_s1 + $0x206c] ss:$16 sps:$4 sm:$0xff]  }
 0x3d0   :  { %7817 = vmatprep.subr.bf16.mxu0 %v11619_v47  ;;  %8591 = vmatprep.subr.bf16.mxu1 %v11622_v48  ;;  %v11710_v47 = vld [vmem:[%s15489_s1 + $0x2060] ss:$16 sps:$4 sm:$0xff]   ;;  %v11713_v48 = vld [vmem:[%s15489_s1 + $0x2068] ss:$16 sps:$4 sm:$0xff]  }
 0x3d3   :  { %7818 = vmatpush1.bf16.msra.mxu0 %v11617_v49  ;;  %8592 = vmatpush1.bf16.msra.mxu1 %v11620_v50  ;;  %v11718_v49 = vld [vmem:[%s15489_s1 + $0x2084] ss:$16 sps:$4 sm:$0xff]   ;;  %v11721_v50 = vld [vmem:[%s15489_s1 + $0x208c] ss:$16 sps:$4 sm:$0xff]  }
 0x3d4   :  { %7819 = vmatprep.subr.bf16.mxu0 %v11625_v51  ;;  %8593 = vmatprep.subr.bf16.mxu1 %v11628_v52  ;;  %v11716_v51 = vld [vmem:[%s15489_s1 + $0x2080] ss:$16 sps:$4 sm:$0xff]   ;;  %v11719_v52 = vld [vmem:[%s15489_s1 + $0x2088] ss:$16 sps:$4 sm:$0xff]  }
 0x3d7   :  { %7820 = vmatpush1.bf16.msra.mxu0 %v11623_v53  ;;  %8594 = vmatpush1.bf16.msra.mxu1 %v11626_v54  ;;  %v11724_v53 = vld [vmem:[%s15489_s1 + $0x20a4] ss:$16 sps:$4 sm:$0xff]   ;;  %v11727_v54 = vld [vmem:[%s15489_s1 + $0x20ac] ss:$16 sps:$4 sm:$0xff]  }
 0x3d8   :  { %7821 = vmatprep.subr.bf16.mxu0 %v11631_v55  ;;  %8595 = vmatprep.subr.bf16.mxu1 %v11634_v56  ;;  %v11722_v55 = vld [vmem:[%s15489_s1 + $0x20a0] ss:$16 sps:$4 sm:$0xff]   ;;  %v11725_v56 = vld [vmem:[%s15489_s1 + $0x20a8] ss:$16 sps:$4 sm:$0xff]  }
 0x3db   :  { %7822 = vmatpush1.bf16.msra.mxu0 %v11629_v57  ;;  %8596 = vmatpush1.bf16.msra.mxu1 %v11632_v58  ;;  %v11730_v57 = vld [vmem:[%s15489_s1 + $0x20c4] ss:$16 sps:$4 sm:$0xff]   ;;  %v11733_v58 = vld [vmem:[%s15489_s1 + $0x20cc] ss:$16 sps:$4 sm:$0xff]  }
 0x3dc   :  { %7823 = vmatprep.subr.bf16.mxu0 %v11637_v59  ;;  %8597 = vmatprep.subr.bf16.mxu1 %v11640_v60  ;;  %v11728_v59 = vld [vmem:[%s15489_s1 + $0x20c0] ss:$16 sps:$4 sm:$0xff]   ;;  %v11731_v60 = vld [vmem:[%s15489_s1 + $0x20c8] ss:$16 sps:$4 sm:$0xff]  }
 0x3df   :  { %7824 = vmatpush1.bf16.msra.mxu0 %v11635_v61  ;;  %8598 = vmatpush1.bf16.msra.mxu1 %v11638_v62  ;;  %v11736_v61 = vld [vmem:[%s15489_s1 + $0x20e4] ss:$16 sps:$4 sm:$0xff]   ;;  %v11739_v62 = vld [vmem:[%s15489_s1 + $0x20ec] ss:$16 sps:$4 sm:$0xff]  }
 0x3e0   :  { %7825 = vmatprep.subr.bf16.mxu0 %v11643_v63  ;;  %8599 = vmatprep.subr.bf16.mxu1 %v11646_v0  ;;  %v11734_v63 = vld [vmem:[%s15489_s1 + $0x20e0] ss:$16 sps:$4 sm:$0xff]   ;;  %v11737_v0 = vld [vmem:[%s15489_s1 + $0x20e8] ss:$16 sps:$4 sm:$0xff]  }
 0x3e3   :  { %7826 = vmatpush1.bf16.msra.mxu0 %v11641_v1  ;;  %8600 = vmatpush1.bf16.msra.mxu1 %v11644_v2  ;;  %v11742_v1 = vld [vmem:[%s15489_s1 + $0x2104] ss:$16 sps:$4 sm:$0xff]   ;;  %v11745_v2 = vld [vmem:[%s15489_s1 + $0x210c] ss:$16 sps:$4 sm:$0xff]  }
 0x3e4   :  { %7827 = vmatprep.subr.bf16.mxu0 %v11649_v3  ;;  %8601 = vmatprep.subr.bf16.mxu1 %v11652_v4  ;;  %v11740_v3 = vld [vmem:[%s15489_s1 + $0x2100] ss:$16 sps:$4 sm:$0xff]   ;;  %v11743_v4 = vld [vmem:[%s15489_s1 + $0x2108] ss:$16 sps:$4 sm:$0xff]  }
 0x3e7   :  { %7828 = vmatpush1.bf16.msra.mxu0 %v11647_v5  ;;  %8602 = vmatpush1.bf16.msra.mxu1 %v11650_v6  ;;  %v11748_v5 = vld [vmem:[%s15489_s1 + $0x2124] ss:$16 sps:$4 sm:$0xff]   ;;  %v11751_v6 = vld [vmem:[%s15489_s1 + $0x212c] ss:$16 sps:$4 sm:$0xff]  }
 0x3e8   :  { %7829 = vmatprep.subr.bf16.mxu0 %v11655_v7  ;;  %8603 = vmatprep.subr.bf16.mxu1 %v11658_v8  ;;  %v11746_v7 = vld [vmem:[%s15489_s1 + $0x2120] ss:$16 sps:$4 sm:$0xff]   ;;  %v11749_v8 = vld [vmem:[%s15489_s1 + $0x2128] ss:$16 sps:$4 sm:$0xff]  }
 0x3eb   :  { %7830 = vmatpush1.bf16.msra.mxu0 %v11653_v9  ;;  %8604 = vmatpush1.bf16.msra.mxu1 %v11656_v10  ;;  %v11754_v9 = vld [vmem:[%s15489_s1 + $0x2144] ss:$16 sps:$4 sm:$0xff]   ;;  %v11757_v10 = vld [vmem:[%s15489_s1 + $0x214c] ss:$16 sps:$4 sm:$0xff]  }
 0x3ec   :  { %7831 = vmatprep.subr.bf16.mxu0 %v11661_v11  ;;  %8605 = vmatprep.subr.bf16.mxu1 %v11664_v12  ;;  %v11752_v11 = vld [vmem:[%s15489_s1 + $0x2140] ss:$16 sps:$4 sm:$0xff]   ;;  %v11755_v12 = vld [vmem:[%s15489_s1 + $0x2148] ss:$16 sps:$4 sm:$0xff]  }
 0x3ef   :  { %7832 = vmatpush1.bf16.msra.mxu0 %v11659_v13  ;;  %8606 = vmatpush1.bf16.msra.mxu1 %v11662_v14  ;;  %v11760_v13 = vld [vmem:[%s15489_s1 + $0x2164] ss:$16 sps:$4 sm:$0xff]   ;;  %v11763_v14 = vld [vmem:[%s15489_s1 + $0x216c] ss:$16 sps:$4 sm:$0xff]  }
 0x3f0   :  { %7833 = vmatprep.subr.bf16.mxu0 %v11667_v15  ;;  %8607 = vmatprep.subr.bf16.mxu1 %v11670_v16  ;;  %v11758_v15 = vld [vmem:[%s15489_s1 + $0x2160] ss:$16 sps:$4 sm:$0xff]   ;;  %v11761_v16 = vld [vmem:[%s15489_s1 + $0x2168] ss:$16 sps:$4 sm:$0xff]  }
 0x3f3   :  { %7834 = vmatpush1.bf16.msra.mxu0 %v11665_v17  ;;  %8608 = vmatpush1.bf16.msra.mxu1 %v11668_v18  ;;  %v11766_v17 = vld [vmem:[%s15489_s1 + $0x2184] ss:$16 sps:$4 sm:$0xff]   ;;  %v11769_v18 = vld [vmem:[%s15489_s1 + $0x218c] ss:$16 sps:$4 sm:$0xff]  }
 0x3f4   :  { %7835 = vmatprep.subr.bf16.mxu0 %v11673_v19  ;;  %8609 = vmatprep.subr.bf16.mxu1 %v11676_v20  ;;  %v11764_v19 = vld [vmem:[%s15489_s1 + $0x2180] ss:$16 sps:$4 sm:$0xff]   ;;  %v11767_v20 = vld [vmem:[%s15489_s1 + $0x2188] ss:$16 sps:$4 sm:$0xff]  }
 0x3f7   :  { %7836 = vmatpush1.bf16.msra.mxu0 %v11671_v21  ;;  %8610 = vmatpush1.bf16.msra.mxu1 %v11674_v22  ;;  %v11772_v21 = vld [vmem:[%s15489_s1 + $0x21a4] ss:$16 sps:$4 sm:$0xff]   ;;  %v11775_v22 = vld [vmem:[%s15489_s1 + $0x21ac] ss:$16 sps:$4 sm:$0xff]  }
 0x3f8   :  { %7837 = vmatprep.subr.bf16.mxu0 %v11679_v23  ;;  %8611 = vmatprep.subr.bf16.mxu1 %v11682_v24  ;;  %v11770_v23 = vld [vmem:[%s15489_s1 + $0x21a0] ss:$16 sps:$4 sm:$0xff]   ;;  %v11773_v24 = vld [vmem:[%s15489_s1 + $0x21a8] ss:$16 sps:$4 sm:$0xff]  }
 0x3fb   :  { %7838 = vmatpush1.bf16.msra.mxu0 %v11677_v25  ;;  %8612 = vmatpush1.bf16.msra.mxu1 %v11680_v26  ;;  %v11778_v25 = vld [vmem:[%s15489_s1 + $0x21c4] ss:$16 sps:$4 sm:$0xff]   ;;  %v11781_v26 = vld [vmem:[%s15489_s1 + $0x21cc] ss:$16 sps:$4 sm:$0xff]  }
 0x3fc   :  { %7839 = vmatprep.subr.bf16.mxu0 %v11685_v27  ;;  %8613 = vmatprep.subr.bf16.mxu1 %v11688_v28  ;;  %v11776_v27 = vld [vmem:[%s15489_s1 + $0x21c0] ss:$16 sps:$4 sm:$0xff]   ;;  %v11779_v28 = vld [vmem:[%s15489_s1 + $0x21c8] ss:$16 sps:$4 sm:$0xff]  }
 0x3ff   :  { %7840 = vmatpush1.bf16.msra.mxu0 %v11683_v29  ;;  %8614 = vmatpush1.bf16.msra.mxu1 %v11686_v30  ;;  %v11784_v29 = vld [vmem:[%s15489_s1 + $0x21e4] ss:$16 sps:$4 sm:$0xff]   ;;  %v11787_v30 = vld [vmem:[%s15489_s1 + $0x21ec] ss:$16 sps:$4 sm:$0xff]  }
 0x400   :  { %7852 = vmatprep.subr.bf16.mxu0 %v11694_v31  ;;  %8626 = vmatprep.subr.bf16.mxu1 %v11697_v32  ;;  %v11782_v31 = vld [vmem:[%s15489_s1 + $0x21e0] ss:$16 sps:$4 sm:$0xff]   ;;  %v11785_v32 = vld [vmem:[%s15489_s1 + $0x21e8] ss:$16 sps:$4 sm:$0xff]  }
 0x402   :  { %7842 = vmatmul.mubr.bf16.vlgmr.msra.gmra.mrb[0].mxu0 %v11689_v33  ;;  %8616 = vmatmul.mubr.bf16.vlgmr.msra.gmra.mrb[0].mxu1 %v11689_v33  ;;  %v11793_v33 = vld [vmem:[%s15489_s1 + $0x2204] ss:$16 sps:$4 sm:$0xff]  }
 0x403   :  { %7853 = vmatpush1.bf16.msra.mxu0 %v11692_v34  ;;  %8627 = vmatpush1.bf16.msra.mxu1 %v11695_v35  ;;  %v11796_v34 = vld [vmem:[%s15489_s1 + $0x220c] ss:$16 sps:$4 sm:$0xff]   ;;  %v11788_v35 = vld [vmem:[%s15490_s0 + $0x80] ss:$144 sps:$4 sm:$0xff]  }
 0x404   :  { %7854 = vmatprep.subr.bf16.mxu0 %v11700_v36  ;;  %8628 = vmatprep.subr.bf16.mxu1 %v11703_v37  ;;  %v11791_v36 = vld [vmem:[%s15489_s1 + $0x2200] ss:$16 sps:$4 sm:$0xff]   ;;  %v11794_v37 = vld [vmem:[%s15489_s1 + $0x2208] ss:$16 sps:$4 sm:$0xff]  }
 0x405   :  { %7884 = vmatprep.mubr.bf16.mxu0 %v11790_v38  ;;  %8658 = vmatprep.mubr.bf16.mxu1 %v11790_v38  ;;  %v11799_v38 = vld [vmem:[%s15489_s1 + $0x2224] ss:$16 sps:$4 sm:$0xff]  }
 0x407   :  { %7855 = vmatpush1.bf16.msra.mxu0 %v11698_v39  ;;  %8629 = vmatpush1.bf16.msra.mxu1 %v11701_v40  ;;  %v11802_v39 = vld [vmem:[%s15489_s1 + $0x222c] ss:$16 sps:$4 sm:$0xff]  }
 0x408   :  { %7856 = vmatprep.subr.bf16.mxu0 %v11706_v41  ;;  %8630 = vmatprep.subr.bf16.mxu1 %v11709_v42  ;;  %v11889_v40 = vld [vmem:[%s15490_s0 + $0x8c] ss:$144 sps:$4 sm:$0xff]   ;;  %v11797_v41 = vld [vmem:[%s15489_s1 + $0x2220] ss:$16 sps:$4 sm:$0xff]   ;;  %v11800_v42 = vld [vmem:[%s15489_s1 + $0x2228] ss:$16 sps:$4 sm:$0xff]  }
 0x40b   :  { %7857 = vmatpush1.bf16.msra.mxu0 %v11704_v43  ;;  %8631 = vmatpush1.bf16.msra.mxu1 %v11707_v44  ;;  %v11805_v43 = vld [vmem:[%s15489_s1 + $0x2244] ss:$16 sps:$4 sm:$0xff]   ;;  %v11808_v44 = vld [vmem:[%s15489_s1 + $0x224c] ss:$16 sps:$4 sm:$0xff]  }
 0x40c   :  { %7858 = vmatprep.subr.bf16.mxu0 %v11712_v45  ;;  %8632 = vmatprep.subr.bf16.mxu1 %v11715_v46  ;;  %v11803_v45 = vld [vmem:[%s15489_s1 + $0x2240] ss:$16 sps:$4 sm:$0xff]   ;;  %v11806_v46 = vld [vmem:[%s15489_s1 + $0x2248] ss:$16 sps:$4 sm:$0xff]  }
 0x40f   :  { %7859 = vmatpush1.bf16.msra.mxu0 %v11710_v47  ;;  %8633 = vmatpush1.bf16.msra.mxu1 %v11713_v48  ;;  %v11811_v47 = vld [vmem:[%s15489_s1 + $0x2264] ss:$16 sps:$4 sm:$0xff]   ;;  %v11814_v48 = vld [vmem:[%s15489_s1 + $0x226c] ss:$16 sps:$4 sm:$0xff]  }
 0x410   :  { %7860 = vmatprep.subr.bf16.mxu0 %v11718_v49  ;;  %8634 = vmatprep.subr.bf16.mxu1 %v11721_v50  ;;  %v11809_v49 = vld [vmem:[%s15489_s1 + $0x2260] ss:$16 sps:$4 sm:$0xff]   ;;  %v11812_v50 = vld [vmem:[%s15489_s1 + $0x2268] ss:$16 sps:$4 sm:$0xff]  }
 0x413   :  { %7861 = vmatpush1.bf16.msra.mxu0 %v11716_v51  ;;  %8635 = vmatpush1.bf16.msra.mxu1 %v11719_v52  ;;  %v11817_v51 = vld [vmem:[%s15489_s1 + $0x2284] ss:$16 sps:$4 sm:$0xff]   ;;  %v11820_v52 = vld [vmem:[%s15489_s1 + $0x228c] ss:$16 sps:$4 sm:$0xff]  }
 0x414   :  { %7862 = vmatprep.subr.bf16.mxu0 %v11724_v53  ;;  %8636 = vmatprep.subr.bf16.mxu1 %v11727_v54  ;;  %v11815_v53 = vld [vmem:[%s15489_s1 + $0x2280] ss:$16 sps:$4 sm:$0xff]   ;;  %v11818_v54 = vld [vmem:[%s15489_s1 + $0x2288] ss:$16 sps:$4 sm:$0xff]  }
 0x417   :  { %7863 = vmatpush1.bf16.msra.mxu0 %v11722_v55  ;;  %8637 = vmatpush1.bf16.msra.mxu1 %v11725_v56  ;;  %v11823_v55 = vld [vmem:[%s15489_s1 + $0x22a4] ss:$16 sps:$4 sm:$0xff]   ;;  %v11826_v56 = vld [vmem:[%s15489_s1 + $0x22ac] ss:$16 sps:$4 sm:$0xff]  }
 0x418   :  { %7864 = vmatprep.subr.bf16.mxu0 %v11730_v57  ;;  %8638 = vmatprep.subr.bf16.mxu1 %v11733_v58  ;;  %v11821_v57 = vld [vmem:[%s15489_s1 + $0x22a0] ss:$16 sps:$4 sm:$0xff]   ;;  %v11824_v58 = vld [vmem:[%s15489_s1 + $0x22a8] ss:$16 sps:$4 sm:$0xff]  }
 0x41b   :  { %7865 = vmatpush1.bf16.msra.mxu0 %v11728_v59  ;;  %8639 = vmatpush1.bf16.msra.mxu1 %v11731_v60  ;;  %v11829_v59 = vld [vmem:[%s15489_s1 + $0x22c4] ss:$16 sps:$4 sm:$0xff]   ;;  %v11832_v60 = vld [vmem:[%s15489_s1 + $0x22cc] ss:$16 sps:$4 sm:$0xff]  }
 0x41c   :  { %7866 = vmatprep.subr.bf16.mxu0 %v11736_v61  ;;  %8640 = vmatprep.subr.bf16.mxu1 %v11739_v62  ;;  %v11827_v61 = vld [vmem:[%s15489_s1 + $0x22c0] ss:$16 sps:$4 sm:$0xff]   ;;  %v11830_v62 = vld [vmem:[%s15489_s1 + $0x22c8] ss:$16 sps:$4 sm:$0xff]  }
 0x41f   :  { %7867 = vmatpush1.bf16.msra.mxu0 %v11734_v63  ;;  %8641 = vmatpush1.bf16.msra.mxu1 %v11737_v0  ;;  %v11835_v63 = vld [vmem:[%s15489_s1 + $0x22e4] ss:$16 sps:$4 sm:$0xff]   ;;  %v11838_v0 = vld [vmem:[%s15489_s1 + $0x22ec] ss:$16 sps:$4 sm:$0xff]  }
 0x420   :  { %7868 = vmatprep.subr.bf16.mxu0 %v11742_v1  ;;  %8642 = vmatprep.subr.bf16.mxu1 %v11745_v2  ;;  %v11833_v1 = vld [vmem:[%s15489_s1 + $0x22e0] ss:$16 sps:$4 sm:$0xff]   ;;  %v11836_v2 = vld [vmem:[%s15489_s1 + $0x22e8] ss:$16 sps:$4 sm:$0xff]  }
 0x423   :  { %7869 = vmatpush1.bf16.msra.mxu0 %v11740_v3  ;;  %8643 = vmatpush1.bf16.msra.mxu1 %v11743_v4  ;;  %v11841_v3 = vld [vmem:[%s15489_s1 + $0x2304] ss:$16 sps:$4 sm:$0xff]   ;;  %v11844_v4 = vld [vmem:[%s15489_s1 + $0x230c] ss:$16 sps:$4 sm:$0xff]  }
 0x424   :  { %7870 = vmatprep.subr.bf16.mxu0 %v11748_v5  ;;  %8644 = vmatprep.subr.bf16.mxu1 %v11751_v6  ;;  %v11839_v5 = vld [vmem:[%s15489_s1 + $0x2300] ss:$16 sps:$4 sm:$0xff]   ;;  %v11842_v6 = vld [vmem:[%s15489_s1 + $0x2308] ss:$16 sps:$4 sm:$0xff]  }
 0x427   :  { %7871 = vmatpush1.bf16.msra.mxu0 %v11746_v7  ;;  %8645 = vmatpush1.bf16.msra.mxu1 %v11749_v8  ;;  %v11847_v7 = vld [vmem:[%s15489_s1 + $0x2324] ss:$16 sps:$4 sm:$0xff]   ;;  %v11850_v8 = vld [vmem:[%s15489_s1 + $0x232c] ss:$16 sps:$4 sm:$0xff]  }
 0x428   :  { %7872 = vmatprep.subr.bf16.mxu0 %v11754_v9  ;;  %8646 = vmatprep.subr.bf16.mxu1 %v11757_v10  ;;  %v11845_v9 = vld [vmem:[%s15489_s1 + $0x2320] ss:$16 sps:$4 sm:$0xff]   ;;  %v11848_v10 = vld [vmem:[%s15489_s1 + $0x2328] ss:$16 sps:$4 sm:$0xff]  }
 0x42b   :  { %7873 = vmatpush1.bf16.msra.mxu0 %v11752_v11  ;;  %8647 = vmatpush1.bf16.msra.mxu1 %v11755_v12  ;;  %v11853_v11 = vld [vmem:[%s15489_s1 + $0x2344] ss:$16 sps:$4 sm:$0xff]   ;;  %v11856_v12 = vld [vmem:[%s15489_s1 + $0x234c] ss:$16 sps:$4 sm:$0xff]  }
 0x42c   :  { %7874 = vmatprep.subr.bf16.mxu0 %v11760_v13  ;;  %8648 = vmatprep.subr.bf16.mxu1 %v11763_v14  ;;  %v11851_v13 = vld [vmem:[%s15489_s1 + $0x2340] ss:$16 sps:$4 sm:$0xff]   ;;  %v11854_v14 = vld [vmem:[%s15489_s1 + $0x2348] ss:$16 sps:$4 sm:$0xff]  }
 0x42f   :  { %7875 = vmatpush1.bf16.msra.mxu0 %v11758_v15  ;;  %8649 = vmatpush1.bf16.msra.mxu1 %v11761_v16  ;;  %v11859_v15 = vld [vmem:[%s15489_s1 + $0x2364] ss:$16 sps:$4 sm:$0xff]   ;;  %v11862_v16 = vld [vmem:[%s15489_s1 + $0x236c] ss:$16 sps:$4 sm:$0xff]  }
 0x430   :  { %7876 = vmatprep.subr.bf16.mxu0 %v11766_v17  ;;  %8650 = vmatprep.subr.bf16.mxu1 %v11769_v18  ;;  %v11857_v17 = vld [vmem:[%s15489_s1 + $0x2360] ss:$16 sps:$4 sm:$0xff]   ;;  %v11860_v18 = vld [vmem:[%s15489_s1 + $0x2368] ss:$16 sps:$4 sm:$0xff]  }
 0x433   :  { %7877 = vmatpush1.bf16.msra.mxu0 %v11764_v19  ;;  %8651 = vmatpush1.bf16.msra.mxu1 %v11767_v20  ;;  %v11865_v19 = vld [vmem:[%s15489_s1 + $0x2384] ss:$16 sps:$4 sm:$0xff]   ;;  %v11868_v20 = vld [vmem:[%s15489_s1 + $0x238c] ss:$16 sps:$4 sm:$0xff]  }
 0x434   :  { %7878 = vmatprep.subr.bf16.mxu0 %v11772_v21  ;;  %8652 = vmatprep.subr.bf16.mxu1 %v11775_v22  ;;  %v11863_v21 = vld [vmem:[%s15489_s1 + $0x2380] ss:$16 sps:$4 sm:$0xff]   ;;  %v11866_v22 = vld [vmem:[%s15489_s1 + $0x2388] ss:$16 sps:$4 sm:$0xff]  }
 0x437   :  { %7879 = vmatpush1.bf16.msra.mxu0 %v11770_v23  ;;  %8653 = vmatpush1.bf16.msra.mxu1 %v11773_v24  ;;  %v11871_v23 = vld [vmem:[%s15489_s1 + $0x23a4] ss:$16 sps:$4 sm:$0xff]   ;;  %v11874_v24 = vld [vmem:[%s15489_s1 + $0x23ac] ss:$16 sps:$4 sm:$0xff]  }
 0x438   :  { %7880 = vmatprep.subr.bf16.mxu0 %v11778_v25  ;;  %8654 = vmatprep.subr.bf16.mxu1 %v11781_v26  ;;  %v11869_v25 = vld [vmem:[%s15489_s1 + $0x23a0] ss:$16 sps:$4 sm:$0xff]   ;;  %v11872_v26 = vld [vmem:[%s15489_s1 + $0x23a8] ss:$16 sps:$4 sm:$0xff]  }
 0x43b   :  { %7881 = vmatpush1.bf16.msra.mxu0 %v11776_v27  ;;  %8655 = vmatpush1.bf16.msra.mxu1 %v11779_v28  ;;  %v11877_v27 = vld [vmem:[%s15489_s1 + $0x23c4] ss:$16 sps:$4 sm:$0xff]   ;;  %v11880_v28 = vld [vmem:[%s15489_s1 + $0x23cc] ss:$16 sps:$4 sm:$0xff]  }
 0x43c   :  { %7882 = vmatprep.subr.bf16.mxu0 %v11784_v29  ;;  %8656 = vmatprep.subr.bf16.mxu1 %v11787_v30  ;;  %v11875_v29 = vld [vmem:[%s15489_s1 + $0x23c0] ss:$16 sps:$4 sm:$0xff]   ;;  %v11878_v30 = vld [vmem:[%s15489_s1 + $0x23c8] ss:$16 sps:$4 sm:$0xff]  }
 0x43f   :  { %7883 = vmatpush1.bf16.msra.mxu0 %v11782_v31  ;;  %8657 = vmatpush1.bf16.msra.mxu1 %v11785_v32  ;;  %v11883_v31 = vld [vmem:[%s15489_s1 + $0x23e4] ss:$16 sps:$4 sm:$0xff]   ;;  %v11886_v32 = vld [vmem:[%s15489_s1 + $0x23ec] ss:$16 sps:$4 sm:$0xff]  }
 0x440   :  { %7895 = vmatprep.subr.bf16.mxu0 %v11793_v33  ;;  %8669 = vmatprep.subr.bf16.mxu1 %v11796_v34  ;;  %v11881_v33 = vld [vmem:[%s15489_s1 + $0x23e0] ss:$16 sps:$4 sm:$0xff]   ;;  %v11884_v34 = vld [vmem:[%s15489_s1 + $0x23e8] ss:$16 sps:$4 sm:$0xff]  }
 0x442   :  { %7885 = vmatmul.mubr.bf16.vlgmr.msra.gmra.mrb[0].mxu0 %v11788_v35  ;;  %8659 = vmatmul.mubr.bf16.vlgmr.msra.gmra.mrb[0].mxu1 %v11788_v35  ;;  %v11887_v35 = vld [vmem:[%s15490_s0 + $0x88] ss:$144 sps:$4 sm:$0xff]  }
 0x443   :  { %7896 = vmatpush1.bf16.msra.mxu0 %v11791_v36  ;;  %8670 = vmatpush1.bf16.msra.mxu1 %v11794_v37  ;;  %v1204_v36 = vlaneseq }
 0x444   :  { %7897 = vmatprep.subr.bf16.mxu0 %v11799_v38  ;;  %8671 = vmatprep.subr.bf16.mxu1 %v11802_v39 }
 0x445   :  { %7927 = vmatprep.mubr.bf16.mxu0 %v11889_v40  ;;  %8701 = vmatprep.mubr.bf16.mxu1 %v11889_v40  ;;  %v1205_v37 = vshrl.u32 %v1204_v36, 7  ;;  %v1202_v40 = vld [vmem:[%s15491_s2] sm:$0xf] }
 0x447   :  { %7898 = vmatpush1.bf16.msra.mxu0 %v11797_v41  ;;  %8672 = vmatpush1.bf16.msra.mxu1 %v11800_v42  ;;  %v1206_v38 = vsub.s32 0, %v1205_v37  ;;  %v1214_v39 = vsub.s32 2, %v1205_v37  ;;  %v1210_v41 = vsub.s32 1, %v1205_v37  ;;  %v1218_v42 = vsub.s32 3, %v1205_v37 }
 0x448   :  { %7899 = vmatprep.subr.bf16.mxu0 %v11805_v43  ;;  %8673 = vmatprep.subr.bf16.mxu1 %v11808_v44 }
 0x449   :  { %v1207_v43 = vrot.slane %v1202_v40, %v1206_v38  ;;  %v1215_v44 = vrot.slane %v1202_v40, %v1214_v39 }
 0x44b   :  { %7900 = vmatpush1.bf16.msra.mxu0 %v11803_v45  ;;  %8674 = vmatpush1.bf16.msra.mxu1 %v11806_v46  ;;  %v1211_v45 = vrot.slane %v1202_v40, %v1210_v41  ;;  %v1219_v46 = vrot.slane %v1202_v40, %v1218_v42 }
 0x44c   :  { %7901 = vmatprep.subr.bf16.mxu0 %v11811_v47  ;;  %8675 = vmatprep.subr.bf16.mxu1 %v11814_v48 }
 0x44f   :  { %7902 = vmatpush1.bf16.msra.mxu0 %v11809_v49  ;;  %8676 = vmatpush1.bf16.msra.mxu1 %v11812_v50 }
 0x450   :  { %7903 = vmatprep.subr.bf16.mxu0 %v11817_v51  ;;  %8677 = vmatprep.subr.bf16.mxu1 %v11820_v52 }
 0x453   :  { %7904 = vmatpush1.bf16.msra.mxu0 %v11815_v53  ;;  %8678 = vmatpush1.bf16.msra.mxu1 %v11818_v54 }
 0x454   :  { %7905 = vmatprep.subr.bf16.mxu0 %v11823_v55  ;;  %8679 = vmatprep.subr.bf16.mxu1 %v11826_v56 }
 0x457   :  { %7906 = vmatpush1.bf16.msra.mxu0 %v11821_v57  ;;  %8680 = vmatpush1.bf16.msra.mxu1 %v11824_v58 }
 0x458   :  { %7907 = vmatprep.subr.bf16.mxu0 %v11829_v59  ;;  %8681 = vmatprep.subr.bf16.mxu1 %v11832_v60 }
 0x45b   :  { %7908 = vmatpush1.bf16.msra.mxu0 %v11827_v61  ;;  %8682 = vmatpush1.bf16.msra.mxu1 %v11830_v62 }
 0x45c   :  { %7909 = vmatprep.subr.bf16.mxu0 %v11835_v63  ;;  %8683 = vmatprep.subr.bf16.mxu1 %v11838_v0 }
 0x45f   :  { %7910 = vmatpush1.bf16.msra.mxu0 %v11833_v1  ;;  %8684 = vmatpush1.bf16.msra.mxu1 %v11836_v2 }
 0x460   :  { %7911 = vmatprep.subr.bf16.mxu0 %v11841_v3  ;;  %8685 = vmatprep.subr.bf16.mxu1 %v11844_v4 }
 0x463   :  { %7912 = vmatpush1.bf16.msra.mxu0 %v11839_v5  ;;  %8686 = vmatpush1.bf16.msra.mxu1 %v11842_v6 }
 0x464   :  { %7913 = vmatprep.subr.bf16.mxu0 %v11847_v7  ;;  %8687 = vmatprep.subr.bf16.mxu1 %v11850_v8 }
 0x467   :  { %7914 = vmatpush1.bf16.msra.mxu0 %v11845_v9  ;;  %8688 = vmatpush1.bf16.msra.mxu1 %v11848_v10 }
 0x468   :  { %7915 = vmatprep.subr.bf16.mxu0 %v11853_v11  ;;  %8689 = vmatprep.subr.bf16.mxu1 %v11856_v12 }
 0x46b   :  { %7916 = vmatpush1.bf16.msra.mxu0 %v11851_v13  ;;  %8690 = vmatpush1.bf16.msra.mxu1 %v11854_v14 }
 0x46c   :  { %7917 = vmatprep.subr.bf16.mxu0 %v11859_v15  ;;  %8691 = vmatprep.subr.bf16.mxu1 %v11862_v16 }
 0x46f   :  { %7918 = vmatpush1.bf16.msra.mxu0 %v11857_v17  ;;  %8692 = vmatpush1.bf16.msra.mxu1 %v11860_v18 }
 0x470   :  { %7919 = vmatprep.subr.bf16.mxu0 %v11865_v19  ;;  %8693 = vmatprep.subr.bf16.mxu1 %v11868_v20 }
 0x473   :  { %7920 = vmatpush1.bf16.msra.mxu0 %v11863_v21  ;;  %8694 = vmatpush1.bf16.msra.mxu1 %v11866_v22 }
 0x474   :  { %7921 = vmatprep.subr.bf16.mxu0 %v11871_v23  ;;  %8695 = vmatprep.subr.bf16.mxu1 %v11874_v24 }
 0x477   :  { %7922 = vmatpush1.bf16.msra.mxu0 %v11869_v25  ;;  %8696 = vmatpush1.bf16.msra.mxu1 %v11872_v26 }
 0x478   :  { %7923 = vmatprep.subr.bf16.mxu0 %v11877_v27  ;;  %8697 = vmatprep.subr.bf16.mxu1 %v11880_v28 }
 0x47b   :  { %7924 = vmatpush1.bf16.msra.mxu0 %v11875_v29  ;;  %8698 = vmatpush1.bf16.msra.mxu1 %v11878_v30 }
 0x47c   :  { %7925 = vmatprep.subr.bf16.mxu0 %v11883_v31  ;;  %8699 = vmatprep.subr.bf16.mxu1 %v11886_v32 }
 0x47f   :  { %7926 = vmatpush1.bf16.msra.mxu0 %v11881_v33  ;;  %8700 = vmatpush1.bf16.msra.mxu1 %v11884_v34 }
 0x482   :  { %7928 = vmatmul.mubr.bf16.vlgmr.msra.gmra.mrb[0].mxu0 %v11887_v35  ;;  %8702 = vmatmul.mubr.bf16.vlgmr.msra.gmra.mrb[0].mxu1 %v11887_v35 }
 0x555   :  { %v7929_v47 = vpop.f32.mrb[0].mxu0  ;;  %v8703_v48 = vpop.f32.mrb[0].mxu1 }
 0x556   :  { %v9964_v49 = vadd.f32 %v7929_v47, %v1207_v43  ;;  %v9968_v50 = vadd.f32 %v8703_v48, %v1215_v44  ;;  %v7931_v51 = vpop.f32.mrb[1].mxu0  ;;  %v8705_v52 = vpop.f32.mrb[1].mxu1 }
 0x557   :  { %v9965_v53 = vadd.f32 %v7931_v51, %v1211_v45  ;;  %v9969_v54 = vadd.f32 %v8705_v52, %v1219_v46  ;;  %v7933_v55 = vpop.f32.mrb[2].mxu0  ;;  %v8707_v56 = vpop.f32.mrb[2].mxu1 }
 0x558   :  { %vm8712_vm0 = vcmp.ge.f32.partialorder %v9964_v49, 0.0  ;;  %v8720_v57 = vmul.f32 0.2, %v9964_v49  ;;  %vm8714_vm1 = vcmp.ge.f32.partialorder %v9968_v50, 0.0  ;;  %v8722_v58 = vmul.f32 0.2, %v9968_v50 }
 0x559   :  { %vm8713_vm2 = vcmp.ge.f32.partialorder %v9965_v53, 0.0  ;;  %v8721_v59 = vmul.f32 0.2, %v9965_v53  ;;  %vm8715_vm3 = vcmp.ge.f32.partialorder %v9969_v54, 0.0  ;;  %v8723_v60 = vmul.f32 0.2, %v9969_v54 }
 0x55a   :  { %v8728_v61 = vsel %vm8712_vm0, %v9964_v49, %v8720_v57  ;;  %v8730_v62 = vsel %vm8714_vm1, %v9968_v50, %v8722_v58  ;;  %v9966_v63 = vadd.f32 %v7933_v55, %v1207_v43  ;;  %v9970_v0 = vadd.f32 %v8707_v56, %v1215_v44  ;;  %v7935_v1 = vpop.f32.mrb[3].mxu0  ;;  %v8709_v2 = vpop.f32.mrb[3].mxu1 }
 0x55b   :  { %v8729_v3 = vsel %vm8713_vm2, %v9965_v53, %v8721_v59  ;;  %v8731_v4 = vsel %vm8715_vm3, %v9969_v54, %v8723_v60  ;;  %v9967_v5 = vadd.f32 %v7935_v1, %v1211_v45  ;;  %v9971_v6 = vadd.f32 %v8709_v2, %v1219_v46 }
 0x55c   :  { %v9960_v7 = vpack.c.bf16 %v8729_v3, %v8728_v61  ;;  %v9961_v8 = vpack.c.bf16 %v8731_v4, %v8730_v62  ;;  %vm8716_vm4 = vcmp.ge.f32.partialorder %v9966_v63, 0.0  ;;  %v8724_v9 = vmul.f32 0.2, %v9966_v63 }
 0x55d   :  { %vm8718_vm5 = vcmp.ge.f32.partialorder %v9970_v0, 0.0  ;;  %v8726_v10 = vmul.f32 0.2, %v9970_v0  ;;  %vm8717_vm6 = vcmp.ge.f32.partialorder %v9967_v5, 0.0  ;;  %v8725_v11 = vmul.f32 0.2, %v9967_v5 }
 0x55e   :  { %8760 = vst [vmem:[%s15492_s3] sm:$0xff] %v9960_v7  ;;  %8761 = vst [vmem:[%s15492_s3 + $0x8] sm:$0xff] %v9961_v8  ;;  %v8732_v12 = vsel %vm8716_vm4, %v9966_v63, %v8724_v9  ;;  %vm8719_vm7 = vcmp.ge.f32.partialorder %v9971_v6, 0.0  ;;  %v8727_v13 = vmul.f32 0.2, %v9971_v6 }
 0x55f   :  { %v8734_v14 = vsel %vm8718_vm5, %v9970_v0, %v8726_v10  ;;  %v8733_v15 = vsel %vm8717_vm6, %v9967_v5, %v8725_v11 }
 0x560   :  { %v9962_v16 = vpack.c.bf16 %v8733_v15, %v8732_v12  ;;  %v8735_v17 = vsel %vm8719_vm7, %v9971_v6, %v8727_v13 }
 0x561   :  { %v9963_v18 = vpack.c.bf16 %v8735_v17, %v8734_v14 }
 0x562   :  { %8762 = vst [vmem:[%s15492_s3 + $0x10] sm:$0xff] %v9962_v16 }
 0x563   :  { %8763 = vst [vmem:[%s15492_s3 + $0x18] sm:$0xff] %v9963_v18 }

</bundles_post_ra>
